<compile_context>
chip_gen: v7x
topology: tpu7x:2x2x1
jax: 0.10.0
libtpu: 0.0.40
codegen_flags: <defaults>
</compile_context>

<pallas_src>
import functools
import math

import jax
import jax.numpy as jnp
from jax.experimental import pallas as pl
from jax.experimental.pallas import tpu as pltpu


_VMEM_LIMIT = 32 * 1024 * 1024  # fits every generation's scoped-VMEM budget (v7x: 64 MiB/TC)


def _cparams(n_parallel_axes):
    return pltpu.CompilerParams(
        dimension_semantics=("parallel",) * n_parallel_axes,
        vmem_limit_bytes=_VMEM_LIMIT,
    )


def _fixed(arr):
    """Full-array BlockSpec (weights: same block every grid step -> DMA'd once)."""
    zeros = (0,) * arr.ndim
    return pl.BlockSpec(arr.shape, lambda i, z=zeros: z)


# -----------------------------------------------------------------------------
# In-kernel helpers
# -----------------------------------------------------------------------------
def _ln(x, w, b, eps=1e-5):
    mu = jnp.mean(x, axis=-1, keepdims=True)
    xc = x - mu
    var = jnp.mean(xc * xc, axis=-1, keepdims=True)
    return xc * jax.lax.rsqrt(var + eps) * w + b


def _dot(a, b):
    return jnp.dot(a, b, preferred_element_type=jnp.float32)


def _dot_t(a, b):  # a @ b.T without an explicit transpose
    return jax.lax.dot_general(a, b, (((1,), (1,)), ((), ())),
                               preferred_element_type=jnp.float32)


def _rel_shift(ps, T):
    """Transformer-XL relative shift of a (T, T) score matrix.

    Reproduces the reference zero-pad + reshape view trick with static slices/concats
    (no in-kernel reshape):
      shifted[i, j] = ps[i, T-1-i+j]   for j <= i
                    = 0                for j == i+1
                    = ps[i+1, j-i-2]   for j >  i+1
    """
    rows = []
    for i in range(T):
        pieces = [ps[i:i + 1, T - 1 - i:T]]
        if i < T - 1:
            pieces.append(jnp.zeros((1, 1), ps.dtype))
            if T - i - 2 > 0:
                pieces.append(ps[i + 1:i + 2, 0:T - i - 2])
        rows.append(pieces[0] if len(pieces) == 1 else jnp.concatenate(pieces, axis=-1))
    return jnp.concatenate(rows, axis=0)


# -----------------------------------------------------------------------------
# Generic fused matmul + bias + activation (stem only)
# -----------------------------------------------------------------------------
def _mm_kernel(a_ref, w_ref, b_ref, o_ref, *, act):
    acc = _dot(a_ref[...], w_ref[...]) + b_ref[...]
    if act == "relu":
        acc = jnp.maximum(acc, 0.0)
    elif act == "swish":
        acc = acc * jax.nn.sigmoid(acc)
    o_ref[...] = acc


def matmul_bias_act(a, w, b=None, act="none", tm_max=512):
    """(M,K) @ (K,N) + bias, fused activation. M-tiled 'parallel' grid; K/N stay whole."""
    M, K = a.shape
    K2, N = w.shape
    assert K == K2
    if b is None:
        b = jnp.zeros((N,), jnp.float32)
    b2 = jnp.asarray(b, jnp.float32).reshape(1, N)

    Mp = ((M + 7) // 8) * 8
    tm = Mp if Mp <= tm_max else tm_max
    if Mp % tm:
        Mp = ((Mp + tm - 1) // tm) * tm
    a_p = a.astype(jnp.float32)
    if Mp != M:
        a_p = jnp.pad(a_p, ((0, Mp - M), (0, 0)))

    out = pl.pallas_call(
        functools.partial(_mm_kernel, act=act),
        grid=(Mp // tm,),
        in_specs=[
            pl.BlockSpec((tm, K), lambda i: (i, 0)),
            pl.BlockSpec((K, N), lambda i: (0, 0)),
            pl.BlockSpec((1, N), lambda i: (0, 0)),
        ],
        out_specs=pl.BlockSpec((tm, N), lambda i: (i, 0)),
        out_shape=jax.ShapeDtypeStruct((Mp, N), jnp.float32),
        compiler_params=_cparams(1),
    )(a_p, w.astype(jnp.float32), b2)
    return out[:M]


# -----------------------------------------------------------------------------
# ONE fused kernel: all conformer blocks + all prediction heads
# -----------------------------------------------------------------------------
def _encoder_heads_kernel(x_ref, pos_ref,
                          lnv_ref, ev_ref, fv_ref, ee_ref, ef_ref, fe_ref,
                          wc_ref, uv_ref, dw_ref,
                          hw1_ref, hb1_ref, hw2_ref, hb2_ref,
                          o_ref, *, num_layers, num_heads, head_dim, ksize):
    T, E = x_ref.shape
    H, dh = num_heads, head_dim
    x = x_ref[...]
    pos = pos_ref[...]

    for l in range(num_layers):                          # static unroll over layers
        ln = lambda i: lnv_ref[10 * l + i:10 * l + i + 1, :]    # (1, E)  LN rows
        ev = lambda i: ev_ref[8 * l + i:8 * l + i + 1, :]       # (1, E)  bias/BN rows
        fv = lambda i: fv_ref[3 * l + i:3 * l + i + 1, :]       # (1, 4E) wide bias rows

        # ---- FeedForward #1 (half-step residual): LN -> W1+Swish -> W2 ----
        h = _ln(x, ln(0), ln(1))
        h = _dot(h, ef_ref[2 * l + 0]) + fv(0)
        h = h * jax.nn.sigmoid(h)
        h = _dot(h, fe_ref[2 * l + 0]) + ev(0)
        x1 = x + 0.5 * h

        # ---- MMSA: LN -> fused q/k/v/pos proj -> relative attention -> out proj ----
        xn = _ln(x1, ln(2), ln(3))
        inp = jnp.concatenate([xn, x, pos], axis=-1)              # (T, 3E): q/k src, v src, pos
        qkvp = _dot(inp, wc_ref[l]) + fv(1)                       # (T, 4E), q pre-scaled
        u_all = uv_ref[2 * l + 0]                                 # (H, dh), pre-scaled
        v_all = uv_ref[2 * l + 1]
        ctx = []
        for hh in range(H):                                       # static unroll over heads
            q = qkvp[:, hh * dh:(hh + 1) * dh]
            k = qkvp[:, E + hh * dh:E + (hh + 1) * dh]
            v = qkvp[:, 2 * E + hh * dh:2 * E + (hh + 1) * dh]
            pe = qkvp[:, 3 * E + hh * dh:3 * E + (hh + 1) * dh]
            qu = q + u_all[hh:hh + 1, :]
            qv = q + v_all[hh:hh + 1, :]
            s = _dot_t(qu, k) + _rel_shift(_dot_t(qv, pe), T)     # (T, T)
            m = jnp.max(s, axis=-1, keepdims=True)
            e = jnp.exp(s - m)
            probs = e * pl.reciprocal(jnp.sum(e, axis=-1, keepdims=True), approx=True)
            ctx.append(_dot(probs, v))                            # (T, dh)
        ctx = jnp.concatenate(ctx, axis=-1)                       # (T, E)
        x2 = x1 + _dot(ctx, ee_ref[4 * l + 0]) + ev(1)            # MRCM residual

        # ---- Conv module: LN -> pw1+GLU -> depthwise+BN(eval)+Swish -> pw2 ----
        hc = _ln(x2, ln(4), ln(5))
        a = _dot(hc, ee_ref[4 * l + 1]) + ev(2)                   # GLU content half
        g = _dot(hc, ee_ref[4 * l + 2]) + ev(3)                   # GLU gate half
        hc = a * jax.nn.sigmoid(g)
        pad = (ksize - 1) // 2
        zr = jnp.zeros((pad, E), jnp.float32)
        hp = jnp.concatenate([zr, hc, zr], axis=0)                # 'same' time pad, in VMEM
        dwl = dw_ref[l]                                           # (K, E) depthwise taps
        acc = jnp.zeros((T, E), jnp.float32)
        for k in range(ksize):                                    # static unroll over taps
            acc = acc + hp[k:k + T, :] * dwl[k:k + 1, :]
        y = acc * ev(4) + ev(5)                                   # BatchNorm1d (eval stats)
        y = y * jax.nn.sigmoid(y)                                 # Swish
        x3 = x2 + _dot(y, ee_ref[4 * l + 3]) + ev(6)              # residual

        # ---- FeedForward #2 (half-step) + block-final LayerNorm ----
        h = _ln(x3, ln(6), ln(7))
        h = _dot(h, ef_ref[2 * l + 1]) + fv(2)
        h = h * jax.nn.sigmoid(h)
        h = _dot(h, fe_ref[2 * l + 1]) + ev(7)
        x = _ln(x3 + 0.5 * h, ln(8), ln(9))

    # ---- prediction heads (all fused): k=3 conv as shifted matmuls + ReLU + 1x1 conv ----
    n_hc = hb1_ref.shape[1]
    zrow = jnp.zeros((1, E), jnp.float32)
    xp = jnp.concatenate([zrow, x, zrow], axis=0)                 # (T+2, E), pad=1
    acc = jnp.zeros((T, n_hc), jnp.float32) + hb1_ref[...]
    for k in range(3):                                            # no HBM im2col
        acc = acc + _dot(xp[k:k + T, :], hw1_ref[k])
    hrelu = jnp.maximum(acc, 0.0)
    o_ref[...] = _dot(hrelu, hw2_ref[...]) + hb2_ref[...]


def encoder_heads_forward(x, pos, ep, hfp, *, num_heads, ksize, num_layers):
    B, T, E = x.shape
    dh = E // num_heads
    c_tot = hfp['w2'].shape[1]
    return pl.pallas_call(
        functools.partial(_encoder_heads_kernel, num_layers=num_layers,
                          num_heads=num_heads, head_dim=dh, ksize=ksize),
        grid=(B,),
        in_specs=[
            pl.BlockSpec((None, T, E), lambda i: (i, 0, 0)),      # activations, per batch
            _fixed(pos),
            _fixed(ep['lnv']), _fixed(ep['ev']), _fixed(ep['fv']),
            _fixed(ep['ee']), _fixed(ep['ef']), _fixed(ep['fe']),
            _fixed(ep['wc']), _fixed(ep['uv']), _fixed(ep['dw']),
            _fixed(hfp['w1']), _fixed(hfp['b1']),
            _fixed(hfp['w2']), _fixed(hfp['b2']),
        ],
        out_specs=pl.BlockSpec((None, T, c_tot), lambda i: (i, 0, 0)),
        out_shape=jax.ShapeDtypeStruct((B, T, c_tot), jnp.float32),
        compiler_params=_cparams(1),
    )(x, pos, ep['lnv'], ep['ev'], ep['fv'], ep['ee'], ep['ef'], ep['fe'],
      ep['wc'], ep['uv'], ep['dw'], hfp['w1'], hfp['b1'], hfp['w2'], hfp['b2'])


# -----------------------------------------------------------------------------
# Model glue (plain JAX): parameter prep, positional encoding, im2col for the stem
# -----------------------------------------------------------------------------
def positional_encoding(length, d_model):
    position = jnp.arange(length, dtype=jnp.float32)[:, None]
    div_term = jnp.exp(jnp.arange(0, d_model, 2, dtype=jnp.float32)
                       * -(math.log(10000.0) / d_model))
    pe = jnp.zeros((length, d_model), jnp.float32)
    pe = pe.at[:, 0::2].set(jnp.sin(position * div_term))
    pe = pe.at[:, 1::2].set(jnp.cos(position * div_term))
    return pe


def im2col_2d(x, kh, kw, stride):
    B, H, W, C = x.shape
    Ho = (H - kh) // stride + 1
    Wo = (W - kw) // stride + 1
    cols = []
    for i in range(kh):
        for j in range(kw):
            cols.append(x[:, i:i + stride * Ho:stride, j:j + stride * Wo:stride, :])
    patches = jnp.stack(cols, axis=3)                       # (B, Ho, Wo, kh*kw, C)
    return patches.reshape(B, Ho, Wo, kh * kw * C), Ho, Wo


def init_params(key, settings, heads, head_conv, in_chans):
    input_dim = settings['input_dim']
    E = settings['encoder_dim']
    H = settings['num_attention_heads']
    K = settings['conv_kernel_size']
    P = settings['patch_size']
    L = settings['num_encoder_layers']
    ffe = 4                                   # FFN expansion (matches 4E attention packing)
    dh = E // H
    sub_f = ((input_dim - 1) // 2 - 1) // 2
    sc = 1.0 / math.sqrt(E)                   # 1/sqrt(d_model), folded into weights

    keys = iter(jax.random.split(key, 8192))

    def w(*shape, scale=0.05):
        return scale * jax.random.normal(next(keys), shape, dtype=jnp.float32)

    params = {
        # TODO(synk): PatchEmbed source not provided; assumed Conv1d(in_chans, input_dim,
        #             kernel=patch_size, stride=patch_size) projection (standard form).
        'patch_w': w(P * in_chans, input_dim), 'patch_b': w(input_dim),
        'sub_w1': w(3 * 3 * 1, E), 'sub_b1': w(E),
        'sub_w2': w(3 * 3 * E, E), 'sub_b2': w(E),
        'proj_w': w(E * sub_f, E), 'proj_b': jnp.zeros((E,), jnp.float32),
    }

    ones = jnp.ones((E,), jnp.float32)
    zeros = jnp.zeros((E,), jnp.float32)
    bn_scale = jnp.full((E,), 1.0 / math.sqrt(1.0 + 1e-5), jnp.float32)  # BN eval, init stats

    lnv, ev, fv, ee, ef, fe, wc, uv, dw = [], [], [], [], [], [], [], [], []
    for _ in range(L):
        # fused, lane-dense (3E, 4E) q/k/v/pos projection (block-diagonal weight)
        wq, wk, wv_, wp_ = w(E, E), w(E, E), w(E, E), w(E, E)
        w_comb = jnp.zeros((3 * E, 4 * E), jnp.float32)
        w_comb = w_comb.at[0:E, 0:E].set(wq * sc)             # q (from LN'd x), pre-scaled
        w_comb = w_comb.at[0:E, E:2 * E].set(wk)              # k (from LN'd x)
        w_comb = w_comb.at[E:2 * E, 2 * E:3 * E].set(wv_)     # v (from pre_block)
        w_comb = w_comb.at[2 * E:3 * E, 3 * E:4 * E].set(wp_)  # pos (no bias)
        b_comb = jnp.zeros((4 * E,), jnp.float32)

        pw1_w = w(E, 2 * E)                                   # conv pointwise-1, split for GLU

        lnv.append(jnp.stack([ones, zeros,       # ff1 LN
                              ones, zeros,       # mhsa LN
                              ones, zeros,       # conv LN
                              ones, zeros,       # ff2 LN
                              ones, zeros]))     # block-final LN
        ev.append(jnp.stack([zeros,              # ff1 b2
                             zeros,              # attn out-proj bias
                             zeros, zeros,       # GLU content / gate biases
                             bn_scale, zeros,    # BN scale / shift
                             zeros,              # conv pw2 bias
                             zeros]))            # ff2 b2
        fv.append(jnp.stack([jnp.zeros((ffe * E,), jnp.float32),    # ff1 b1
                             b_comb,                                # fused qkvp bias
                             jnp.zeros((ffe * E,), jnp.float32)]))  # ff2 b1
        ee.append(jnp.stack([w(E, E),            # attn out proj
                             pw1_w[:, :E],       # GLU content half
                             pw1_w[:, E:],       # GLU gate half
                             w(E, E)]))          # conv pw2
        ef.append(jnp.stack([w(E, ffe * E), w(E, ffe * E)]))        # ff1_w1, ff2_w1
        fe.append(jnp.stack([w(ffe * E, E), w(ffe * E, E)]))        # ff1_w2, ff2_w2
        wc.append(w_comb)
        uv.append(jnp.stack([w(H, dh) * sc, w(H, dh) * sc]))        # u, v (pre-scaled)
        dw.append(w(K, E))                                          # depthwise taps

    params['encoder'] = dict(
        lnv=jnp.concatenate(lnv, axis=0),        # (L*10, E)
        ev=jnp.concatenate(ev, axis=0),          # (L*8, E)
        fv=jnp.concatenate(fv, axis=0),          # (L*3, 4E)
        ee=jnp.concatenate(ee, axis=0),          # (L*4, E, E)
        ef=jnp.concatenate(ef, axis=0),          # (L*2, E, 4E)
        fe=jnp.concatenate(fe, axis=0),          # (L*2, 4E, E)
        wc=jnp.stack(wc, axis=0),                # (L, 3E, 4E)
        uv=jnp.concatenate(uv, axis=0),          # (L*2, H, dh)
        dw=jnp.stack(dw, axis=0),                # (L, K, E)
    )

    # --- all prediction heads fused into one weight set ---
    names = list(heads.keys())
    n = len(names)
    c_tot = sum(heads[h_] for h_ in names)
    w1_all = jnp.concatenate([w(3, E, head_conv) for _ in names], axis=-1)   # (3, E, n*Hc)
    w2_all = jnp.zeros((n * head_conv, c_tot), jnp.float32)                  # block-diag
    b1_parts, b2_parts = [], []
    off = 0
    for idx, head in enumerate(names):
        classes = heads[head]
        if 'hm' in head:
            b1_parts.append(w(head_conv))                                    # default init
            b2_parts.append(jnp.full((classes,), -2.19, jnp.float32))        # fc[-1].bias
        else:
            b1_parts.append(jnp.zeros((head_conv,), jnp.float32))            # fill_fc_weights
            b2_parts.append(jnp.zeros((classes,), jnp.float32))
        w2_all = w2_all.at[idx * head_conv:(idx + 1) * head_conv,
                           off:off + classes].set(w(head_conv, classes))
        off += classes
    params['heads_fused'] = dict(
        w1=w1_all, b1=jnp.concatenate(b1_parts).reshape(1, -1),
        w2=w2_all, b2=jnp.concatenate(b2_parts).reshape(1, -1))
    return params


def mconforod_forward(params, inputs, input_lengths, settings, heads, head_conv):
    """inputs: (B, T_raw, in_chans)  (PyTorch transposes to NCL for PatchEmbed internally)."""
    del head_conv  # shapes are carried by the fused head weights
    B, T_raw, Cin = inputs.shape
    P = settings['patch_size']
    E = settings['encoder_dim']
    H = settings['num_attention_heads']
    K = settings['conv_kernel_size']
    L = settings['num_encoder_layers']

    # --- PatchEmbed: Conv1d(Cin, input_dim, kernel=stride=P) as one matmul ---
    Tp = T_raw // P
    xp = inputs[:, :Tp * P, :].reshape(B * Tp, P * Cin)
    x = matmul_bias_act(xp, params['patch_w'], params['patch_b']).reshape(
        B, Tp, settings['input_dim'])

    # --- Conv2dSubsampling: two (k=3, s=2) Conv2d + ReLU as fused im2col matmuls ---
    # (one-time stem on a tiny map; im2col stays in JAX, conv+bias+ReLU fused in Pallas)
    img = x[..., None]                                       # (B, Tp, input_dim, 1)
    pat, H1, W1 = im2col_2d(img, 3, 3, 2)
    h = matmul_bias_act(pat.reshape(B * H1 * W1, 9), params['sub_w1'], params['sub_b1'],
                        act='relu').reshape(B, H1, W1, E)
    pat, H2, W2 = im2col_2d(h, 3, 3, 2)
    h = matmul_bias_act(pat.reshape(B * H2 * W2, 9 * E), params['sub_w2'], params['sub_b2'],
                        act='relu').reshape(B, H2, W2, E)
    h = h.transpose(0, 1, 3, 2).reshape(B, H2, E * W2)       # (B,C,T,F)->(B,T,C*F)
    _output_lengths = (input_lengths >> 2) - 1               # computed but unused (as in ref)

    # --- input projection (Linear + Dropout) ---
    out = matmul_bias_act(h.reshape(B * H2, E * W2), params['proj_w'],
                          params['proj_b']).reshape(B, H2, E)

    # --- all conformer blocks + all heads: ONE fused Pallas kernel ---
    T = H2
    pos = positional_encoding(T, E)
    z_all = encoder_heads_forward(out, pos, params['encoder'], params['heads_fused'],
                                  num_heads=H, ksize=K, num_layers=L)   # (B, T, sum(classes))

    z = {}
    off = 0
    for head in heads:
        classes = heads[head]
        z[head] = z_all[:, :, off:off + classes].transpose(0, 2, 1)     # (B, classes, T)
        off += classes
    return z


# -----------------------------------------------------------------------------
if __name__ == "__main__":
    settings = dict(input_dim=16, encoder_dim=32, num_encoder_layers=2,
                    num_attention_heads=4, conv_kernel_size=7, patch_size=4)
    heads = {'hm': 3, 'wh': 2}
    head_conv = 16
    in_chans = 2
    B, T_raw = 2, 144

    key = jax.random.PRNGKey(0)
    pkey, xkey = jax.random.split(key)
    params = init_params(pkey, settings, heads, head_conv, in_chans)
    inputs = jax.random.normal(xkey, (B, T_raw, in_chans), dtype=jnp.float32)
    input_lengths = jnp.array([T_raw, T_raw], dtype=jnp.int32)

    fwd = jax.jit(functools.partial(mconforod_forward, settings=settings,
                                    heads=heads, head_conv=head_conv))
    z = fwd(params, inputs, input_lengths)
    z = jax.tree_util.tree_map(jax.block_until_ready, z)

    expected_T = (((T_raw // settings['patch_size']) - 1) // 2 - 1) // 2
    for head, classes in heads.items():
        assert z[head].shape == (B, classes, expected_T), z[head].shape
        assert bool(jnp.all(jnp.isfinite(z[head])))
    print("KERNEL_OK")
</pallas_src>

<mosaic_0001>
module attributes {stable_mosaic.version = 11 : i64} {
  func.func @_mm_kernel(%arg0: i32, %arg1: memref<72x8xf32, #tpu.memory_space<vmem>>, %arg2: memref<8x16xf32, #tpu.memory_space<vmem>>, %arg3: memref<1x16xf32, #tpu.memory_space<vmem>>, %arg4: memref<72x16xf32, #tpu.memory_space<vmem>>) attributes {dimension_semantics = [#tpu.dimension_semantics<parallel>], iteration_bounds = array<i64: 1>, scalar_prefetch = 0 : i64, scratch_operands = 0 : i64, tpu.core_type = #tpu.core_type<tc>, window_params = [{transform_indices = @transform_0, window_bounds = array<i64: 72, 8>}, {pipeline_mode = #tpu.pipeline_mode<synchronous>, transform_indices = @transform_1, window_bounds = array<i64: 8, 16>}, {pipeline_mode = #tpu.pipeline_mode<synchronous>, transform_indices = @transform_2, window_bounds = array<i64: 1, 16>}, {transform_indices = @transform_3, window_bounds = array<i64: 72, 16>}]} {
    %c0 = arith.constant 0 : index
    %c0_0 = arith.constant 0 : index
    %0 = vector.load %arg1[%c0, %c0_0] : memref<72x8xf32, #tpu.memory_space<vmem>>, vector<72x8xf32>
    %c0_1 = arith.constant 0 : index
    %c0_2 = arith.constant 0 : index
    %1 = vector.load %arg2[%c0_1, %c0_2] : memref<8x16xf32, #tpu.memory_space<vmem>>, vector<8x16xf32>
    %cst = arith.constant dense<0.000000e+00> : vector<72x16xf32>
    %2 = tpu.matmul %0, %1, %cst {dimension_numbers = #tpu.dot_dimension_numbers<[1], [0], [0], [1], [0, 0, 1, 1], [], []>} : vector<72x8xf32>, vector<8x16xf32>, vector<72x16xf32> -> vector<72x16xf32>
    %c0_3 = arith.constant 0 : index
    %c0_4 = arith.constant 0 : index
    %3 = vector.load %arg3[%c0_3, %c0_4] : memref<1x16xf32, #tpu.memory_space<vmem>>, vector<1x16xf32>
    %4 = vector.broadcast %3 : vector<1x16xf32> to vector<72x16xf32>
    %5 = arith.addf %2, %4 : vector<72x16xf32>
    %c0_5 = arith.constant 0 : index
    %c0_6 = arith.constant 0 : index
    %6 = vector.load %arg4[%c0_5, %c0_6] : memref<72x16xf32, #tpu.memory_space<vmem>>, vector<72x16xf32>
    tpu.vector_store %arg4[%c0_5, %c0_6], %5 {strides = array<i32>} : memref<72x16xf32, #tpu.memory_space<vmem>>, vector<72x16xf32>,
    return
  }
  func.func @transform_0(%arg0: i32) -> (i32, i32) {
    %c0_i32 = arith.constant 0 : i32
    %c0_i32_0 = arith.constant 0 : i32
    return %arg0, %c0_i32 : i32, i32
  }
  func.func @transform_1(%arg0: i32) -> (i32, i32) {
    %c0_i32 = arith.constant 0 : i32
    %c0_i32_0 = arith.constant 0 : i32
    %c0_i32_1 = arith.constant 0 : i32
    return %c0_i32, %c0_i32_0 : i32, i32
  }
  func.func @transform_2(%arg0: i32) -> (i32, i32) {
    %c0_i32 = arith.constant 0 : i32
    %c0_i32_0 = arith.constant 0 : i32
    %c0_i32_1 = arith.constant 0 : i32
    return %c0_i32, %c0_i32_0 : i32, i32
  }
  func.func @transform_3(%arg0: i32) -> (i32, i32) {
    %c0_i32 = arith.constant 0 : i32
    %c0_i32_0 = arith.constant 0 : i32
    return %arg0, %c0_i32 : i32, i32
  }
}

module attributes {stable_mosaic.version = 11 : i64} {
  func.func @_mm_kernel(%arg0: i32, %arg1: memref<240x9xf32, #tpu.memory_space<vmem>>, %arg2: memref<9x32xf32, #tpu.memory_space<vmem>>, %arg3: memref<1x32xf32, #tpu.memory_space<vmem>>, %arg4: memref<240x32xf32, #tpu.memory_space<vmem>>) attributes {dimension_semantics = [#tpu.dimension_semantics<parallel>], iteration_bounds = array<i64: 1>, scalar_prefetch = 0 : i64, scratch_operands = 0 : i64, tpu.core_type = #tpu.core_type<tc>, window_params = [{transform_indices = @transform_0, window_bounds = array<i64: 240, 9>}, {pipeline_mode = #tpu.pipeline_mode<synchronous>, transform_indices = @transform_1, window_bounds = array<i64: 9, 32>}, {pipeline_mode = #tpu.pipeline_mode<synchronous>, transform_indices = @transform_2, window_bounds = array<i64: 1, 32>}, {transform_indices = @transform_3, window_bounds = array<i64: 240, 32>}]} {
    %c0 = arith.constant 0 : index
    %c0_0 = arith.constant 0 : index
    %0 = vector.load %arg1[%c0, %c0_0] : memref<240x9xf32, #tpu.memory_space<vmem>>, vector<240x9xf32>
    %c0_1 = arith.constant 0 : index
    %c0_2 = arith.constant 0 : index
    %1 = vector.load %arg2[%c0_1, %c0_2] : memref<9x32xf32, #tpu.memory_space<vmem>>, vector<9x32xf32>
    %cst = arith.constant dense<0.000000e+00> : vector<240x32xf32>
    %2 = tpu.matmul %0, %1, %cst {dimension_numbers = #tpu.dot_dimension_numbers<[1], [0], [0], [1], [0, 0, 1, 1], [], []>} : vector<240x9xf32>, vector<9x32xf32>, vector<240x32xf32> -> vector<240x32xf32>
    %c0_3 = arith.constant 0 : index
    %c0_4 = arith.constant 0 : index
    %3 = vector.load %arg3[%c0_3, %c0_4] : memref<1x32xf32, #tpu.memory_space<vmem>>, vector<1x32xf32>
    %4 = vector.broadcast %3 : vector<1x32xf32> to vector<240x32xf32>
    %5 = arith.addf %2, %4 : vector<240x32xf32>
    %cst_5 = arith.constant 0.000000e+00 : f32
    %6 = vector.broadcast %cst_5 : f32 to vector<240x32xf32>
    %7 = arith.maximumf %5, %6 : vector<240x32xf32>
    %c0_6 = arith.constant 0 : index
    %c0_7 = arith.constant 0 : index
    %8 = vector.load %arg4[%c0_6, %c0_7] : memref<240x32xf32, #tpu.memory_space<vmem>>, vector<240x32xf32>
    tpu.vector_store %arg4[%c0_6, %c0_7], %7 {strides = array<i32>} : memref<240x32xf32, #tpu.memory_space<vmem>>, vector<240x32xf32>,
    return
  }
  func.func @transform_0(%arg0: i32) -> (i32, i32) {
    %c0_i32 = arith.constant 0 : i32
    %c0_i32_0 = arith.constant 0 : i32
    return %arg0, %c0_i32 : i32, i32
  }
  func.func @transform_1(%arg0: i32) -> (i32, i32) {
    %c0_i32 = arith.constant 0 : i32
    %c0_i32_0 = arith.constant 0 : i32
    %c0_i32_1 = arith.constant 0 : i32
    return %c0_i32, %c0_i32_0 : i32, i32
  }
  func.func @transform_2(%arg0: i32) -> (i32, i32) {
    %c0_i32 = arith.constant 0 : i32
    %c0_i32_0 = arith.constant 0 : i32
    %c0_i32_1 = arith.constant 0 : i32
    return %c0_i32, %c0_i32_0 : i32, i32
  }
  func.func @transform_3(%arg0: i32) -> (i32, i32) {
    %c0_i32 = arith.constant 0 : i32
    %c0_i32_0 = arith.constant 0 : i32
    return %arg0, %c0_i32 : i32, i32
  }
}

module attributes {stable_mosaic.version = 11 : i64} {
  func.func @_mm_kernel(%arg0: i32, %arg1: memref<48x288xf32, #tpu.memory_space<vmem>>, %arg2: memref<288x32xf32, #tpu.memory_space<vmem>>, %arg3: memref<1x32xf32, #tpu.memory_space<vmem>>, %arg4: memref<48x32xf32, #tpu.memory_space<vmem>>) attributes {dimension_semantics = [#tpu.dimension_semantics<parallel>], iteration_bounds = array<i64: 1>, scalar_prefetch = 0 : i64, scratch_operands = 0 : i64, tpu.core_type = #tpu.core_type<tc>, window_params = [{transform_indices = @transform_0, window_bounds = array<i64: 48, 288>}, {pipeline_mode = #tpu.pipeline_mode<synchronous>, transform_indices = @transform_1, window_bounds = array<i64: 288, 32>}, {pipeline_mode = #tpu.pipeline_mode<synchronous>, transform_indices = @transform_2, window_bounds = array<i64: 1, 32>}, {transform_indices = @transform_3, window_bounds = array<i64: 48, 32>}]} {
    %c0 = arith.constant 0 : index
    %c0_0 = arith.constant 0 : index
    %0 = vector.load %arg1[%c0, %c0_0] : memref<48x288xf32, #tpu.memory_space<vmem>>, vector<48x288xf32>
    %c0_1 = arith.constant 0 : index
    %c0_2 = arith.constant 0 : index
    %1 = vector.load %arg2[%c0_1, %c0_2] : memref<288x32xf32, #tpu.memory_space<vmem>>, vector<288x32xf32>
    %cst = arith.constant dense<0.000000e+00> : vector<48x32xf32>
    %2 = tpu.matmul %0, %1, %cst {dimension_numbers = #tpu.dot_dimension_numbers<[1], [0], [0], [1], [0, 0, 1, 1], [], []>} : vector<48x288xf32>, vector<288x32xf32>, vector<48x32xf32> -> vector<48x32xf32>
    %c0_3 = arith.constant 0 : index
    %c0_4 = arith.constant 0 : index
    %3 = vector.load %arg3[%c0_3, %c0_4] : memref<1x32xf32, #tpu.memory_space<vmem>>, vector<1x32xf32>
    %4 = vector.broadcast %3 : vector<1x32xf32> to vector<48x32xf32>
    %5 = arith.addf %2, %4 : vector<48x32xf32>
    %cst_5 = arith.constant 0.000000e+00 : f32
    %6 = vector.broadcast %cst_5 : f32 to vector<48x32xf32>
    %7 = arith.maximumf %5, %6 : vector<48x32xf32>
    %c0_6 = arith.constant 0 : index
    %c0_7 = arith.constant 0 : index
    %8 = vector.load %arg4[%c0_6, %c0_7] : memref<48x32xf32, #tpu.memory_space<vmem>>, vector<48x32xf32>
    tpu.vector_store %arg4[%c0_6, %c0_7], %7 {strides = array<i32>} : memref<48x32xf32, #tpu.memory_space<vmem>>, vector<48x32xf32>,
    return
  }
  func.func @transform_0(%arg0: i32) -> (i32, i32) {
    %c0_i32 = arith.constant 0 : i32
    %c0_i32_0 = arith.constant 0 : i32
    return %arg0, %c0_i32 : i32, i32
  }
  func.func @transform_1(%arg0: i32) -> (i32, i32) {
    %c0_i32 = arith.constant 0 : i32
    %c0_i32_0 = arith.constant 0 : i32
    %c0_i32_1 = arith.constant 0 : i32
    return %c0_i32, %c0_i32_0 : i32, i32
  }
  func.func @transform_2(%arg0: i32) -> (i32, i32) {
    %c0_i32 = arith.constant 0 : i32
    %c0_i32_0 = arith.constant 0 : i32
    %c0_i32_1 = arith.constant 0 : i32
    return %c0_i32, %c0_i32_0 : i32, i32
  }
  func.func @transform_3(%arg0: i32) -> (i32, i32) {
    %c0_i32 = arith.constant 0 : i32
    %c0_i32_0 = arith.constant 0 : i32
    return %arg0, %c0_i32 : i32, i32
  }
}

module attributes {stable_mosaic.version = 11 : i64} {
  func.func @_mm_kernel(%arg0: i32, %arg1: memref<16x96xf32, #tpu.memory_space<vmem>>, %arg2: memref<96x32xf32, #tpu.memory_space<vmem>>, %arg3: memref<1x32xf32, #tpu.memory_space<vmem>>, %arg4: memref<16x32xf32, #tpu.memory_space<vmem>>) attributes {dimension_semantics = [#tpu.dimension_semantics<parallel>], iteration_bounds = array<i64: 1>, scalar_prefetch = 0 : i64, scratch_operands = 0 : i64, tpu.core_type = #tpu.core_type<tc>, window_params = [{transform_indices = @transform_0, window_bounds = array<i64: 16, 96>}, {pipeline_mode = #tpu.pipeline_mode<synchronous>, transform_indices = @transform_1, window_bounds = array<i64: 96, 32>}, {pipeline_mode = #tpu.pipeline_mode<synchronous>, transform_indices = @transform_2, window_bounds = array<i64: 1, 32>}, {transform_indices = @transform_3, window_bounds = array<i64: 16, 32>}]} {
    %c0 = arith.constant 0 : index
    %c0_0 = arith.constant 0 : index
    %0 = vector.load %arg1[%c0, %c0_0] : memref<16x96xf32, #tpu.memory_space<vmem>>, vector<16x96xf32>
    %c0_1 = arith.constant 0 : index
    %c0_2 = arith.constant 0 : index
    %1 = vector.load %arg2[%c0_1, %c0_2] : memref<96x32xf32, #tpu.memory_space<vmem>>, vector<96x32xf32>
    %cst = arith.constant dense<0.000000e+00> : vector<16x32xf32>
    %2 = tpu.matmul %0, %1, %cst {dimension_numbers = #tpu.dot_dimension_numbers<[1], [0], [0], [1], [0, 0, 1, 1], [], []>} : vector<16x96xf32>, vector<96x32xf32>, vector<16x32xf32> -> vector<16x32xf32>
    %c0_3 = arith.constant 0 : index
    %c0_4 = arith.constant 0 : index
    %3 = vector.load %arg3[%c0_3, %c0_4] : memref<1x32xf32, #tpu.memory_space<vmem>>, vector<1x32xf32>
    %4 = vector.broadcast %3 : vector<1x32xf32> to vector<16x32xf32>
    %5 = arith.addf %2, %4 : vector<16x32xf32>
    %c0_5 = arith.constant 0 : index
    %c0_6 = arith.constant 0 : index
    %6 = vector.load %arg4[%c0_5, %c0_6] : memref<16x32xf32, #tpu.memory_space<vmem>>, vector<16x32xf32>
    tpu.vector_store %arg4[%c0_5, %c0_6], %5 {strides = array<i32>} : memref<16x32xf32, #tpu.memory_space<vmem>>, vector<16x32xf32>,
    return
  }
  func.func @transform_0(%arg0: i32) -> (i32, i32) {
    %c0_i32 = arith.constant 0 : i32
    %c0_i32_0 = arith.constant 0 : i32
    return %arg0, %c0_i32 : i32, i32
  }
  func.func @transform_1(%arg0: i32) -> (i32, i32) {
    %c0_i32 = arith.constant 0 : i32
    %c0_i32_0 = arith.constant 0 : i32
    %c0_i32_1 = arith.constant 0 : i32
    return %c0_i32, %c0_i32_0 : i32, i32
  }
  func.func @transform_2(%arg0: i32) -> (i32, i32) {
    %c0_i32 = arith.constant 0 : i32
    %c0_i32_0 = arith.constant 0 : i32
    %c0_i32_1 = arith.constant 0 : i32
    return %c0_i32, %c0_i32_0 : i32, i32
  }
  func.func @transform_3(%arg0: i32) -> (i32, i32) {
    %c0_i32 = arith.constant 0 : i32
    %c0_i32_0 = arith.constant 0 : i32
    return %arg0, %c0_i32 : i32, i32
  }
}

module attributes {stable_mosaic.version = 11 : i64} {
  func.func @_encoder_heads_kernel(%arg0: i32, %arg1: memref<1x8x32xf32, #tpu.memory_space<vmem>>, %arg2: memref<8x32xf32, #tpu.memory_space<vmem>>, %arg3: memref<20x32xf32, #tpu.memory_space<vmem>>, %arg4: memref<16x32xf32, #tpu.memory_space<vmem>>, %arg5: memref<6x128xf32, #tpu.memory_space<vmem>>, %arg6: memref<8x32x32xf32, #tpu.memory_space<vmem>>, %arg7: memref<4x32x128xf32, #tpu.memory_space<vmem>>, %arg8: memref<4x128x32xf32, #tpu.memory_space<vmem>>, %arg9: memref<2x96x128xf32, #tpu.memory_space<vmem>>, %arg10: memref<4x4x8xf32, #tpu.memory_space<vmem>>, %arg11: memref<2x7x32xf32, #tpu.memory_space<vmem>>, %arg12: memref<3x32x32xf32, #tpu.memory_space<vmem>>, %arg13: memref<1x32xf32, #tpu.memory_space<vmem>>, %arg14: memref<32x5xf32, #tpu.memory_space<vmem>>, %arg15: memref<1x5xf32, #tpu.memory_space<vmem>>, %arg16: memref<1x8x5xf32, #tpu.memory_space<vmem>>) attributes {dimension_semantics = [#tpu.dimension_semantics<parallel>], iteration_bounds = array<i64: 2>, scalar_prefetch = 0 : i64, scratch_operands = 0 : i64, tpu.core_type = #tpu.core_type<tc>, window_params = [{transform_indices = @transform_0, window_bounds = array<i64: 1, 8, 32>}, {pipeline_mode = #tpu.pipeline_mode<synchronous>, transform_indices = @transform_1, window_bounds = array<i64: 8, 32>}, {pipeline_mode = #tpu.pipeline_mode<synchronous>, transform_indices = @transform_2, window_bounds = array<i64: 20, 32>}, {pipeline_mode = #tpu.pipeline_mode<synchronous>, transform_indices = @transform_3, window_bounds = array<i64: 16, 32>}, {pipeline_mode = #tpu.pipeline_mode<synchronous>, transform_indices = @transform_4, window_bounds = array<i64: 6, 128>}, {pipeline_mode = #tpu.pipeline_mode<synchronous>, transform_indices = @transform_5, window_bounds = array<i64: 8, 32, 32>}, {pipeline_mode = #tpu.pipeline_mode<synchronous>, transform_indices = @transform_6, window_bounds = array<i64: 4, 32, 128>}, {pipeline_mode = #tpu.pipeline_mode<synchronous>, transform_indices = @transform_7, window_bounds = array<i64: 4, 128, 32>}, {pipeline_mode = #tpu.pipeline_mode<synchronous>, transform_indices = @transform_8, window_bounds = array<i64: 2, 96, 128>}, {pipeline_mode = #tpu.pipeline_mode<synchronous>, transform_indices = @transform_9, window_bounds = array<i64: 4, 4, 8>}, {pipeline_mode = #tpu.pipeline_mode<synchronous>, transform_indices = @transform_10, window_bounds = array<i64: 2, 7, 32>}, {pipeline_mode = #tpu.pipeline_mode<synchronous>, transform_indices = @transform_11, window_bounds = array<i64: 3, 32, 32>}, {pipeline_mode = #tpu.pipeline_mode<synchronous>, transform_indices = @transform_12, window_bounds = array<i64: 1, 32>}, {pipeline_mode = #tpu.pipeline_mode<synchronous>, transform_indices = @transform_13, window_bounds = array<i64: 32, 5>}, {pipeline_mode = #tpu.pipeline_mode<synchronous>, transform_indices = @transform_14, window_bounds = array<i64: 1, 5>}, {transform_indices = @transform_15, window_bounds = array<i64: 1, 8, 5>}]} {
    %c0 = arith.constant 0 : index
    %c0_0 = arith.constant 0 : index
    %c0_1 = arith.constant 0 : index
    %0 = vector.load %arg1[%c0, %c0_0, %c0_1] : memref<1x8x32xf32, #tpu.memory_space<vmem>>, vector<1x8x32xf32>
    %1 = vector.shape_cast %0 : vector<1x8x32xf32> to vector<8x32xf32>
    %c0_2 = arith.constant 0 : index
    %c0_3 = arith.constant 0 : index
    %2 = vector.load %arg2[%c0_2, %c0_3] : memref<8x32xf32, #tpu.memory_space<vmem>>, vector<8x32xf32>
    %c0_4 = arith.constant 0 : index
    %c0_5 = arith.constant 0 : index
    %3 = vector.load %arg3[%c0_4, %c0_5] : memref<20x32xf32, #tpu.memory_space<vmem>>, vector<1x32xf32>
    %c1 = arith.constant 1 : index
    %c0_6 = arith.constant 0 : index
    %4 = vector.load %arg3[%c1, %c0_6] : memref<20x32xf32, #tpu.memory_space<vmem>>, vector<1x32xf32>
    %cst = arith.constant dense<0.000000e+00> : vector<8xf32>
    %5 = vector.multi_reduction <add>, %1, %cst [1] : vector<8x32xf32> to vector<8xf32>
    %6 = vector.shape_cast %5 : vector<8xf32> to vector<8x1xf32>
    %cst_7 = arith.constant 3.200000e+01 : f32
    %7 = vector.broadcast %cst_7 : f32 to vector<8x1xf32>
    %8 = arith.divf %6, %7 : vector<8x1xf32>
    %9 = vector.broadcast %8 : vector<8x1xf32> to vector<8x32xf32>
    %10 = arith.subf %1, %9 : vector<8x32xf32>
    %11 = arith.mulf %10, %10 : vector<8x32xf32>
    %cst_8 = arith.constant dense<0.000000e+00> : vector<8xf32>
    %12 = vector.multi_reduction <add>, %11, %cst_8 [1] : vector<8x32xf32> to vector<8xf32>
    %13 = vector.shape_cast %12 : vector<8xf32> to vector<8x1xf32>
    %cst_9 = arith.constant 3.200000e+01 : f32
    %14 = vector.broadcast %cst_9 : f32 to vector<8x1xf32>
    %15 = arith.divf %13, %14 : vector<8x1xf32>
    %cst_10 = arith.constant 9.99999974E-6 : f32
    %16 = vector.broadcast %cst_10 : f32 to vector<8x1xf32>
    %17 = arith.addf %15, %16 : vector<8x1xf32>
    %18 = math.rsqrt %17 : vector<8x1xf32>
    %19 = vector.broadcast %18 : vector<8x1xf32> to vector<8x32xf32>
    %20 = arith.mulf %10, %19 : vector<8x32xf32>
    %21 = vector.broadcast %3 : vector<1x32xf32> to vector<8x32xf32>
    %22 = arith.mulf %20, %21 : vector<8x32xf32>
    %23 = vector.broadcast %4 : vector<1x32xf32> to vector<8x32xf32>
    %24 = arith.addf %22, %23 : vector<8x32xf32>
    %c0_11 = arith.constant 0 : index
    %c0_12 = arith.constant 0 : index
    %c0_13 = arith.constant 0 : index
    %25 = vector.load %arg7[%c0_11, %c0_12, %c0_13] : memref<4x32x128xf32, #tpu.memory_space<vmem>>, vector<1x32x128xf32>
    %26 = vector.shape_cast %25 : vector<1x32x128xf32> to vector<32x128xf32>
    %cst_14 = arith.constant dense<0.000000e+00> : vector<8x128xf32>
    %27 = tpu.matmul %24, %26, %cst_14 {dimension_numbers = #tpu.dot_dimension_numbers<[1], [0], [0], [1], [0, 0, 1, 1], [], []>} : vector<8x32xf32>, vector<32x128xf32>, vector<8x128xf32> -> vector<8x128xf32>
    %c0_15 = arith.constant 0 : index
    %c0_16 = arith.constant 0 : index
    %28 = vector.load %arg5[%c0_15, %c0_16] : memref<6x128xf32, #tpu.memory_space<vmem>>, vector<1x128xf32>
    %29 = vector.broadcast %28 : vector<1x128xf32> to vector<8x128xf32>
    %30 = arith.addf %27, %29 : vector<8x128xf32>
    %31 = arith.negf %30 : vector<8x128xf32>
    %32 = math.exp %31 : vector<8x128xf32>
    %cst_17 = arith.constant 1.000000e+00 : f32
    %33 = vector.broadcast %cst_17 : f32 to vector<8x128xf32>
    %34 = arith.addf %33, %32 : vector<8x128xf32>
    %35 = arith.divf %33, %34 : vector<8x128xf32>
    %36 = arith.mulf %30, %35 : vector<8x128xf32>
    %c0_18 = arith.constant 0 : index
    %c0_19 = arith.constant 0 : index
    %c0_20 = arith.constant 0 : index
    %37 = vector.load %arg8[%c0_18, %c0_19, %c0_20] : memref<4x128x32xf32, #tpu.memory_space<vmem>>, vector<1x128x32xf32>
    %38 = vector.shape_cast %37 : vector<1x128x32xf32> to vector<128x32xf32>
    %cst_21 = arith.constant dense<0.000000e+00> : vector<8x32xf32>
    %39 = tpu.matmul %36, %38, %cst_21 {dimension_numbers = #tpu.dot_dimension_numbers<[1], [0], [0], [1], [0, 0, 1, 1], [], []>} : vector<8x128xf32>, vector<128x32xf32>, vector<8x32xf32> -> vector<8x32xf32>
    %c0_22 = arith.constant 0 : index
    %c0_23 = arith.constant 0 : index
    %40 = vector.load %arg4[%c0_22, %c0_23] : memref<16x32xf32, #tpu.memory_space<vmem>>, vector<1x32xf32>
    %41 = vector.broadcast %40 : vector<1x32xf32> to vector<8x32xf32>
    %42 = arith.addf %39, %41 : vector<8x32xf32>
    %cst_24 = arith.constant 5.000000e-01 : f32
    %43 = vector.broadcast %cst_24 : f32 to vector<8x32xf32>
    %44 = arith.mulf %43, %42 : vector<8x32xf32>
    %45 = arith.addf %1, %44 : vector<8x32xf32>
    %c2 = arith.constant 2 : index
    %c0_25 = arith.constant 0 : index
    %46 = vector.load %arg3[%c2, %c0_25] : memref<20x32xf32, #tpu.memory_space<vmem>>, vector<1x32xf32>
    %c3 = arith.constant 3 : index
    %c0_26 = arith.constant 0 : index
    %47 = vector.load %arg3[%c3, %c0_26] : memref<20x32xf32, #tpu.memory_space<vmem>>, vector<1x32xf32>
    %cst_27 = arith.constant dense<0.000000e+00> : vector<8xf32>
    %48 = vector.multi_reduction <add>, %45, %cst_27 [1] : vector<8x32xf32> to vector<8xf32>
    %49 = vector.shape_cast %48 : vector<8xf32> to vector<8x1xf32>
    %cst_28 = arith.constant 3.200000e+01 : f32
    %50 = vector.broadcast %cst_28 : f32 to vector<8x1xf32>
    %51 = arith.divf %49, %50 : vector<8x1xf32>
    %52 = vector.broadcast %51 : vector<8x1xf32> to vector<8x32xf32>
    %53 = arith.subf %45, %52 : vector<8x32xf32>
    %54 = arith.mulf %53, %53 : vector<8x32xf32>
    %cst_29 = arith.constant dense<0.000000e+00> : vector<8xf32>
    %55 = vector.multi_reduction <add>, %54, %cst_29 [1] : vector<8x32xf32> to vector<8xf32>
    %56 = vector.shape_cast %55 : vector<8xf32> to vector<8x1xf32>
    %cst_30 = arith.constant 3.200000e+01 : f32
    %57 = vector.broadcast %cst_30 : f32 to vector<8x1xf32>
    %58 = arith.divf %56, %57 : vector<8x1xf32>
    %cst_31 = arith.constant 9.99999974E-6 : f32
    %59 = vector.broadcast %cst_31 : f32 to vector<8x1xf32>
    %60 = arith.addf %58, %59 : vector<8x1xf32>
    %61 = math.rsqrt %60 : vector<8x1xf32>
    %62 = vector.broadcast %61 : vector<8x1xf32> to vector<8x32xf32>
    %63 = arith.mulf %53, %62 : vector<8x32xf32>
    %64 = vector.broadcast %46 : vector<1x32xf32> to vector<8x32xf32>
    %65 = arith.mulf %63, %64 : vector<8x32xf32>
    %66 = vector.broadcast %47 : vector<1x32xf32> to vector<8x32xf32>
    %67 = arith.addf %65, %66 : vector<8x32xf32>
    %68 = tpu.concatenate %67, %1, %2 in 1 : vector<8x32xf32>, vector<8x32xf32>, vector<8x32xf32> -> vector<8x96xf32>
    %c0_32 = arith.constant 0 : index
    %c0_33 = arith.constant 0 : index
    %c0_34 = arith.constant 0 : index
    %69 = vector.load %arg9[%c0_32, %c0_33, %c0_34] : memref<2x96x128xf32, #tpu.memory_space<vmem>>, vector<1x96x128xf32>
    %70 = vector.shape_cast %69 : vector<1x96x128xf32> to vector<96x128xf32>
    %cst_35 = arith.constant dense<0.000000e+00> : vector<8x128xf32>
    %71 = tpu.matmul %68, %70, %cst_35 {dimension_numbers = #tpu.dot_dimension_numbers<[1], [0], [0], [1], [0, 0, 1, 1], [], []>} : vector<8x96xf32>, vector<96x128xf32>, vector<8x128xf32> -> vector<8x128xf32>
    %c1_36 = arith.constant 1 : index
    %c0_37 = arith.constant 0 : index
    %72 = vector.load %arg5[%c1_36, %c0_37] : memref<6x128xf32, #tpu.memory_space<vmem>>, vector<1x128xf32>
    %73 = vector.broadcast %72 : vector<1x128xf32> to vector<8x128xf32>
    %74 = arith.addf %71, %73 : vector<8x128xf32>
    %c0_38 = arith.constant 0 : index
    %c0_39 = arith.constant 0 : index
    %c0_40 = arith.constant 0 : index
    %75 = vector.load %arg10[%c0_38, %c0_39, %c0_40] : memref<4x4x8xf32, #tpu.memory_space<vmem>>, vector<1x4x8xf32>
    %76 = vector.shape_cast %75 : vector<1x4x8xf32> to vector<4x8xf32>
    %c1_41 = arith.constant 1 : index
    %c0_42 = arith.constant 0 : index
    %c0_43 = arith.constant 0 : index
    %77 = vector.load %arg10[%c1_41, %c0_42, %c0_43] : memref<4x4x8xf32, #tpu.memory_space<vmem>>, vector<1x4x8xf32>
    %78 = vector.shape_cast %77 : vector<1x4x8xf32> to vector<4x8xf32>
    %79 = vector.extract_strided_slice %74 {offsets = [0, 0], sizes = [8, 8], strides = [1, 1]} : vector<8x128xf32> to vector<8x8xf32>
    %80 = vector.extract_strided_slice %74 {offsets = [0, 32], sizes = [8, 8], strides = [1, 1]} : vector<8x128xf32> to vector<8x8xf32>
    %81 = vector.extract_strided_slice %74 {offsets = [0, 64], sizes = [8, 8], strides = [1, 1]} : vector<8x128xf32> to vector<8x8xf32>
    %82 = vector.extract_strided_slice %74 {offsets = [0, 96], sizes = [8, 8], strides = [1, 1]} : vector<8x128xf32> to vector<8x8xf32>
    %83 = vector.extract_strided_slice %76 {offsets = [0, 0], sizes = [1, 8], strides = [1, 1]} : vector<4x8xf32> to vector<1x8xf32>
    %84 = vector.broadcast %83 : vector<1x8xf32> to vector<8x8xf32>
    %85 = arith.addf %79, %84 : vector<8x8xf32>
    %86 = vector.extract_strided_slice %78 {offsets = [0, 0], sizes = [1, 8], strides = [1, 1]} : vector<4x8xf32> to vector<1x8xf32>
    %87 = vector.broadcast %86 : vector<1x8xf32> to vector<8x8xf32>
    %88 = arith.addf %79, %87 : vector<8x8xf32>
    %cst_44 = arith.constant dense<0.000000e+00> : vector<8x8xf32>
    %89 = tpu.matmul %85, %80, %cst_44 {dimension_numbers = #tpu.dot_dimension_numbers<[1], [1], [0], [0], [0, 0, 1, 0], [], []>} : vector<8x8xf32>, vector<8x8xf32>, vector<8x8xf32> -> vector<8x8xf32>
    %cst_45 = arith.constant dense<0.000000e+00> : vector<8x8xf32>
    %90 = tpu.matmul %88, %82, %cst_45 {dimension_numbers = #tpu.dot_dimension_numbers<[1], [1], [0], [0], [0, 0, 1, 0], [], []>} : vector<8x8xf32>, vector<8x8xf32>, vector<8x8xf32> -> vector<8x8xf32>
    %91 = vector.extract_strided_slice %90 {offsets = [0, 7], sizes = [1, 1], strides = [1, 1]} : vector<8x8xf32> to vector<1x1xf32>
    %cst_46 = arith.constant 0.000000e+00 : f32
    %92 = vector.broadcast %cst_46 : f32 to vector<1x1xf32>
    %93 = vector.extract_strided_slice %90 {offsets = [1, 0], sizes = [1, 6], strides = [1, 1]} : vector<8x8xf32> to vector<1x6xf32>
    %94 = tpu.concatenate %91, %92, %93 in 1 : vector<1x1xf32>, vector<1x1xf32>, vector<1x6xf32> -> vector<1x8xf32>
    %95 = vector.extract_strided_slice %90 {offsets = [1, 6], sizes = [1, 2], strides = [1, 1]} : vector<8x8xf32> to vector<1x2xf32>
    %cst_47 = arith.constant 0.000000e+00 : f32
    %96 = vector.broadcast %cst_47 : f32 to vector<1x1xf32>
    %97 = vector.extract_strided_slice %90 {offsets = [2, 0], sizes = [1, 5], strides = [1, 1]} : vector<8x8xf32> to vector<1x5xf32>
    %98 = tpu.concatenate %95, %96, %97 in 1 : vector<1x2xf32>, vector<1x1xf32>, vector<1x5xf32> -> vector<1x8xf32>
    %99 = vector.extract_strided_slice %90 {offsets = [2, 5], sizes = [1, 3], strides = [1, 1]} : vector<8x8xf32> to vector<1x3xf32>
    %cst_48 = arith.constant 0.000000e+00 : f32
    %100 = vector.broadcast %cst_48 : f32 to vector<1x1xf32>
    %101 = vector.extract_strided_slice %90 {offsets = [3, 0], sizes = [1, 4], strides = [1, 1]} : vector<8x8xf32> to vector<1x4xf32>
    %102 = tpu.concatenate %99, %100, %101 in 1 : vector<1x3xf32>, vector<1x1xf32>, vector<1x4xf32> -> vector<1x8xf32>
    %103 = vector.extract_strided_slice %90 {offsets = [3, 4], sizes = [1, 4], strides = [1, 1]} : vector<8x8xf32> to vector<1x4xf32>
    %cst_49 = arith.constant 0.000000e+00 : f32
    %104 = vector.broadcast %cst_49 : f32 to vector<1x1xf32>
    %105 = vector.extract_strided_slice %90 {offsets = [4, 0], sizes = [1, 3], strides = [1, 1]} : vector<8x8xf32> to vector<1x3xf32>
    %106 = tpu.concatenate %103, %104, %105 in 1 : vector<1x4xf32>, vector<1x1xf32>, vector<1x3xf32> -> vector<1x8xf32>
    %107 = vector.extract_strided_slice %90 {offsets = [4, 3], sizes = [1, 5], strides = [1, 1]} : vector<8x8xf32> to vector<1x5xf32>
    %cst_50 = arith.constant 0.000000e+00 : f32
    %108 = vector.broadcast %cst_50 : f32 to vector<1x1xf32>
    %109 = vector.extract_strided_slice %90 {offsets = [5, 0], sizes = [1, 2], strides = [1, 1]} : vector<8x8xf32> to vector<1x2xf32>
    %110 = tpu.concatenate %107, %108, %109 in 1 : vector<1x5xf32>, vector<1x1xf32>, vector<1x2xf32> -> vector<1x8xf32>
    %111 = vector.extract_strided_slice %90 {offsets = [5, 2], sizes = [1, 6], strides = [1, 1]} : vector<8x8xf32> to vector<1x6xf32>
    %cst_51 = arith.constant 0.000000e+00 : f32
    %112 = vector.broadcast %cst_51 : f32 to vector<1x1xf32>
    %113 = vector.extract_strided_slice %90 {offsets = [6, 0], sizes = [1, 1], strides = [1, 1]} : vector<8x8xf32> to vector<1x1xf32>
    %114 = tpu.concatenate %111, %112, %113 in 1 : vector<1x6xf32>, vector<1x1xf32>, vector<1x1xf32> -> vector<1x8xf32>
    %115 = vector.extract_strided_slice %90 {offsets = [6, 1], sizes = [1, 7], strides = [1, 1]} : vector<8x8xf32> to vector<1x7xf32>
    %cst_52 = arith.constant 0.000000e+00 : f32
    %116 = vector.broadcast %cst_52 : f32 to vector<1x1xf32>
    %117 = tpu.concatenate %115, %116 in 1 : vector<1x7xf32>, vector<1x1xf32> -> vector<1x8xf32>
    %118 = vector.extract_strided_slice %90 {offsets = [7, 0], sizes = [1, 8], strides = [1, 1]} : vector<8x8xf32> to vector<1x8xf32>
    %119 = tpu.concatenate %94, %98, %102, %106, %110, %114, %117, %118 in 0 : vector<1x8xf32>, vector<1x8xf32>, vector<1x8xf32>, vector<1x8xf32>, vector<1x8xf32>, vector<1x8xf32>, vector<1x8xf32>, vector<1x8xf32> -> vector<8x8xf32>
    %120 = arith.addf %89, %119 : vector<8x8xf32>
    %cst_53 = arith.constant dense<0xFF800000> : vector<8xf32>
    %121 = vector.multi_reduction <maximumf>, %120, %cst_53 [1] : vector<8x8xf32> to vector<8xf32>
    %122 = vector.shape_cast %121 : vector<8xf32> to vector<8x1xf32>
    %123 = vector.broadcast %122 : vector<8x1xf32> to vector<8x8xf32>
    %124 = arith.subf %120, %123 : vector<8x8xf32>
    %125 = math.exp %124 : vector<8x8xf32>
    %cst_54 = arith.constant dense<0.000000e+00> : vector<8xf32>
    %126 = vector.multi_reduction <add>, %125, %cst_54 [1] : vector<8x8xf32> to vector<8xf32>
    %127 = vector.shape_cast %126 : vector<8xf32> to vector<8x1xf32>
    %128 = tpu.reciprocal %127 {approx = true} : vector<8x1xf32> -> vector<8x1xf32>
    %129 = vector.broadcast %128 : vector<8x1xf32> to vector<8x8xf32>
    %130 = arith.mulf %125, %129 : vector<8x8xf32>
    %cst_55 = arith.constant dense<0.000000e+00> : vector<8x8xf32>
    %131 = tpu.matmul %130, %81, %cst_55 {dimension_numbers = #tpu.dot_dimension_numbers<[1], [0], [0], [1], [0, 0, 1, 1], [], []>} : vector<8x8xf32>, vector<8x8xf32>, vector<8x8xf32> -> vector<8x8xf32>
    %132 = vector.extract_strided_slice %74 {offsets = [0, 8], sizes = [8, 8], strides = [1, 1]} : vector<8x128xf32> to vector<8x8xf32>
    %133 = vector.extract_strided_slice %74 {offsets = [0, 40], sizes = [8, 8], strides = [1, 1]} : vector<8x128xf32> to vector<8x8xf32>
    %134 = vector.extract_strided_slice %74 {offsets = [0, 72], sizes = [8, 8], strides = [1, 1]} : vector<8x128xf32> to vector<8x8xf32>
    %135 = vector.extract_strided_slice %74 {offsets = [0, 104], sizes = [8, 8], strides = [1, 1]} : vector<8x128xf32> to vector<8x8xf32>
    %136 = vector.extract_strided_slice %76 {offsets = [1, 0], sizes = [1, 8], strides = [1, 1]} : vector<4x8xf32> to vector<1x8xf32>
    %137 = vector.broadcast %136 : vector<1x8xf32> to vector<8x8xf32>
    %138 = arith.addf %132, %137 : vector<8x8xf32>
    %139 = vector.extract_strided_slice %78 {offsets = [1, 0], sizes = [1, 8], strides = [1, 1]} : vector<4x8xf32> to vector<1x8xf32>
    %140 = vector.broadcast %139 : vector<1x8xf32> to vector<8x8xf32>
    %141 = arith.addf %132, %140 : vector<8x8xf32>
    %cst_56 = arith.constant dense<0.000000e+00> : vector<8x8xf32>
    %142 = tpu.matmul %138, %133, %cst_56 {dimension_numbers = #tpu.dot_dimension_numbers<[1], [1], [0], [0], [0, 0, 1, 0], [], []>} : vector<8x8xf32>, vector<8x8xf32>, vector<8x8xf32> -> vector<8x8xf32>
    %cst_57 = arith.constant dense<0.000000e+00> : vector<8x8xf32>
    %143 = tpu.matmul %141, %135, %cst_57 {dimension_numbers = #tpu.dot_dimension_numbers<[1], [1], [0], [0], [0, 0, 1, 0], [], []>} : vector<8x8xf32>, vector<8x8xf32>, vector<8x8xf32> -> vector<8x8xf32>
    %144 = vector.extract_strided_slice %143 {offsets = [0, 7], sizes = [1, 1], strides = [1, 1]} : vector<8x8xf32> to vector<1x1xf32>
    %cst_58 = arith.constant 0.000000e+00 : f32
    %145 = vector.broadcast %cst_58 : f32 to vector<1x1xf32>
    %146 = vector.extract_strided_slice %143 {offsets = [1, 0], sizes = [1, 6], strides = [1, 1]} : vector<8x8xf32> to vector<1x6xf32>
    %147 = tpu.concatenate %144, %145, %146 in 1 : vector<1x1xf32>, vector<1x1xf32>, vector<1x6xf32> -> vector<1x8xf32>
    %148 = vector.extract_strided_slice %143 {offsets = [1, 6], sizes = [1, 2], strides = [1, 1]} : vector<8x8xf32> to vector<1x2xf32>
    %cst_59 = arith.constant 0.000000e+00 : f32
    %149 = vector.broadcast %cst_59 : f32 to vector<1x1xf32>
    %150 = vector.extract_strided_slice %143 {offsets = [2, 0], sizes = [1, 5], strides = [1, 1]} : vector<8x8xf32> to vector<1x5xf32>
    %151 = tpu.concatenate %148, %149, %150 in 1 : vector<1x2xf32>, vector<1x1xf32>, vector<1x5xf32> -> vector<1x8xf32>
    %152 = vector.extract_strided_slice %143 {offsets = [2, 5], sizes = [1, 3], strides = [1, 1]} : vector<8x8xf32> to vector<1x3xf32>
    %cst_60 = arith.constant 0.000000e+00 : f32
    %153 = vector.broadcast %cst_60 : f32 to vector<1x1xf32>
    %154 = vector.extract_strided_slice %143 {offsets = [3, 0], sizes = [1, 4], strides = [1, 1]} : vector<8x8xf32> to vector<1x4xf32>
    %155 = tpu.concatenate %152, %153, %154 in 1 : vector<1x3xf32>, vector<1x1xf32>, vector<1x4xf32> -> vector<1x8xf32>
    %156 = vector.extract_strided_slice %143 {offsets = [3, 4], sizes = [1, 4], strides = [1, 1]} : vector<8x8xf32> to vector<1x4xf32>
    %cst_61 = arith.constant 0.000000e+00 : f32
    %157 = vector.broadcast %cst_61 : f32 to vector<1x1xf32>
    %158 = vector.extract_strided_slice %143 {offsets = [4, 0], sizes = [1, 3], strides = [1, 1]} : vector<8x8xf32> to vector<1x3xf32>
    %159 = tpu.concatenate %156, %157, %158 in 1 : vector<1x4xf32>, vector<1x1xf32>, vector<1x3xf32> -> vector<1x8xf32>
    %160 = vector.extract_strided_slice %143 {offsets = [4, 3], sizes = [1, 5], strides = [1, 1]} : vector<8x8xf32> to vector<1x5xf32>
    %cst_62 = arith.constant 0.000000e+00 : f32
    %161 = vector.broadcast %cst_62 : f32 to vector<1x1xf32>
    %162 = vector.extract_strided_slice %143 {offsets = [5, 0], sizes = [1, 2], strides = [1, 1]} : vector<8x8xf32> to vector<1x2xf32>
    %163 = tpu.concatenate %160, %161, %162 in 1 : vector<1x5xf32>, vector<1x1xf32>, vector<1x2xf32> -> vector<1x8xf32>
    %164 = vector.extract_strided_slice %143 {offsets = [5, 2], sizes = [1, 6], strides = [1, 1]} : vector<8x8xf32> to vector<1x6xf32>
    %cst_63 = arith.constant 0.000000e+00 : f32
    %165 = vector.broadcast %cst_63 : f32 to vector<1x1xf32>
    %166 = vector.extract_strided_slice %143 {offsets = [6, 0], sizes = [1, 1], strides = [1, 1]} : vector<8x8xf32> to vector<1x1xf32>
    %167 = tpu.concatenate %164, %165, %166 in 1 : vector<1x6xf32>, vector<1x1xf32>, vector<1x1xf32> -> vector<1x8xf32>
    %168 = vector.extract_strided_slice %143 {offsets = [6, 1], sizes = [1, 7], strides = [1, 1]} : vector<8x8xf32> to vector<1x7xf32>
    %cst_64 = arith.constant 0.000000e+00 : f32
    %169 = vector.broadcast %cst_64 : f32 to vector<1x1xf32>
    %170 = tpu.concatenate %168, %169 in 1 : vector<1x7xf32>, vector<1x1xf32> -> vector<1x8xf32>
    %171 = vector.extract_strided_slice %143 {offsets = [7, 0], sizes = [1, 8], strides = [1, 1]} : vector<8x8xf32> to vector<1x8xf32>
    %172 = tpu.concatenate %147, %151, %155, %159, %163, %167, %170, %171 in 0 : vector<1x8xf32>, vector<1x8xf32>, vector<1x8xf32>, vector<1x8xf32>, vector<1x8xf32>, vector<1x8xf32>, vector<1x8xf32>, vector<1x8xf32> -> vector<8x8xf32>
    %173 = arith.addf %142, %172 : vector<8x8xf32>
    %cst_65 = arith.constant dense<0xFF800000> : vector<8xf32>
    %174 = vector.multi_reduction <maximumf>, %173, %cst_65 [1] : vector<8x8xf32> to vector<8xf32>
    %175 = vector.shape_cast %174 : vector<8xf32> to vector<8x1xf32>
    %176 = vector.broadcast %175 : vector<8x1xf32> to vector<8x8xf32>
    %177 = arith.subf %173, %176 : vector<8x8xf32>
    %178 = math.exp %177 : vector<8x8xf32>
    %cst_66 = arith.constant dense<0.000000e+00> : vector<8xf32>
    %179 = vector.multi_reduction <add>, %178, %cst_66 [1] : vector<8x8xf32> to vector<8xf32>
    %180 = vector.shape_cast %179 : vector<8xf32> to vector<8x1xf32>
    %181 = tpu.reciprocal %180 {approx = true} : vector<8x1xf32> -> vector<8x1xf32>
    %182 = vector.broadcast %181 : vector<8x1xf32> to vector<8x8xf32>
    %183 = arith.mulf %178, %182 : vector<8x8xf32>
    %cst_67 = arith.constant dense<0.000000e+00> : vector<8x8xf32>
    %184 = tpu.matmul %183, %134, %cst_67 {dimension_numbers = #tpu.dot_dimension_numbers<[1], [0], [0], [1], [0, 0, 1, 1], [], []>} : vector<8x8xf32>, vector<8x8xf32>, vector<8x8xf32> -> vector<8x8xf32>
    %185 = vector.extract_strided_slice %74 {offsets = [0, 16], sizes = [8, 8], strides = [1, 1]} : vector<8x128xf32> to vector<8x8xf32>
    %186 = vector.extract_strided_slice %74 {offsets = [0, 48], sizes = [8, 8], strides = [1, 1]} : vector<8x128xf32> to vector<8x8xf32>
    %187 = vector.extract_strided_slice %74 {offsets = [0, 80], sizes = [8, 8], strides = [1, 1]} : vector<8x128xf32> to vector<8x8xf32>
    %188 = vector.extract_strided_slice %74 {offsets = [0, 112], sizes = [8, 8], strides = [1, 1]} : vector<8x128xf32> to vector<8x8xf32>
    %189 = vector.extract_strided_slice %76 {offsets = [2, 0], sizes = [1, 8], strides = [1, 1]} : vector<4x8xf32> to vector<1x8xf32>
    %190 = vector.broadcast %189 : vector<1x8xf32> to vector<8x8xf32>
    %191 = arith.addf %185, %190 : vector<8x8xf32>
    %192 = vector.extract_strided_slice %78 {offsets = [2, 0], sizes = [1, 8], strides = [1, 1]} : vector<4x8xf32> to vector<1x8xf32>
    %193 = vector.broadcast %192 : vector<1x8xf32> to vector<8x8xf32>
    %194 = arith.addf %185, %193 : vector<8x8xf32>
    %cst_68 = arith.constant dense<0.000000e+00> : vector<8x8xf32>
    %195 = tpu.matmul %191, %186, %cst_68 {dimension_numbers = #tpu.dot_dimension_numbers<[1], [1], [0], [0], [0, 0, 1, 0], [], []>} : vector<8x8xf32>, vector<8x8xf32>, vector<8x8xf32> -> vector<8x8xf32>
    %cst_69 = arith.constant dense<0.000000e+00> : vector<8x8xf32>
    %196 = tpu.matmul %194, %188, %cst_69 {dimension_numbers = #tpu.dot_dimension_numbers<[1], [1], [0], [0], [0, 0, 1, 0], [], []>} : vector<8x8xf32>, vector<8x8xf32>, vector<8x8xf32> -> vector<8x8xf32>
    %197 = vector.extract_strided_slice %196 {offsets = [0, 7], sizes = [1, 1], strides = [1, 1]} : vector<8x8xf32> to vector<1x1xf32>
    %cst_70 = arith.constant 0.000000e+00 : f32
    %198 = vector.broadcast %cst_70 : f32 to vector<1x1xf32>
    %199 = vector.extract_strided_slice %196 {offsets = [1, 0], sizes = [1, 6], strides = [1, 1]} : vector<8x8xf32> to vector<1x6xf32>
    %200 = tpu.concatenate %197, %198, %199 in 1 : vector<1x1xf32>, vector<1x1xf32>, vector<1x6xf32> -> vector<1x8xf32>
    %201 = vector.extract_strided_slice %196 {offsets = [1, 6], sizes = [1, 2], strides = [1, 1]} : vector<8x8xf32> to vector<1x2xf32>
    %cst_71 = arith.constant 0.000000e+00 : f32
    %202 = vector.broadcast %cst_71 : f32 to vector<1x1xf32>
    %203 = vector.extract_strided_slice %196 {offsets = [2, 0], sizes = [1, 5], strides = [1, 1]} : vector<8x8xf32> to vector<1x5xf32>
    %204 = tpu.concatenate %201, %202, %203 in 1 : vector<1x2xf32>, vector<1x1xf32>, vector<1x5xf32> -> vector<1x8xf32>
    %205 = vector.extract_strided_slice %196 {offsets = [2, 5], sizes = [1, 3], strides = [1, 1]} : vector<8x8xf32> to vector<1x3xf32>
    %cst_72 = arith.constant 0.000000e+00 : f32
    %206 = vector.broadcast %cst_72 : f32 to vector<1x1xf32>
    %207 = vector.extract_strided_slice %196 {offsets = [3, 0], sizes = [1, 4], strides = [1, 1]} : vector<8x8xf32> to vector<1x4xf32>
    %208 = tpu.concatenate %205, %206, %207 in 1 : vector<1x3xf32>, vector<1x1xf32>, vector<1x4xf32> -> vector<1x8xf32>
    %209 = vector.extract_strided_slice %196 {offsets = [3, 4], sizes = [1, 4], strides = [1, 1]} : vector<8x8xf32> to vector<1x4xf32>
    %cst_73 = arith.constant 0.000000e+00 : f32
    %210 = vector.broadcast %cst_73 : f32 to vector<1x1xf32>
    %211 = vector.extract_strided_slice %196 {offsets = [4, 0], sizes = [1, 3], strides = [1, 1]} : vector<8x8xf32> to vector<1x3xf32>
    %212 = tpu.concatenate %209, %210, %211 in 1 : vector<1x4xf32>, vector<1x1xf32>, vector<1x3xf32> -> vector<1x8xf32>
    %213 = vector.extract_strided_slice %196 {offsets = [4, 3], sizes = [1, 5], strides = [1, 1]} : vector<8x8xf32> to vector<1x5xf32>
    %cst_74 = arith.constant 0.000000e+00 : f32
    %214 = vector.broadcast %cst_74 : f32 to vector<1x1xf32>
    %215 = vector.extract_strided_slice %196 {offsets = [5, 0], sizes = [1, 2], strides = [1, 1]} : vector<8x8xf32> to vector<1x2xf32>
    %216 = tpu.concatenate %213, %214, %215 in 1 : vector<1x5xf32>, vector<1x1xf32>, vector<1x2xf32> -> vector<1x8xf32>
    %217 = vector.extract_strided_slice %196 {offsets = [5, 2], sizes = [1, 6], strides = [1, 1]} : vector<8x8xf32> to vector<1x6xf32>
    %cst_75 = arith.constant 0.000000e+00 : f32
    %218 = vector.broadcast %cst_75 : f32 to vector<1x1xf32>
    %219 = vector.extract_strided_slice %196 {offsets = [6, 0], sizes = [1, 1], strides = [1, 1]} : vector<8x8xf32> to vector<1x1xf32>
    %220 = tpu.concatenate %217, %218, %219 in 1 : vector<1x6xf32>, vector<1x1xf32>, vector<1x1xf32> -> vector<1x8xf32>
    %221 = vector.extract_strided_slice %196 {offsets = [6, 1], sizes = [1, 7], strides = [1, 1]} : vector<8x8xf32> to vector<1x7xf32>
    %cst_76 = arith.constant 0.000000e+00 : f32
    %222 = vector.broadcast %cst_76 : f32 to vector<1x1xf32>
    %223 = tpu.concatenate %221, %222 in 1 : vector<1x7xf32>, vector<1x1xf32> -> vector<1x8xf32>
    %224 = vector.extract_strided_slice %196 {offsets = [7, 0], sizes = [1, 8], strides = [1, 1]} : vector<8x8xf32> to vector<1x8xf32>
    %225 = tpu.concatenate %200, %204, %208, %212, %216, %220, %223, %224 in 0 : vector<1x8xf32>, vector<1x8xf32>, vector<1x8xf32>, vector<1x8xf32>, vector<1x8xf32>, vector<1x8xf32>, vector<1x8xf32>, vector<1x8xf32> -> vector<8x8xf32>
    %226 = arith.addf %195, %225 : vector<8x8xf32>
    %cst_77 = arith.constant dense<0xFF800000> : vector<8xf32>
    %227 = vector.multi_reduction <maximumf>, %226, %cst_77 [1] : vector<8x8xf32> to vector<8xf32>
    %228 = vector.shape_cast %227 : vector<8xf32> to vector<8x1xf32>
    %229 = vector.broadcast %228 : vector<8x1xf32> to vector<8x8xf32>
    %230 = arith.subf %226, %229 : vector<8x8xf32>
    %231 = math.exp %230 : vector<8x8xf32>
    %cst_78 = arith.constant dense<0.000000e+00> : vector<8xf32>
    %232 = vector.multi_reduction <add>, %231, %cst_78 [1] : vector<8x8xf32> to vector<8xf32>
    %233 = vector.shape_cast %232 : vector<8xf32> to vector<8x1xf32>
    %234 = tpu.reciprocal %233 {approx = true} : vector<8x1xf32> -> vector<8x1xf32>
    %235 = vector.broadcast %234 : vector<8x1xf32> to vector<8x8xf32>
    %236 = arith.mulf %231, %235 : vector<8x8xf32>
    %cst_79 = arith.constant dense<0.000000e+00> : vector<8x8xf32>
    %237 = tpu.matmul %236, %187, %cst_79 {dimension_numbers = #tpu.dot_dimension_numbers<[1], [0], [0], [1], [0, 0, 1, 1], [], []>} : vector<8x8xf32>, vector<8x8xf32>, vector<8x8xf32> -> vector<8x8xf32>
    %238 = vector.extract_strided_slice %74 {offsets = [0, 24], sizes = [8, 8], strides = [1, 1]} : vector<8x128xf32> to vector<8x8xf32>
    %239 = vector.extract_strided_slice %74 {offsets = [0, 56], sizes = [8, 8], strides = [1, 1]} : vector<8x128xf32> to vector<8x8xf32>
    %240 = vector.extract_strided_slice %74 {offsets = [0, 88], sizes = [8, 8], strides = [1, 1]} : vector<8x128xf32> to vector<8x8xf32>
    %241 = vector.extract_strided_slice %74 {offsets = [0, 120], sizes = [8, 8], strides = [1, 1]} : vector<8x128xf32> to vector<8x8xf32>
    %242 = vector.extract_strided_slice %76 {offsets = [3, 0], sizes = [1, 8], strides = [1, 1]} : vector<4x8xf32> to vector<1x8xf32>
    %243 = vector.broadcast %242 : vector<1x8xf32> to vector<8x8xf32>
    %244 = arith.addf %238, %243 : vector<8x8xf32>
    %245 = vector.extract_strided_slice %78 {offsets = [3, 0], sizes = [1, 8], strides = [1, 1]} : vector<4x8xf32> to vector<1x8xf32>
    %246 = vector.broadcast %245 : vector<1x8xf32> to vector<8x8xf32>
    %247 = arith.addf %238, %246 : vector<8x8xf32>
    %cst_80 = arith.constant dense<0.000000e+00> : vector<8x8xf32>
    %248 = tpu.matmul %244, %239, %cst_80 {dimension_numbers = #tpu.dot_dimension_numbers<[1], [1], [0], [0], [0, 0, 1, 0], [], []>} : vector<8x8xf32>, vector<8x8xf32>, vector<8x8xf32> -> vector<8x8xf32>
    %cst_81 = arith.constant dense<0.000000e+00> : vector<8x8xf32>
    %249 = tpu.matmul %247, %241, %cst_81 {dimension_numbers = #tpu.dot_dimension_numbers<[1], [1], [0], [0], [0, 0, 1, 0], [], []>} : vector<8x8xf32>, vector<8x8xf32>, vector<8x8xf32> -> vector<8x8xf32>
    %250 = vector.extract_strided_slice %249 {offsets = [0, 7], sizes = [1, 1], strides = [1, 1]} : vector<8x8xf32> to vector<1x1xf32>
    %cst_82 = arith.constant 0.000000e+00 : f32
    %251 = vector.broadcast %cst_82 : f32 to vector<1x1xf32>
    %252 = vector.extract_strided_slice %249 {offsets = [1, 0], sizes = [1, 6], strides = [1, 1]} : vector<8x8xf32> to vector<1x6xf32>
    %253 = tpu.concatenate %250, %251, %252 in 1 : vector<1x1xf32>, vector<1x1xf32>, vector<1x6xf32> -> vector<1x8xf32>
    %254 = vector.extract_strided_slice %249 {offsets = [1, 6], sizes = [1, 2], strides = [1, 1]} : vector<8x8xf32> to vector<1x2xf32>
    %cst_83 = arith.constant 0.000000e+00 : f32
    %255 = vector.broadcast %cst_83 : f32 to vector<1x1xf32>
    %256 = vector.extract_strided_slice %249 {offsets = [2, 0], sizes = [1, 5], strides = [1, 1]} : vector<8x8xf32> to vector<1x5xf32>
    %257 = tpu.concatenate %254, %255, %256 in 1 : vector<1x2xf32>, vector<1x1xf32>, vector<1x5xf32> -> vector<1x8xf32>
    %258 = vector.extract_strided_slice %249 {offsets = [2, 5], sizes = [1, 3], strides = [1, 1]} : vector<8x8xf32> to vector<1x3xf32>
    %cst_84 = arith.constant 0.000000e+00 : f32
    %259 = vector.broadcast %cst_84 : f32 to vector<1x1xf32>
    %260 = vector.extract_strided_slice %249 {offsets = [3, 0], sizes = [1, 4], strides = [1, 1]} : vector<8x8xf32> to vector<1x4xf32>
    %261 = tpu.concatenate %258, %259, %260 in 1 : vector<1x3xf32>, vector<1x1xf32>, vector<1x4xf32> -> vector<1x8xf32>
    %262 = vector.extract_strided_slice %249 {offsets = [3, 4], sizes = [1, 4], strides = [1, 1]} : vector<8x8xf32> to vector<1x4xf32>
    %cst_85 = arith.constant 0.000000e+00 : f32
    %263 = vector.broadcast %cst_85 : f32 to vector<1x1xf32>
    %264 = vector.extract_strided_slice %249 {offsets = [4, 0], sizes = [1, 3], strides = [1, 1]} : vector<8x8xf32> to vector<1x3xf32>
    %265 = tpu.concatenate %262, %263, %264 in 1 : vector<1x4xf32>, vector<1x1xf32>, vector<1x3xf32> -> vector<1x8xf32>
    %266 = vector.extract_strided_slice %249 {offsets = [4, 3], sizes = [1, 5], strides = [1, 1]} : vector<8x8xf32> to vector<1x5xf32>
    %cst_86 = arith.constant 0.000000e+00 : f32
    %267 = vector.broadcast %cst_86 : f32 to vector<1x1xf32>
    %268 = vector.extract_strided_slice %249 {offsets = [5, 0], sizes = [1, 2], strides = [1, 1]} : vector<8x8xf32> to vector<1x2xf32>
    %269 = tpu.concatenate %266, %267, %268 in 1 : vector<1x5xf32>, vector<1x1xf32>, vector<1x2xf32> -> vector<1x8xf32>
    %270 = vector.extract_strided_slice %249 {offsets = [5, 2], sizes = [1, 6], strides = [1, 1]} : vector<8x8xf32> to vector<1x6xf32>
    %cst_87 = arith.constant 0.000000e+00 : f32
    %271 = vector.broadcast %cst_87 : f32 to vector<1x1xf32>
    %272 = vector.extract_strided_slice %249 {offsets = [6, 0], sizes = [1, 1], strides = [1, 1]} : vector<8x8xf32> to vector<1x1xf32>
    %273 = tpu.concatenate %270, %271, %272 in 1 : vector<1x6xf32>, vector<1x1xf32>, vector<1x1xf32> -> vector<1x8xf32>
    %274 = vector.extract_strided_slice %249 {offsets = [6, 1], sizes = [1, 7], strides = [1, 1]} : vector<8x8xf32> to vector<1x7xf32>
    %cst_88 = arith.constant 0.000000e+00 : f32
    %275 = vector.broadcast %cst_88 : f32 to vector<1x1xf32>
    %276 = tpu.concatenate %274, %275 in 1 : vector<1x7xf32>, vector<1x1xf32> -> vector<1x8xf32>
    %277 = vector.extract_strided_slice %249 {offsets = [7, 0], sizes = [1, 8], strides = [1, 1]} : vector<8x8xf32> to vector<1x8xf32>
    %278 = tpu.concatenate %253, %257, %261, %265, %269, %273, %276, %277 in 0 : vector<1x8xf32>, vector<1x8xf32>, vector<1x8xf32>, vector<1x8xf32>, vector<1x8xf32>, vector<1x8xf32>, vector<1x8xf32>, vector<1x8xf32> -> vector<8x8xf32>
    %279 = arith.addf %248, %278 : vector<8x8xf32>
    %cst_89 = arith.constant dense<0xFF800000> : vector<8xf32>
    %280 = vector.multi_reduction <maximumf>, %279, %cst_89 [1] : vector<8x8xf32> to vector<8xf32>
    %281 = vector.shape_cast %280 : vector<8xf32> to vector<8x1xf32>
    %282 = vector.broadcast %281 : vector<8x1xf32> to vector<8x8xf32>
    %283 = arith.subf %279, %282 : vector<8x8xf32>
    %284 = math.exp %283 : vector<8x8xf32>
    %cst_90 = arith.constant dense<0.000000e+00> : vector<8xf32>
    %285 = vector.multi_reduction <add>, %284, %cst_90 [1] : vector<8x8xf32> to vector<8xf32>
    %286 = vector.shape_cast %285 : vector<8xf32> to vector<8x1xf32>
    %287 = tpu.reciprocal %286 {approx = true} : vector<8x1xf32> -> vector<8x1xf32>
    %288 = vector.broadcast %287 : vector<8x1xf32> to vector<8x8xf32>
    %289 = arith.mulf %284, %288 : vector<8x8xf32>
    %cst_91 = arith.constant dense<0.000000e+00> : vector<8x8xf32>
    %290 = tpu.matmul %289, %240, %cst_91 {dimension_numbers = #tpu.dot_dimension_numbers<[1], [0], [0], [1], [0, 0, 1, 1], [], []>} : vector<8x8xf32>, vector<8x8xf32>, vector<8x8xf32> -> vector<8x8xf32>
    %291 = tpu.concatenate %131, %184, %237, %290 in 1 : vector<8x8xf32>, vector<8x8xf32>, vector<8x8xf32>, vector<8x8xf32> -> vector<8x32xf32>
    %c0_92 = arith.constant 0 : index
    %c0_93 = arith.constant 0 : index
    %c0_94 = arith.constant 0 : index
    %292 = vector.load %arg6[%c0_92, %c0_93, %c0_94] : memref<8x32x32xf32, #tpu.memory_space<vmem>>, vector<1x32x32xf32>
    %293 = vector.shape_cast %292 : vector<1x32x32xf32> to vector<32x32xf32>
    %cst_95 = arith.constant dense<0.000000e+00> : vector<8x32xf32>
    %294 = tpu.matmul %291, %293, %cst_95 {dimension_numbers = #tpu.dot_dimension_numbers<[1], [0], [0], [1], [0, 0, 1, 1], [], []>} : vector<8x32xf32>, vector<32x32xf32>, vector<8x32xf32> -> vector<8x32xf32>
    %295 = arith.addf %45, %294 : vector<8x32xf32>
    %c1_96 = arith.constant 1 : index
    %c0_97 = arith.constant 0 : index
    %296 = vector.load %arg4[%c1_96, %c0_97] : memref<16x32xf32, #tpu.memory_space<vmem>>, vector<1x32xf32>
    %297 = vector.broadcast %296 : vector<1x32xf32> to vector<8x32xf32>
    %298 = arith.addf %295, %297 : vector<8x32xf32>
    %c4 = arith.constant 4 : index
    %c0_98 = arith.constant 0 : index
    %299 = vector.load %arg3[%c4, %c0_98] : memref<20x32xf32, #tpu.memory_space<vmem>>, vector<1x32xf32>
    %c5 = arith.constant 5 : index
    %c0_99 = arith.constant 0 : index
    %300 = vector.load %arg3[%c5, %c0_99] : memref<20x32xf32, #tpu.memory_space<vmem>>, vector<1x32xf32>
    %cst_100 = arith.constant dense<0.000000e+00> : vector<8xf32>
    %301 = vector.multi_reduction <add>, %298, %cst_100 [1] : vector<8x32xf32> to vector<8xf32>
    %302 = vector.shape_cast %301 : vector<8xf32> to vector<8x1xf32>
    %cst_101 = arith.constant 3.200000e+01 : f32
    %303 = vector.broadcast %cst_101 : f32 to vector<8x1xf32>
    %304 = arith.divf %302, %303 : vector<8x1xf32>
    %305 = vector.broadcast %304 : vector<8x1xf32> to vector<8x32xf32>
    %306 = arith.subf %298, %305 : vector<8x32xf32>
    %307 = arith.mulf %306, %306 : vector<8x32xf32>
    %cst_102 = arith.constant dense<0.000000e+00> : vector<8xf32>
    %308 = vector.multi_reduction <add>, %307, %cst_102 [1] : vector<8x32xf32> to vector<8xf32>
    %309 = vector.shape_cast %308 : vector<8xf32> to vector<8x1xf32>
    %cst_103 = arith.constant 3.200000e+01 : f32
    %310 = vector.broadcast %cst_103 : f32 to vector<8x1xf32>
    %311 = arith.divf %309, %310 : vector<8x1xf32>
    %cst_104 = arith.constant 9.99999974E-6 : f32
    %312 = vector.broadcast %cst_104 : f32 to vector<8x1xf32>
    %313 = arith.addf %311, %312 : vector<8x1xf32>
    %314 = math.rsqrt %313 : vector<8x1xf32>
    %315 = vector.broadcast %314 : vector<8x1xf32> to vector<8x32xf32>
    %316 = arith.mulf %306, %315 : vector<8x32xf32>
    %317 = vector.broadcast %299 : vector<1x32xf32> to vector<8x32xf32>
    %318 = arith.mulf %316, %317 : vector<8x32xf32>
    %319 = vector.broadcast %300 : vector<1x32xf32> to vector<8x32xf32>
    %320 = arith.addf %318, %319 : vector<8x32xf32>
    %c1_105 = arith.constant 1 : index
    %c0_106 = arith.constant 0 : index
    %c0_107 = arith.constant 0 : index
    %321 = vector.load %arg6[%c1_105, %c0_106, %c0_107] : memref<8x32x32xf32, #tpu.memory_space<vmem>>, vector<1x32x32xf32>
    %322 = vector.shape_cast %321 : vector<1x32x32xf32> to vector<32x32xf32>
    %cst_108 = arith.constant dense<0.000000e+00> : vector<8x32xf32>
    %323 = tpu.matmul %320, %322, %cst_108 {dimension_numbers = #tpu.dot_dimension_numbers<[1], [0], [0], [1], [0, 0, 1, 1], [], []>} : vector<8x32xf32>, vector<32x32xf32>, vector<8x32xf32> -> vector<8x32xf32>
    %c2_109 = arith.constant 2 : index
    %c0_110 = arith.constant 0 : index
    %324 = vector.load %arg4[%c2_109, %c0_110] : memref<16x32xf32, #tpu.memory_space<vmem>>, vector<1x32xf32>
    %325 = vector.broadcast %324 : vector<1x32xf32> to vector<8x32xf32>
    %326 = arith.addf %323, %325 : vector<8x32xf32>
    %c2_111 = arith.constant 2 : index
    %c0_112 = arith.constant 0 : index
    %c0_113 = arith.constant 0 : index
    %327 = vector.load %arg6[%c2_111, %c0_112, %c0_113] : memref<8x32x32xf32, #tpu.memory_space<vmem>>, vector<1x32x32xf32>
    %328 = vector.shape_cast %327 : vector<1x32x32xf32> to vector<32x32xf32>
    %cst_114 = arith.constant dense<0.000000e+00> : vector<8x32xf32>
    %329 = tpu.matmul %320, %328, %cst_114 {dimension_numbers = #tpu.dot_dimension_numbers<[1], [0], [0], [1], [0, 0, 1, 1], [], []>} : vector<8x32xf32>, vector<32x32xf32>, vector<8x32xf32> -> vector<8x32xf32>
    %c3_115 = arith.constant 3 : index
    %c0_116 = arith.constant 0 : index
    %330 = vector.load %arg4[%c3_115, %c0_116] : memref<16x32xf32, #tpu.memory_space<vmem>>, vector<1x32xf32>
    %331 = vector.broadcast %330 : vector<1x32xf32> to vector<8x32xf32>
    %332 = arith.addf %329, %331 : vector<8x32xf32>
    %333 = arith.negf %332 : vector<8x32xf32>
    %334 = math.exp %333 : vector<8x32xf32>
    %cst_117 = arith.constant 1.000000e+00 : f32
    %335 = vector.broadcast %cst_117 : f32 to vector<8x32xf32>
    %336 = arith.addf %335, %334 : vector<8x32xf32>
    %337 = arith.divf %335, %336 : vector<8x32xf32>
    %338 = arith.mulf %326, %337 : vector<8x32xf32>
    %cst_118 = arith.constant 0.000000e+00 : f32
    %339 = vector.broadcast %cst_118 : f32 to vector<3x32xf32>
    %340 = tpu.concatenate %339, %338, %339 in 0 : vector<3x32xf32>, vector<8x32xf32>, vector<3x32xf32> -> vector<14x32xf32>
    %c0_119 = arith.constant 0 : index
    %c0_120 = arith.constant 0 : index
    %c0_121 = arith.constant 0 : index
    %341 = vector.load %arg11[%c0_119, %c0_120, %c0_121] : memref<2x7x32xf32, #tpu.memory_space<vmem>>, vector<1x7x32xf32>
    %342 = vector.shape_cast %341 : vector<1x7x32xf32> to vector<7x32xf32>
    %cst_122 = arith.constant 0.000000e+00 : f32
    %343 = vector.broadcast %cst_122 : f32 to vector<8x32xf32>
    %344 = vector.extract_strided_slice %340 {offsets = [0, 0], sizes = [8, 32], strides = [1, 1]} : vector<14x32xf32> to vector<8x32xf32>
    %345 = vector.extract_strided_slice %342 {offsets = [0, 0], sizes = [1, 32], strides = [1, 1]} : vector<7x32xf32> to vector<1x32xf32>
    %346 = vector.broadcast %345 : vector<1x32xf32> to vector<8x32xf32>
    %347 = arith.mulf %344, %346 : vector<8x32xf32>
    %348 = arith.addf %343, %347 : vector<8x32xf32>
    %349 = vector.extract_strided_slice %340 {offsets = [1, 0], sizes = [8, 32], strides = [1, 1]} : vector<14x32xf32> to vector<8x32xf32>
    %350 = vector.extract_strided_slice %342 {offsets = [1, 0], sizes = [1, 32], strides = [1, 1]} : vector<7x32xf32> to vector<1x32xf32>
    %351 = vector.broadcast %350 : vector<1x32xf32> to vector<8x32xf32>
    %352 = arith.mulf %349, %351 : vector<8x32xf32>
    %353 = arith.addf %348, %352 : vector<8x32xf32>
    %354 = vector.extract_strided_slice %340 {offsets = [2, 0], sizes = [8, 32], strides = [1, 1]} : vector<14x32xf32> to vector<8x32xf32>
    %355 = vector.extract_strided_slice %342 {offsets = [2, 0], sizes = [1, 32], strides = [1, 1]} : vector<7x32xf32> to vector<1x32xf32>
    %356 = vector.broadcast %355 : vector<1x32xf32> to vector<8x32xf32>
    %357 = arith.mulf %354, %356 : vector<8x32xf32>
    %358 = arith.addf %353, %357 : vector<8x32xf32>
    %359 = vector.extract_strided_slice %340 {offsets = [3, 0], sizes = [8, 32], strides = [1, 1]} : vector<14x32xf32> to vector<8x32xf32>
    %360 = vector.extract_strided_slice %342 {offsets = [3, 0], sizes = [1, 32], strides = [1, 1]} : vector<7x32xf32> to vector<1x32xf32>
    %361 = vector.broadcast %360 : vector<1x32xf32> to vector<8x32xf32>
    %362 = arith.mulf %359, %361 : vector<8x32xf32>
    %363 = arith.addf %358, %362 : vector<8x32xf32>
    %364 = vector.extract_strided_slice %340 {offsets = [4, 0], sizes = [8, 32], strides = [1, 1]} : vector<14x32xf32> to vector<8x32xf32>
    %365 = vector.extract_strided_slice %342 {offsets = [4, 0], sizes = [1, 32], strides = [1, 1]} : vector<7x32xf32> to vector<1x32xf32>
    %366 = vector.broadcast %365 : vector<1x32xf32> to vector<8x32xf32>
    %367 = arith.mulf %364, %366 : vector<8x32xf32>
    %368 = arith.addf %363, %367 : vector<8x32xf32>
    %369 = vector.extract_strided_slice %340 {offsets = [5, 0], sizes = [8, 32], strides = [1, 1]} : vector<14x32xf32> to vector<8x32xf32>
    %370 = vector.extract_strided_slice %342 {offsets = [5, 0], sizes = [1, 32], strides = [1, 1]} : vector<7x32xf32> to vector<1x32xf32>
    %371 = vector.broadcast %370 : vector<1x32xf32> to vector<8x32xf32>
    %372 = arith.mulf %369, %371 : vector<8x32xf32>
    %373 = arith.addf %368, %372 : vector<8x32xf32>
    %374 = vector.extract_strided_slice %340 {offsets = [6, 0], sizes = [8, 32], strides = [1, 1]} : vector<14x32xf32> to vector<8x32xf32>
    %375 = vector.extract_strided_slice %342 {offsets = [6, 0], sizes = [1, 32], strides = [1, 1]} : vector<7x32xf32> to vector<1x32xf32>
    %376 = vector.broadcast %375 : vector<1x32xf32> to vector<8x32xf32>
    %377 = arith.mulf %374, %376 : vector<8x32xf32>
    %378 = arith.addf %373, %377 : vector<8x32xf32>
    %c4_123 = arith.constant 4 : index
    %c0_124 = arith.constant 0 : index
    %379 = vector.load %arg4[%c4_123, %c0_124] : memref<16x32xf32, #tpu.memory_space<vmem>>, vector<1x32xf32>
    %380 = vector.broadcast %379 : vector<1x32xf32> to vector<8x32xf32>
    %381 = arith.mulf %378, %380 : vector<8x32xf32>
    %c5_125 = arith.constant 5 : index
    %c0_126 = arith.constant 0 : index
    %382 = vector.load %arg4[%c5_125, %c0_126] : memref<16x32xf32, #tpu.memory_space<vmem>>, vector<1x32xf32>
    %383 = vector.broadcast %382 : vector<1x32xf32> to vector<8x32xf32>
    %384 = arith.addf %381, %383 : vector<8x32xf32>
    %385 = arith.negf %384 : vector<8x32xf32>
    %386 = math.exp %385 : vector<8x32xf32>
    %cst_127 = arith.constant 1.000000e+00 : f32
    %387 = vector.broadcast %cst_127 : f32 to vector<8x32xf32>
    %388 = arith.addf %387, %386 : vector<8x32xf32>
    %389 = arith.divf %387, %388 : vector<8x32xf32>
    %390 = arith.mulf %384, %389 : vector<8x32xf32>
    %c3_128 = arith.constant 3 : index
    %c0_129 = arith.constant 0 : index
    %c0_130 = arith.constant 0 : index
    %391 = vector.load %arg6[%c3_128, %c0_129, %c0_130] : memref<8x32x32xf32, #tpu.memory_space<vmem>>, vector<1x32x32xf32>
    %392 = vector.shape_cast %391 : vector<1x32x32xf32> to vector<32x32xf32>
    %cst_131 = arith.constant dense<0.000000e+00> : vector<8x32xf32>
    %393 = tpu.matmul %390, %392, %cst_131 {dimension_numbers = #tpu.dot_dimension_numbers<[1], [0], [0], [1], [0, 0, 1, 1], [], []>} : vector<8x32xf32>, vector<32x32xf32>, vector<8x32xf32> -> vector<8x32xf32>
    %394 = arith.addf %298, %393 : vector<8x32xf32>
    %c6 = arith.constant 6 : index
    %c0_132 = arith.constant 0 : index
    %395 = vector.load %arg4[%c6, %c0_132] : memref<16x32xf32, #tpu.memory_space<vmem>>, vector<1x32xf32>
    %396 = vector.broadcast %395 : vector<1x32xf32> to vector<8x32xf32>
    %397 = arith.addf %394, %396 : vector<8x32xf32>
    %c6_133 = arith.constant 6 : index
    %c0_134 = arith.constant 0 : index
    %398 = vector.load %arg3[%c6_133, %c0_134] : memref<20x32xf32, #tpu.memory_space<vmem>>, vector<1x32xf32>
    %c7 = arith.constant 7 : index
    %c0_135 = arith.constant 0 : index
    %399 = vector.load %arg3[%c7, %c0_135] : memref<20x32xf32, #tpu.memory_space<vmem>>, vector<1x32xf32>
    %cst_136 = arith.constant dense<0.000000e+00> : vector<8xf32>
    %400 = vector.multi_reduction <add>, %397, %cst_136 [1] : vector<8x32xf32> to vector<8xf32>
    %401 = vector.shape_cast %400 : vector<8xf32> to vector<8x1xf32>
    %cst_137 = arith.constant 3.200000e+01 : f32
    %402 = vector.broadcast %cst_137 : f32 to vector<8x1xf32>
    %403 = arith.divf %401, %402 : vector<8x1xf32>
    %404 = vector.broadcast %403 : vector<8x1xf32> to vector<8x32xf32>
    %405 = arith.subf %397, %404 : vector<8x32xf32>
    %406 = arith.mulf %405, %405 : vector<8x32xf32>
    %cst_138 = arith.constant dense<0.000000e+00> : vector<8xf32>
    %407 = vector.multi_reduction <add>, %406, %cst_138 [1] : vector<8x32xf32> to vector<8xf32>
    %408 = vector.shape_cast %407 : vector<8xf32> to vector<8x1xf32>
    %cst_139 = arith.constant 3.200000e+01 : f32
    %409 = vector.broadcast %cst_139 : f32 to vector<8x1xf32>
    %410 = arith.divf %408, %409 : vector<8x1xf32>
    %cst_140 = arith.constant 9.99999974E-6 : f32
    %411 = vector.broadcast %cst_140 : f32 to vector<8x1xf32>
    %412 = arith.addf %410, %411 : vector<8x1xf32>
    %413 = math.rsqrt %412 : vector<8x1xf32>
    %414 = vector.broadcast %413 : vector<8x1xf32> to vector<8x32xf32>
    %415 = arith.mulf %405, %414 : vector<8x32xf32>
    %416 = vector.broadcast %398 : vector<1x32xf32> to vector<8x32xf32>
    %417 = arith.mulf %415, %416 : vector<8x32xf32>
    %418 = vector.broadcast %399 : vector<1x32xf32> to vector<8x32xf32>
    %419 = arith.addf %417, %418 : vector<8x32xf32>
    %c1_141 = arith.constant 1 : index
    %c0_142 = arith.constant 0 : index
    %c0_143 = arith.constant 0 : index
    %420 = vector.load %arg7[%c1_141, %c0_142, %c0_143] : memref<4x32x128xf32, #tpu.memory_space<vmem>>, vector<1x32x128xf32>
    %421 = vector.shape_cast %420 : vector<1x32x128xf32> to vector<32x128xf32>
    %cst_144 = arith.constant dense<0.000000e+00> : vector<8x128xf32>
    %422 = tpu.matmul %419, %421, %cst_144 {dimension_numbers = #tpu.dot_dimension_numbers<[1], [0], [0], [1], [0, 0, 1, 1], [], []>} : vector<8x32xf32>, vector<32x128xf32>, vector<8x128xf32> -> vector<8x128xf32>
    %c2_145 = arith.constant 2 : index
    %c0_146 = arith.constant 0 : index
    %423 = vector.load %arg5[%c2_145, %c0_146] : memref<6x128xf32, #tpu.memory_space<vmem>>, vector<1x128xf32>
    %424 = vector.broadcast %423 : vector<1x128xf32> to vector<8x128xf32>
    %425 = arith.addf %422, %424 : vector<8x128xf32>
    %426 = arith.negf %425 : vector<8x128xf32>
    %427 = math.exp %426 : vector<8x128xf32>
    %cst_147 = arith.constant 1.000000e+00 : f32
    %428 = vector.broadcast %cst_147 : f32 to vector<8x128xf32>
    %429 = arith.addf %428, %427 : vector<8x128xf32>
    %430 = arith.divf %428, %429 : vector<8x128xf32>
    %431 = arith.mulf %425, %430 : vector<8x128xf32>
    %c1_148 = arith.constant 1 : index
    %c0_149 = arith.constant 0 : index
    %c0_150 = arith.constant 0 : index
    %432 = vector.load %arg8[%c1_148, %c0_149, %c0_150] : memref<4x128x32xf32, #tpu.memory_space<vmem>>, vector<1x128x32xf32>
    %433 = vector.shape_cast %432 : vector<1x128x32xf32> to vector<128x32xf32>
    %cst_151 = arith.constant dense<0.000000e+00> : vector<8x32xf32>
    %434 = tpu.matmul %431, %433, %cst_151 {dimension_numbers = #tpu.dot_dimension_numbers<[1], [0], [0], [1], [0, 0, 1, 1], [], []>} : vector<8x128xf32>, vector<128x32xf32>, vector<8x32xf32> -> vector<8x32xf32>
    %c7_152 = arith.constant 7 : index
    %c0_153 = arith.constant 0 : index
    %435 = vector.load %arg4[%c7_152, %c0_153] : memref<16x32xf32, #tpu.memory_space<vmem>>, vector<1x32xf32>
    %436 = vector.broadcast %435 : vector<1x32xf32> to vector<8x32xf32>
    %437 = arith.addf %434, %436 : vector<8x32xf32>
    %cst_154 = arith.constant 5.000000e-01 : f32
    %438 = vector.broadcast %cst_154 : f32 to vector<8x32xf32>
    %439 = arith.mulf %438, %437 : vector<8x32xf32>
    %440 = arith.addf %397, %439 : vector<8x32xf32>
    %c8 = arith.constant 8 : index
    %c0_155 = arith.constant 0 : index
    %441 = vector.load %arg3[%c8, %c0_155] : memref<20x32xf32, #tpu.memory_space<vmem>>, vector<1x32xf32>
    %c9 = arith.constant 9 : index
    %c0_156 = arith.constant 0 : index
    %442 = vector.load %arg3[%c9, %c0_156] : memref<20x32xf32, #tpu.memory_space<vmem>>, vector<1x32xf32>
    %cst_157 = arith.constant dense<0.000000e+00> : vector<8xf32>
    %443 = vector.multi_reduction <add>, %440, %cst_157 [1] : vector<8x32xf32> to vector<8xf32>
    %444 = vector.shape_cast %443 : vector<8xf32> to vector<8x1xf32>
    %cst_158 = arith.constant 3.200000e+01 : f32
    %445 = vector.broadcast %cst_158 : f32 to vector<8x1xf32>
    %446 = arith.divf %444, %445 : vector<8x1xf32>
    %447 = vector.broadcast %446 : vector<8x1xf32> to vector<8x32xf32>
    %448 = arith.subf %440, %447 : vector<8x32xf32>
    %449 = arith.mulf %448, %448 : vector<8x32xf32>
    %cst_159 = arith.constant dense<0.000000e+00> : vector<8xf32>
    %450 = vector.multi_reduction <add>, %449, %cst_159 [1] : vector<8x32xf32> to vector<8xf32>
    %451 = vector.shape_cast %450 : vector<8xf32> to vector<8x1xf32>
    %cst_160 = arith.constant 3.200000e+01 : f32
    %452 = vector.broadcast %cst_160 : f32 to vector<8x1xf32>
    %453 = arith.divf %451, %452 : vector<8x1xf32>
    %cst_161 = arith.constant 9.99999974E-6 : f32
    %454 = vector.broadcast %cst_161 : f32 to vector<8x1xf32>
    %455 = arith.addf %453, %454 : vector<8x1xf32>
    %456 = math.rsqrt %455 : vector<8x1xf32>
    %457 = vector.broadcast %456 : vector<8x1xf32> to vector<8x32xf32>
    %458 = arith.mulf %448, %457 : vector<8x32xf32>
    %459 = vector.broadcast %441 : vector<1x32xf32> to vector<8x32xf32>
    %460 = arith.mulf %458, %459 : vector<8x32xf32>
    %461 = vector.broadcast %442 : vector<1x32xf32> to vector<8x32xf32>
    %462 = arith.addf %460, %461 : vector<8x32xf32>
    %c10 = arith.constant 10 : index
    %c0_162 = arith.constant 0 : index
    %463 = vector.load %arg3[%c10, %c0_162] : memref<20x32xf32, #tpu.memory_space<vmem>>, vector<1x32xf32>
    %c11 = arith.constant 11 : index
    %c0_163 = arith.constant 0 : index
    %464 = vector.load %arg3[%c11, %c0_163] : memref<20x32xf32, #tpu.memory_space<vmem>>, vector<1x32xf32>
    %cst_164 = arith.constant dense<0.000000e+00> : vector<8xf32>
    %465 = vector.multi_reduction <add>, %462, %cst_164 [1] : vector<8x32xf32> to vector<8xf32>
    %466 = vector.shape_cast %465 : vector<8xf32> to vector<8x1xf32>
    %cst_165 = arith.constant 3.200000e+01 : f32
    %467 = vector.broadcast %cst_165 : f32 to vector<8x1xf32>
    %468 = arith.divf %466, %467 : vector<8x1xf32>
    %469 = vector.broadcast %468 : vector<8x1xf32> to vector<8x32xf32>
    %470 = arith.subf %462, %469 : vector<8x32xf32>
    %471 = arith.mulf %470, %470 : vector<8x32xf32>
    %cst_166 = arith.constant dense<0.000000e+00> : vector<8xf32>
    %472 = vector.multi_reduction <add>, %471, %cst_166 [1] : vector<8x32xf32> to vector<8xf32>
    %473 = vector.shape_cast %472 : vector<8xf32> to vector<8x1xf32>
    %cst_167 = arith.constant 3.200000e+01 : f32
    %474 = vector.broadcast %cst_167 : f32 to vector<8x1xf32>
    %475 = arith.divf %473, %474 : vector<8x1xf32>
    %cst_168 = arith.constant 9.99999974E-6 : f32
    %476 = vector.broadcast %cst_168 : f32 to vector<8x1xf32>
    %477 = arith.addf %475, %476 : vector<8x1xf32>
    %478 = math.rsqrt %477 : vector<8x1xf32>
    %479 = vector.broadcast %478 : vector<8x1xf32> to vector<8x32xf32>
    %480 = arith.mulf %470, %479 : vector<8x32xf32>
    %481 = vector.broadcast %463 : vector<1x32xf32> to vector<8x32xf32>
    %482 = arith.mulf %480, %481 : vector<8x32xf32>
    %483 = vector.broadcast %464 : vector<1x32xf32> to vector<8x32xf32>
    %484 = arith.addf %482, %483 : vector<8x32xf32>
    %c2_169 = arith.constant 2 : index
    %c0_170 = arith.constant 0 : index
    %c0_171 = arith.constant 0 : index
    %485 = vector.load %arg7[%c2_169, %c0_170, %c0_171] : memref<4x32x128xf32, #tpu.memory_space<vmem>>, vector<1x32x128xf32>
    %486 = vector.shape_cast %485 : vector<1x32x128xf32> to vector<32x128xf32>
    %cst_172 = arith.constant dense<0.000000e+00> : vector<8x128xf32>
    %487 = tpu.matmul %484, %486, %cst_172 {dimension_numbers = #tpu.dot_dimension_numbers<[1], [0], [0], [1], [0, 0, 1, 1], [], []>} : vector<8x32xf32>, vector<32x128xf32>, vector<8x128xf32> -> vector<8x128xf32>
    %c3_173 = arith.constant 3 : index
    %c0_174 = arith.constant 0 : index
    %488 = vector.load %arg5[%c3_173, %c0_174] : memref<6x128xf32, #tpu.memory_space<vmem>>, vector<1x128xf32>
    %489 = vector.broadcast %488 : vector<1x128xf32> to vector<8x128xf32>
    %490 = arith.addf %487, %489 : vector<8x128xf32>
    %491 = arith.negf %490 : vector<8x128xf32>
    %492 = math.exp %491 : vector<8x128xf32>
    %cst_175 = arith.constant 1.000000e+00 : f32
    %493 = vector.broadcast %cst_175 : f32 to vector<8x128xf32>
    %494 = arith.addf %493, %492 : vector<8x128xf32>
    %495 = arith.divf %493, %494 : vector<8x128xf32>
    %496 = arith.mulf %490, %495 : vector<8x128xf32>
    %c2_176 = arith.constant 2 : index
    %c0_177 = arith.constant 0 : index
    %c0_178 = arith.constant 0 : index
    %497 = vector.load %arg8[%c2_176, %c0_177, %c0_178] : memref<4x128x32xf32, #tpu.memory_space<vmem>>, vector<1x128x32xf32>
    %498 = vector.shape_cast %497 : vector<1x128x32xf32> to vector<128x32xf32>
    %cst_179 = arith.constant dense<0.000000e+00> : vector<8x32xf32>
    %499 = tpu.matmul %496, %498, %cst_179 {dimension_numbers = #tpu.dot_dimension_numbers<[1], [0], [0], [1], [0, 0, 1, 1], [], []>} : vector<8x128xf32>, vector<128x32xf32>, vector<8x32xf32> -> vector<8x32xf32>
    %c8_180 = arith.constant 8 : index
    %c0_181 = arith.constant 0 : index
    %500 = vector.load %arg4[%c8_180, %c0_181] : memref<16x32xf32, #tpu.memory_space<vmem>>, vector<1x32xf32>
    %501 = vector.broadcast %500 : vector<1x32xf32> to vector<8x32xf32>
    %502 = arith.addf %499, %501 : vector<8x32xf32>
    %cst_182 = arith.constant 5.000000e-01 : f32
    %503 = vector.broadcast %cst_182 : f32 to vector<8x32xf32>
    %504 = arith.mulf %503, %502 : vector<8x32xf32>
    %505 = arith.addf %462, %504 : vector<8x32xf32>
    %c12 = arith.constant 12 : index
    %c0_183 = arith.constant 0 : index
    %506 = vector.load %arg3[%c12, %c0_183] : memref<20x32xf32, #tpu.memory_space<vmem>>, vector<1x32xf32>
    %c13 = arith.constant 13 : index
    %c0_184 = arith.constant 0 : index
    %507 = vector.load %arg3[%c13, %c0_184] : memref<20x32xf32, #tpu.memory_space<vmem>>, vector<1x32xf32>
    %cst_185 = arith.constant dense<0.000000e+00> : vector<8xf32>
    %508 = vector.multi_reduction <add>, %505, %cst_185 [1] : vector<8x32xf32> to vector<8xf32>
    %509 = vector.shape_cast %508 : vector<8xf32> to vector<8x1xf32>
    %cst_186 = arith.constant 3.200000e+01 : f32
    %510 = vector.broadcast %cst_186 : f32 to vector<8x1xf32>
    %511 = arith.divf %509, %510 : vector<8x1xf32>
    %512 = vector.broadcast %511 : vector<8x1xf32> to vector<8x32xf32>
    %513 = arith.subf %505, %512 : vector<8x32xf32>
    %514 = arith.mulf %513, %513 : vector<8x32xf32>
    %cst_187 = arith.constant dense<0.000000e+00> : vector<8xf32>
    %515 = vector.multi_reduction <add>, %514, %cst_187 [1] : vector<8x32xf32> to vector<8xf32>
    %516 = vector.shape_cast %515 : vector<8xf32> to vector<8x1xf32>
    %cst_188 = arith.constant 3.200000e+01 : f32
    %517 = vector.broadcast %cst_188 : f32 to vector<8x1xf32>
    %518 = arith.divf %516, %517 : vector<8x1xf32>
    %cst_189 = arith.constant 9.99999974E-6 : f32
    %519 = vector.broadcast %cst_189 : f32 to vector<8x1xf32>
    %520 = arith.addf %518, %519 : vector<8x1xf32>
    %521 = math.rsqrt %520 : vector<8x1xf32>
    %522 = vector.broadcast %521 : vector<8x1xf32> to vector<8x32xf32>
    %523 = arith.mulf %513, %522 : vector<8x32xf32>
    %524 = vector.broadcast %506 : vector<1x32xf32> to vector<8x32xf32>
    %525 = arith.mulf %523, %524 : vector<8x32xf32>
    %526 = vector.broadcast %507 : vector<1x32xf32> to vector<8x32xf32>
    %527 = arith.addf %525, %526 : vector<8x32xf32>
    %528 = tpu.concatenate %527, %462, %2 in 1 : vector<8x32xf32>, vector<8x32xf32>, vector<8x32xf32> -> vector<8x96xf32>
    %c1_190 = arith.constant 1 : index
    %c0_191 = arith.constant 0 : index
    %c0_192 = arith.constant 0 : index
    %529 = vector.load %arg9[%c1_190, %c0_191, %c0_192] : memref<2x96x128xf32, #tpu.memory_space<vmem>>, vector<1x96x128xf32>
    %530 = vector.shape_cast %529 : vector<1x96x128xf32> to vector<96x128xf32>
    %cst_193 = arith.constant dense<0.000000e+00> : vector<8x128xf32>
    %531 = tpu.matmul %528, %530, %cst_193 {dimension_numbers = #tpu.dot_dimension_numbers<[1], [0], [0], [1], [0, 0, 1, 1], [], []>} : vector<8x96xf32>, vector<96x128xf32>, vector<8x128xf32> -> vector<8x128xf32>
    %c4_194 = arith.constant 4 : index
    %c0_195 = arith.constant 0 : index
    %532 = vector.load %arg5[%c4_194, %c0_195] : memref<6x128xf32, #tpu.memory_space<vmem>>, vector<1x128xf32>
    %533 = vector.broadcast %532 : vector<1x128xf32> to vector<8x128xf32>
    %534 = arith.addf %531, %533 : vector<8x128xf32>
    %c2_196 = arith.constant 2 : index
    %c0_197 = arith.constant 0 : index
    %c0_198 = arith.constant 0 : index
    %535 = vector.load %arg10[%c2_196, %c0_197, %c0_198] : memref<4x4x8xf32, #tpu.memory_space<vmem>>, vector<1x4x8xf32>
    %536 = vector.shape_cast %535 : vector<1x4x8xf32> to vector<4x8xf32>
    %c3_199 = arith.constant 3 : index
    %c0_200 = arith.constant 0 : index
    %c0_201 = arith.constant 0 : index
    %537 = vector.load %arg10[%c3_199, %c0_200, %c0_201] : memref<4x4x8xf32, #tpu.memory_space<vmem>>, vector<1x4x8xf32>
    %538 = vector.shape_cast %537 : vector<1x4x8xf32> to vector<4x8xf32>
    %539 = vector.extract_strided_slice %534 {offsets = [0, 0], sizes = [8, 8], strides = [1, 1]} : vector<8x128xf32> to vector<8x8xf32>
    %540 = vector.extract_strided_slice %534 {offsets = [0, 32], sizes = [8, 8], strides = [1, 1]} : vector<8x128xf32> to vector<8x8xf32>
    %541 = vector.extract_strided_slice %534 {offsets = [0, 64], sizes = [8, 8], strides = [1, 1]} : vector<8x128xf32> to vector<8x8xf32>
    %542 = vector.extract_strided_slice %534 {offsets = [0, 96], sizes = [8, 8], strides = [1, 1]} : vector<8x128xf32> to vector<8x8xf32>
    %543 = vector.extract_strided_slice %536 {offsets = [0, 0], sizes = [1, 8], strides = [1, 1]} : vector<4x8xf32> to vector<1x8xf32>
    %544 = vector.broadcast %543 : vector<1x8xf32> to vector<8x8xf32>
    %545 = arith.addf %539, %544 : vector<8x8xf32>
    %546 = vector.extract_strided_slice %538 {offsets = [0, 0], sizes = [1, 8], strides = [1, 1]} : vector<4x8xf32> to vector<1x8xf32>
    %547 = vector.broadcast %546 : vector<1x8xf32> to vector<8x8xf32>
    %548 = arith.addf %539, %547 : vector<8x8xf32>
    %cst_202 = arith.constant dense<0.000000e+00> : vector<8x8xf32>
    %549 = tpu.matmul %545, %540, %cst_202 {dimension_numbers = #tpu.dot_dimension_numbers<[1], [1], [0], [0], [0, 0, 1, 0], [], []>} : vector<8x8xf32>, vector<8x8xf32>, vector<8x8xf32> -> vector<8x8xf32>
    %cst_203 = arith.constant dense<0.000000e+00> : vector<8x8xf32>
    %550 = tpu.matmul %548, %542, %cst_203 {dimension_numbers = #tpu.dot_dimension_numbers<[1], [1], [0], [0], [0, 0, 1, 0], [], []>} : vector<8x8xf32>, vector<8x8xf32>, vector<8x8xf32> -> vector<8x8xf32>
    %551 = vector.extract_strided_slice %550 {offsets = [0, 7], sizes = [1, 1], strides = [1, 1]} : vector<8x8xf32> to vector<1x1xf32>
    %cst_204 = arith.constant 0.000000e+00 : f32
    %552 = vector.broadcast %cst_204 : f32 to vector<1x1xf32>
    %553 = vector.extract_strided_slice %550 {offsets = [1, 0], sizes = [1, 6], strides = [1, 1]} : vector<8x8xf32> to vector<1x6xf32>
    %554 = tpu.concatenate %551, %552, %553 in 1 : vector<1x1xf32>, vector<1x1xf32>, vector<1x6xf32> -> vector<1x8xf32>
    %555 = vector.extract_strided_slice %550 {offsets = [1, 6], sizes = [1, 2], strides = [1, 1]} : vector<8x8xf32> to vector<1x2xf32>
    %cst_205 = arith.constant 0.000000e+00 : f32
    %556 = vector.broadcast %cst_205 : f32 to vector<1x1xf32>
    %557 = vector.extract_strided_slice %550 {offsets = [2, 0], sizes = [1, 5], strides = [1, 1]} : vector<8x8xf32> to vector<1x5xf32>
    %558 = tpu.concatenate %555, %556, %557 in 1 : vector<1x2xf32>, vector<1x1xf32>, vector<1x5xf32> -> vector<1x8xf32>
    %559 = vector.extract_strided_slice %550 {offsets = [2, 5], sizes = [1, 3], strides = [1, 1]} : vector<8x8xf32> to vector<1x3xf32>
    %cst_206 = arith.constant 0.000000e+00 : f32
    %560 = vector.broadcast %cst_206 : f32 to vector<1x1xf32>
    %561 = vector.extract_strided_slice %550 {offsets = [3, 0], sizes = [1, 4], strides = [1, 1]} : vector<8x8xf32> to vector<1x4xf32>
    %562 = tpu.concatenate %559, %560, %561 in 1 : vector<1x3xf32>, vector<1x1xf32>, vector<1x4xf32> -> vector<1x8xf32>
    %563 = vector.extract_strided_slice %550 {offsets = [3, 4], sizes = [1, 4], strides = [1, 1]} : vector<8x8xf32> to vector<1x4xf32>
    %cst_207 = arith.constant 0.000000e+00 : f32
    %564 = vector.broadcast %cst_207 : f32 to vector<1x1xf32>
    %565 = vector.extract_strided_slice %550 {offsets = [4, 0], sizes = [1, 3], strides = [1, 1]} : vector<8x8xf32> to vector<1x3xf32>
    %566 = tpu.concatenate %563, %564, %565 in 1 : vector<1x4xf32>, vector<1x1xf32>, vector<1x3xf32> -> vector<1x8xf32>
    %567 = vector.extract_strided_slice %550 {offsets = [4, 3], sizes = [1, 5], strides = [1, 1]} : vector<8x8xf32> to vector<1x5xf32>
    %cst_208 = arith.constant 0.000000e+00 : f32
    %568 = vector.broadcast %cst_208 : f32 to vector<1x1xf32>
    %569 = vector.extract_strided_slice %550 {offsets = [5, 0], sizes = [1, 2], strides = [1, 1]} : vector<8x8xf32> to vector<1x2xf32>
    %570 = tpu.concatenate %567, %568, %569 in 1 : vector<1x5xf32>, vector<1x1xf32>, vector<1x2xf32> -> vector<1x8xf32>
    %571 = vector.extract_strided_slice %550 {offsets = [5, 2], sizes = [1, 6], strides = [1, 1]} : vector<8x8xf32> to vector<1x6xf32>
    %cst_209 = arith.constant 0.000000e+00 : f32
    %572 = vector.broadcast %cst_209 : f32 to vector<1x1xf32>
    %573 = vector.extract_strided_slice %550 {offsets = [6, 0], sizes = [1, 1], strides = [1, 1]} : vector<8x8xf32> to vector<1x1xf32>
    %574 = tpu.concatenate %571, %572, %573 in 1 : vector<1x6xf32>, vector<1x1xf32>, vector<1x1xf32> -> vector<1x8xf32>
    %575 = vector.extract_strided_slice %550 {offsets = [6, 1], sizes = [1, 7], strides = [1, 1]} : vector<8x8xf32> to vector<1x7xf32>
    %cst_210 = arith.constant 0.000000e+00 : f32
    %576 = vector.broadcast %cst_210 : f32 to vector<1x1xf32>
    %577 = tpu.concatenate %575, %576 in 1 : vector<1x7xf32>, vector<1x1xf32> -> vector<1x8xf32>
    %578 = vector.extract_strided_slice %550 {offsets = [7, 0], sizes = [1, 8], strides = [1, 1]} : vector<8x8xf32> to vector<1x8xf32>
    %579 = tpu.concatenate %554, %558, %562, %566, %570, %574, %577, %578 in 0 : vector<1x8xf32>, vector<1x8xf32>, vector<1x8xf32>, vector<1x8xf32>, vector<1x8xf32>, vector<1x8xf32>, vector<1x8xf32>, vector<1x8xf32> -> vector<8x8xf32>
    %580 = arith.addf %549, %579 : vector<8x8xf32>
    %cst_211 = arith.constant dense<0xFF800000> : vector<8xf32>
    %581 = vector.multi_reduction <maximumf>, %580, %cst_211 [1] : vector<8x8xf32> to vector<8xf32>
    %582 = vector.shape_cast %581 : vector<8xf32> to vector<8x1xf32>
    %583 = vector.broadcast %582 : vector<8x1xf32> to vector<8x8xf32>
    %584 = arith.subf %580, %583 : vector<8x8xf32>
    %585 = math.exp %584 : vector<8x8xf32>
    %cst_212 = arith.constant dense<0.000000e+00> : vector<8xf32>
    %586 = vector.multi_reduction <add>, %585, %cst_212 [1] : vector<8x8xf32> to vector<8xf32>
    %587 = vector.shape_cast %586 : vector<8xf32> to vector<8x1xf32>
    %588 = tpu.reciprocal %587 {approx = true} : vector<8x1xf32> -> vector<8x1xf32>
    %589 = vector.broadcast %588 : vector<8x1xf32> to vector<8x8xf32>
    %590 = arith.mulf %585, %589 : vector<8x8xf32>
    %cst_213 = arith.constant dense<0.000000e+00> : vector<8x8xf32>
    %591 = tpu.matmul %590, %541, %cst_213 {dimension_numbers = #tpu.dot_dimension_numbers<[1], [0], [0], [1], [0, 0, 1, 1], [], []>} : vector<8x8xf32>, vector<8x8xf32>, vector<8x8xf32> -> vector<8x8xf32>
    %592 = vector.extract_strided_slice %534 {offsets = [0, 8], sizes = [8, 8], strides = [1, 1]} : vector<8x128xf32> to vector<8x8xf32>
    %593 = vector.extract_strided_slice %534 {offsets = [0, 40], sizes = [8, 8], strides = [1, 1]} : vector<8x128xf32> to vector<8x8xf32>
    %594 = vector.extract_strided_slice %534 {offsets = [0, 72], sizes = [8, 8], strides = [1, 1]} : vector<8x128xf32> to vector<8x8xf32>
    %595 = vector.extract_strided_slice %534 {offsets = [0, 104], sizes = [8, 8], strides = [1, 1]} : vector<8x128xf32> to vector<8x8xf32>
    %596 = vector.extract_strided_slice %536 {offsets = [1, 0], sizes = [1, 8], strides = [1, 1]} : vector<4x8xf32> to vector<1x8xf32>
    %597 = vector.broadcast %596 : vector<1x8xf32> to vector<8x8xf32>
    %598 = arith.addf %592, %597 : vector<8x8xf32>
    %599 = vector.extract_strided_slice %538 {offsets = [1, 0], sizes = [1, 8], strides = [1, 1]} : vector<4x8xf32> to vector<1x8xf32>
    %600 = vector.broadcast %599 : vector<1x8xf32> to vector<8x8xf32>
    %601 = arith.addf %592, %600 : vector<8x8xf32>
    %cst_214 = arith.constant dense<0.000000e+00> : vector<8x8xf32>
    %602 = tpu.matmul %598, %593, %cst_214 {dimension_numbers = #tpu.dot_dimension_numbers<[1], [1], [0], [0], [0, 0, 1, 0], [], []>} : vector<8x8xf32>, vector<8x8xf32>, vector<8x8xf32> -> vector<8x8xf32>
    %cst_215 = arith.constant dense<0.000000e+00> : vector<8x8xf32>
    %603 = tpu.matmul %601, %595, %cst_215 {dimension_numbers = #tpu.dot_dimension_numbers<[1], [1], [0], [0], [0, 0, 1, 0], [], []>} : vector<8x8xf32>, vector<8x8xf32>, vector<8x8xf32> -> vector<8x8xf32>
    %604 = vector.extract_strided_slice %603 {offsets = [0, 7], sizes = [1, 1], strides = [1, 1]} : vector<8x8xf32> to vector<1x1xf32>
    %cst_216 = arith.constant 0.000000e+00 : f32
    %605 = vector.broadcast %cst_216 : f32 to vector<1x1xf32>
    %606 = vector.extract_strided_slice %603 {offsets = [1, 0], sizes = [1, 6], strides = [1, 1]} : vector<8x8xf32> to vector<1x6xf32>
    %607 = tpu.concatenate %604, %605, %606 in 1 : vector<1x1xf32>, vector<1x1xf32>, vector<1x6xf32> -> vector<1x8xf32>
    %608 = vector.extract_strided_slice %603 {offsets = [1, 6], sizes = [1, 2], strides = [1, 1]} : vector<8x8xf32> to vector<1x2xf32>
    %cst_217 = arith.constant 0.000000e+00 : f32
    %609 = vector.broadcast %cst_217 : f32 to vector<1x1xf32>
    %610 = vector.extract_strided_slice %603 {offsets = [2, 0], sizes = [1, 5], strides = [1, 1]} : vector<8x8xf32> to vector<1x5xf32>
    %611 = tpu.concatenate %608, %609, %610 in 1 : vector<1x2xf32>, vector<1x1xf32>, vector<1x5xf32> -> vector<1x8xf32>
    %612 = vector.extract_strided_slice %603 {offsets = [2, 5], sizes = [1, 3], strides = [1, 1]} : vector<8x8xf32> to vector<1x3xf32>
    %cst_218 = arith.constant 0.000000e+00 : f32
    %613 = vector.broadcast %cst_218 : f32 to vector<1x1xf32>
    %614 = vector.extract_strided_slice %603 {offsets = [3, 0], sizes = [1, 4], strides = [1, 1]} : vector<8x8xf32> to vector<1x4xf32>
    %615 = tpu.concatenate %612, %613, %614 in 1 : vector<1x3xf32>, vector<1x1xf32>, vector<1x4xf32> -> vector<1x8xf32>
    %616 = vector.extract_strided_slice %603 {offsets = [3, 4], sizes = [1, 4], strides = [1, 1]} : vector<8x8xf32> to vector<1x4xf32>
    %cst_219 = arith.constant 0.000000e+00 : f32
    %617 = vector.broadcast %cst_219 : f32 to vector<1x1xf32>
    %618 = vector.extract_strided_slice %603 {offsets = [4, 0], sizes = [1, 3], strides = [1, 1]} : vector<8x8xf32> to vector<1x3xf32>
    %619 = tpu.concatenate %616, %617, %618 in 1 : vector<1x4xf32>, vector<1x1xf32>, vector<1x3xf32> -> vector<1x8xf32>
    %620 = vector.extract_strided_slice %603 {offsets = [4, 3], sizes = [1, 5], strides = [1, 1]} : vector<8x8xf32> to vector<1x5xf32>
    %cst_220 = arith.constant 0.000000e+00 : f32
    %621 = vector.broadcast %cst_220 : f32 to vector<1x1xf32>
    %622 = vector.extract_strided_slice %603 {offsets = [5, 0], sizes = [1, 2], strides = [1, 1]} : vector<8x8xf32> to vector<1x2xf32>
    %623 = tpu.concatenate %620, %621, %622 in 1 : vector<1x5xf32>, vector<1x1xf32>, vector<1x2xf32> -> vector<1x8xf32>
    %624 = vector.extract_strided_slice %603 {offsets = [5, 2], sizes = [1, 6], strides = [1, 1]} : vector<8x8xf32> to vector<1x6xf32>
    %cst_221 = arith.constant 0.000000e+00 : f32
    %625 = vector.broadcast %cst_221 : f32 to vector<1x1xf32>
    %626 = vector.extract_strided_slice %603 {offsets = [6, 0], sizes = [1, 1], strides = [1, 1]} : vector<8x8xf32> to vector<1x1xf32>
    %627 = tpu.concatenate %624, %625, %626 in 1 : vector<1x6xf32>, vector<1x1xf32>, vector<1x1xf32> -> vector<1x8xf32>
    %628 = vector.extract_strided_slice %603 {offsets = [6, 1], sizes = [1, 7], strides = [1, 1]} : vector<8x8xf32> to vector<1x7xf32>
    %cst_222 = arith.constant 0.000000e+00 : f32
    %629 = vector.broadcast %cst_222 : f32 to vector<1x1xf32>
    %630 = tpu.concatenate %628, %629 in 1 : vector<1x7xf32>, vector<1x1xf32> -> vector<1x8xf32>
    %631 = vector.extract_strided_slice %603 {offsets = [7, 0], sizes = [1, 8], strides = [1, 1]} : vector<8x8xf32> to vector<1x8xf32>
    %632 = tpu.concatenate %607, %611, %615, %619, %623, %627, %630, %631 in 0 : vector<1x8xf32>, vector<1x8xf32>, vector<1x8xf32>, vector<1x8xf32>, vector<1x8xf32>, vector<1x8xf32>, vector<1x8xf32>, vector<1x8xf32> -> vector<8x8xf32>
    %633 = arith.addf %602, %632 : vector<8x8xf32>
    %cst_223 = arith.constant dense<0xFF800000> : vector<8xf32>
    %634 = vector.multi_reduction <maximumf>, %633, %cst_223 [1] : vector<8x8xf32> to vector<8xf32>
    %635 = vector.shape_cast %634 : vector<8xf32> to vector<8x1xf32>
    %636 = vector.broadcast %635 : vector<8x1xf32> to vector<8x8xf32>
    %637 = arith.subf %633, %636 : vector<8x8xf32>
    %638 = math.exp %637 : vector<8x8xf32>
    %cst_224 = arith.constant dense<0.000000e+00> : vector<8xf32>
    %639 = vector.multi_reduction <add>, %638, %cst_224 [1] : vector<8x8xf32> to vector<8xf32>
    %640 = vector.shape_cast %639 : vector<8xf32> to vector<8x1xf32>
    %641 = tpu.reciprocal %640 {approx = true} : vector<8x1xf32> -> vector<8x1xf32>
    %642 = vector.broadcast %641 : vector<8x1xf32> to vector<8x8xf32>
    %643 = arith.mulf %638, %642 : vector<8x8xf32>
    %cst_225 = arith.constant dense<0.000000e+00> : vector<8x8xf32>
    %644 = tpu.matmul %643, %594, %cst_225 {dimension_numbers = #tpu.dot_dimension_numbers<[1], [0], [0], [1], [0, 0, 1, 1], [], []>} : vector<8x8xf32>, vector<8x8xf32>, vector<8x8xf32> -> vector<8x8xf32>
    %645 = vector.extract_strided_slice %534 {offsets = [0, 16], sizes = [8, 8], strides = [1, 1]} : vector<8x128xf32> to vector<8x8xf32>
    %646 = vector.extract_strided_slice %534 {offsets = [0, 48], sizes = [8, 8], strides = [1, 1]} : vector<8x128xf32> to vector<8x8xf32>
    %647 = vector.extract_strided_slice %534 {offsets = [0, 80], sizes = [8, 8], strides = [1, 1]} : vector<8x128xf32> to vector<8x8xf32>
    %648 = vector.extract_strided_slice %534 {offsets = [0, 112], sizes = [8, 8], strides = [1, 1]} : vector<8x128xf32> to vector<8x8xf32>
    %649 = vector.extract_strided_slice %536 {offsets = [2, 0], sizes = [1, 8], strides = [1, 1]} : vector<4x8xf32> to vector<1x8xf32>
    %650 = vector.broadcast %649 : vector<1x8xf32> to vector<8x8xf32>
    %651 = arith.addf %645, %650 : vector<8x8xf32>
    %652 = vector.extract_strided_slice %538 {offsets = [2, 0], sizes = [1, 8], strides = [1, 1]} : vector<4x8xf32> to vector<1x8xf32>
    %653 = vector.broadcast %652 : vector<1x8xf32> to vector<8x8xf32>
    %654 = arith.addf %645, %653 : vector<8x8xf32>
    %cst_226 = arith.constant dense<0.000000e+00> : vector<8x8xf32>
    %655 = tpu.matmul %651, %646, %cst_226 {dimension_numbers = #tpu.dot_dimension_numbers<[1], [1], [0], [0], [0, 0, 1, 0], [], []>} : vector<8x8xf32>, vector<8x8xf32>, vector<8x8xf32> -> vector<8x8xf32>
    %cst_227 = arith.constant dense<0.000000e+00> : vector<8x8xf32>
    %656 = tpu.matmul %654, %648, %cst_227 {dimension_numbers = #tpu.dot_dimension_numbers<[1], [1], [0], [0], [0, 0, 1, 0], [], []>} : vector<8x8xf32>, vector<8x8xf32>, vector<8x8xf32> -> vector<8x8xf32>
    %657 = vector.extract_strided_slice %656 {offsets = [0, 7], sizes = [1, 1], strides = [1, 1]} : vector<8x8xf32> to vector<1x1xf32>
    %cst_228 = arith.constant 0.000000e+00 : f32
    %658 = vector.broadcast %cst_228 : f32 to vector<1x1xf32>
    %659 = vector.extract_strided_slice %656 {offsets = [1, 0], sizes = [1, 6], strides = [1, 1]} : vector<8x8xf32> to vector<1x6xf32>
    %660 = tpu.concatenate %657, %658, %659 in 1 : vector<1x1xf32>, vector<1x1xf32>, vector<1x6xf32> -> vector<1x8xf32>
    %661 = vector.extract_strided_slice %656 {offsets = [1, 6], sizes = [1, 2], strides = [1, 1]} : vector<8x8xf32> to vector<1x2xf32>
    %cst_229 = arith.constant 0.000000e+00 : f32
    %662 = vector.broadcast %cst_229 : f32 to vector<1x1xf32>
    %663 = vector.extract_strided_slice %656 {offsets = [2, 0], sizes = [1, 5], strides = [1, 1]} : vector<8x8xf32> to vector<1x5xf32>
    %664 = tpu.concatenate %661, %662, %663 in 1 : vector<1x2xf32>, vector<1x1xf32>, vector<1x5xf32> -> vector<1x8xf32>
    %665 = vector.extract_strided_slice %656 {offsets = [2, 5], sizes = [1, 3], strides = [1, 1]} : vector<8x8xf32> to vector<1x3xf32>
    %cst_230 = arith.constant 0.000000e+00 : f32
    %666 = vector.broadcast %cst_230 : f32 to vector<1x1xf32>
    %667 = vector.extract_strided_slice %656 {offsets = [3, 0], sizes = [1, 4], strides = [1, 1]} : vector<8x8xf32> to vector<1x4xf32>
    %668 = tpu.concatenate %665, %666, %667 in 1 : vector<1x3xf32>, vector<1x1xf32>, vector<1x4xf32> -> vector<1x8xf32>
    %669 = vector.extract_strided_slice %656 {offsets = [3, 4], sizes = [1, 4], strides = [1, 1]} : vector<8x8xf32> to vector<1x4xf32>
    %cst_231 = arith.constant 0.000000e+00 : f32
    %670 = vector.broadcast %cst_231 : f32 to vector<1x1xf32>
    %671 = vector.extract_strided_slice %656 {offsets = [4, 0], sizes = [1, 3], strides = [1, 1]} : vector<8x8xf32> to vector<1x3xf32>
    %672 = tpu.concatenate %669, %670, %671 in 1 : vector<1x4xf32>, vector<1x1xf32>, vector<1x3xf32> -> vector<1x8xf32>
    %673 = vector.extract_strided_slice %656 {offsets = [4, 3], sizes = [1, 5], strides = [1, 1]} : vector<8x8xf32> to vector<1x5xf32>
    %cst_232 = arith.constant 0.000000e+00 : f32
    %674 = vector.broadcast %cst_232 : f32 to vector<1x1xf32>
    %675 = vector.extract_strided_slice %656 {offsets = [5, 0], sizes = [1, 2], strides = [1, 1]} : vector<8x8xf32> to vector<1x2xf32>
    %676 = tpu.concatenate %673, %674, %675 in 1 : vector<1x5xf32>, vector<1x1xf32>, vector<1x2xf32> -> vector<1x8xf32>
    %677 = vector.extract_strided_slice %656 {offsets = [5, 2], sizes = [1, 6], strides = [1, 1]} : vector<8x8xf32> to vector<1x6xf32>
    %cst_233 = arith.constant 0.000000e+00 : f32
    %678 = vector.broadcast %cst_233 : f32 to vector<1x1xf32>
    %679 = vector.extract_strided_slice %656 {offsets = [6, 0], sizes = [1, 1], strides = [1, 1]} : vector<8x8xf32> to vector<1x1xf32>
    %680 = tpu.concatenate %677, %678, %679 in 1 : vector<1x6xf32>, vector<1x1xf32>, vector<1x1xf32> -> vector<1x8xf32>
    %681 = vector.extract_strided_slice %656 {offsets = [6, 1], sizes = [1, 7], strides = [1, 1]} : vector<8x8xf32> to vector<1x7xf32>
    %cst_234 = arith.constant 0.000000e+00 : f32
    %682 = vector.broadcast %cst_234 : f32 to vector<1x1xf32>
    %683 = tpu.concatenate %681, %682 in 1 : vector<1x7xf32>, vector<1x1xf32> -> vector<1x8xf32>
    %684 = vector.extract_strided_slice %656 {offsets = [7, 0], sizes = [1, 8], strides = [1, 1]} : vector<8x8xf32> to vector<1x8xf32>
    %685 = tpu.concatenate %660, %664, %668, %672, %676, %680, %683, %684 in 0 : vector<1x8xf32>, vector<1x8xf32>, vector<1x8xf32>, vector<1x8xf32>, vector<1x8xf32>, vector<1x8xf32>, vector<1x8xf32>, vector<1x8xf32> -> vector<8x8xf32>
    %686 = arith.addf %655, %685 : vector<8x8xf32>
    %cst_235 = arith.constant dense<0xFF800000> : vector<8xf32>
    %687 = vector.multi_reduction <maximumf>, %686, %cst_235 [1] : vector<8x8xf32> to vector<8xf32>
    %688 = vector.shape_cast %687 : vector<8xf32> to vector<8x1xf32>
    %689 = vector.broadcast %688 : vector<8x1xf32> to vector<8x8xf32>
    %690 = arith.subf %686, %689 : vector<8x8xf32>
    %691 = math.exp %690 : vector<8x8xf32>
    %cst_236 = arith.constant dense<0.000000e+00> : vector<8xf32>
    %692 = vector.multi_reduction <add>, %691, %cst_236 [1] : vector<8x8xf32> to vector<8xf32>
    %693 = vector.shape_cast %692 : vector<8xf32> to vector<8x1xf32>
    %694 = tpu.reciprocal %693 {approx = true} : vector<8x1xf32> -> vector<8x1xf32>
    %695 = vector.broadcast %694 : vector<8x1xf32> to vector<8x8xf32>
    %696 = arith.mulf %691, %695 : vector<8x8xf32>
    %cst_237 = arith.constant dense<0.000000e+00> : vector<8x8xf32>
    %697 = tpu.matmul %696, %647, %cst_237 {dimension_numbers = #tpu.dot_dimension_numbers<[1], [0], [0], [1], [0, 0, 1, 1], [], []>} : vector<8x8xf32>, vector<8x8xf32>, vector<8x8xf32> -> vector<8x8xf32>
    %698 = vector.extract_strided_slice %534 {offsets = [0, 24], sizes = [8, 8], strides = [1, 1]} : vector<8x128xf32> to vector<8x8xf32>
    %699 = vector.extract_strided_slice %534 {offsets = [0, 56], sizes = [8, 8], strides = [1, 1]} : vector<8x128xf32> to vector<8x8xf32>
    %700 = vector.extract_strided_slice %534 {offsets = [0, 88], sizes = [8, 8], strides = [1, 1]} : vector<8x128xf32> to vector<8x8xf32>
    %701 = vector.extract_strided_slice %534 {offsets = [0, 120], sizes = [8, 8], strides = [1, 1]} : vector<8x128xf32> to vector<8x8xf32>
    %702 = vector.extract_strided_slice %536 {offsets = [3, 0], sizes = [1, 8], strides = [1, 1]} : vector<4x8xf32> to vector<1x8xf32>
    %703 = vector.broadcast %702 : vector<1x8xf32> to vector<8x8xf32>
    %704 = arith.addf %698, %703 : vector<8x8xf32>
    %705 = vector.extract_strided_slice %538 {offsets = [3, 0], sizes = [1, 8], strides = [1, 1]} : vector<4x8xf32> to vector<1x8xf32>
    %706 = vector.broadcast %705 : vector<1x8xf32> to vector<8x8xf32>
    %707 = arith.addf %698, %706 : vector<8x8xf32>
    %cst_238 = arith.constant dense<0.000000e+00> : vector<8x8xf32>
    %708 = tpu.matmul %704, %699, %cst_238 {dimension_numbers = #tpu.dot_dimension_numbers<[1], [1], [0], [0], [0, 0, 1, 0], [], []>} : vector<8x8xf32>, vector<8x8xf32>, vector<8x8xf32> -> vector<8x8xf32>
    %cst_239 = arith.constant dense<0.000000e+00> : vector<8x8xf32>
    %709 = tpu.matmul %707, %701, %cst_239 {dimension_numbers = #tpu.dot_dimension_numbers<[1], [1], [0], [0], [0, 0, 1, 0], [], []>} : vector<8x8xf32>, vector<8x8xf32>, vector<8x8xf32> -> vector<8x8xf32>
    %710 = vector.extract_strided_slice %709 {offsets = [0, 7], sizes = [1, 1], strides = [1, 1]} : vector<8x8xf32> to vector<1x1xf32>
    %cst_240 = arith.constant 0.000000e+00 : f32
    %711 = vector.broadcast %cst_240 : f32 to vector<1x1xf32>
    %712 = vector.extract_strided_slice %709 {offsets = [1, 0], sizes = [1, 6], strides = [1, 1]} : vector<8x8xf32> to vector<1x6xf32>
    %713 = tpu.concatenate %710, %711, %712 in 1 : vector<1x1xf32>, vector<1x1xf32>, vector<1x6xf32> -> vector<1x8xf32>
    %714 = vector.extract_strided_slice %709 {offsets = [1, 6], sizes = [1, 2], strides = [1, 1]} : vector<8x8xf32> to vector<1x2xf32>
    %cst_241 = arith.constant 0.000000e+00 : f32
    %715 = vector.broadcast %cst_241 : f32 to vector<1x1xf32>
    %716 = vector.extract_strided_slice %709 {offsets = [2, 0], sizes = [1, 5], strides = [1, 1]} : vector<8x8xf32> to vector<1x5xf32>
    %717 = tpu.concatenate %714, %715, %716 in 1 : vector<1x2xf32>, vector<1x1xf32>, vector<1x5xf32> -> vector<1x8xf32>
    %718 = vector.extract_strided_slice %709 {offsets = [2, 5], sizes = [1, 3], strides = [1, 1]} : vector<8x8xf32> to vector<1x3xf32>
    %cst_242 = arith.constant 0.000000e+00 : f32
    %719 = vector.broadcast %cst_242 : f32 to vector<1x1xf32>
    %720 = vector.extract_strided_slice %709 {offsets = [3, 0], sizes = [1, 4], strides = [1, 1]} : vector<8x8xf32> to vector<1x4xf32>
    %721 = tpu.concatenate %718, %719, %720 in 1 : vector<1x3xf32>, vector<1x1xf32>, vector<1x4xf32> -> vector<1x8xf32>
    %722 = vector.extract_strided_slice %709 {offsets = [3, 4], sizes = [1, 4], strides = [1, 1]} : vector<8x8xf32> to vector<1x4xf32>
    %cst_243 = arith.constant 0.000000e+00 : f32
    %723 = vector.broadcast %cst_243 : f32 to vector<1x1xf32>
    %724 = vector.extract_strided_slice %709 {offsets = [4, 0], sizes = [1, 3], strides = [1, 1]} : vector<8x8xf32> to vector<1x3xf32>
    %725 = tpu.concatenate %722, %723, %724 in 1 : vector<1x4xf32>, vector<1x1xf32>, vector<1x3xf32> -> vector<1x8xf32>
    %726 = vector.extract_strided_slice %709 {offsets = [4, 3], sizes = [1, 5], strides = [1, 1]} : vector<8x8xf32> to vector<1x5xf32>
    %cst_244 = arith.constant 0.000000e+00 : f32
    %727 = vector.broadcast %cst_244 : f32 to vector<1x1xf32>
    %728 = vector.extract_strided_slice %709 {offsets = [5, 0], sizes = [1, 2], strides = [1, 1]} : vector<8x8xf32> to vector<1x2xf32>
    %729 = tpu.concatenate %726, %727, %728 in 1 : vector<1x5xf32>, vector<1x1xf32>, vector<1x2xf32> -> vector<1x8xf32>
    %730 = vector.extract_strided_slice %709 {offsets = [5, 2], sizes = [1, 6], strides = [1, 1]} : vector<8x8xf32> to vector<1x6xf32>
    %cst_245 = arith.constant 0.000000e+00 : f32
    %731 = vector.broadcast %cst_245 : f32 to vector<1x1xf32>
    %732 = vector.extract_strided_slice %709 {offsets = [6, 0], sizes = [1, 1], strides = [1, 1]} : vector<8x8xf32> to vector<1x1xf32>
    %733 = tpu.concatenate %730, %731, %732 in 1 : vector<1x6xf32>, vector<1x1xf32>, vector<1x1xf32> -> vector<1x8xf32>
    %734 = vector.extract_strided_slice %709 {offsets = [6, 1], sizes = [1, 7], strides = [1, 1]} : vector<8x8xf32> to vector<1x7xf32>
    %cst_246 = arith.constant 0.000000e+00 : f32
    %735 = vector.broadcast %cst_246 : f32 to vector<1x1xf32>
    %736 = tpu.concatenate %734, %735 in 1 : vector<1x7xf32>, vector<1x1xf32> -> vector<1x8xf32>
    %737 = vector.extract_strided_slice %709 {offsets = [7, 0], sizes = [1, 8], strides = [1, 1]} : vector<8x8xf32> to vector<1x8xf32>
    %738 = tpu.concatenate %713, %717, %721, %725, %729, %733, %736, %737 in 0 : vector<1x8xf32>, vector<1x8xf32>, vector<1x8xf32>, vector<1x8xf32>, vector<1x8xf32>, vector<1x8xf32>, vector<1x8xf32>, vector<1x8xf32> -> vector<8x8xf32>
    %739 = arith.addf %708, %738 : vector<8x8xf32>
    %cst_247 = arith.constant dense<0xFF800000> : vector<8xf32>
    %740 = vector.multi_reduction <maximumf>, %739, %cst_247 [1] : vector<8x8xf32> to vector<8xf32>
    %741 = vector.shape_cast %740 : vector<8xf32> to vector<8x1xf32>
    %742 = vector.broadcast %741 : vector<8x1xf32> to vector<8x8xf32>
    %743 = arith.subf %739, %742 : vector<8x8xf32>
    %744 = math.exp %743 : vector<8x8xf32>
    %cst_248 = arith.constant dense<0.000000e+00> : vector<8xf32>
    %745 = vector.multi_reduction <add>, %744, %cst_248 [1] : vector<8x8xf32> to vector<8xf32>
    %746 = vector.shape_cast %745 : vector<8xf32> to vector<8x1xf32>
    %747 = tpu.reciprocal %746 {approx = true} : vector<8x1xf32> -> vector<8x1xf32>
    %748 = vector.broadcast %747 : vector<8x1xf32> to vector<8x8xf32>
    %749 = arith.mulf %744, %748 : vector<8x8xf32>
    %cst_249 = arith.constant dense<0.000000e+00> : vector<8x8xf32>
    %750 = tpu.matmul %749, %700, %cst_249 {dimension_numbers = #tpu.dot_dimension_numbers<[1], [0], [0], [1], [0, 0, 1, 1], [], []>} : vector<8x8xf32>, vector<8x8xf32>, vector<8x8xf32> -> vector<8x8xf32>
    %751 = tpu.concatenate %591, %644, %697, %750 in 1 : vector<8x8xf32>, vector<8x8xf32>, vector<8x8xf32>, vector<8x8xf32> -> vector<8x32xf32>
    %c4_250 = arith.constant 4 : index
    %c0_251 = arith.constant 0 : index
    %c0_252 = arith.constant 0 : index
    %752 = vector.load %arg6[%c4_250, %c0_251, %c0_252] : memref<8x32x32xf32, #tpu.memory_space<vmem>>, vector<1x32x32xf32>
    %753 = vector.shape_cast %752 : vector<1x32x32xf32> to vector<32x32xf32>
    %cst_253 = arith.constant dense<0.000000e+00> : vector<8x32xf32>
    %754 = tpu.matmul %751, %753, %cst_253 {dimension_numbers = #tpu.dot_dimension_numbers<[1], [0], [0], [1], [0, 0, 1, 1], [], []>} : vector<8x32xf32>, vector<32x32xf32>, vector<8x32xf32> -> vector<8x32xf32>
    %755 = arith.addf %505, %754 : vector<8x32xf32>
    %c9_254 = arith.constant 9 : index
    %c0_255 = arith.constant 0 : index
    %756 = vector.load %arg4[%c9_254, %c0_255] : memref<16x32xf32, #tpu.memory_space<vmem>>, vector<1x32xf32>
    %757 = vector.broadcast %756 : vector<1x32xf32> to vector<8x32xf32>
    %758 = arith.addf %755, %757 : vector<8x32xf32>
    %c14 = arith.constant 14 : index
    %c0_256 = arith.constant 0 : index
    %759 = vector.load %arg3[%c14, %c0_256] : memref<20x32xf32, #tpu.memory_space<vmem>>, vector<1x32xf32>
    %c15 = arith.constant 15 : index
    %c0_257 = arith.constant 0 : index
    %760 = vector.load %arg3[%c15, %c0_257] : memref<20x32xf32, #tpu.memory_space<vmem>>, vector<1x32xf32>
    %cst_258 = arith.constant dense<0.000000e+00> : vector<8xf32>
    %761 = vector.multi_reduction <add>, %758, %cst_258 [1] : vector<8x32xf32> to vector<8xf32>
    %762 = vector.shape_cast %761 : vector<8xf32> to vector<8x1xf32>
    %cst_259 = arith.constant 3.200000e+01 : f32
    %763 = vector.broadcast %cst_259 : f32 to vector<8x1xf32>
    %764 = arith.divf %762, %763 : vector<8x1xf32>
    %765 = vector.broadcast %764 : vector<8x1xf32> to vector<8x32xf32>
    %766 = arith.subf %758, %765 : vector<8x32xf32>
    %767 = arith.mulf %766, %766 : vector<8x32xf32>
    %cst_260 = arith.constant dense<0.000000e+00> : vector<8xf32>
    %768 = vector.multi_reduction <add>, %767, %cst_260 [1] : vector<8x32xf32> to vector<8xf32>
    %769 = vector.shape_cast %768 : vector<8xf32> to vector<8x1xf32>
    %cst_261 = arith.constant 3.200000e+01 : f32
    %770 = vector.broadcast %cst_261 : f32 to vector<8x1xf32>
    %771 = arith.divf %769, %770 : vector<8x1xf32>
    %cst_262 = arith.constant 9.99999974E-6 : f32
    %772 = vector.broadcast %cst_262 : f32 to vector<8x1xf32>
    %773 = arith.addf %771, %772 : vector<8x1xf32>
    %774 = math.rsqrt %773 : vector<8x1xf32>
    %775 = vector.broadcast %774 : vector<8x1xf32> to vector<8x32xf32>
    %776 = arith.mulf %766, %775 : vector<8x32xf32>
    %777 = vector.broadcast %759 : vector<1x32xf32> to vector<8x32xf32>
    %778 = arith.mulf %776, %777 : vector<8x32xf32>
    %779 = vector.broadcast %760 : vector<1x32xf32> to vector<8x32xf32>
    %780 = arith.addf %778, %779 : vector<8x32xf32>
    %c5_263 = arith.constant 5 : index
    %c0_264 = arith.constant 0 : index
    %c0_265 = arith.constant 0 : index
    %781 = vector.load %arg6[%c5_263, %c0_264, %c0_265] : memref<8x32x32xf32, #tpu.memory_space<vmem>>, vector<1x32x32xf32>
    %782 = vector.shape_cast %781 : vector<1x32x32xf32> to vector<32x32xf32>
    %cst_266 = arith.constant dense<0.000000e+00> : vector<8x32xf32>
    %783 = tpu.matmul %780, %782, %cst_266 {dimension_numbers = #tpu.dot_dimension_numbers<[1], [0], [0], [1], [0, 0, 1, 1], [], []>} : vector<8x32xf32>, vector<32x32xf32>, vector<8x32xf32> -> vector<8x32xf32>
    %c10_267 = arith.constant 10 : index
    %c0_268 = arith.constant 0 : index
    %784 = vector.load %arg4[%c10_267, %c0_268] : memref<16x32xf32, #tpu.memory_space<vmem>>, vector<1x32xf32>
    %785 = vector.broadcast %784 : vector<1x32xf32> to vector<8x32xf32>
    %786 = arith.addf %783, %785 : vector<8x32xf32>
    %c6_269 = arith.constant 6 : index
    %c0_270 = arith.constant 0 : index
    %c0_271 = arith.constant 0 : index
    %787 = vector.load %arg6[%c6_269, %c0_270, %c0_271] : memref<8x32x32xf32, #tpu.memory_space<vmem>>, vector<1x32x32xf32>
    %788 = vector.shape_cast %787 : vector<1x32x32xf32> to vector<32x32xf32>
    %cst_272 = arith.constant dense<0.000000e+00> : vector<8x32xf32>
    %789 = tpu.matmul %780, %788, %cst_272 {dimension_numbers = #tpu.dot_dimension_numbers<[1], [0], [0], [1], [0, 0, 1, 1], [], []>} : vector<8x32xf32>, vector<32x32xf32>, vector<8x32xf32> -> vector<8x32xf32>
    %c11_273 = arith.constant 11 : index
    %c0_274 = arith.constant 0 : index
    %790 = vector.load %arg4[%c11_273, %c0_274] : memref<16x32xf32, #tpu.memory_space<vmem>>, vector<1x32xf32>
    %791 = vector.broadcast %790 : vector<1x32xf32> to vector<8x32xf32>
    %792 = arith.addf %789, %791 : vector<8x32xf32>
    %793 = arith.negf %792 : vector<8x32xf32>
    %794 = math.exp %793 : vector<8x32xf32>
    %cst_275 = arith.constant 1.000000e+00 : f32
    %795 = vector.broadcast %cst_275 : f32 to vector<8x32xf32>
    %796 = arith.addf %795, %794 : vector<8x32xf32>
    %797 = arith.divf %795, %796 : vector<8x32xf32>
    %798 = arith.mulf %786, %797 : vector<8x32xf32>
    %cst_276 = arith.constant 0.000000e+00 : f32
    %799 = vector.broadcast %cst_276 : f32 to vector<3x32xf32>
    %800 = tpu.concatenate %799, %798, %799 in 0 : vector<3x32xf32>, vector<8x32xf32>, vector<3x32xf32> -> vector<14x32xf32>
    %c1_277 = arith.constant 1 : index
    %c0_278 = arith.constant 0 : index
    %c0_279 = arith.constant 0 : index
    %801 = vector.load %arg11[%c1_277, %c0_278, %c0_279] : memref<2x7x32xf32, #tpu.memory_space<vmem>>, vector<1x7x32xf32>
    %802 = vector.shape_cast %801 : vector<1x7x32xf32> to vector<7x32xf32>
    %cst_280 = arith.constant 0.000000e+00 : f32
    %803 = vector.broadcast %cst_280 : f32 to vector<8x32xf32>
    %804 = vector.extract_strided_slice %800 {offsets = [0, 0], sizes = [8, 32], strides = [1, 1]} : vector<14x32xf32> to vector<8x32xf32>
    %805 = vector.extract_strided_slice %802 {offsets = [0, 0], sizes = [1, 32], strides = [1, 1]} : vector<7x32xf32> to vector<1x32xf32>
    %806 = vector.broadcast %805 : vector<1x32xf32> to vector<8x32xf32>
    %807 = arith.mulf %804, %806 : vector<8x32xf32>
    %808 = arith.addf %803, %807 : vector<8x32xf32>
    %809 = vector.extract_strided_slice %800 {offsets = [1, 0], sizes = [8, 32], strides = [1, 1]} : vector<14x32xf32> to vector<8x32xf32>
    %810 = vector.extract_strided_slice %802 {offsets = [1, 0], sizes = [1, 32], strides = [1, 1]} : vector<7x32xf32> to vector<1x32xf32>
    %811 = vector.broadcast %810 : vector<1x32xf32> to vector<8x32xf32>
    %812 = arith.mulf %809, %811 : vector<8x32xf32>
    %813 = arith.addf %808, %812 : vector<8x32xf32>
    %814 = vector.extract_strided_slice %800 {offsets = [2, 0], sizes = [8, 32], strides = [1, 1]} : vector<14x32xf32> to vector<8x32xf32>
    %815 = vector.extract_strided_slice %802 {offsets = [2, 0], sizes = [1, 32], strides = [1, 1]} : vector<7x32xf32> to vector<1x32xf32>
    %816 = vector.broadcast %815 : vector<1x32xf32> to vector<8x32xf32>
    %817 = arith.mulf %814, %816 : vector<8x32xf32>
    %818 = arith.addf %813, %817 : vector<8x32xf32>
    %819 = vector.extract_strided_slice %800 {offsets = [3, 0], sizes = [8, 32], strides = [1, 1]} : vector<14x32xf32> to vector<8x32xf32>
    %820 = vector.extract_strided_slice %802 {offsets = [3, 0], sizes = [1, 32], strides = [1, 1]} : vector<7x32xf32> to vector<1x32xf32>
    %821 = vector.broadcast %820 : vector<1x32xf32> to vector<8x32xf32>
    %822 = arith.mulf %819, %821 : vector<8x32xf32>
    %823 = arith.addf %818, %822 : vector<8x32xf32>
    %824 = vector.extract_strided_slice %800 {offsets = [4, 0], sizes = [8, 32], strides = [1, 1]} : vector<14x32xf32> to vector<8x32xf32>
    %825 = vector.extract_strided_slice %802 {offsets = [4, 0], sizes = [1, 32], strides = [1, 1]} : vector<7x32xf32> to vector<1x32xf32>
    %826 = vector.broadcast %825 : vector<1x32xf32> to vector<8x32xf32>
    %827 = arith.mulf %824, %826 : vector<8x32xf32>
    %828 = arith.addf %823, %827 : vector<8x32xf32>
    %829 = vector.extract_strided_slice %800 {offsets = [5, 0], sizes = [8, 32], strides = [1, 1]} : vector<14x32xf32> to vector<8x32xf32>
    %830 = vector.extract_strided_slice %802 {offsets = [5, 0], sizes = [1, 32], strides = [1, 1]} : vector<7x32xf32> to vector<1x32xf32>
    %831 = vector.broadcast %830 : vector<1x32xf32> to vector<8x32xf32>
    %832 = arith.mulf %829, %831 : vector<8x32xf32>
    %833 = arith.addf %828, %832 : vector<8x32xf32>
    %834 = vector.extract_strided_slice %800 {offsets = [6, 0], sizes = [8, 32], strides = [1, 1]} : vector<14x32xf32> to vector<8x32xf32>
    %835 = vector.extract_strided_slice %802 {offsets = [6, 0], sizes = [1, 32], strides = [1, 1]} : vector<7x32xf32> to vector<1x32xf32>
    %836 = vector.broadcast %835 : vector<1x32xf32> to vector<8x32xf32>
    %837 = arith.mulf %834, %836 : vector<8x32xf32>
    %838 = arith.addf %833, %837 : vector<8x32xf32>
    %c12_281 = arith.constant 12 : index
    %c0_282 = arith.constant 0 : index
    %839 = vector.load %arg4[%c12_281, %c0_282] : memref<16x32xf32, #tpu.memory_space<vmem>>, vector<1x32xf32>
    %840 = vector.broadcast %839 : vector<1x32xf32> to vector<8x32xf32>
    %841 = arith.mulf %838, %840 : vector<8x32xf32>
    %c13_283 = arith.constant 13 : index
    %c0_284 = arith.constant 0 : index
    %842 = vector.load %arg4[%c13_283, %c0_284] : memref<16x32xf32, #tpu.memory_space<vmem>>, vector<1x32xf32>
    %843 = vector.broadcast %842 : vector<1x32xf32> to vector<8x32xf32>
    %844 = arith.addf %841, %843 : vector<8x32xf32>
    %845 = arith.negf %844 : vector<8x32xf32>
    %846 = math.exp %845 : vector<8x32xf32>
    %cst_285 = arith.constant 1.000000e+00 : f32
    %847 = vector.broadcast %cst_285 : f32 to vector<8x32xf32>
    %848 = arith.addf %847, %846 : vector<8x32xf32>
    %849 = arith.divf %847, %848 : vector<8x32xf32>
    %850 = arith.mulf %844, %849 : vector<8x32xf32>
    %c7_286 = arith.constant 7 : index
    %c0_287 = arith.constant 0 : index
    %c0_288 = arith.constant 0 : index
    %851 = vector.load %arg6[%c7_286, %c0_287, %c0_288] : memref<8x32x32xf32, #tpu.memory_space<vmem>>, vector<1x32x32xf32>
    %852 = vector.shape_cast %851 : vector<1x32x32xf32> to vector<32x32xf32>
    %cst_289 = arith.constant dense<0.000000e+00> : vector<8x32xf32>
    %853 = tpu.matmul %850, %852, %cst_289 {dimension_numbers = #tpu.dot_dimension_numbers<[1], [0], [0], [1], [0, 0, 1, 1], [], []>} : vector<8x32xf32>, vector<32x32xf32>, vector<8x32xf32> -> vector<8x32xf32>
    %854 = arith.addf %758, %853 : vector<8x32xf32>
    %c14_290 = arith.constant 14 : index
    %c0_291 = arith.constant 0 : index
    %855 = vector.load %arg4[%c14_290, %c0_291] : memref<16x32xf32, #tpu.memory_space<vmem>>, vector<1x32xf32>
    %856 = vector.broadcast %855 : vector<1x32xf32> to vector<8x32xf32>
    %857 = arith.addf %854, %856 : vector<8x32xf32>
    %c16 = arith.constant 16 : index
    %c0_292 = arith.constant 0 : index
    %858 = vector.load %arg3[%c16, %c0_292] : memref<20x32xf32, #tpu.memory_space<vmem>>, vector<1x32xf32>
    %c17 = arith.constant 17 : index
    %c0_293 = arith.constant 0 : index
    %859 = vector.load %arg3[%c17, %c0_293] : memref<20x32xf32, #tpu.memory_space<vmem>>, vector<1x32xf32>
    %cst_294 = arith.constant dense<0.000000e+00> : vector<8xf32>
    %860 = vector.multi_reduction <add>, %857, %cst_294 [1] : vector<8x32xf32> to vector<8xf32>
    %861 = vector.shape_cast %860 : vector<8xf32> to vector<8x1xf32>
    %cst_295 = arith.constant 3.200000e+01 : f32
    %862 = vector.broadcast %cst_295 : f32 to vector<8x1xf32>
    %863 = arith.divf %861, %862 : vector<8x1xf32>
    %864 = vector.broadcast %863 : vector<8x1xf32> to vector<8x32xf32>
    %865 = arith.subf %857, %864 : vector<8x32xf32>
    %866 = arith.mulf %865, %865 : vector<8x32xf32>
    %cst_296 = arith.constant dense<0.000000e+00> : vector<8xf32>
    %867 = vector.multi_reduction <add>, %866, %cst_296 [1] : vector<8x32xf32> to vector<8xf32>
    %868 = vector.shape_cast %867 : vector<8xf32> to vector<8x1xf32>
    %cst_297 = arith.constant 3.200000e+01 : f32
    %869 = vector.broadcast %cst_297 : f32 to vector<8x1xf32>
    %870 = arith.divf %868, %869 : vector<8x1xf32>
    %cst_298 = arith.constant 9.99999974E-6 : f32
    %871 = vector.broadcast %cst_298 : f32 to vector<8x1xf32>
    %872 = arith.addf %870, %871 : vector<8x1xf32>
    %873 = math.rsqrt %872 : vector<8x1xf32>
    %874 = vector.broadcast %873 : vector<8x1xf32> to vector<8x32xf32>
    %875 = arith.mulf %865, %874 : vector<8x32xf32>
    %876 = vector.broadcast %858 : vector<1x32xf32> to vector<8x32xf32>
    %877 = arith.mulf %875, %876 : vector<8x32xf32>
    %878 = vector.broadcast %859 : vector<1x32xf32> to vector<8x32xf32>
    %879 = arith.addf %877, %878 : vector<8x32xf32>
    %c3_299 = arith.constant 3 : index
    %c0_300 = arith.constant 0 : index
    %c0_301 = arith.constant 0 : index
    %880 = vector.load %arg7[%c3_299, %c0_300, %c0_301] : memref<4x32x128xf32, #tpu.memory_space<vmem>>, vector<1x32x128xf32>
    %881 = vector.shape_cast %880 : vector<1x32x128xf32> to vector<32x128xf32>
    %cst_302 = arith.constant dense<0.000000e+00> : vector<8x128xf32>
    %882 = tpu.matmul %879, %881, %cst_302 {dimension_numbers = #tpu.dot_dimension_numbers<[1], [0], [0], [1], [0, 0, 1, 1], [], []>} : vector<8x32xf32>, vector<32x128xf32>, vector<8x128xf32> -> vector<8x128xf32>
    %c5_303 = arith.constant 5 : index
    %c0_304 = arith.constant 0 : index
    %883 = vector.load %arg5[%c5_303, %c0_304] : memref<6x128xf32, #tpu.memory_space<vmem>>, vector<1x128xf32>
    %884 = vector.broadcast %883 : vector<1x128xf32> to vector<8x128xf32>
    %885 = arith.addf %882, %884 : vector<8x128xf32>
    %886 = arith.negf %885 : vector<8x128xf32>
    %887 = math.exp %886 : vector<8x128xf32>
    %cst_305 = arith.constant 1.000000e+00 : f32
    %888 = vector.broadcast %cst_305 : f32 to vector<8x128xf32>
    %889 = arith.addf %888, %887 : vector<8x128xf32>
    %890 = arith.divf %888, %889 : vector<8x128xf32>
    %891 = arith.mulf %885, %890 : vector<8x128xf32>
    %c3_306 = arith.constant 3 : index
    %c0_307 = arith.constant 0 : index
    %c0_308 = arith.constant 0 : index
    %892 = vector.load %arg8[%c3_306, %c0_307, %c0_308] : memref<4x128x32xf32, #tpu.memory_space<vmem>>, vector<1x128x32xf32>
    %893 = vector.shape_cast %892 : vector<1x128x32xf32> to vector<128x32xf32>
    %cst_309 = arith.constant dense<0.000000e+00> : vector<8x32xf32>
    %894 = tpu.matmul %891, %893, %cst_309 {dimension_numbers = #tpu.dot_dimension_numbers<[1], [0], [0], [1], [0, 0, 1, 1], [], []>} : vector<8x128xf32>, vector<128x32xf32>, vector<8x32xf32> -> vector<8x32xf32>
    %c15_310 = arith.constant 15 : index
    %c0_311 = arith.constant 0 : index
    %895 = vector.load %arg4[%c15_310, %c0_311] : memref<16x32xf32, #tpu.memory_space<vmem>>, vector<1x32xf32>
    %896 = vector.broadcast %895 : vector<1x32xf32> to vector<8x32xf32>
    %897 = arith.addf %894, %896 : vector<8x32xf32>
    %cst_312 = arith.constant 5.000000e-01 : f32
    %898 = vector.broadcast %cst_312 : f32 to vector<8x32xf32>
    %899 = arith.mulf %898, %897 : vector<8x32xf32>
    %900 = arith.addf %857, %899 : vector<8x32xf32>
    %c18 = arith.constant 18 : index
    %c0_313 = arith.constant 0 : index
    %901 = vector.load %arg3[%c18, %c0_313] : memref<20x32xf32, #tpu.memory_space<vmem>>, vector<1x32xf32>
    %c19 = arith.constant 19 : index
    %c0_314 = arith.constant 0 : index
    %902 = vector.load %arg3[%c19, %c0_314] : memref<20x32xf32, #tpu.memory_space<vmem>>, vector<1x32xf32>
    %cst_315 = arith.constant dense<0.000000e+00> : vector<8xf32>
    %903 = vector.multi_reduction <add>, %900, %cst_315 [1] : vector<8x32xf32> to vector<8xf32>
    %904 = vector.shape_cast %903 : vector<8xf32> to vector<8x1xf32>
    %cst_316 = arith.constant 3.200000e+01 : f32
    %905 = vector.broadcast %cst_316 : f32 to vector<8x1xf32>
    %906 = arith.divf %904, %905 : vector<8x1xf32>
    %907 = vector.broadcast %906 : vector<8x1xf32> to vector<8x32xf32>
    %908 = arith.subf %900, %907 : vector<8x32xf32>
    %909 = arith.mulf %908, %908 : vector<8x32xf32>
    %cst_317 = arith.constant dense<0.000000e+00> : vector<8xf32>
    %910 = vector.multi_reduction <add>, %909, %cst_317 [1] : vector<8x32xf32> to vector<8xf32>
    %911 = vector.shape_cast %910 : vector<8xf32> to vector<8x1xf32>
    %cst_318 = arith.constant 3.200000e+01 : f32
    %912 = vector.broadcast %cst_318 : f32 to vector<8x1xf32>
    %913 = arith.divf %911, %912 : vector<8x1xf32>
    %cst_319 = arith.constant 9.99999974E-6 : f32
    %914 = vector.broadcast %cst_319 : f32 to vector<8x1xf32>
    %915 = arith.addf %913, %914 : vector<8x1xf32>
    %916 = math.rsqrt %915 : vector<8x1xf32>
    %917 = vector.broadcast %916 : vector<8x1xf32> to vector<8x32xf32>
    %918 = arith.mulf %908, %917 : vector<8x32xf32>
    %919 = vector.broadcast %901 : vector<1x32xf32> to vector<8x32xf32>
    %920 = arith.mulf %918, %919 : vector<8x32xf32>
    %921 = vector.broadcast %902 : vector<1x32xf32> to vector<8x32xf32>
    %922 = arith.addf %920, %921 : vector<8x32xf32>
    %cst_320 = arith.constant 0.000000e+00 : f32
    %923 = vector.broadcast %cst_320 : f32 to vector<1x32xf32>
    %924 = tpu.concatenate %923, %922, %923 in 0 : vector<1x32xf32>, vector<8x32xf32>, vector<1x32xf32> -> vector<10x32xf32>
    %cst_321 = arith.constant 0.000000e+00 : f32
    %925 = vector.broadcast %cst_321 : f32 to vector<8x32xf32>
    %c0_322 = arith.constant 0 : index
    %c0_323 = arith.constant 0 : index
    %926 = vector.load %arg13[%c0_322, %c0_323] : memref<1x32xf32, #tpu.memory_space<vmem>>, vector<1x32xf32>
    %927 = vector.broadcast %926 : vector<1x32xf32> to vector<8x32xf32>
    %928 = arith.addf %925, %927 : vector<8x32xf32>
    %929 = vector.extract_strided_slice %924 {offsets = [0, 0], sizes = [8, 32], strides = [1, 1]} : vector<10x32xf32> to vector<8x32xf32>
    %c0_324 = arith.constant 0 : index
    %c0_325 = arith.constant 0 : index
    %c0_326 = arith.constant 0 : index
    %930 = vector.load %arg12[%c0_324, %c0_325, %c0_326] : memref<3x32x32xf32, #tpu.memory_space<vmem>>, vector<1x32x32xf32>
    %931 = vector.shape_cast %930 : vector<1x32x32xf32> to vector<32x32xf32>
    %cst_327 = arith.constant dense<0.000000e+00> : vector<8x32xf32>
    %932 = tpu.matmul %929, %931, %cst_327 {dimension_numbers = #tpu.dot_dimension_numbers<[1], [0], [0], [1], [0, 0, 1, 1], [], []>} : vector<8x32xf32>, vector<32x32xf32>, vector<8x32xf32> -> vector<8x32xf32>
    %933 = arith.addf %928, %932 : vector<8x32xf32>
    %934 = vector.extract_strided_slice %924 {offsets = [1, 0], sizes = [8, 32], strides = [1, 1]} : vector<10x32xf32> to vector<8x32xf32>
    %c1_328 = arith.constant 1 : index
    %c0_329 = arith.constant 0 : index
    %c0_330 = arith.constant 0 : index
    %935 = vector.load %arg12[%c1_328, %c0_329, %c0_330] : memref<3x32x32xf32, #tpu.memory_space<vmem>>, vector<1x32x32xf32>
    %936 = vector.shape_cast %935 : vector<1x32x32xf32> to vector<32x32xf32>
    %cst_331 = arith.constant dense<0.000000e+00> : vector<8x32xf32>
    %937 = tpu.matmul %934, %936, %cst_331 {dimension_numbers = #tpu.dot_dimension_numbers<[1], [0], [0], [1], [0, 0, 1, 1], [], []>} : vector<8x32xf32>, vector<32x32xf32>, vector<8x32xf32> -> vector<8x32xf32>
    %938 = arith.addf %933, %937 : vector<8x32xf32>
    %939 = vector.extract_strided_slice %924 {offsets = [2, 0], sizes = [8, 32], strides = [1, 1]} : vector<10x32xf32> to vector<8x32xf32>
    %c2_332 = arith.constant 2 : index
    %c0_333 = arith.constant 0 : index
    %c0_334 = arith.constant 0 : index
    %940 = vector.load %arg12[%c2_332, %c0_333, %c0_334] : memref<3x32x32xf32, #tpu.memory_space<vmem>>, vector<1x32x32xf32>
    %941 = vector.shape_cast %940 : vector<1x32x32xf32> to vector<32x32xf32>
    %cst_335 = arith.constant dense<0.000000e+00> : vector<8x32xf32>
    %942 = tpu.matmul %939, %941, %cst_335 {dimension_numbers = #tpu.dot_dimension_numbers<[1], [0], [0], [1], [0, 0, 1, 1], [], []>} : vector<8x32xf32>, vector<32x32xf32>, vector<8x32xf32> -> vector<8x32xf32>
    %943 = arith.addf %938, %942 : vector<8x32xf32>
    %cst_336 = arith.constant 0.000000e+00 : f32
    %944 = vector.broadcast %cst_336 : f32 to vector<8x32xf32>
    %945 = arith.maximumf %943, %944 : vector<8x32xf32>
    %c0_337 = arith.constant 0 : index
    %c0_338 = arith.constant 0 : index
    %946 = vector.load %arg14[%c0_337, %c0_338] : memref<32x5xf32, #tpu.memory_space<vmem>>, vector<32x5xf32>
    %cst_339 = arith.constant dense<0.000000e+00> : vector<8x5xf32>
    %947 = tpu.matmul %945, %946, %cst_339 {dimension_numbers = #tpu.dot_dimension_numbers<[1], [0], [0], [1], [0, 0, 1, 1], [], []>} : vector<8x32xf32>, vector<32x5xf32>, vector<8x5xf32> -> vector<8x5xf32>
    %c0_340 = arith.constant 0 : index
    %c0_341 = arith.constant 0 : index
    %948 = vector.load %arg15[%c0_340, %c0_341] : memref<1x5xf32, #tpu.memory_space<vmem>>, vector<1x5xf32>
    %949 = vector.broadcast %948 : vector<1x5xf32> to vector<8x5xf32>
    %950 = arith.addf %947, %949 : vector<8x5xf32>
    %c0_342 = arith.constant 0 : index
    %c0_343 = arith.constant 0 : index
    %c0_344 = arith.constant 0 : index
    %951 = vector.load %arg16[%c0_342, %c0_343, %c0_344] : memref<1x8x5xf32, #tpu.memory_space<vmem>>, vector<1x8x5xf32>
    %952 = vector.shape_cast %951 : vector<1x8x5xf32> to vector<8x5xf32>
    %953 = vector.shape_cast %950 : vector<8x5xf32> to vector<1x8x5xf32>
    tpu.vector_store %arg16[%c0_342, %c0_343, %c0_344], %953 {strides = array<i32>} : memref<1x8x5xf32, #tpu.memory_space<vmem>>, vector<1x8x5xf32>,
    return
  }
  func.func @transform_0(%arg0: i32) -> (i32, i32, i32) {
    %c0_i32 = arith.constant 0 : i32
    %c0_i32_0 = arith.constant 0 : i32
    %c0_i32_1 = arith.constant 0 : i32
    return %arg0, %c0_i32, %c0_i32_0 : i32, i32, i32
  }
  func.func @transform_1(%arg0: i32) -> (i32, i32) {
    %c0_i32 = arith.constant 0 : i32
    %c0_i32_0 = arith.constant 0 : i32
    %c0_i32_1 = arith.constant 0 : i32
    return %c0_i32, %c0_i32_0 : i32, i32
  }
  func.func @transform_2(%arg0: i32) -> (i32, i32) {
    %c0_i32 = arith.constant 0 : i32
    %c0_i32_0 = arith.constant 0 : i32
    %c0_i32_1 = arith.constant 0 : i32
    return %c0_i32, %c0_i32_0 : i32, i32
  }
  func.func @transform_3(%arg0: i32) -> (i32, i32) {
    %c0_i32 = arith.constant 0 : i32
    %c0_i32_0 = arith.constant 0 : i32
    %c0_i32_1 = arith.constant 0 : i32
    return %c0_i32, %c0_i32_0 : i32, i32
  }
  func.func @transform_4(%arg0: i32) -> (i32, i32) {
    %c0_i32 = arith.constant 0 : i32
    %c0_i32_0 = arith.constant 0 : i32
    %c0_i32_1 = arith.constant 0 : i32
    return %c0_i32, %c0_i32_0 : i32, i32
  }
  func.func @transform_5(%arg0: i32) -> (i32, i32, i32) {
    %c0_i32 = arith.constant 0 : i32
    %c0_i32_0 = arith.constant 0 : i32
    %c0_i32_1 = arith.constant 0 : i32
    %c0_i32_2 = arith.constant 0 : i32
    return %c0_i32, %c0_i32_0, %c0_i32_1 : i32, i32, i32
  }
  func.func @transform_6(%arg0: i32) -> (i32, i32, i32) {
    %c0_i32 = arith.constant 0 : i32
    %c0_i32_0 = arith.constant 0 : i32
    %c0_i32_1 = arith.constant 0 : i32
    %c0_i32_2 = arith.constant 0 : i32
    return %c0_i32, %c0_i32_0, %c0_i32_1 : i32, i32, i32
  }
  func.func @transform_7(%arg0: i32) -> (i32, i32, i32) {
    %c0_i32 = arith.constant 0 : i32
    %c0_i32_0 = arith.constant 0 : i32
    %c0_i32_1 = arith.constant 0 : i32
    %c0_i32_2 = arith.constant 0 : i32
    return %c0_i32, %c0_i32_0, %c0_i32_1 : i32, i32, i32
  }
  func.func @transform_8(%arg0: i32) -> (i32, i32, i32) {
    %c0_i32 = arith.constant 0 : i32
    %c0_i32_0 = arith.constant 0 : i32
    %c0_i32_1 = arith.constant 0 : i32
    %c0_i32_2 = arith.constant 0 : i32
    return %c0_i32, %c0_i32_0, %c0_i32_1 : i32, i32, i32
  }
  func.func @transform_9(%arg0: i32) -> (i32, i32, i32) {
    %c0_i32 = arith.constant 0 : i32
    %c0_i32_0 = arith.constant 0 : i32
    %c0_i32_1 = arith.constant 0 : i32
    %c0_i32_2 = arith.constant 0 : i32
    return %c0_i32, %c0_i32_0, %c0_i32_1 : i32, i32, i32
  }
  func.func @transform_10(%arg0: i32) -> (i32, i32, i32) {
    %c0_i32 = arith.constant 0 : i32
    %c0_i32_0 = arith.constant 0 : i32
    %c0_i32_1 = arith.constant 0 : i32
    %c0_i32_2 = arith.constant 0 : i32
    return %c0_i32, %c0_i32_0, %c0_i32_1 : i32, i32, i32
  }
  func.func @transform_11(%arg0: i32) -> (i32, i32, i32) {
    %c0_i32 = arith.constant 0 : i32
    %c0_i32_0 = arith.constant 0 : i32
    %c0_i32_1 = arith.constant 0 : i32
    %c0_i32_2 = arith.constant 0 : i32
    return %c0_i32, %c0_i32_0, %c0_i32_1 : i32, i32, i32
  }
  func.func @transform_12(%arg0: i32) -> (i32, i32) {
    %c0_i32 = arith.constant 0 : i32
    %c0_i32_0 = arith.constant 0 : i32
    %c0_i32_1 = arith.constant 0 : i32
    return %c0_i32, %c0_i32_0 : i32, i32
  }
  func.func @transform_13(%arg0: i32) -> (i32, i32) {
    %c0_i32 = arith.constant 0 : i32
    %c0_i32_0 = arith.constant 0 : i32
    %c0_i32_1 = arith.constant 0 : i32
    return %c0_i32, %c0_i32_0 : i32, i32
  }
  func.func @transform_14(%arg0: i32) -> (i32, i32) {
    %c0_i32 = arith.constant 0 : i32
    %c0_i32_0 = arith.constant 0 : i32
    %c0_i32_1 = arith.constant 0 : i32
    return %c0_i32, %c0_i32_0 : i32, i32
  }
  func.func @transform_15(%arg0: i32) -> (i32, i32, i32) {
    %c0_i32 = arith.constant 0 : i32
    %c0_i32_0 = arith.constant 0 : i32
    %c0_i32_1 = arith.constant 0 : i32
    return %arg0, %c0_i32, %c0_i32_0 : i32, i32, i32
  }
}

</mosaic_0001>

<bundles_post_ra>
// kernel: mconforod_forward.5
= control target key start
LH: loop header
LB: loop body
LE: loop exit
PB: predicated region body
PF: predicated region fallthrough
CT: control target
= control target key end

     0   :  { %vm31_vm0 = vcmask 64512   ;;  %v236_v0 = vmov 0.0   ;;  %vm237_vm1 = vmmov 0   ;;  %vm169_vm2 = vcmask 130048   ;;  %s345_s1 = inlined_call_operand.vmem [shape: f32[8,16], index: 1, kind: input, shape index: {}]   ;;  %s346_s0 = inlined_call_operand.vmem [shape: f32[72,8], index: 0, kind: input, shape index: {}]   ;;  %s347_s2 = inlined_call_operand.vmem [shape: f32[1,16], index: 2, kind: input, shape index: {}]   ;;  %s348_s3 = inlined_call_operand.vmem [shape: f32[72,16], index: 3, kind: output, shape index: {}]  }
   0x1   :  { %203 = vmatprep.subr.mxu0 %v236_v0  ;;  %v23_v1 = vld [vmem:[%s345_s1] sm:$0xff]  ;;  %205 = vmatprep.mubr.msk.f32.mxu0 %vm237_vm1, %v236_v0  ;;  %v19_v3 = vld [vmem:[%s346_s0 + $0x28] sm:$0xff]  ;;  %v20_v5 = vld [vmem:[%s346_s0 + $0x30] sm:$0xff] }
   0x2   :  { %v14_v2 = vld [vmem:[%s346_s0] sm:$0xff]  ;;  %204 = vmatpush3.msra.mxu0 %v23_v1  ;;  %232 = vmatprep.subr.mxu1 %v236_v0  ;;  %v15_v4 = vld [vmem:[%s346_s0 + $0x8] sm:$0xff]  ;;  %v16_v6 = vld [vmem:[%s346_s0 + $0x10] sm:$0xff] }
   0x3   :  { %206 = vmatmul.mubr.msk.f32.vlgmr.msra.gmra.mrb[0].mxu0 %vm31_vm0, %v14_v2  ;;  %233 = vmatpush3.msra.mxu1 %v23_v1  ;;  %v21_v7 = vld [vmem:[%s346_s0 + $0x38] sm:$0xff]  ;;  %v22_v9 = vld [vmem:[%s346_s0 + $0x40] sm:$0xff] }
   0x4   :  { %220 = vmatprep.mubr.msk.f32.mxu1 %vm237_vm1, %v236_v0  ;;  %208 = vmatprep.mubr.msk.f32.mxu0 %vm237_vm1, %v236_v0  ;;  %v17_v8 = vld [vmem:[%s346_s0 + $0x18] sm:$0xff]  ;;  %v18_v10 = vld [vmem:[%s346_s0 + $0x20] sm:$0xff] }
   0x5   :  { %221 = vmatmul.mubr.msk.f32.vlgmr.msra.gmra.mrb[0].mxu1 %vm31_vm0, %v19_v3  ;;  %v183_v11 = vld [vmem:[%s347_s2] ss:$0 sm:$0xff] }
   0x6   :  { %223 = vmatprep.mubr.msk.f32.mxu1 %vm237_vm1, %v236_v0 }
   0x7   :  { %209 = vmatmul.mubr.msk.f32.gmra.mrb[2].mxu0 %vm31_vm0, %v15_v4 }
   0x8   :  { %211 = vmatprep.mubr.msk.f32.mxu0 %vm237_vm1, %v236_v0 }
   0x9   :  { %224 = vmatmul.mubr.msk.f32.gmra.mrb[2].mxu1 %vm31_vm0, %v20_v5 }
   0xa   :  { %226 = vmatprep.mubr.msk.f32.mxu1 %vm237_vm1, %v236_v0 }
   0xb   :  { %212 = vmatmul.mubr.msk.f32.gmra.mrb[4].mxu0 %vm31_vm0, %v16_v6 }
   0xc   :  { %214 = vmatprep.mubr.msk.f32.mxu0 %vm237_vm1, %v236_v0 }
   0xd   :  { %227 = vmatmul.mubr.msk.f32.gmra.mrb[4].mxu1 %vm31_vm0, %v21_v7 }
   0xe   :  { %229 = vmatprep.mubr.msk.f32.mxu1 %vm237_vm1, %v236_v0 }
   0xf   :  { %215 = vmatmul.mubr.msk.f32.gmra.mrb[6].mxu0 %vm31_vm0, %v17_v8 }
  0x10   :  { %217 = vmatprep.mubr.msk.f32.mxu0 %vm237_vm1, %v236_v0 }
  0x11   :  { %230 = vmatmul.mubr.msk.f32.gmra.mrb[6].mxu1 %vm31_vm0, %v22_v9 }
  0x13   :  { %218 = vmatmul.mubr.msk.f32.gmra.mrb[8].mxu0 %vm31_vm0, %v18_v10 }
  0xd6   :  { %v125_v12 = vpop.f32.mrb[0].mxu0 }
  0xd7   :  { %v126_v13 = vadd.f32 %v183_v11, %v125_v12  ;;  %v207_v14 = vpop.f32.mrb[1].mxu0 }
  0xd8   :  { %v150_v15 = vpop.f32.mrb[0].mxu1 }
  0xd9   :  { %170 = vst.msk [vmem:[%s348_s3] sm:$0xff] %vm169_vm2, %v126_v13  ;;  %v151_v16 = vadd.f32 %v183_v11, %v150_v15  ;;  %v222_v17 = vpop.f32.mrb[1].mxu1 }
  0xda   :  { %v130_v18 = vpop.f32.mrb[2].mxu0 }
  0xdb   :  { %175 = vst.msk [vmem:[%s348_s3 + $0x28] sm:$0xff] %vm169_vm2, %v151_v16  ;;  %v131_v19 = vadd.f32 %v183_v11, %v130_v18  ;;  %v210_v20 = vpop.f32.mrb[3].mxu0 }
  0xdc   :  { %v155_v21 = vpop.f32.mrb[2].mxu1 }
  0xdd   :  { %171 = vst.msk [vmem:[%s348_s3 + $0x8] sm:$0xff] %vm169_vm2, %v131_v19  ;;  %v156_v22 = vadd.f32 %v183_v11, %v155_v21  ;;  %v225_v23 = vpop.f32.mrb[3].mxu1 }
  0xde   :  { %v135_v24 = vpop.f32.mrb[4].mxu0 }
  0xdf   :  { %176 = vst.msk [vmem:[%s348_s3 + $0x30] sm:$0xff] %vm169_vm2, %v156_v22  ;;  %v136_v25 = vadd.f32 %v183_v11, %v135_v24  ;;  %v213_v26 = vpop.f32.mrb[5].mxu0 }
  0xe0   :  { %v160_v27 = vpop.f32.mrb[4].mxu1 }
  0xe1   :  { %172 = vst.msk [vmem:[%s348_s3 + $0x10] sm:$0xff] %vm169_vm2, %v136_v25  ;;  %v161_v28 = vadd.f32 %v183_v11, %v160_v27  ;;  %v228_v29 = vpop.f32.mrb[5].mxu1 }
  0xe2   :  { %v140_v30 = vpop.f32.mrb[6].mxu0 }
  0xe3   :  { %177 = vst.msk [vmem:[%s348_s3 + $0x38] sm:$0xff] %vm169_vm2, %v161_v28  ;;  %v141_v31 = vadd.f32 %v183_v11, %v140_v30  ;;  %v216_v32 = vpop.f32.mrb[7].mxu0 }
  0xe4   :  { %v165_v33 = vpop.f32.mrb[6].mxu1 }
  0xe5   :  { %173 = vst.msk [vmem:[%s348_s3 + $0x18] sm:$0xff] %vm169_vm2, %v141_v31  ;;  %v166_v34 = vadd.f32 %v183_v11, %v165_v33  ;;  %v231_v35 = vpop.f32.mrb[7].mxu1 }
  0xe6   :  { %v145_v36 = vpop.f32.mrb[8].mxu0 }
  0xe7   :  { %178 = vst.msk [vmem:[%s348_s3 + $0x40] sm:$0xff] %vm169_vm2, %v166_v34  ;;  %v146_v37 = vadd.f32 %v183_v11, %v145_v36  ;;  %v219_v38 = vpop.f32.mrb[9].mxu0 }
  0xe9   :  { %174 = vst.msk [vmem:[%s348_s3 + $0x20] sm:$0xff] %vm169_vm2, %v146_v37 }

// kernel: mconforod_forward.6
= control target key start
LH: loop header
LB: loop body
LE: loop exit
PB: predicated region body
PF: predicated region fallthrough
CT: control target
= control target key end

     0   :  { %vm144_vm0 = vcmask 1040384   ;;  %vm53_vm1 = vcmask 72704   ;;  %vm550_vm2 = vmmov 1   ;;  %vm393_vm4 = vcmask 261120   ;;  %s852_s1 = inlined_call_operand.vmem [shape: f32[9,32], index: 1, kind: input, shape index: {}]   ;;  %s853_s0 = inlined_call_operand.vmem [shape: f32[240,9], index: 0, kind: input, shape index: {}]   ;;  %s854_s2 = inlined_call_operand.vmem [shape: f32[1,32], index: 2, kind: input, shape index: {}]   ;;  %s855_s3 = inlined_call_operand.vmem [shape: f32[240,32], index: 3, kind: output, shape index: {}]  }
   0x1   :  { %v44_v0 = vld [vmem:[%s852_s1] sm:$0xff]  ;;  %v45_v1 = vld [vmem:[%s852_s1 + $0x8] sm:$0x1]  ;;  %vm542_vm3 = vmpackc.low %vm144_vm0, %vm550_vm2 }
   0x2   :  { %v541_v2 = vpack.c.bf16 %v45_v1, %v44_v0  ;;  %v14_v3 = vld [vmem:[%s853_s0] sm:$0xff]  ;;  %v15_v5 = vld [vmem:[%s853_s0 + $0x8] sm:$0xff]  ;;  %v16_v7 = vld [vmem:[%s853_s0 + $0x10] sm:$0xff] }
   0x3   :  { %v30_v4 = vld [vmem:[%s853_s0 + $0x80] sm:$0xff]  ;;  %496 = vmatprep.mubr.msk.f32.mxu0 %vm53_vm1, %v14_v3  ;;  %v31_v6 = vld [vmem:[%s853_s0 + $0x88] sm:$0xff]  ;;  %v32_v8 = vld [vmem:[%s853_s0 + $0x90] sm:$0xff] }
   0x4   :  { %520 = vmatprep.mubr.msk.f32.mxu1 %vm53_vm1, %v30_v4  ;;  %543 = vmatprep.subr.msk.bf16.mxu0 %vm542_vm3, %v541_v2  ;;  %v17_v9 = vld [vmem:[%s853_s0 + $0x18] sm:$0xff]  ;;  %v18_v11 = vld [vmem:[%s853_s0 + $0x20] sm:$0xff]  ;;  %v19_v13 = vld [vmem:[%s853_s0 + $0x28] sm:$0xff] }
   0x5   :  { %547 = vmatprep.subr.msk.bf16.mxu1 %vm542_vm3, %v541_v2  ;;  %546 = vmatpush3.bf16.msk.msra.mxu0 %vm542_vm3, %v541_v2  ;;  %v33_v10 = vld [vmem:[%s853_s0 + $0x98] sm:$0xff]  ;;  %v34_v12 = vld [vmem:[%s853_s0 + $0xa0] sm:$0xff]  ;;  %v35_v14 = vld [vmem:[%s853_s0 + $0xa8] sm:$0xff] }
   0x6   :  { %548 = vmatpush3.bf16.msk.msra.mxu1 %vm542_vm3, %v541_v2  ;;  %v20_v15 = vld [vmem:[%s853_s0 + $0x30] sm:$0xff]  ;;  %v21_v17 = vld [vmem:[%s853_s0 + $0x38] sm:$0xff]  ;;  %v22_v19 = vld [vmem:[%s853_s0 + $0x40] sm:$0xff] }
   0x7   :  { %v36_v16 = vld [vmem:[%s853_s0 + $0xb0] sm:$0xff]  ;;  %v37_v18 = vld [vmem:[%s853_s0 + $0xb8] sm:$0xff]  ;;  %v38_v20 = vld [vmem:[%s853_s0 + $0xc0] sm:$0xff] }
   0x8   :  { %497 = vmatmul.mubr.msk.f32.vlgmr.msra.gmra.mrb[0].mxu0 %vm53_vm1, %v15_v5  ;;  %v23_v21 = vld [vmem:[%s853_s0 + $0x48] sm:$0xff]  ;;  %v24_v23 = vld [vmem:[%s853_s0 + $0x50] sm:$0xff]  ;;  %v25_v25 = vld [vmem:[%s853_s0 + $0x58] sm:$0xff] }
   0x9   :  { %521 = vmatmul.mubr.msk.f32.vlgmr.msra.gmra.mrb[0].mxu1 %vm53_vm1, %v31_v6  ;;  %499 = vmatprep.mubr.msk.f32.mxu0 %vm53_vm1, %v16_v7  ;;  %v39_v22 = vld [vmem:[%s853_s0 + $0xc8] sm:$0xff]  ;;  %v40_v24 = vld [vmem:[%s853_s0 + $0xd0] sm:$0xff]  ;;  %v41_v26 = vld [vmem:[%s853_s0 + $0xd8] sm:$0xff] }
   0xa   :  { %523 = vmatprep.mubr.msk.f32.mxu1 %vm53_vm1, %v32_v8  ;;  %v26_v27 = vld [vmem:[%s853_s0 + $0x60] sm:$0xff]  ;;  %v27_v29 = vld [vmem:[%s853_s0 + $0x68] sm:$0xff]  ;;  %v28_v31 = vld [vmem:[%s853_s0 + $0x70] sm:$0xff] }
   0xb   :  { %v42_v28 = vld [vmem:[%s853_s0 + $0xe0] sm:$0xff]  ;;  %v43_v30 = vld [vmem:[%s853_s0 + $0xe8] sm:$0xff]  ;;  %v29_v32 = vld [vmem:[%s853_s0 + $0x78] sm:$0xff] }
   0xc   :  { %500 = vmatmul.mubr.msk.f32.gmra.mrb[2].mxu0 %vm53_vm1, %v17_v9  ;;  %v700_v33 = vld [vmem:[%s854_s2] ss:$0 sm:$0xff] }
   0xd   :  { %524 = vmatmul.mubr.msk.f32.gmra.mrb[2].mxu1 %vm53_vm1, %v33_v10  ;;  %502 = vmatprep.mubr.msk.f32.mxu0 %vm53_vm1, %v18_v11 }
   0xe   :  { %526 = vmatprep.mubr.msk.f32.mxu1 %vm53_vm1, %v34_v12 }
  0x10   :  { %503 = vmatmul.mubr.msk.f32.gmra.mrb[4].mxu0 %vm53_vm1, %v19_v13 }
  0x11   :  { %527 = vmatmul.mubr.msk.f32.gmra.mrb[4].mxu1 %vm53_vm1, %v35_v14  ;;  %505 = vmatprep.mubr.msk.f32.mxu0 %vm53_vm1, %v20_v15 }
  0x12   :  { %529 = vmatprep.mubr.msk.f32.mxu1 %vm53_vm1, %v36_v16 }
  0x14   :  { %506 = vmatmul.mubr.msk.f32.gmra.mrb[6].mxu0 %vm53_vm1, %v21_v17 }
  0x15   :  { %530 = vmatmul.mubr.msk.f32.gmra.mrb[6].mxu1 %vm53_vm1, %v37_v18  ;;  %508 = vmatprep.mubr.msk.f32.mxu0 %vm53_vm1, %v22_v19 }
  0x16   :  { %532 = vmatprep.mubr.msk.f32.mxu1 %vm53_vm1, %v38_v20 }
  0x18   :  { %509 = vmatmul.mubr.msk.f32.gmra.mrb[8].mxu0 %vm53_vm1, %v23_v21 }
  0x19   :  { %533 = vmatmul.mubr.msk.f32.gmra.mrb[8].mxu1 %vm53_vm1, %v39_v22  ;;  %511 = vmatprep.mubr.msk.f32.mxu0 %vm53_vm1, %v24_v23 }
  0x1a   :  { %535 = vmatprep.mubr.msk.f32.mxu1 %vm53_vm1, %v40_v24 }
  0x1c   :  { %512 = vmatmul.mubr.msk.f32.gmra.mrb[10].mxu0 %vm53_vm1, %v25_v25 }
  0x1d   :  { %536 = vmatmul.mubr.msk.f32.gmra.mrb[10].mxu1 %vm53_vm1, %v41_v26  ;;  %514 = vmatprep.mubr.msk.f32.mxu0 %vm53_vm1, %v26_v27 }
  0x1e   :  { %538 = vmatprep.mubr.msk.f32.mxu1 %vm53_vm1, %v42_v28 }
  0x20   :  { %515 = vmatmul.mubr.msk.f32.gmra.mrb[12].mxu0 %vm53_vm1, %v27_v29 }
  0x21   :  { %539 = vmatmul.mubr.msk.f32.gmra.mrb[12].mxu1 %vm53_vm1, %v43_v30  ;;  %517 = vmatprep.mubr.msk.f32.mxu0 %vm53_vm1, %v28_v31 }
  0x24   :  { %518 = vmatmul.mubr.msk.f32.gmra.mrb[14].mxu0 %vm53_vm1, %v29_v32 }
  0xdb   :  { %v498_v34 = vpop.f32.mrb[0].mxu0 }
  0xdc   :  { %v522_v35 = vpop.f32.mrb[0].mxu1  ;;  %v220_v36 = vadd.f32 %v498_v34, %v700_v33  ;;  %v214_v37 = vpop.f32.mrb[1].mxu0 }
  0xdd   :  { %v300_v38 = vadd.f32 %v522_v35, %v700_v33  ;;  %v294_v39 = vpop.f32.mrb[1].mxu1  ;;  %v215_v40 = vadd.f32 %v700_v33, %v214_v37 }
  0xde   :  { %v295_v41 = vadd.f32 %v700_v33, %v294_v39  ;;  %v364_v42 = vmax.f32 %v220_v36, 0.0 }
  0xdf   :  { %v380_v43 = vmax.f32 %v300_v38, 0.0  ;;  %v363_v44 = vmax.f32 %v215_v40, 0.0  ;;  %v501_v45 = vpop.f32.mrb[2].mxu0 }
  0xe0   :  { %v379_v46 = vmax.f32 %v295_v41, 0.0  ;;  %v525_v47 = vpop.f32.mrb[2].mxu1  ;;  %395 = vst.msk [vmem:[%s855_s3 + $0x8] sm:$0xff] %vm393_vm4, %v364_v42  ;;  %v230_v48 = vadd.f32 %v501_v45, %v700_v33  ;;  %v224_v49 = vpop.f32.mrb[3].mxu0 }
  0xe1   :  { %411 = vst.msk [vmem:[%s855_s3 + $0x88] sm:$0xff] %vm393_vm4, %v380_v43  ;;  %v310_v50 = vadd.f32 %v525_v47, %v700_v33  ;;  %v304_v51 = vpop.f32.mrb[3].mxu1  ;;  %394 = vst.msk [vmem:[%s855_s3] sm:$0xff] %vm393_vm4, %v363_v44  ;;  %v225_v52 = vadd.f32 %v700_v33, %v224_v49 }
  0xe2   :  { %410 = vst.msk [vmem:[%s855_s3 + $0x80] sm:$0xff] %vm393_vm4, %v379_v46  ;;  %v305_v53 = vadd.f32 %v700_v33, %v304_v51  ;;  %v366_v54 = vmax.f32 %v230_v48, 0.0 }
  0xe3   :  { %v382_v55 = vmax.f32 %v310_v50, 0.0  ;;  %v365_v56 = vmax.f32 %v225_v52, 0.0  ;;  %v504_v57 = vpop.f32.mrb[4].mxu0 }
  0xe4   :  { %v381_v58 = vmax.f32 %v305_v53, 0.0  ;;  %v528_v59 = vpop.f32.mrb[4].mxu1  ;;  %397 = vst.msk [vmem:[%s855_s3 + $0x18] sm:$0xff] %vm393_vm4, %v366_v54  ;;  %v240_v60 = vadd.f32 %v504_v57, %v700_v33  ;;  %v234_v61 = vpop.f32.mrb[5].mxu0 }
  0xe5   :  { %413 = vst.msk [vmem:[%s855_s3 + $0x98] sm:$0xff] %vm393_vm4, %v382_v55  ;;  %v320_v62 = vadd.f32 %v528_v59, %v700_v33  ;;  %v314_v63 = vpop.f32.mrb[5].mxu1  ;;  %396 = vst.msk [vmem:[%s855_s3 + $0x10] sm:$0xff] %vm393_vm4, %v365_v56  ;;  %v235_v0 = vadd.f32 %v700_v33, %v234_v61 }
  0xe6   :  { %412 = vst.msk [vmem:[%s855_s3 + $0x90] sm:$0xff] %vm393_vm4, %v381_v58  ;;  %v315_v1 = vadd.f32 %v700_v33, %v314_v63  ;;  %v368_v2 = vmax.f32 %v240_v60, 0.0 }
  0xe7   :  { %v384_v3 = vmax.f32 %v320_v62, 0.0  ;;  %v367_v4 = vmax.f32 %v235_v0, 0.0  ;;  %v507_v5 = vpop.f32.mrb[6].mxu0 }
  0xe8   :  { %v383_v6 = vmax.f32 %v315_v1, 0.0  ;;  %v531_v7 = vpop.f32.mrb[6].mxu1  ;;  %399 = vst.msk [vmem:[%s855_s3 + $0x28] sm:$0xff] %vm393_vm4, %v368_v2  ;;  %v250_v8 = vadd.f32 %v507_v5, %v700_v33  ;;  %v244_v9 = vpop.f32.mrb[7].mxu0 }
  0xe9   :  { %415 = vst.msk [vmem:[%s855_s3 + $0xa8] sm:$0xff] %vm393_vm4, %v384_v3  ;;  %v330_v10 = vadd.f32 %v531_v7, %v700_v33  ;;  %v324_v11 = vpop.f32.mrb[7].mxu1  ;;  %398 = vst.msk [vmem:[%s855_s3 + $0x20] sm:$0xff] %vm393_vm4, %v367_v4  ;;  %v245_v12 = vadd.f32 %v700_v33, %v244_v9 }
  0xea   :  { %414 = vst.msk [vmem:[%s855_s3 + $0xa0] sm:$0xff] %vm393_vm4, %v383_v6  ;;  %v325_v13 = vadd.f32 %v700_v33, %v324_v11  ;;  %v370_v14 = vmax.f32 %v250_v8, 0.0 }
  0xeb   :  { %v386_v15 = vmax.f32 %v330_v10, 0.0  ;;  %v369_v16 = vmax.f32 %v245_v12, 0.0  ;;  %v510_v17 = vpop.f32.mrb[8].mxu0 }
  0xec   :  { %v385_v18 = vmax.f32 %v325_v13, 0.0  ;;  %v534_v19 = vpop.f32.mrb[8].mxu1  ;;  %401 = vst.msk [vmem:[%s855_s3 + $0x38] sm:$0xff] %vm393_vm4, %v370_v14  ;;  %v260_v20 = vadd.f32 %v510_v17, %v700_v33  ;;  %v254_v21 = vpop.f32.mrb[9].mxu0 }
  0xed   :  { %417 = vst.msk [vmem:[%s855_s3 + $0xb8] sm:$0xff] %vm393_vm4, %v386_v15  ;;  %v340_v22 = vadd.f32 %v534_v19, %v700_v33  ;;  %v334_v23 = vpop.f32.mrb[9].mxu1  ;;  %400 = vst.msk [vmem:[%s855_s3 + $0x30] sm:$0xff] %vm393_vm4, %v369_v16  ;;  %v255_v24 = vadd.f32 %v700_v33, %v254_v21 }
  0xee   :  { %416 = vst.msk [vmem:[%s855_s3 + $0xb0] sm:$0xff] %vm393_vm4, %v385_v18  ;;  %v335_v25 = vadd.f32 %v700_v33, %v334_v23  ;;  %v372_v26 = vmax.f32 %v260_v20, 0.0 }
  0xef   :  { %v388_v27 = vmax.f32 %v340_v22, 0.0  ;;  %v371_v28 = vmax.f32 %v255_v24, 0.0  ;;  %v513_v29 = vpop.f32.mrb[10].mxu0 }
  0xf0   :  { %v387_v30 = vmax.f32 %v335_v25, 0.0  ;;  %v537_v31 = vpop.f32.mrb[10].mxu1  ;;  %403 = vst.msk [vmem:[%s855_s3 + $0x48] sm:$0xff] %vm393_vm4, %v372_v26  ;;  %v270_v32 = vadd.f32 %v513_v29, %v700_v33  ;;  %v264_v34 = vpop.f32.mrb[11].mxu0 }
  0xf1   :  { %419 = vst.msk [vmem:[%s855_s3 + $0xc8] sm:$0xff] %vm393_vm4, %v388_v27  ;;  %v350_v35 = vadd.f32 %v537_v31, %v700_v33  ;;  %v344_v36 = vpop.f32.mrb[11].mxu1  ;;  %402 = vst.msk [vmem:[%s855_s3 + $0x40] sm:$0xff] %vm393_vm4, %v371_v28  ;;  %v265_v37 = vadd.f32 %v700_v33, %v264_v34 }
  0xf2   :  { %418 = vst.msk [vmem:[%s855_s3 + $0xc0] sm:$0xff] %vm393_vm4, %v387_v30  ;;  %v345_v38 = vadd.f32 %v700_v33, %v344_v36  ;;  %v374_v39 = vmax.f32 %v270_v32, 0.0 }
  0xf3   :  { %v390_v40 = vmax.f32 %v350_v35, 0.0  ;;  %v373_v41 = vmax.f32 %v265_v37, 0.0  ;;  %v516_v42 = vpop.f32.mrb[12].mxu0 }
  0xf4   :  { %v389_v43 = vmax.f32 %v345_v38, 0.0  ;;  %v540_v44 = vpop.f32.mrb[12].mxu1  ;;  %405 = vst.msk [vmem:[%s855_s3 + $0x58] sm:$0xff] %vm393_vm4, %v374_v39  ;;  %v280_v45 = vadd.f32 %v516_v42, %v700_v33  ;;  %v274_v46 = vpop.f32.mrb[13].mxu0 }
  0xf5   :  { %421 = vst.msk [vmem:[%s855_s3 + $0xd8] sm:$0xff] %vm393_vm4, %v390_v40  ;;  %v360_v47 = vadd.f32 %v540_v44, %v700_v33  ;;  %v354_v48 = vpop.f32.mrb[13].mxu1  ;;  %404 = vst.msk [vmem:[%s855_s3 + $0x50] sm:$0xff] %vm393_vm4, %v373_v41  ;;  %v275_v49 = vadd.f32 %v700_v33, %v274_v46 }
  0xf6   :  { %420 = vst.msk [vmem:[%s855_s3 + $0xd0] sm:$0xff] %vm393_vm4, %v389_v43  ;;  %v355_v50 = vadd.f32 %v700_v33, %v354_v48  ;;  %v376_v51 = vmax.f32 %v280_v45, 0.0 }
  0xf7   :  { %v392_v52 = vmax.f32 %v360_v47, 0.0  ;;  %v375_v53 = vmax.f32 %v275_v49, 0.0  ;;  %v519_v54 = vpop.f32.mrb[14].mxu0 }
  0xf8   :  { %v391_v55 = vmax.f32 %v355_v50, 0.0  ;;  %407 = vst.msk [vmem:[%s855_s3 + $0x68] sm:$0xff] %vm393_vm4, %v376_v51  ;;  %v290_v56 = vadd.f32 %v519_v54, %v700_v33  ;;  %v284_v57 = vpop.f32.mrb[15].mxu0 }
  0xf9   :  { %423 = vst.msk [vmem:[%s855_s3 + $0xe8] sm:$0xff] %vm393_vm4, %v392_v52  ;;  %406 = vst.msk [vmem:[%s855_s3 + $0x60] sm:$0xff] %vm393_vm4, %v375_v53  ;;  %v285_v58 = vadd.f32 %v700_v33, %v284_v57 }
  0xfa   :  { %422 = vst.msk [vmem:[%s855_s3 + $0xe0] sm:$0xff] %vm393_vm4, %v391_v55  ;;  %v378_v59 = vmax.f32 %v290_v56, 0.0 }
  0xfb   :  { %v377_v60 = vmax.f32 %v285_v58, 0.0 }
  0xfc   :  { %409 = vst.msk [vmem:[%s855_s3 + $0x78] sm:$0xff] %vm393_vm4, %v378_v59 }
  0xfd   :  { %408 = vst.msk [vmem:[%s855_s3 + $0x70] sm:$0xff] %vm393_vm4, %v377_v60 }

// kernel: mconforod_forward.7
= control target key start
LH: loop header
LB: loop body
LE: loop exit
PB: predicated region body
PF: predicated region fallthrough
CT: control target
= control target key end

     0   :  { %vm75_vm0 = vcmask 261120   ;;  %s639_s1 = inlined_call_operand.vmem [shape: f32[288,32], index: 1, kind: input, shape index: {}]   ;;  %s640_s0 = inlined_call_operand.vmem [shape: f32[48,288], index: 0, kind: input, shape index: {}]   ;;  %s641_s2 = inlined_call_operand.vmem [shape: f32[1,32], index: 2, kind: input, shape index: {}]   ;;  %s642_s3 = inlined_call_operand.vmem [shape: f32[48,32], index: 3, kind: output, shape index: {}]  }
   0x1   :  { %v48_v0 = vld [vmem:[%s639_s1 + $0x80] sm:$0xff]  ;;  %v49_v1 = vld [vmem:[%s639_s1 + $0x88] sm:$0xff]  ;;  %v50_v5 = vld [vmem:[%s639_s1 + $0x90] sm:$0xff] }
   0x2   :  { %v32_v2 = vld [vmem:[%s639_s1] sm:$0xff]  ;;  %v384_v3 = vpack.c.bf16 %v49_v1, %v48_v0  ;;  %v33_v4 = vld [vmem:[%s639_s1 + $0x8] sm:$0xff]  ;;  %v51_v6 = vld [vmem:[%s639_s1 + $0x98] sm:$0xff] }
   0x3   :  { %v386_v7 = vpack.c.bf16 %v33_v4, %v32_v2  ;;  %v388_v8 = vpack.c.bf16 %v51_v6, %v50_v5  ;;  %v34_v9 = vld [vmem:[%s639_s1 + $0x10] sm:$0xff]  ;;  %v35_v10 = vld [vmem:[%s639_s1 + $0x18] sm:$0xff]  ;;  %v52_v11 = vld [vmem:[%s639_s1 + $0xa0] sm:$0xff] }
   0x4   :  { %385 = vmatprep.subr.bf16.mxu0 %v384_v3  ;;  %v53_v12 = vld [vmem:[%s639_s1 + $0xa8] sm:$0xff]  ;;  %v390_v13 = vpack.c.bf16 %v35_v10, %v34_v9  ;;  %v36_v15 = vld [vmem:[%s639_s1 + $0x20] sm:$0xff]  ;;  %v54_v17 = vld [vmem:[%s639_s1 + $0xb0] sm:$0xff] }
   0x5   :  { %387 = vmatpush3.bf16.msra.mxu0 %v386_v7  ;;  %v392_v14 = vpack.c.bf16 %v53_v12, %v52_v11  ;;  %v37_v16 = vld [vmem:[%s639_s1 + $0x28] sm:$0xff]  ;;  %v55_v18 = vld [vmem:[%s639_s1 + $0xb8] sm:$0xff]  ;;  %v38_v21 = vld [vmem:[%s639_s1 + $0x30] sm:$0xff] }
   0x6   :  { %389 = vmatprep.subr.bf16.mxu0 %v388_v8  ;;  %v394_v19 = vpack.c.bf16 %v37_v16, %v36_v15  ;;  %v396_v20 = vpack.c.bf16 %v55_v18, %v54_v17  ;;  %v39_v22 = vld [vmem:[%s639_s1 + $0x38] sm:$0xff]  ;;  %v56_v23 = vld [vmem:[%s639_s1 + $0xc0] sm:$0xff]  ;;  %v57_v24 = vld [vmem:[%s639_s1 + $0xc8] sm:$0xff] }
   0x7   :  { %v64_v25 = vld [vmem:[%s639_s1 + $0x100] sm:$0xff]  ;;  %v65_v26 = vld [vmem:[%s639_s1 + $0x108] sm:$0xff]  ;;  %v398_v29 = vpack.c.bf16 %v39_v22, %v38_v21  ;;  %v66_v30 = vld [vmem:[%s639_s1 + $0x110] sm:$0xff]  ;;  %v400_v32 = vpack.c.bf16 %v57_v24, %v56_v23 }
   0x8   :  { %v416_v27 = vpack.c.bf16 %v65_v26, %v64_v25  ;;  %v15_v28 = vld [vmem:[%s640_s0 + $0x8] sm:$0xff]  ;;  %v67_v31 = vld [vmem:[%s639_s1 + $0x118] sm:$0xff]  ;;  %v40_v33 = vld [vmem:[%s639_s1 + $0x40] sm:$0xff] }
   0x9   :  { %391 = vmatpush3.bf16.msra.mxu0 %v390_v13  ;;  %158 = vmatprep.mubr.f32.mxu0 %v15_v28  ;;  %v41_v34 = vld [vmem:[%s639_s1 + $0x48] sm:$0xff]  ;;  %v420_v35 = vpack.c.bf16 %v67_v31, %v66_v30  ;;  %v16_v36 = vld [vmem:[%s640_s0 + $0x10] sm:$0xff]  ;;  %v59_v38 = vld [vmem:[%s639_s1 + $0xd8] sm:$0xff] }
   0xa   :  { %393 = vmatprep.subr.bf16.mxu0 %v392_v14  ;;  %417 = vmatprep.subr.bf16.mxu1 %v416_v27  ;;  %v58_v37 = vld [vmem:[%s639_s1 + $0xd0] sm:$0xff]  ;;  %v402_v39 = vpack.c.bf16 %v41_v34, %v40_v33  ;;  %v43_v42 = vld [vmem:[%s639_s1 + $0x58] sm:$0xff]  ;;  %v60_v43 = vld [vmem:[%s639_s1 + $0xe0] sm:$0xff] }
   0xb   :  { %419 = vmatpush3.bf16.msra.mxu1 %v416_v27  ;;  %375 = vmatprep.mubr.msk.f32.mxu1 %vm75_vm0, %v16_v36  ;;  %v404_v40 = vpack.c.bf16 %v59_v38, %v58_v37  ;;  %v42_v41 = vld [vmem:[%s639_s1 + $0x50] sm:$0xff]  ;;  %v61_v44 = vld [vmem:[%s639_s1 + $0xe8] sm:$0xff]  ;;  %v22_v46 = vld [vmem:[%s640_s0 + $0x40] sm:$0xff] }
   0xc   :  { %421 = vmatprep.subr.bf16.mxu1 %v420_v35  ;;  %v19_v45 = vld [vmem:[%s640_s0 + $0x28] sm:$0xff]  ;;  %v406_v47 = vpack.c.bf16 %v43_v42, %v42_v41  ;;  %v408_v48 = vpack.c.bf16 %v61_v44, %v60_v43  ;;  %v44_v49 = vld [vmem:[%s639_s1 + $0x60] sm:$0xff]  ;;  %v62_v51 = vld [vmem:[%s639_s1 + $0xf0] sm:$0xff] }
   0xd   :  { %395 = vmatpush3.bf16.msra.mxu0 %v394_v19  ;;  %v45_v50 = vld [vmem:[%s639_s1 + $0x68] sm:$0xff]  ;;  %v63_v52 = vld [vmem:[%s639_s1 + $0xf8] sm:$0xff]  ;;  %v28_v54 = vld [vmem:[%s640_s0 + $0x70] sm:$0xff] }
   0xe   :  { %397 = vmatprep.subr.bf16.mxu0 %v396_v20  ;;  %v25_v53 = vld [vmem:[%s640_s0 + $0x58] sm:$0xff]  ;;  %v410_v55 = vpack.c.bf16 %v45_v50, %v44_v49  ;;  %v412_v56 = vpack.c.bf16 %v63_v52, %v62_v51  ;;  %v46_v57 = vld [vmem:[%s639_s1 + $0x70] sm:$0xff]  ;;  %v31_v59 = vld [vmem:[%s640_s0 + $0x88] sm:$0xff] }
   0xf   :  { %423 = vmatpush3.bf16.msra.mxu1 %v420_v35  ;;  %v47_v58 = vld [vmem:[%s639_s1 + $0x78] sm:$0xff]  ;;  %v14_v61 = vld [vmem:[%s640_s0] sm:$0xff]  ;;  %v20_v1 = vld [vmem:[%s640_s0 + $0x30] sm:$0xff] }
  0x10   :  { %v414_v60 = vpack.c.bf16 %v47_v58, %v46_v57  ;;  %v18_v62 = vld [vmem:[%s640_s0 + $0x20] sm:$0xff]  ;;  %v17_v63 = vld [vmem:[%s640_s0 + $0x18] sm:$0xff]  ;;  %v24_v2 = vld [vmem:[%s640_s0 + $0x50] sm:$0xff] }
  0x11   :  { %399 = vmatpush3.bf16.msra.mxu0 %v398_v29  ;;  %v21_v0 = vld [vmem:[%s640_s0 + $0x38] sm:$0xff]  ;;  %v23_v3 = vld [vmem:[%s640_s0 + $0x48] sm:$0xff]  ;;  %v26_v5 = vld [vmem:[%s640_s0 + $0x60] sm:$0xff] }
  0x12   :  { %401 = vmatprep.subr.bf16.mxu0 %v400_v32  ;;  %376 = vmatmul.mubr.msk.f32.vlgmr.msra.gmra.mrb[0].mxu1 %vm75_vm0, %v19_v45  ;;  %v27_v4 = vld [vmem:[%s640_s0 + $0x68] sm:$0xff]  ;;  %v30_v6 = vld [vmem:[%s640_s0 + $0x80] sm:$0xff]  ;;  %v29_v7 = vld [vmem:[%s640_s0 + $0x78] sm:$0xff] }
  0x13   :  { %378 = vmatprep.mubr.msk.f32.mxu1 %vm75_vm0, %v22_v46  ;;  %v300_v16 = vld [vmem:[%s641_s2] ss:$0 sm:$0xff] }
  0x15   :  { %403 = vmatpush3.bf16.msra.mxu0 %v402_v39 }
  0x16   :  { %405 = vmatprep.subr.bf16.mxu0 %v404_v40  ;;  %379 = vmatmul.mubr.msk.f32.gmra.mrb[2].mxu1 %vm75_vm0, %v25_v53 }
  0x17   :  { %381 = vmatprep.mubr.msk.f32.mxu1 %vm75_vm0, %v28_v54 }
  0x19   :  { %407 = vmatpush3.bf16.msra.mxu0 %v406_v47 }
  0x1a   :  { %409 = vmatprep.subr.bf16.mxu0 %v408_v48  ;;  %382 = vmatmul.mubr.msk.f32.gmra.mrb[4].mxu1 %vm75_vm0, %v31_v59 }
  0x1d   :  { %411 = vmatpush3.bf16.msra.mxu0 %v410_v55 }
  0x1e   :  { %413 = vmatprep.subr.bf16.mxu0 %v412_v56 }
  0x21   :  { %415 = vmatpush3.bf16.msra.mxu0 %v414_v60 }
  0x24   :  { %159 = vmatmul.mubr.f32.vlgmr.msra.gmra.mrb[0].mxu0 %v14_v61 }
  0x25   :  { %163 = vmatprep.mubr.f32.mxu0 %v18_v62 }
  0x28   :  { %164 = vmatmul.mubr.f32.gmra.mrb[2].mxu0 %v17_v63 }
  0x29   :  { %168 = vmatprep.mubr.f32.mxu0 %v21_v0 }
  0x2c   :  { %169 = vmatmul.mubr.f32.gmra.mrb[4].mxu0 %v20_v1 }
  0x2d   :  { %173 = vmatprep.mubr.f32.mxu0 %v24_v2 }
  0x30   :  { %174 = vmatmul.mubr.f32.gmra.mrb[6].mxu0 %v23_v3 }
  0x31   :  { %178 = vmatprep.mubr.f32.mxu0 %v27_v4 }
  0x34   :  { %179 = vmatmul.mubr.f32.gmra.mrb[8].mxu0 %v26_v5 }
  0x35   :  { %183 = vmatprep.mubr.f32.mxu0 %v30_v6 }
  0x38   :  { %184 = vmatmul.mubr.f32.gmra.mrb[10].mxu0 %v29_v7 }
  0xe5   :  { %v377_v8 = vpop.f32.mrb[0].mxu1 }
  0xe6   :  { %v255_v9 = vpop.f32.mrb[1].mxu1 }
  0xe9   :  { %v380_v10 = vpop.f32.mrb[2].mxu1 }
  0xea   :  { %v265_v11 = vpop.f32.mrb[3].mxu1 }
  0xed   :  { %v383_v12 = vpop.f32.mrb[4].mxu1 }
  0xee   :  { %v275_v13 = vpop.f32.mrb[5].mxu1 }
  0xf7   :  { %v339_v14 = vpop.f32.mrb[0].mxu0 }
  0xf8   :  { %v340_v15 = vpop.f32.mrb[1].mxu0 }
  0xf9   :  { %v341_v17 = vadd.f32 %v340_v15, %v339_v14 }
  0xfb   :  { %v342_v18 = vpop.f32.mrb[2].mxu0  ;;  %v161_v19 = vadd.f32 %v341_v17, %v300_v16 }
  0xfc   :  { %v343_v20 = vpop.f32.mrb[3].mxu0 }
  0xfd   :  { %v344_v21 = vadd.f32 %v343_v20, %v342_v18  ;;  %v256_v22 = vadd.f32 %v255_v9, %v161_v19 }
  0xff   :  { %v166_v23 = vadd.f32 %v344_v21, %v300_v16  ;;  %v284_v24 = vmax.f32 %v256_v22, 0.0  ;;  %v345_v25 = vpop.f32.mrb[4].mxu0 }
 0x100   :  { %v346_v26 = vpop.f32.mrb[5].mxu0 }
 0x101   :  { %v261_v27 = vadd.f32 %v377_v8, %v166_v23  ;;  %290 = vst.msk [vmem:[%s642_s3] sm:$0xff] %vm75_vm0, %v284_v24  ;;  %v347_v28 = vadd.f32 %v346_v26, %v345_v25 }
 0x103   :  { %v285_v29 = vmax.f32 %v261_v27, 0.0  ;;  %v348_v30 = vpop.f32.mrb[6].mxu0  ;;  %v171_v31 = vadd.f32 %v347_v28, %v300_v16 }
 0x104   :  { %v349_v32 = vpop.f32.mrb[7].mxu0 }
 0x105   :  { %291 = vst.msk [vmem:[%s642_s3 + $0x8] sm:$0xff] %vm75_vm0, %v285_v29  ;;  %v350_v33 = vadd.f32 %v349_v32, %v348_v30  ;;  %v266_v34 = vadd.f32 %v265_v11, %v171_v31 }
 0x107   :  { %v176_v35 = vadd.f32 %v350_v33, %v300_v16  ;;  %v286_v36 = vmax.f32 %v266_v34, 0.0  ;;  %v351_v37 = vpop.f32.mrb[8].mxu0 }
 0x108   :  { %v352_v38 = vpop.f32.mrb[9].mxu0 }
 0x109   :  { %v271_v39 = vadd.f32 %v380_v10, %v176_v35  ;;  %292 = vst.msk [vmem:[%s642_s3 + $0x10] sm:$0xff] %vm75_vm0, %v286_v36  ;;  %v353_v40 = vadd.f32 %v352_v38, %v351_v37 }
 0x10b   :  { %v287_v41 = vmax.f32 %v271_v39, 0.0  ;;  %v354_v42 = vpop.f32.mrb[10].mxu0  ;;  %v181_v43 = vadd.f32 %v353_v40, %v300_v16 }
 0x10c   :  { %v355_v44 = vpop.f32.mrb[11].mxu0 }
 0x10d   :  { %293 = vst.msk [vmem:[%s642_s3 + $0x18] sm:$0xff] %vm75_vm0, %v287_v41  ;;  %v356_v45 = vadd.f32 %v355_v44, %v354_v42  ;;  %v276_v46 = vadd.f32 %v275_v13, %v181_v43 }
 0x10f   :  { %v186_v47 = vadd.f32 %v356_v45, %v300_v16  ;;  %v288_v48 = vmax.f32 %v276_v46, 0.0 }
 0x111   :  { %v281_v49 = vadd.f32 %v383_v12, %v186_v47  ;;  %294 = vst.msk [vmem:[%s642_s3 + $0x20] sm:$0xff] %vm75_vm0, %v288_v48 }
 0x113   :  { %v289_v50 = vmax.f32 %v281_v49, 0.0 }
 0x115   :  { %295 = vst.msk [vmem:[%s642_s3 + $0x28] sm:$0xff] %vm75_vm0, %v289_v50 }

// kernel: mconforod_forward.8
= control target key start
LH: loop header
LB: loop body
LE: loop exit
PB: predicated region body
PF: predicated region fallthrough
CT: control target
= control target key end

     0   :  { %vm35_vm0 = vcmask 785408   ;;  %vm117_vm1 = vcmask 261120   ;;  %s265_s1 = inlined_call_operand.vmem [shape: f32[96,32], index: 1, kind: input, shape index: {}]   ;;  %s266_s0 = inlined_call_operand.vmem [shape: f32[16,96], index: 0, kind: input, shape index: {}]   ;;  %s267_s2 = inlined_call_operand.vmem [shape: f32[1,32], index: 2, kind: input, shape index: {}]   ;;  %s268_s3 = inlined_call_operand.vmem [shape: f32[16,32], index: 3, kind: output, shape index: {}]  }
   0x1   :  { %v16_v0 = vld [vmem:[%s265_s1] sm:$0xff]  ;;  %v17_v1 = vld [vmem:[%s265_s1 + $0x8] sm:$0xff]  ;;  %v18_v2 = vld [vmem:[%s265_s1 + $0x10] sm:$0xff] }
   0x2   :  { %v168_v3 = vpack.c.bf16 %v17_v1, %v16_v0  ;;  %v19_v4 = vld [vmem:[%s265_s1 + $0x18] sm:$0xff]  ;;  %v20_v6 = vld [vmem:[%s265_s1 + $0x20] sm:$0xff]  ;;  %v21_v7 = vld [vmem:[%s265_s1 + $0x28] sm:$0xff] }
   0x3   :  { %v172_v5 = vpack.c.bf16 %v19_v4, %v18_v2  ;;  %v14_v8 = vld [vmem:[%s266_s0] sm:$0xff]  ;;  %v176_v9 = vpack.c.bf16 %v21_v7, %v20_v6  ;;  %v22_v10 = vld [vmem:[%s265_s1 + $0x30] sm:$0xff]  ;;  %v23_v11 = vld [vmem:[%s265_s1 + $0x38] sm:$0xff] }
   0x4   :  { %169 = vmatprep.subr.bf16.mxu0 %v168_v3  ;;  %165 = vmatprep.mubr.msk.f32.mxu0 %vm35_vm0, %v14_v8  ;;  %v180_v12 = vpack.c.bf16 %v23_v11, %v22_v10  ;;  %v24_v13 = vld [vmem:[%s265_s1 + $0x40] sm:$0xff]  ;;  %v25_v14 = vld [vmem:[%s265_s1 + $0x48] sm:$0xff]  ;;  %v26_v16 = vld [vmem:[%s265_s1 + $0x50] sm:$0xff] }
   0x5   :  { %171 = vmatpush3.bf16.msra.mxu0 %v168_v3  ;;  %v184_v15 = vpack.c.bf16 %v25_v14, %v24_v13  ;;  %v27_v17 = vld [vmem:[%s265_s1 + $0x58] sm:$0xff]  ;;  %v15_v19 = vld [vmem:[%s266_s0 + $0x8] sm:$0xff]  ;;  %v124_v20 = vld [vmem:[%s267_s2] ss:$0 sm:$0xff] }
   0x6   :  { %173 = vmatprep.subr.bf16.mxu0 %v172_v5  ;;  %v188_v18 = vpack.c.bf16 %v27_v17, %v26_v16 }
   0x9   :  { %175 = vmatpush3.bf16.msra.mxu0 %v172_v5 }
   0xa   :  { %177 = vmatprep.subr.bf16.mxu0 %v176_v9 }
   0xd   :  { %179 = vmatpush3.bf16.msra.mxu0 %v176_v9 }
   0xe   :  { %181 = vmatprep.subr.bf16.mxu0 %v180_v12 }
  0x11   :  { %183 = vmatpush3.bf16.msra.mxu0 %v180_v12 }
  0x12   :  { %185 = vmatprep.subr.bf16.mxu0 %v184_v15 }
  0x15   :  { %187 = vmatpush3.bf16.msra.mxu0 %v184_v15 }
  0x16   :  { %189 = vmatprep.subr.bf16.mxu0 %v188_v18 }
  0x19   :  { %191 = vmatpush3.bf16.msra.mxu0 %v188_v18 }
  0x1c   :  { %166 = vmatmul.mubr.msk.f32.vlgmr.msra.gmra.mrb[0].mxu0 %vm35_vm0, %v15_v19 }
  0xef   :  { %v167_v21 = vpop.f32.mrb[0].mxu0 }
  0xf0   :  { %v114_v22 = vadd.f32 %v167_v21, %v124_v20  ;;  %v108_v23 = vpop.f32.mrb[1].mxu0 }
  0xf1   :  { %v109_v24 = vadd.f32 %v124_v20, %v108_v23 }
  0xf2   :  { %119 = vst.msk [vmem:[%s268_s3 + $0x8] sm:$0xff] %vm117_vm1, %v114_v22 }
  0xf3   :  { %118 = vst.msk [vmem:[%s268_s3] sm:$0xff] %vm117_vm1, %v109_v24 }

// kernel: mconforod_forward.9
= control target key start
LH: loop header
LB: loop body
LE: loop exit
PB: predicated region body
PF: predicated region fallthrough
CT: control target
= control target key end

     0   :  { %s7010_s18 = smov 0   ;;  %s8529_s0 = inlined_call_operand.vmem [shape: f32[2,8,32], index: 0, kind: input, shape index: {}]   ;;  %s8530_s1 = inlined_call_operand.vmem [shape: f32[8,32], index: 1, kind: input, shape index: {}]   ;;  %s8531_s2 = inlined_call_operand.vmem [shape: f32[20,32], index: 2, kind: input, shape index: {}]   ;;  %s8532_s3 = inlined_call_operand.vmem [shape: f32[16,32], index: 3, kind: input, shape index: {}]   ;;  %s8533_s4 = inlined_call_operand.vmem [shape: f32[6,128], index: 4, kind: input, shape index: {}]   ;;  %s8534_s5 = inlined_call_operand.vmem [shape: f32[8,32,32], index: 5, kind: input, shape index: {}]   ;;  %s8535_s6 = inlined_call_operand.vmem [shape: f32[4,32,128], index: 6, kind: input, shape index: {}]   ;;  %s8536_s7 = inlined_call_operand.vmem [shape: f32[4,128,32], index: 7, kind: input, shape index: {}]   ;;  %s8537_s8 = inlined_call_operand.vmem [shape: f32[2,96,128], index: 8, kind: input, shape index: {}]   ;;  %s8538_s9 = inlined_call_operand.vmem [shape: f32[4,4,8], index: 9, kind: input, shape index: {}]   ;;  %s8539_s10 = inlined_call_operand.vmem [shape: f32[2,7,32], index: 10, kind: input, shape index: {}]   ;;  %s8540_s11 = inlined_call_operand.vmem [shape: f32[3,32,32], index: 11, kind: input, shape index: {}]   ;;  %s8541_s12 = inlined_call_operand.vmem [shape: f32[1,32], index: 12, kind: input, shape index: {}]   ;;  %s8542_s13 = inlined_call_operand.vmem [shape: f32[32,5], index: 13, kind: input, shape index: {}]   ;;  %s8543_s14 = inlined_call_operand.vmem [shape: f32[1,5], index: 14, kind: input, shape index: {}]   ;;  %s8544_s15 = inlined_call_operand.vmem [shape: f32[2,8,5], index: 15, kind: output, shape index: {}]  }
   0x1   :  { %8613 = sst [smem:[#allocation4_spill]] %s8529_s0 }
   0x2   :  { %8614 = sst [smem:[#allocation5_spill]] %s8530_s1 }
   0x3   :  { %8615 = sst [smem:[#allocation6_spill]] %s8536_s7 }
   0x4   :  { %8616 = sst [smem:[#allocation7_spill]] %s8540_s11 }
   0x5   :  { %8617 = sst [smem:[#allocation8_spill]] %s8541_s12 }
   0x6   :  { %8618 = sst [smem:[#allocation9_spill]] %s8542_s13 }
   0x7   :  { %8619 = sst [smem:[#allocation10_spill]] %s8543_s14 }
   0x8   :  { %8620 = sst [smem:[#allocation11_spill]] %s8544_s15 }
   0x9 LB: > { %8621 = sst [smem:[#allocation2_spill]] %s6897_s18  ;;  %s5592_s19 = sadd.s32 4294967295, %s6897_s18   ;;  %s6897_s18 = sphi %s7010_s18, %s25_s18  }
   0xa   : > { %p5596_p0 = scmp.ge.s32.totalorder %s6897_s18, 1  ;;  %p436_p1 = scmp.lt.s32.totalorder %s6897_s18, 3 }
   0xc   : > { %p437_p2 = pnand %p5596_p0, %p436_p1 }
   0xe   : > { %440 = sbr.rel (%p437_p2) target bundleno = 12758 (0x31d6), region = 80 }
  0x15   : > { %p482_p3 = scmp.lt.s32.totalorder %s5592_s19, 1  ;;  %vm8557_vm0 = vcmask 261120   ;;  %s8623_s0 = sld [smem:[#allocation4_spill]]  ;;  %v519_v7 = vld [vmem:[%s8535_s6] sm:$0xff]  ;;  %v520_v8 = vld [vmem:[%s8535_s6 + $0x8] sm:$0xff]  ;;  %v521_v9 = vld [vmem:[%s8535_s6 + $0x10] sm:$0xff] }
  0x16   : > { %v6899_v10 = vmov 0.0|0.0   ;;  %v6536_v11 = vpack.c.bf16 %v520_v8, %v519_v7  ;;  %v522_v12 = vld [vmem:[%s8535_s6 + $0x18] sm:$0xff]  ;;  %vm8610_vm1 = vmmov 0   ;;  %v6901_v13 = vmov 0.0   ;;  %v5599_v19 = vld [vmem:[%s8531_s2] ss:$0 sm:$0xff] }
  0x17   : > { %s8740_s19 = smov (!%p482_p3, %s5592_s19), 1  ;;  %6535 = vmatprep.subr.bf16.mxu0 %v6899_v10  ;;  %6053 = vmatprep.mubr.msk.f32.mxu0 %vm8610_vm1, %v6901_v13  ;;  %v6539_v14 = vpack.c.bf16 %v522_v12, %v521_v9  ;;  %v5600_v21 = vld [vmem:[%s8531_s2 + $0x1] ss:$0 sm:$0xff]  ;;  %s8624_s7 = sld [smem:[#allocation6_spill]]  ;;  %v5601_v48 = vld [vmem:[%s8533_s4] ss:$0 sm:$0xff] }
  0x18   : > { %8622 = sst [smem:[#allocation3_spill]] %s8740_s19  ;;  %s8545_s20 = sshll.u32 %s8740_s19, 3  ;;  %6541 = vmatprep.subr.bf16.mxu1 %v6899_v10  ;;  %6088 = vmatprep.mubr.msk.f32.mxu1 %vm8610_vm1, %v6901_v13  ;;  %v5604_v57 = vld [vmem:[%s8532_s3] ss:$0 sm:$0xff]  ;;  %v738_v7 = vld [vmem:[%s8537_s8 + $0x8] sm:$0xff]  ;;  %v739_v9 = vld [vmem:[%s8537_s8 + $0x10] sm:$0xff] }
  0x19   : > { %6537 = vmatpush3.bf16.msra.mxu0 %v6536_v11  ;;  %s8547_s24 = smov 32   ;;  %s8625_s1 = sld [smem:[#allocation5_spill]]  ;;  %v740_v11 = vld [vmem:[%s8537_s8 + $0x18] sm:$0xff]  ;;  %vm8556_vm2 = vcmask 523264   ;;  %vm8555_vm3 = vcmask 785408   ;;  %vm8612_vm4 = vcmask 64512  }
  0x1a   : > { %6538 = vmatprep.subr.bf16.mxu0 %v6899_v10  ;;  %v6569_v12 = vpack.c.bf16 %v740_v11, %v739_v9  ;;  %s8546_s27 = smov 96   ;;  %s8592_s17 = smov 122   ;;  %vm8607_vm5 = vcmask 15360   ;;  %vm928_vm6 = vcmask 7168   ;;  %vm939_vm7 = vcmask 23552  }
  0x1b   : > { %s485_s23 = scalar_lea.vmem %s8623_s0, %s8545_s20  ;;  %s8594_s21 = smov 121   ;;  %vm8608_vm8 = vcmask 31744   ;;  %vm8609_vm9 = vcmask 1040384   ;;  %vm8602_vm10 = vcmask 39936   ;;  %vm983_vm11 = vcmask 1041408  }
  0x1c   : > { %v7026_v0 = vld [vmem:[%s485_s23] sm:$0xff]  ;;  %s8560_s23 = smov 64   ;;  %s8578_s22 = smov 123   ;;  %vm985_vm12 = vcmask 1042432   ;;  %vm8601_vm13 = vcmask 48128   ;;  %vm8600_vm14 = vcmask 56320  }
  0x1d   : > { %v495_v1 = vsel %vm8557_vm0, %v7026_v0, 0.0  ;;  %6540 = vmatpush3.bf16.msra.mxu0 %v6539_v14  ;;  %v608_v24 = vld [vmem:[%s8624_s7] sm:$0xff]  ;;  %v609_v25 = vld [vmem:[%s8624_s7 + $0x8] sm:$0xff]  ;;  %v610_v27 = vld [vmem:[%s8624_s7 + $0x10] sm:$0xff]  ;;  %s8590_s25 = smov 3   ;;  %s8551_s26 = smov 124  }
  0x1e   : > { %496 = vadd.xlane.f32.xlu0 %v495_v1  ;;  %6565 = vmatprep.subr.bf16.mxu0 %v6899_v10  ;;  %v6542_v26 = vpack.c.bf16 %v609_v25, %v608_v24  ;;  %v611_v28 = vld [vmem:[%s8624_s7 + $0x18] sm:$0xff]  ;;  %v612_v30 = vld [vmem:[%s8624_s7 + $0x20] sm:$0xff]  ;;  %v613_v31 = vld [vmem:[%s8624_s7 + $0x28] sm:$0xff]  ;;  %s8584_s28 = smov 4   ;;  %s8549_s29 = smov 125   ;;  %vm987_vm15 = vcmask 1043456  }
  0x1f   : > { %v6545_v29 = vpack.c.bf16 %v611_v28, %v610_v27  ;;  %v6548_v32 = vpack.c.bf16 %v613_v31, %v612_v30  ;;  %v614_v33 = vld [vmem:[%s8624_s7 + $0x30] sm:$0xff]  ;;  %v615_v34 = vld [vmem:[%s8624_s7 + $0x38] sm:$0xff]  ;;  %v616_v36 = vld [vmem:[%s8624_s7 + $0x40] sm:$0xff]  ;;  %s8566_s30 = smov 5   ;;  %s8553_s16 = smov 6  }
  0x20   : > { %6543 = vmatpush3.bf16.msra.mxu1 %v6542_v26  ;;  %v6551_v35 = vpack.c.bf16 %v615_v34, %v614_v33  ;;  %v617_v37 = vld [vmem:[%s8624_s7 + $0x48] sm:$0xff]  ;;  %v618_v39 = vld [vmem:[%s8624_s7 + $0x50] sm:$0xff]  ;;  %v619_v40 = vld [vmem:[%s8624_s7 + $0x58] sm:$0xff]  ;;  %s8576_s20 = smov 2   ;;  %s8597_s0 = smov 40  }
  0x21   : > { %6544 = vmatprep.subr.bf16.mxu1 %v6899_v10  ;;  %v6554_v38 = vpack.c.bf16 %v617_v37, %v616_v36  ;;  %v6557_v41 = vpack.c.bf16 %v619_v40, %v618_v39  ;;  %v620_v42 = vld [vmem:[%s8624_s7 + $0x60] sm:$0xff]  ;;  %v621_v43 = vld [vmem:[%s8624_s7 + $0x68] sm:$0xff]  ;;  %v622_v45 = vld [vmem:[%s8624_s7 + $0x70] sm:$0xff]  ;;  %s8647_s12 = smov 32   ;;  %s8651_s14 = smov 96  }
  0x22   : > { %v6560_v44 = vpack.c.bf16 %v621_v43, %v620_v42  ;;  %v623_v46 = vld [vmem:[%s8624_s7 + $0x78] sm:$0xff]  ;;  %v741_v14 = vld [vmem:[%s8537_s8 + $0x20] sm:$0xff]  ;;  %v831_v43 = vlaneseq  ;;  %s8653_s11 = smov 122   ;;  %s8663_s13 = smov 88  }
  0x23   : > { %v6563_v47 = vpack.c.bf16 %v623_v46, %v622_v45  ;;  %v748_v24 = vld [vmem:[%s8537_s8 + $0x58] sm:$0xff]  ;;  %v5605_v30 = vld [vmem:[%s8531_s2 + $0x2] ss:$0 sm:$0xff]  ;;  %v5607_v39 = vld [vmem:[%s8533_s4 + $0x1] ss:$0 sm:$0xff]  ;;  %s8674_s15 = smov 112  }
  0x24   : > { %6546 = vmatpush3.bf16.msra.mxu1 %v6545_v29  ;;  %v7211_v46 = vld [vmem:[%s8538_s9 + $0x4] sm:$0xf]  ;;  %s8677_s18 = smov 56   ;;  %s8678_s19 = smov 80  }
  0x25   : > { %6547 = vmatprep.subr.bf16.mxu1 %v6899_v10 }
  0x28   : > { %6549 = vmatpush3.bf16.msra.mxu1 %v6548_v32  ;;  %v5606_v32 = vld [vmem:[%s8531_s2 + $0x3] ss:$0 sm:$0xff] }
  0x29   : > { %6550 = vmatprep.subr.bf16.mxu1 %v6899_v10 }
  0x2c   : > { %6552 = vmatpush3.bf16.msra.mxu1 %v6551_v35 }
  0x2d   : > { %6553 = vmatprep.subr.bf16.mxu1 %v6899_v10 }
  0x30   : > { %6555 = vmatpush3.bf16.msra.mxu1 %v6554_v38 }
  0x31   : > { %6556 = vmatprep.subr.bf16.mxu1 %v6899_v10 }
  0x34   : > { %6558 = vmatpush3.bf16.msra.mxu1 %v6557_v41 }
  0x35   : > { %6559 = vmatprep.subr.bf16.mxu1 %v6899_v10 }
  0x38   : > { %6561 = vmatpush3.bf16.msra.mxu1 %v6560_v44  ;;  %v7203_v44 = vshrl.u32 %v831_v43, 7 }
  0x39   : > { %6562 = vmatprep.subr.bf16.mxu1 %v6899_v10 }
  0x3a   : > { %v7206_v45 = vsub.s32 0, %v7203_v44 }
  0x3c   : > { %6564 = vmatpush3.bf16.msra.mxu1 %v6563_v47  ;;  %v839_v47 = vrot.slane %v7211_v46, %v7206_v45 }
  0x3d   : > { %6118 = vmatprep.subr.mxu1 %v6901_v13 }
  0xab   : > { %v497_v2 = vpop.xlane.xlu0 %496 }
  0xac   : > { %v499_v3 = vmul.f32 0.03125, %v497_v2 }
  0xae   : > { %v500_v4 = vsub.f32 %v7026_v0, %v499_v3 }
  0xb0   : > { %v501_v5 = vmul.f32 %v500_v4, %v500_v4 }
  0xb2   : > { %v502_v6 = vsel %vm8557_vm0, %v501_v5, 0.0 }
  0xb3   : > { %503 = vadd.xlane.f32.xlu0 %v502_v6  ;;  %v737_v6 = vld [vmem:[%s8537_s8] sm:$0xff] }
  0xb4   : > { %v6566_v8 = vpack.c.bf16 %v738_v7, %v737_v6 }
  0xc9   : > { %727 = vrot.lane.b32.xlu0 %v7026_v0, %s8547_s24 }
 0x140   : > { %v504_v15 = vpop.xlane.xlu0 %503 }
 0x141   : > { %v505_v16 = vmul.f32 0.03125, %v504_v15  ;;  %v742_v15 = vld [vmem:[%s8537_s8 + $0x28] sm:$0xff] }
 0x143   : > { %v506_v17 = vadd.f32 1e-05, %v505_v16  ;;  %v6572_v16 = vpack.c.bf16 %v742_v15, %v741_v14 }
 0x144   : > { %v728_v34 = vpop.permute.xlu0 %727 }
 0x145   : > { %6807 = vrsqrt.f32 %v506_v17  ;;  %v743_v17 = vld [vmem:[%s8537_s8 + $0x30] sm:$0xff] }
 0x14f   : > { %v6808_v18 = vpop.eup %6807 }
 0x150   : > { %v508_v20 = vmul.f32 %v6808_v18, %v500_v4  ;;  %v744_v18 = vld [vmem:[%s8537_s8 + $0x38] sm:$0xff] }
 0x152   : > { %v513_v22 = vmul.f32 %v5599_v19, %v508_v20  ;;  %v6575_v19 = vpack.c.bf16 %v744_v18, %v743_v17  ;;  %v745_v20 = vld [vmem:[%s8537_s8 + $0x40] sm:$0xff] }
 0x154   : > { %v518_v23 = vadd.f32 %v5600_v21, %v513_v22  ;;  %v746_v21 = vld [vmem:[%s8537_s8 + $0x48] sm:$0xff] }
 0x155   : > { %v6578_v22 = vpack.c.bf16 %v746_v21, %v745_v20 }
 0x156   : > { %6054 = vmatmul.mubr.msk.f32.vlgmr.msra.gmra.mrb[0].mxu0 %vm8557_vm0, %v518_v23  ;;  %v747_v23 = vld [vmem:[%s8537_s8 + $0x50] sm:$0xff] }
 0x157   : > { %6115 = vmatprep.mubr.msk.f32.mxu0 %vm8610_vm1, %v6901_v13  ;;  %6567 = vmatpush3.bf16.msra.mxu0 %v6566_v8  ;;  %v6581_v25 = vpack.c.bf16 %v748_v24, %v747_v23 }
 0x158   : > { %6568 = vmatprep.subr.bf16.mxu0 %v6899_v10 }
 0x15b   : > { %6570 = vmatpush3.bf16.msra.mxu0 %v6569_v12 }
 0x15c   : > { %6571 = vmatprep.subr.bf16.mxu0 %v6899_v10 }
 0x15f   : > { %6573 = vmatpush3.bf16.msra.mxu0 %v6572_v16 }
 0x160   : > { %6574 = vmatprep.subr.bf16.mxu0 %v6899_v10 }
 0x163   : > { %6576 = vmatpush3.bf16.msra.mxu0 %v6575_v19 }
 0x164   : > { %6577 = vmatprep.subr.bf16.mxu0 %v6899_v10 }
 0x167   : > { %6579 = vmatpush3.bf16.msra.mxu0 %v6578_v22 }
 0x168   : > { %6580 = vmatprep.subr.bf16.mxu0 %v6899_v10 }
 0x16b   : > { %6582 = vmatpush3.bf16.msra.mxu0 %v6581_v25 }
 0x16c   : > { %6128 = vmatprep.subr.mxu0 %v6901_v13 }
 0x229   : > { %v597_v49 = vpop.f32.mrb[0].mxu0 }
 0x22a   : > { %v598_v50 = vadd.f32 %v5601_v48, %v597_v49  ;;  %v6055_v51 = vpop.f32.mrb[1].mxu0  ;;  %v7218_v48 = vld [vmem:[%s8538_s9] sm:$0xf] }
 0x22b   : > { %v834_v51 = vrot.slane %v7218_v48, %v7206_v45 }
 0x22c   : > { %v5603_v52 = vmul.f32 -1.442695, %v598_v50 }
 0x22e   : > { %6809 = vpow2.f32 %v5603_v52 }
 0x238   : > { %v6810_v53 = vpop.eup %6809 }
 0x239   : > { %v604_v54 = vadd.f32 1.0, %v6810_v53 }
 0x23b   : > { %6811 = vrcp.f32 %v604_v54 }
 0x245   : > { %v6812_v55 = vpop.eup %6811 }
 0x246   : > { %v607_v56 = vmul.f32 %v6812_v55, %v598_v50 }
 0x248   : > { %6089 = vmatmul.mubr.f32.vlgmr.msra.gmra.mrb[0].mxu1 %v607_v56 }
 0x249   : > { %6120 = vmatprep.mubr.msk.f32.mxu1 %vm8610_vm1, %v6901_v13 }
 0x31b   : > { %v695_v58 = vpop.f32.mrb[0].mxu1 }
 0x31c   : > { %v696_v59 = vadd.f32 %v5604_v57, %v695_v58  ;;  %v6090_v60 = vpop.f32.mrb[1].mxu1 }
 0x31e   : > { %v699_v61 = vmul.f32 0.5, %v696_v59  ;;  %v7255_v59 = vsub.s32 1, %v7203_v44 }
 0x320   : > { %v7126_v62 = vadd.f32 %v699_v61, %v7026_v0  ;;  %v491_v0 = vld [vmem:[%s8625_s1] sm:$0xff]  ;;  %v1171_v60 = vrot.slane %v7211_v46, %v7255_v59  ;;  %s8662_s1 = smov 64  }
 0x322   : > { %v703_v63 = vsel %vm8557_vm0, %v7126_v62, 0.0 }
 0x323   : > { %704 = vadd.xlane.f32.xlu1 %v703_v63 }
 0x3b0   : > { %v705_v1 = vpop.xlane.xlu1 %704 }
 0x3b1   : > { %v706_v2 = vmul.f32 0.03125, %v705_v1 }
 0x3b3   : > { %v707_v3 = vsub.f32 %v7126_v62, %v706_v2 }
 0x3b5   : > { %v708_v4 = vmul.f32 %v707_v3, %v707_v3 }
 0x3b7   : > { %v709_v5 = vsel %vm8557_vm0, %v708_v4, 0.0 }
 0x3b8   : > { %710 = vadd.xlane.f32.xlu1 %v709_v5 }
 0x3c9   : > { %731 = vrot.lane.b32.xlu1 %v491_v0, %s8560_s23 }
 0x445   : > { %v711_v26 = vpop.xlane.xlu1 %710 }
 0x446   : > { %v712_v27 = vmul.f32 0.03125, %v711_v26 }
 0x448   : > { %v713_v28 = vadd.f32 1e-05, %v712_v27 }
 0x449   : > { %v7186_v36 = vpop.permute.xlu1 %731 }
 0x44a   : > { %6813 = vrsqrt.f32 %v713_v28 }
 0x454   : > { %v6814_v29 = vpop.eup %6813 }
 0x455   : > { %v715_v31 = vmul.f32 %v6814_v29, %v707_v3 }
 0x457   : > { %v720_v33 = vmul.f32 %v5605_v30, %v715_v31 }
 0x459   : > { %v725_v35 = vadd.f32 %v5606_v32, %v720_v33 }
 0x45b   : > { %v734_v37 = vsel %vm8557_vm0, %v725_v35, %v728_v34  ;;  %vm993_vm0 = vcmask 1046528   ;;  %v1162_v34 = vrot.slane %v7218_v48, %v7255_v59 }
 0x45c   : > { %v736_v38 = vsel %vm8556_vm2, %v734_v37, %v7186_v36  ;;  %vm991_vm2 = vcmask 1045504  }
 0x45d   : > { %6116 = vmatmul.mubr.msk.f32.vlgmr.msra.gmra.mrb[2].mxu0 %vm8555_vm3, %v736_v38  ;;  %vm989_vm3 = vcmask 1044480  }
 0x45e   : > { %6130 = vmatprep.mubr.msk.f32.mxu0 %vm8610_vm1, %v6901_v13 }
 0x530   : > { %v824_v40 = vpop.f32.mrb[2].mxu0 }
 0x531   : > { %v7197_v41 = vadd.f32 %v5607_v39, %v824_v40  ;;  %v6117_v42 = vpop.f32.mrb[3].mxu0 }
 0x533   : > { %842 = vrot.lane.b32.xlu1 %v7197_v41, %s8547_s24  ;;  %v840_v50 = vadd.f32 %v839_v47, %v7197_v41  ;;  %v835_v53 = vadd.f32 %v834_v51, %v7197_v41  ;;  %s8582_s24 = smov 126  }
 0x537   : > { %995 = vrot.lane.b32.xlu1 %v7197_v41, %s8546_s27  ;;  %s8568_s27 = smov 7  }
 0x5a5   : > { %v843_v49 = vpop.permute.xlu1 %842 }
 0x5a6   : > { %6119 = vmatpush3.xpose.msk.msra.mxu1 %vm8612_vm4, %v843_v49 }
 0x5a7   : > { %6123 = vmatprep.subr.mxu1 %v6901_v13 }
 0x5a9   : > { %v996_v52 = vpop.permute.xlu1 %995  ;;  %6121 = vmatmul.mubr.msk.f32.vlgmr.msra.gmra.mrb[2].mxu1 %vm8612_vm4, %v840_v50 }
 0x5aa   : > { %6124 = vmatpush3.xpose.msk.msra.mxu1 %vm8612_vm4, %v996_v52  ;;  %6125 = vmatprep.mubr.msk.f32.mxu1 %vm8610_vm1, %v6901_v13 }
 0x5ab   : > { %6133 = vmatprep.subr.mxu1 %v6901_v13 }
 0x5ad   : > { %6126 = vmatmul.mubr.msk.f32.vlgmr.msra.gmra.mrb[4].mxu1 %vm8612_vm4, %v835_v53 }
 0x5ae   : > { %6135 = vmatprep.mubr.msk.f32.mxu1 %vm8610_vm1, %v6901_v13 }
 0x67c   : > { %v7234_v54 = vpop.f32.mrb[2].mxu1 }
 0x67d   : > { %932 = vrot.lane.b32.xlu1 %v7234_v54, %s8592_s17  ;;  %921 = vrot.lane.b32.xlu0 %v7234_v54, %s8594_s21  ;;  %v6122_v55 = vpop.f32.mrb[3].mxu1  ;;  %v924_v56 = vrot.slane %v7234_v54, 1 }
 0x680   : > { %v7241_v57 = vpop.f32.mrb[4].mxu1 }
 0x681   : > { %941 = vrot.lane.b32.xlu0 %v7234_v54, %s8578_s22  ;;  %935 = vrot.lane.b32.xlu1 %v924_v56, %s8590_s25  ;;  %v6127_v58 = vpop.f32.mrb[5].mxu1 }
 0x685   : > { %950 = vrot.lane.b32.xlu0 %v7234_v54, %s8551_s26  ;;  %944 = vrot.lane.b32.xlu1 %v924_v56, %s8584_s28  ;;  %s8580_s26 = smov 127  }
 0x689   : > { %959 = vrot.lane.b32.xlu0 %v7234_v54, %s8549_s29  ;;  %953 = vrot.lane.b32.xlu1 %v924_v56, %s8566_s30  ;;  %s8564_s29 = smov 8  }
 0x68d   : > { %962 = vrot.lane.b32.xlu1 %v924_v56, %s8553_s16  ;;  %925 = vrot.lane.b32.xlu0 %v924_v56, %s8576_s20  ;;  %s8558_s16 = smov 24  }
 0x691   : > { %971 = vrot.lane.b32.xlu1 %v924_v56, %s8568_s27  ;;  %968 = vrot.lane.b32.xlu0 %v7234_v54, %s8582_s24 }
 0x695   : > { %1173 = vrot.lane.b32.xlu1 %v1171_v60, %s8564_s29  ;;  %977 = vrot.lane.b32.xlu0 %v7234_v54, %s8580_s26 }
 0x699   : > { %1180 = vrot.lane.b32.xlu1 %v7197_v41, %s8558_s16  ;;  %s8562_s16 = smov 120  }
 0x6ef   : > { %v933_v61 = vpop.permute.xlu1 %932  ;;  %v922_v63 = vpop.permute.xlu0 %921 }
 0x6f0   : > { %v938_v7 = vsel %vm8607_vm5, %v933_v61, 0.0  ;;  %v929_v8 = vsel %vm928_vm6, %v922_v63, 0.0 }
 0x6f3   : > { %v942_v1 = vpop.permute.xlu0 %941  ;;  %v936_v2 = vpop.permute.xlu1 %935 }
 0x6f4   : > { %v947_v11 = vsel %vm939_vm7, %v942_v1, 0.0  ;;  %v940_v12 = vsel %vm939_vm7, %v938_v7, %v936_v2  ;;  %v7331_v1 = vsub.s32 2, %v7203_v44 }
 0x6f6   : > { %v1495_v2 = vrot.slane %v7211_v46, %v7331_v1 }
 0x6f7   : > { %v951_v3 = vpop.permute.xlu0 %950  ;;  %v945_v4 = vpop.permute.xlu1 %944 }
 0x6f8   : > { %v956_v15 = vsel %vm8608_vm8, %v951_v3, 0.0  ;;  %v949_v16 = vsel %vm8608_vm8, %v947_v11, %v945_v4 }
 0x6fb   : > { %v960_v5 = vpop.permute.xlu0 %959  ;;  %v954_v6 = vpop.permute.xlu1 %953 }
 0x6fc   : > { %v958_v18 = vsel %vm8602_vm10, %v956_v15, %v954_v6  ;;  %v965_v20 = vsel %vm8602_vm10, %v960_v5, 0.0 }
 0x6ff   : > { %v963_v0 = vpop.permute.xlu1 %962  ;;  %v926_v9 = vpop.permute.xlu0 %925 }
 0x700   : > { %v931_v14 = vsel %vm8607_vm5, %v929_v8, %v926_v9  ;;  %v967_v24 = vsel %vm8601_vm13, %v965_v20, %v963_v0  ;;  %v1486_v9 = vrot.slane %v7218_v48, %v7331_v1 }
 0x701   : > { %v982_v17 = vsel %vm8609_vm9, %v931_v14, %v940_v12 }
 0x702   : > { %v984_v19 = vsel %vm983_vm11, %v982_v17, %v949_v16 }
 0x703   : > { %v986_v21 = vsel %vm985_vm12, %v984_v19, %v958_v18  ;;  %v972_v22 = vpop.permute.xlu1 %971  ;;  %v969_v23 = vpop.permute.xlu0 %968 }
 0x704   : > { %v974_v25 = vsel %vm8601_vm13, %v969_v23, 0.0  ;;  %v988_v27 = vsel %vm987_vm15, %v986_v21, %v967_v24 }
 0x705   : > { %v976_v26 = vsel %vm8600_vm14, %v974_v25, %v972_v22 }
 0x706   : > { %v990_v31 = vsel %vm989_vm3, %v988_v27, %v976_v26 }
 0x707   : > { %v1174_v28 = vpop.permute.xlu1 %1173  ;;  %v978_v29 = vpop.permute.xlu0 %977 }
 0x708   : > { %v1176_v30 = vadd.f32 %v1174_v28, %v7197_v41  ;;  %v980_v32 = vsel %vm8600_vm14, %v978_v29, 0.0 }
 0x709   : > { %v992_v33 = vsel %vm991_vm2, %v990_v31, %v980_v32 }
 0x70a   : > { %1178 = vrot.lane.b32.xlu1 %v1176_v30, %s8562_s16  ;;  %v994_v35 = vsel %vm993_vm0, %v992_v33, %v7234_v54 }
 0x70b   : > { %v1181_v37 = vpop.permute.xlu1 %1180  ;;  %v1069_v38 = vadd.f32 %v7241_v57, %v994_v35 }
 0x70c   : > { %6134 = vmatpush3.xpose.msk.msra.mxu1 %vm8612_vm4, %v1181_v37 }
 0x70d   : > { %v1072_v39 = vsel %vm8612_vm4, %v1069_v38, -inf  ;;  %6143 = vmatprep.subr.mxu1 %v6901_v13 }
 0x70e   : > { %1164 = vrot.lane.b32.xlu1 %v1162_v34, %s8564_s29  ;;  %1073 = vmax.xlane.f32.xlu0 %v1072_v39  ;;  %s8628_s29 = smov 125  }
 0x724   : > { %1083 = vrot.lane.b32.xlu0 %v7197_v41, %s8560_s23  ;;  %s8561_s23 = smov 88  }
 0x77c   : > { %v1179_v40 = vpop.permute.xlu1 %1178 }
 0x77d   : > { %6136 = vmatmul.mubr.msk.f32.vlgmr.msra.gmra.mrb[6].mxu1 %vm8612_vm4, %v1179_v40 }
 0x77e   : > { %6145 = vmatprep.mubr.msk.f32.mxu1 %vm8610_vm1, %v6901_v13 }
 0x780   : > { %v1165_v42 = vpop.permute.xlu1 %1164 }
 0x781   : > { %v1167_v43 = vadd.f32 %v1165_v42, %v7197_v41 }
 0x783   : > { %1318 = vrot.lane.b32.xlu0 %v1167_v43, %s8562_s16  ;;  %s8627_s16 = smov 124  }
 0x79b   : > { %v1074_v47 = vpop.xlane.xlu0 %1073 }
 0x79c   : > { %v1075_v49 = vsub.f32 %v1069_v38, %v1074_v47 }
 0x79e   : > { %v1076_v50 = vmul.f32 1.442695, %v1075_v49 }
 0x79f   : > { %v1084_v51 = vpop.permute.xlu0 %1083 }
 0x7a0   : > { %6815 = vpow2.f32 %v1076_v50  ;;  %6129 = vmatpush3.msra.mxu0 %v1084_v51 }
 0x7a1   : > { %6138 = vmatprep.subr.mxu0 %v6901_v13 }
 0x7aa   : > { %v6816_v52 = vpop.eup %6815 }
 0x7ab   : > { %v1078_v53 = vsel %vm8612_vm4, %v6816_v52, 0.0 }
 0x7ac   : > { %1079 = vadd.xlane.f32.xlu1 %v1078_v53 }
 0x7bd   : > { %1320 = vrot.lane.b32.xlu1 %v7197_v41, %s8561_s23  ;;  %s8626_s23 = smov 6  }
 0x7f5   : > { %v1319_v58 = vpop.permute.xlu0 %1318 }
 0x839   : > { %v1080_v54 = vpop.xlane.xlu1 %1079 }
 0x83a   : > { %6817 = vrcp.f32 %v1080_v54 }
 0x83d   : > { %v1321_v57 = vpop.permute.xlu1 %1320 }
 0x844   : > { %v6818_v55 = vpop.eup %6817 }
 0x845   : > { %v1082_v56 = vmul.f32 %v6818_v55, %v6816_v52 }
 0x847   : > { %6131 = vmatmul.mubr.msk.f32.vlgmr.msra.gmra.mrb[4].mxu0 %vm8612_vm4, %v1082_v56 }
 0x848   : > { %6139 = vmatpush3.xpose.msk.msra.mxu0 %vm8612_vm4, %v1321_v57  ;;  %6140 = vmatprep.mubr.msk.f32.mxu0 %vm8610_vm1, %v6901_v13 }
 0x849   : > { %6148 = vmatprep.subr.mxu0 %v6901_v13 }
 0x84b   : > { %6141 = vmatmul.mubr.msk.f32.vlgmr.msra.gmra.mrb[6].mxu0 %vm8612_vm4, %v1319_v58 }
 0x84c   : > { %6150 = vmatprep.mubr.msk.f32.mxu0 %vm8610_vm1, %v6901_v13 }
 0x850   : > { %v7316_v60 = vpop.f32.mrb[6].mxu1 }
 0x851   : > { %1257 = vrot.lane.b32.xlu0 %v7316_v60, %s8594_s21  ;;  %v6137_v61 = vpop.f32.mrb[7].mxu1  ;;  %v1260_v63 = vrot.slane %v7316_v60, 1 }
 0x853   : > { %1269 = vrot.lane.b32.xlu1 %v1260_v63, %s8590_s25 }
 0x855   : > { %1266 = vrot.lane.b32.xlu0 %v7316_v60, %s8592_s17 }
 0x857   : > { %1277 = vrot.lane.b32.xlu1 %v1260_v63, %s8584_s28 }
 0x859   : > { %1261 = vrot.lane.b32.xlu0 %v1260_v63, %s8576_s20 }
 0x85b   : > { %1285 = vrot.lane.b32.xlu1 %v1260_v63, %s8566_s30  ;;  %s8570_s30 = smov 16  }
 0x85d   : > { %1274 = vrot.lane.b32.xlu0 %v7316_v60, %s8578_s22 }
 0x85f   : > { %1293 = vrot.lane.b32.xlu1 %v1260_v63, %s8626_s23 }
 0x861   : > { %1282 = vrot.lane.b32.xlu0 %v7316_v60, %s8627_s16 }
 0x863   : > { %1301 = vrot.lane.b32.xlu1 %v1260_v63, %s8568_s27  ;;  %s8573_s27 = smov 112  }
 0x865   : > { %1290 = vrot.lane.b32.xlu0 %v7316_v60, %s8628_s29 }
 0x867   : > { %1497 = vrot.lane.b32.xlu1 %v1495_v2, %s8570_s30 }
 0x869   : > { %1298 = vrot.lane.b32.xlu0 %v7316_v60, %s8582_s24 }
 0x86b   : > { %1504 = vrot.lane.b32.xlu1 %v7197_v41, %s8570_s30 }
 0x86d   : > { %1306 = vrot.lane.b32.xlu0 %v7316_v60, %s8580_s26 }
 0x8c3   : > { %v1258_v12 = vpop.permute.xlu0 %1257 }
 0x8c4   : > { %v1264_v21 = vsel %vm928_vm6, %v1258_v12, 0.0 }
 0x8c5   : > { %v1270_v3 = vpop.permute.xlu1 %1269 }
 0x8c7   : > { %v1267_v14 = vpop.permute.xlu0 %1266 }
 0x8c8   : > { %v1272_v22 = vsel %vm8607_vm5, %v1267_v14, 0.0 }
 0x8c9   : > { %v1278_v4 = vpop.permute.xlu1 %1277  ;;  %v1273_v28 = vsel %vm939_vm7, %v1272_v22, %v1270_v3 }
 0x8cb   : > { %v1262_v15 = vpop.permute.xlu0 %1261 }
 0x8cc   : > { %v1265_v24 = vsel %vm8607_vm5, %v1264_v21, %v1262_v15 }
 0x8cd   : > { %v1286_v5 = vpop.permute.xlu1 %1285  ;;  %v1310_v31 = vsel %vm8609_vm9, %v1265_v24, %v1273_v28 }
 0x8cf   : > { %v1275_v16 = vpop.permute.xlu0 %1274 }
 0x8d0   : > { %v1280_v20 = vsel %vm939_vm7, %v1275_v16, 0.0 }
 0x8d1   : > { %v1294_v6 = vpop.permute.xlu1 %1293  ;;  %v1281_v26 = vsel %vm8608_vm8, %v1280_v20, %v1278_v4 }
 0x8d2   : > { %v1311_v33 = vsel %vm983_vm11, %v1310_v31, %v1281_v26 }
 0x8d3   : > { %v1283_v17 = vpop.permute.xlu0 %1282 }
 0x8d4   : > { %v1288_v23 = vsel %vm8608_vm8, %v1283_v17, 0.0 }
 0x8d5   : > { %v1302_v7 = vpop.permute.xlu1 %1301  ;;  %v1289_v29 = vsel %vm8602_vm10, %v1288_v23, %v1286_v5  ;;  %v7404_v5 = vsub.s32 3, %v7203_v44 }
 0x8d6   : > { %v1312_v35 = vsel %vm985_vm12, %v1311_v33, %v1289_v29 }
 0x8d7   : > { %v1291_v18 = vpop.permute.xlu0 %1290 }
 0x8d8   : > { %v1296_v25 = vsel %vm8602_vm10, %v1291_v18, 0.0 }
 0x8d9   : > { %v1498_v8 = vpop.permute.xlu1 %1497  ;;  %v1297_v32 = vsel %vm8601_vm13, %v1296_v25, %v1294_v6  ;;  %v1819_v6 = vrot.slane %v7211_v46, %v7404_v5 }
 0x8da   : > { %v1500_v0 = vadd.f32 %v1498_v8, %v7197_v41  ;;  %v1313_v38 = vsel %vm987_vm15, %v1312_v35, %v1297_v32 }
 0x8db   : > { %v1299_v19 = vpop.permute.xlu0 %1298 }
 0x8dc   : > { %1502 = vrot.lane.b32.xlu1 %v1500_v0, %s8573_s27  ;;  %v1304_v27 = vsel %vm8601_vm13, %v1299_v19, 0.0  ;;  %v1810_v19 = vrot.slane %v7218_v48, %v7404_v5 }
 0x8dd   : > { %v1505_v11 = vpop.permute.xlu1 %1504  ;;  %v1305_v34 = vsel %vm8600_vm14, %v1304_v27, %v1302_v7 }
 0x8de   : > { %6149 = vmatpush3.xpose.msk.msra.mxu0 %vm8612_vm4, %v1505_v11  ;;  %v1314_v40 = vsel %vm989_vm3, %v1313_v38, %v1305_v34 }
 0x8df   : > { %6158 = vmatprep.subr.mxu0 %v6901_v13  ;;  %v1307_v30 = vpop.permute.xlu0 %1306 }
 0x8e0   : > { %1488 = vrot.lane.b32.xlu1 %v1486_v9, %s8570_s30  ;;  %v1309_v37 = vsel %vm8600_vm14, %v1307_v30, 0.0  ;;  %s8572_s30 = smov 56  }
 0x8e1   : > { %v1315_v43 = vsel %vm991_vm2, %v1314_v40, %v1309_v37 }
 0x8e2   : > { %v1316_v47 = vsel %vm993_vm0, %v1315_v43, %v7316_v60 }
 0x91a   : > { %v7371_v39 = vpop.f32.mrb[4].mxu0 }
 0x91b   : > { %v6132_v42 = vpop.f32.mrb[5].mxu0 }
 0x91e   : > { %v1392_v49 = vpop.f32.mrb[6].mxu0 }
 0x91f   : > { %v1393_v50 = vadd.f32 %v1392_v49, %v1316_v47  ;;  %v6142_v51 = vpop.f32.mrb[7].mxu0 }
 0x921   : > { %v1396_v52 = vsel %vm8612_vm4, %v1393_v50, -inf }
 0x922   : > { %1397 = vmax.xlane.f32.xlu0 %v1396_v52 }
 0x938   : > { %1407 = vrot.lane.b32.xlu0 %v7197_v41, %s8572_s30  ;;  %s8575_s30 = smov 80  }
 0x94e   : > { %v1503_v53 = vpop.permute.xlu1 %1502 }
 0x94f   : > { %6151 = vmatmul.mubr.msk.f32.vlgmr.msra.gmra.mrb[8].mxu0 %vm8612_vm4, %v1503_v53 }
 0x950   : > { %6160 = vmatprep.mubr.msk.f32.mxu0 %vm8610_vm1, %v6901_v13 }
 0x952   : > { %v1489_v54 = vpop.permute.xlu1 %1488 }
 0x953   : > { %v1491_v55 = vadd.f32 %v1489_v54, %v7197_v41 }
 0x955   : > { %1642 = vrot.lane.b32.xlu0 %v1491_v55, %s8573_s27  ;;  %s8629_s27 = smov 5  }
 0x9af   : > { %v1398_v56 = vpop.xlane.xlu0 %1397 }
 0x9b0   : > { %v1399_v57 = vsub.f32 %v1393_v50, %v1398_v56 }
 0x9b2   : > { %v1400_v58 = vmul.f32 1.442695, %v1399_v57 }
 0x9b3   : > { %v1408_v60 = vpop.permute.xlu0 %1407 }
 0x9b4   : > { %6819 = vpow2.f32 %v1400_v58  ;;  %6144 = vmatpush3.msra.mxu1 %v1408_v60 }
 0x9b5   : > { %6153 = vmatprep.subr.mxu1 %v6901_v13 }
 0x9be   : > { %v6820_v61 = vpop.eup %6819 }
 0x9bf   : > { %v1402_v63 = vsel %vm8612_vm4, %v6820_v61, 0.0 }
 0x9c0   : > { %1403 = vadd.xlane.f32.xlu1 %v1402_v63 }
 0x9c7   : > { %v1643_v46 = vpop.permute.xlu0 %1642 }
 0x9d1   : > { %1644 = vrot.lane.b32.xlu1 %v7197_v41, %s8575_s30  ;;  %s8630_s30 = smov 7  }
 0xa22   : > { %v7389_v2 = vpop.f32.mrb[8].mxu0 }
 0xa23   : > { %1581 = vrot.lane.b32.xlu0 %v7389_v2, %s8594_s21  ;;  %v6152_v3 = vpop.f32.mrb[9].mxu0  ;;  %v1584_v4 = vrot.slane %v7389_v2, 1 }
 0xa25   : > { %1593 = vrot.lane.b32.xlu1 %v1584_v4, %s8590_s25 }
 0xa27   : > { %1590 = vrot.lane.b32.xlu0 %v7389_v2, %s8592_s17 }
 0xa29   : > { %1601 = vrot.lane.b32.xlu1 %v1584_v4, %s8584_s28  ;;  %s8589_s28 = smov 72  }
 0xa2b   : > { %1585 = vrot.lane.b32.xlu0 %v1584_v4, %s8576_s20  ;;  %s8631_s20 = smov 24  }
 0xa2d   : > { %1609 = vrot.lane.b32.xlu1 %v1584_v4, %s8629_s27 }
 0xa2f   : > { %1598 = vrot.lane.b32.xlu0 %v7389_v2, %s8578_s22  ;;  %s8632_s22 = smov 8  }
 0xa31   : > { %1617 = vrot.lane.b32.xlu1 %v1584_v4, %s8626_s23 }
 0xa33   : > { %1606 = vrot.lane.b32.xlu0 %v7389_v2, %s8627_s16 }
 0xa35   : > { %1625 = vrot.lane.b32.xlu1 %v1584_v4, %s8630_s30 }
 0xa37   : > { %1614 = vrot.lane.b32.xlu0 %v7389_v2, %s8628_s29 }
 0xa39   : > { %1821 = vrot.lane.b32.xlu1 %v1819_v6, %s8631_s20 }
 0xa3b   : > { %1622 = vrot.lane.b32.xlu0 %v7389_v2, %s8582_s24  ;;  %s8586_s24 = smov 48  }
 0xa3d   : > { %1828 = vrot.lane.b32.xlu1 %v7197_v41, %s8632_s22 }
 0xa3f   : > { %1630 = vrot.lane.b32.xlu0 %v7389_v2, %s8580_s26  ;;  %s8587_s26 = smov 104  }
 0xa4d   : > { %v1404_v7 = vpop.xlane.xlu1 %1403 }
 0xa4e   : > { %6821 = vrcp.f32 %v1404_v7 }
 0xa51   : > { %v1645_v9 = vpop.permute.xlu1 %1644 }
 0xa58   : > { %v6822_v8 = vpop.eup %6821 }
 0xa59   : > { %v1406_v0 = vmul.f32 %v6822_v8, %v6820_v61 }
 0xa5b   : > { %6146 = vmatmul.mubr.msk.f32.vlgmr.msra.gmra.mrb[8].mxu1 %vm8612_vm4, %v1406_v0 }
 0xa5c   : > { %6154 = vmatpush3.xpose.msk.msra.mxu1 %vm8612_vm4, %v1645_v9  ;;  %6155 = vmatprep.mubr.msk.f32.mxu1 %vm8610_vm1, %v6901_v13 }
 0xa5d   : > { %6163 = vmatprep.subr.mxu1 %v6901_v13 }
 0xa5f   : > { %6156 = vmatmul.mubr.msk.f32.vlgmr.msra.gmra.mrb[10].mxu1 %vm8612_vm4, %v1643_v46 }
 0xa60   : > { %6165 = vmatprep.mubr.msk.f32.mxu1 %vm8610_vm1, %v6901_v13 }
 0xa95   : > { %v1582_v21 = vpop.permute.xlu0 %1581 }
 0xa96   : > { %v1588_v29 = vsel %vm928_vm6, %v1582_v21, 0.0 }
 0xa97   : > { %v1594_v11 = vpop.permute.xlu1 %1593 }
 0xa99   : > { %v1591_v22 = vpop.permute.xlu0 %1590 }
 0xa9a   : > { %v1596_v30 = vsel %vm8607_vm5, %v1591_v22, 0.0 }
 0xa9b   : > { %v1602_v12 = vpop.permute.xlu1 %1601  ;;  %v1597_v37 = vsel %vm939_vm7, %v1596_v30, %v1594_v11 }
 0xa9d   : > { %v1586_v23 = vpop.permute.xlu0 %1585 }
 0xa9e   : > { %v1589_v32 = vsel %vm8607_vm5, %v1588_v29, %v1586_v23 }
 0xa9f   : > { %v1610_v14 = vpop.permute.xlu1 %1609  ;;  %v1634_v42 = vsel %vm8609_vm9, %v1589_v32, %v1597_v37 }
 0xaa1   : > { %v1599_v24 = vpop.permute.xlu0 %1598 }
 0xaa2   : > { %v1604_v28 = vsel %vm939_vm7, %v1599_v24, 0.0 }
 0xaa3   : > { %v1618_v15 = vpop.permute.xlu1 %1617  ;;  %v1605_v34 = vsel %vm8608_vm8, %v1604_v28, %v1602_v12 }
 0xaa4   : > { %v1635_v47 = vsel %vm983_vm11, %v1634_v42, %v1605_v34 }
 0xaa5   : > { %v1607_v25 = vpop.permute.xlu0 %1606 }
 0xaa6   : > { %v1612_v31 = vsel %vm8608_vm8, %v1607_v25, 0.0 }
 0xaa7   : > { %v1626_v16 = vpop.permute.xlu1 %1625  ;;  %v1613_v38 = vsel %vm8602_vm10, %v1612_v31, %v1610_v14 }
 0xaa8   : > { %v1636_v50 = vsel %vm985_vm12, %v1635_v47, %v1613_v38 }
 0xaa9   : > { %v1615_v26 = vpop.permute.xlu0 %1614 }
 0xaaa   : > { %v1620_v33 = vsel %vm8602_vm10, %v1615_v26, 0.0 }
 0xaab   : > { %v1822_v17 = vpop.permute.xlu1 %1821  ;;  %v1621_v43 = vsel %vm8601_vm13, %v1620_v33, %v1618_v15 }
 0xaac   : > { %v1824_v18 = vadd.f32 %v1822_v17, %v7197_v41  ;;  %v1637_v52 = vsel %vm987_vm15, %v1636_v50, %v1621_v43 }
 0xaad   : > { %v1623_v48 = vpop.permute.xlu0 %1622 }
 0xaae   : > { %1826 = vrot.lane.b32.xlu1 %v1824_v18, %s8587_s26  ;;  %v1628_v35 = vsel %vm8601_vm13, %v1623_v48, 0.0 }
 0xaaf   : > { %v1829_v20 = vpop.permute.xlu1 %1828  ;;  %v1629_v49 = vsel %vm8600_vm14, %v1628_v35, %v1626_v16 }
 0xab0   : > { %6164 = vmatpush3.xpose.msk.msra.mxu1 %vm8612_vm4, %v1829_v20  ;;  %v1638_v54 = vsel %vm989_vm3, %v1637_v52, %v1629_v49 }
 0xab1   : > { %6173 = vmatprep.subr.mxu1 %v6901_v13  ;;  %v1631_v40 = vpop.permute.xlu0 %1630 }
 0xab2   : > { %1812 = vrot.lane.b32.xlu1 %v1810_v19, %s8631_s20  ;;  %v1633_v51 = vsel %vm8600_vm14, %v1631_v40, 0.0 }
 0xab3   : > { %v1639_v56 = vsel %vm991_vm2, %v1638_v54, %v1633_v51 }
 0xab4   : > { %v1640_v57 = vsel %vm993_vm0, %v1639_v56, %v7389_v2 }
 0xb20   : > { %v1827_v27 = vpop.permute.xlu1 %1826 }
 0xb21   : > { %6166 = vmatmul.mubr.msk.f32.vlgmr.msra.gmra.mrb[12].mxu1 %vm8612_vm4, %v1827_v27 }
 0xb22   : > { %6175 = vmatprep.mubr.msk.f32.mxu1 %vm8610_vm1, %v6901_v13 }
 0xb24   : > { %v1813_v3 = vpop.permute.xlu1 %1812 }
 0xb25   : > { %v1815_v4 = vadd.f32 %v1813_v3, %v7197_v41 }
 0xb2e   : > { %v7455_v53 = vpop.f32.mrb[8].mxu1 }
 0xb2f   : > { %v6147_v55 = vpop.f32.mrb[9].mxu1 }
 0xb32   : > { %v1716_v58 = vpop.f32.mrb[10].mxu1 }
 0xb33   : > { %v1717_v60 = vadd.f32 %v1716_v58, %v1640_v57  ;;  %v6157_v61 = vpop.f32.mrb[11].mxu1 }
 0xb35   : > { %v1720_v63 = vsel %vm8612_vm4, %v1717_v60, -inf }
 0xb36   : > { %1721 = vmax.xlane.f32.xlu0 %v1720_v63 }
 0xb4c   : > { %1731 = vrot.lane.b32.xlu0 %v7197_v41, %s8586_s24  ;;  %s8633_s24 = smov 4  }
 0xb50   : > { %1966 = vrot.lane.b32.xlu0 %v1815_v4, %s8587_s26  ;;  %s8634_s26 = smov 2  }
 0xbc3   : > { %v1722_v6 = vpop.xlane.xlu0 %1721 }
 0xbc4   : > { %v1723_v7 = vsub.f32 %v1717_v60, %v1722_v6 }
 0xbc6   : > { %v1724_v8 = vmul.f32 1.442695, %v1723_v7 }
 0xbc7   : > { %v1732_v0 = vpop.permute.xlu0 %1731 }
 0xbc8   : > { %6823 = vpow2.f32 %v1724_v8  ;;  %6159 = vmatpush3.msra.mxu0 %v1732_v0 }
 0xbc9   : > { %6168 = vmatprep.subr.mxu0 %v6901_v13 }
 0xbcb   : > { %v1967_v18 = vpop.permute.xlu0 %1966 }
 0xbd2   : > { %v6824_v2 = vpop.eup %6823 }
 0xbd3   : > { %v1726_v9 = vsel %vm8612_vm4, %v6824_v2, 0.0 }
 0xbd4   : > { %1727 = vadd.xlane.f32.xlu1 %v1726_v9 }
 0xbe5   : > { %1968 = vrot.lane.b32.xlu1 %v7197_v41, %s8589_s28  ;;  %s8635_s28 = smov 123  }
 0xbf4   : > { %v7470_v46 = vpop.f32.mrb[12].mxu1 }
 0xbf5   : > { %v6167_v11 = vpop.f32.mrb[13].mxu1  ;;  %1905 = vrot.lane.b32.xlu0 %v7470_v46, %s8594_s21  ;;  %v1908_v12 = vrot.slane %v7470_v46, 1  ;;  %s8638_s21 = smov 16  }
 0xbf7   : > { %1917 = vrot.lane.b32.xlu1 %v1908_v12, %s8590_s25  ;;  %s8636_s25 = smov 126  }
 0xbf9   : > { %1914 = vrot.lane.b32.xlu0 %v7470_v46, %s8592_s17  ;;  %s8637_s17 = smov 127  }
 0xbfb   : > { %1925 = vrot.lane.b32.xlu1 %v1908_v12, %s8633_s24 }
 0xbfd   : > { %1909 = vrot.lane.b32.xlu0 %v1908_v12, %s8634_s26 }
 0xbff   : > { %1933 = vrot.lane.b32.xlu1 %v1908_v12, %s8629_s27 }
 0xc01   : > { %1922 = vrot.lane.b32.xlu0 %v7470_v46, %s8635_s28 }
 0xc03   : > { %1941 = vrot.lane.b32.xlu1 %v1908_v12, %s8626_s23 }
 0xc05   : > { %1930 = vrot.lane.b32.xlu0 %v7470_v46, %s8627_s16 }
 0xc07   : > { %1949 = vrot.lane.b32.xlu1 %v1908_v12, %s8630_s30 }
 0xc09   : > { %1938 = vrot.lane.b32.xlu0 %v7470_v46, %s8628_s29 }
 0xc0d   : > { %1946 = vrot.lane.b32.xlu0 %v7470_v46, %s8636_s25 }
 0xc11   : > { %1954 = vrot.lane.b32.xlu0 %v7470_v46, %s8637_s17 }
 0xc61   : > { %v1728_v14 = vpop.xlane.xlu1 %1727 }
 0xc62   : > { %6825 = vrcp.f32 %v1728_v14  ;;  %v2148_v14 = vld [vmem:[%s8534_s5] sm:$0xff] }
 0xc65   : > { %v1969_v17 = vpop.permute.xlu1 %1968 }
 0xc67   : > { %v1906_v19 = vpop.permute.xlu0 %1905 }
 0xc68   : > { %v1912_v30 = vsel %vm928_vm6, %v1906_v19, 0.0 }
 0xc69   : > { %v1918_v23 = vpop.permute.xlu1 %1917 }
 0xc6b   : > { %v1915_v20 = vpop.permute.xlu0 %1914 }
 0xc6c   : > { %v6826_v15 = vpop.eup %6825  ;;  %v1920_v31 = vsel %vm8607_vm5, %v1915_v20, 0.0 }
 0xc6d   : > { %v1730_v16 = vmul.f32 %v6826_v15, %v6824_v2  ;;  %v1926_v25 = vpop.permute.xlu1 %1925  ;;  %v1921_v38 = vsel %vm939_vm7, %v1920_v31, %v1918_v23  ;;  %v2150_v15 = vld [vmem:[%s8534_s5 + $0x10] sm:$0xff] }
 0xc6f   : > { %6161 = vmatmul.mubr.msk.f32.vlgmr.msra.gmra.mrb[10].mxu0 %vm8612_vm4, %v1730_v16  ;;  %v1910_v21 = vpop.permute.xlu0 %1909 }
 0xc70   : > { %6169 = vmatpush3.xpose.msk.msra.mxu0 %vm8612_vm4, %v1969_v17  ;;  %6170 = vmatprep.mubr.msk.f32.mxu0 %vm8610_vm1, %v6901_v13  ;;  %v1913_v33 = vsel %vm8607_vm5, %v1912_v30, %v1910_v21  ;;  %v2151_v17 = vld [vmem:[%s8534_s5 + $0x18] sm:$0xff] }
 0xc71   : > { %6583 = vmatprep.subr.bf16.mxu0 %v6899_v10  ;;  %v1934_v27 = vpop.permute.xlu1 %1933  ;;  %v1958_v43 = vsel %vm8609_vm9, %v1913_v33, %v1921_v38  ;;  %v5640_v38 = vld [vmem:[%s8534_s5 + $0x40] sm:$0xff] }
 0xc73   : > { %6171 = vmatmul.mubr.msk.f32.vlgmr.msra.gmra.mrb[12].mxu0 %vm8612_vm4, %v1967_v18  ;;  %v1923_v22 = vpop.permute.xlu0 %1922  ;;  %v6587_v18 = vpack.c.bf16 %v2151_v17, %v2150_v15 }
 0xc74   : > { %6186 = vmatprep.mubr.msk.f32.mxu0 %vm8610_vm1, %v6901_v13  ;;  %v1928_v29 = vsel %vm939_vm7, %v1923_v22, 0.0 }
 0xc75   : > { %v1942_v28 = vpop.permute.xlu1 %1941  ;;  %v1929_v35 = vsel %vm8608_vm8, %v1928_v29, %v1926_v25 }
 0xc76   : > { %v1959_v50 = vsel %vm983_vm11, %v1958_v43, %v1929_v35 }
 0xc77   : > { %v1931_v24 = vpop.permute.xlu0 %1930 }
 0xc78   : > { %v1936_v32 = vsel %vm8608_vm8, %v1931_v24, 0.0 }
 0xc79   : > { %v1937_v40 = vsel %vm8602_vm10, %v1936_v32, %v1934_v27  ;;  %v1950_v47 = vpop.permute.xlu1 %1949 }
 0xc7a   : > { %v1960_v52 = vsel %vm985_vm12, %v1959_v50, %v1937_v40  ;;  %v5642_v50 = vld [vmem:[%s8534_s5 + $0x50] sm:$0xff] }
 0xc7b   : > { %v1939_v26 = vpop.permute.xlu0 %1938 }
 0xc7c   : > { %v1944_v34 = vsel %vm8602_vm10, %v1939_v26, 0.0  ;;  %vm8639_vm10 = vcmask 261120  }
 0xc7d   : > { %v1945_v49 = vsel %vm8601_vm13, %v1944_v34, %v1942_v28 }
 0xc7e   : > { %v1961_v55 = vsel %vm987_vm15, %v1960_v52, %v1945_v49  ;;  %v5637_v49 = vld [vmem:[%s8534_s5 + $0x38] sm:$0xff] }
 0xc7f   : > { %v1947_v48 = vpop.permute.xlu0 %1946  ;;  %v5643_v52 = vld [vmem:[%s8534_s5 + $0x58] sm:$0xff] }
 0xc80   : > { %v1952_v37 = vsel %vm8601_vm13, %v1947_v48, 0.0  ;;  %vm8606_vm13 = vcmask 195584   ;;  %v5631_v48 = vld [vmem:[%s8532_s3 + $0x1] ss:$0 sm:$0xff] }
 0xc81   : > { %v1953_v51 = vsel %vm8600_vm14, %v1952_v37, %v1950_v47  ;;  %v5634_v37 = vld [vmem:[%s8534_s5 + $0x20] sm:$0xff]  ;;  %v5636_v47 = vld [vmem:[%s8534_s5 + $0x30] sm:$0xff] }
 0xc82   : > { %v1962_v57 = vsel %vm989_vm3, %v1961_v55, %v1953_v51  ;;  %v6593_v51 = vpack.c.bf16 %v5637_v49, %v5636_v47 }
 0xc83   : > { %v1955_v42 = vpop.permute.xlu0 %1954 }
 0xc84   : > { %v1957_v54 = vsel %vm8600_vm14, %v1955_v42, 0.0  ;;  %vm8603_vm14 = vcmask 130048   ;;  %v5641_v42 = vld [vmem:[%s8534_s5 + $0x48] sm:$0xff] }
 0xc85   : > { %v1963_v60 = vsel %vm991_vm2, %v1962_v57, %v1957_v54  ;;  %v6596_v43 = vpack.c.bf16 %v5641_v42, %v5640_v38  ;;  %v6599_v54 = vpack.c.bf16 %v5643_v52, %v5642_v50 }
 0xc86   : > { %v1964_v61 = vsel %vm993_vm0, %v1963_v60, %v7470_v46  ;;  %v5632_v60 = vld [vmem:[%s8531_s2 + $0x4] ss:$0 sm:$0xff] }
 0xd42   : > { %v1803_v56 = vpop.f32.mrb[10].mxu0 }
 0xd43   : > { %v6162_v58 = vpop.f32.mrb[11].mxu0 }
 0xd46   : > { %v2040_v63 = vpop.f32.mrb[12].mxu0 }
 0xd47   : > { %v2041_v3 = vadd.f32 %v2040_v63, %v1964_v61  ;;  %v6172_v4 = vpop.f32.mrb[13].mxu0  ;;  %v5633_v63 = vld [vmem:[%s8531_s2 + $0x5] ss:$0 sm:$0xff] }
 0xd49   : > { %v2044_v6 = vsel %vm8612_vm4, %v2041_v3, -inf }
 0xd4a   : > { %2045 = vmax.xlane.f32.xlu1 %v2044_v6  ;;  %v5650_v6 = vld [vmem:[%s8534_s5 + $0x60] sm:$0xff] }
 0xd5b   : > { %2132 = vrot.lane.b32.xlu1 %v7455_v53, %s8632_s22 }
 0xd5f   : > { %2136 = vrot.lane.b32.xlu1 %v1803_v56, %s8638_s21  ;;  %s8654_s21 = smov 3  }
 0xdd7   : > { %v2046_v7 = vpop.xlane.xlu1 %2045 }
 0xdd8   : > { %v2047_v8 = vsub.f32 %v2041_v3, %v2046_v7  ;;  %v5651_v7 = vld [vmem:[%s8534_s5 + $0x68] sm:$0xff] }
 0xdda   : > { %v2048_v0 = vmul.f32 1.442695, %v2047_v8  ;;  %v5652_v8 = vld [vmem:[%s8534_s5 + $0x70] sm:$0xff] }
 0xddb   : > { %v2133_v21 = vpop.permute.xlu1 %2132 }
 0xddc   : > { %6827 = vpow2.f32 %v2048_v0  ;;  %v2143_v23 = vsel %vm8612_vm4, %v7371_v39, %v2133_v21  ;;  %v6602_v0 = vpack.c.bf16 %v5651_v7, %v5650_v6  ;;  %v2480_v21 = vsub.s32 4, %v7203_v44 }
 0xddf   : > { %v2137_v22 = vpop.permute.xlu1 %2136 }
 0xde0   : > { %v2145_v24 = vsel %vm8603_vm14, %v2143_v23, %v2137_v22  ;;  %vm8640_vm14 = vmmov %vm8639_vm10 }
 0xde6   : > { %v6828_v2 = vpop.eup %6827 }
 0xde7   : > { %v2050_v9 = vsel %vm8612_vm4, %v6828_v2, 0.0 }
 0xde8   : > { %2051 = vadd.xlane.f32.xlu0 %v2050_v9 }
 0xdfe   : > { %2055 = vrot.lane.b32.xlu0 %v7197_v41, %s8597_s0  ;;  %v2149_v41 = vld [vmem:[%s8534_s5 + $0x8] sm:$0xff]  ;;  %s8661_s0 = smov 120  }
 0xdff   : > { %v6584_v16 = vpack.c.bf16 %v2149_v41, %v2148_v14 }
 0xe01   : > { %6585 = vmatpush3.bf16.msra.mxu0 %v6584_v16 }
 0xe02   : > { %6586 = vmatprep.subr.bf16.mxu0 %v6899_v10 }
 0xe05   : > { %6588 = vmatpush3.bf16.msra.mxu0 %v6587_v18  ;;  %v5638_v18 = vld [vmem:[%s8532_s3 + $0x2] ss:$0 sm:$0xff] }
 0xe06   : > { %6595 = vmatprep.subr.bf16.mxu0 %v6899_v10 }
 0xe75   : > { %v2052_v46 = vpop.xlane.xlu0 %2051 }
 0xe76   : > { %6829 = vrcp.f32 %v2052_v46  ;;  %v5644_v46 = vld [vmem:[%s8532_s3 + $0x3] ss:$0 sm:$0xff] }
 0xe79   : > { %v2056_v11 = vpop.permute.xlu0 %2055 }
 0xe7a   : > { %6174 = vmatpush3.msra.mxu1 %v2056_v11 }
 0xe7b   : > { %6589 = vmatprep.subr.bf16.mxu1 %v6899_v10 }
 0xe80   : > { %v6830_v53 = vpop.eup %6829 }
 0xe81   : > { %v2054_v12 = vmul.f32 %v6830_v53, %v6828_v2  ;;  %v5653_v2 = vld [vmem:[%s8534_s5 + $0x78] sm:$0xff] }
 0xe82   : > { %v6605_v9 = vpack.c.bf16 %v5653_v2, %v5652_v8 }
 0xe83   : > { %6176 = vmatmul.mubr.msk.f32.vlgmr.msra.gmra.mrb[14].mxu1 %vm8612_vm4, %v2054_v12 }
 0xe84   : > { %6197 = vmatprep.mubr.msk.f32.mxu1 %vm8610_vm1, %v6901_v13 }
 0xf56   : > { %v2127_v19 = vpop.f32.mrb[14].mxu1 }
 0xf57   : > { %2140 = vrot.lane.b32.xlu0 %v2127_v19, %s8631_s20  ;;  %v6177_v20 = vpop.f32.mrb[15].mxu1 }
 0xf58   : > { %v2432_v20 = vld [vmem:[%s8539_s10] sm:$0x7f] }
 0xfc9   : > { %v2141_v25 = vpop.permute.xlu0 %2140 }
 0xfca   : > { %v2147_v26 = vsel %vm8606_vm13, %v2145_v24, %v2141_v25  ;;  %v2493_v24 = vsub.s32 5, %v7203_v44  ;;  %v2442_v25 = vrot.slane %v2432_v20, %v7255_v59  ;;  %vm8650_vm13 = vcmask 785408  }
 0xfcb   : > { %6187 = vmatmul.mubr.msk.f32.vlgmr.msra.gmra.mrb[14].mxu0 %vm8639_vm10, %v2147_v26  ;;  %v2455_v26 = vrot.slane %v2432_v20, %v7331_v1 }
 0xfcc   : > { %6208 = vmatprep.mubr.msk.f32.mxu0 %vm8610_vm1, %v6901_v13  ;;  %6597 = vmatpush3.bf16.msra.mxu0 %v6596_v43 }
 0xfcd   : > { %6598 = vmatprep.subr.bf16.mxu0 %v6899_v10 }
 0xfd0   : > { %6600 = vmatpush3.bf16.msra.mxu0 %v6599_v54 }
 0xfd1   : > { %6607 = vmatprep.subr.bf16.mxu0 %v6899_v10 }
0x109e   : > { %v2221_v27 = vpop.f32.mrb[14].mxu0 }
0x109f   : > { %v2225_v28 = vadd.f32 %v2221_v27, %v7126_v62  ;;  %v6188_v29 = vpop.f32.mrb[15].mxu0  ;;  %v5635_v62 = vld [vmem:[%s8534_s5 + $0x28] sm:$0xff] }
0x10a0   : > { %v6590_v40 = vpack.c.bf16 %v5635_v62, %v5634_v37  ;;  %v2506_v29 = vsub.s32 6, %v7203_v44 }
0x10a1   : > { %v7559_v30 = vadd.f32 %v5631_v48, %v2225_v28  ;;  %v2468_v48 = vrot.slane %v2432_v20, %v7404_v5  ;;  %v2481_v28 = vrot.slane %v2432_v20, %v2480_v21 }
0x10a2   : > { %6591 = vmatpush3.bf16.msra.mxu1 %v6590_v40  ;;  %v2507_v43 = vrot.slane %v2432_v20, %v2506_v29 }
0x10a3   : > { %v2234_v39 = vsel %vm8640_vm14, %v7559_v30, 0.0  ;;  %6592 = vmatprep.subr.bf16.mxu1 %v6899_v10  ;;  %vm8641_vm14 = vmmov %vm8639_vm10 }
0x10a4   : > { %2235 = vadd.xlane.f32.xlu1 %v2234_v39 }
0x10a6   : > { %6594 = vmatpush3.bf16.msra.mxu1 %v6593_v51 }
0x10a7   : > { %6601 = vmatprep.subr.bf16.mxu1 %v6899_v10 }
0x1131   : > { %v2236_v31 = vpop.xlane.xlu1 %2235 }
0x1132   : > { %v2237_v32 = vmul.f32 0.03125, %v2236_v31 }
0x1134   : > { %v2238_v33 = vsub.f32 %v7559_v30, %v2237_v32  ;;  %v2436_v32 = vrot.slane %v2432_v20, %v7206_v45 }
0x1136   : > { %v2239_v34 = vmul.f32 %v2238_v33, %v2238_v33 }
0x1138   : > { %v2240_v35 = vsel %vm8639_vm10, %v2239_v34, 0.0 }
0x1139   : > { %2241 = vadd.xlane.f32.xlu0 %v2240_v35 }
0x11c6   : > { %v2242_v55 = vpop.xlane.xlu0 %2241 }
0x11c7   : > { %v2243_v56 = vmul.f32 0.03125, %v2242_v55 }
0x11c9   : > { %v2244_v57 = vadd.f32 1e-05, %v2243_v56 }
0x11cb   : > { %6831 = vrsqrt.f32 %v2244_v57 }
0x11d5   : > { %v6832_v58 = vpop.eup %6831 }
0x11d6   : > { %v2246_v61 = vmul.f32 %v6832_v58, %v2238_v33  ;;  %v2494_v33 = vrot.slane %v2432_v20, %v2493_v24 }
0x11d8   : > { %v2251_v3 = vmul.f32 %v5632_v60, %v2246_v61 }
0x11da   : > { %v2256_v4 = vadd.f32 %v5633_v63, %v2251_v3 }
0x11dc   : > { %6198 = vmatmul.mubr.msk.f32.vlgmr.msra.gmra.mrb[16].mxu1 %vm8641_vm14, %v2256_v4  ;;  %6209 = vmatmul.mubr.msk.f32.vlgmr.msra.gmra.mrb[16].mxu0 %vm8639_vm10, %v2256_v4  ;;  %vm8642_vm14 = vmmov %vm8639_vm10 }
0x11dd   : > { %6219 = vmatprep.mubr.msk.f32.mxu1 %vm8610_vm1, %v6901_v13  ;;  %6230 = vmatprep.mubr.msk.f32.mxu0 %vm8610_vm1, %v6901_v13 }
0x11de   : > { %6603 = vmatpush3.bf16.msra.mxu1 %v6602_v0 }
0x11df   : > { %6604 = vmatprep.subr.bf16.mxu1 %v6899_v10 }
0x11e2   : > { %6606 = vmatpush3.bf16.msra.mxu1 %v6605_v9 }
0x11e3   : > { %6613 = vmatprep.subr.bf16.mxu1 %v6899_v10 }
0x12af   : > { %v2336_v11 = vpop.f32.mrb[16].mxu1  ;;  %v2416_v53 = vpop.f32.mrb[16].mxu0 }
0x12b0   : > { %v2417_v12 = vadd.f32 %v5644_v46, %v2416_v53  ;;  %v6199_v14 = vpop.f32.mrb[17].mxu1  ;;  %v6210_v41 = vpop.f32.mrb[17].mxu0  ;;  %v2337_v19 = vadd.f32 %v5638_v18, %v2336_v11 }
0x12b2   : > { %v5646_v15 = vmul.f32 -1.442695, %v2417_v12 }
0x12b4   : > { %6833 = vpow2.f32 %v5646_v15 }
0x12be   : > { %v6834_v16 = vpop.eup %6833 }
0x12bf   : > { %v2423_v17 = vadd.f32 1.0, %v6834_v16 }
0x12c1   : > { %6835 = vrcp.f32 %v2423_v17  ;;  %v5647_v17 = vld [vmem:[%s8532_s3 + $0x4] ss:$0 sm:$0xff] }
0x12cb   : > { %v6836_v22 = vpop.eup %6835 }
0x12cc   : > { %v2426_v23 = vmul.f32 %v6836_v22, %v2337_v19  ;;  %v5648_v19 = vld [vmem:[%s8532_s3 + $0x5] ss:$0 sm:$0xff] }
0x12ce   : > { %v2428_v27 = vrot.slane %v2426_v23, 5 }
0x12d0   : > { %v2430_v39 = vsel %vm985_vm12, 0.0, %v2428_v27  ;;  %v2431_v31 = vsel %vm985_vm12, %v2428_v27, 0.0 }
0x12d1   : > { %v2443_v34 = vmul.f32 %v2442_v25, %v2430_v39  ;;  %v2444_v35 = vmul.f32 %v2442_v25, %v2431_v31  ;;  %v2456_v37 = vmul.f32 %v2455_v26, %v2430_v39  ;;  %v2457_v62 = vmul.f32 %v2455_v26, %v2431_v31 }
0x12d2   : > { %v2470_v38 = vmul.f32 %v2468_v48, %v2431_v31  ;;  %v2483_v40 = vmul.f32 %v2481_v28, %v2431_v31  ;;  %v2469_v42 = vmul.f32 %v2468_v48, %v2430_v39  ;;  %v2437_v54 = vmul.f32 %v2436_v32, %v2430_v39 }
0x12d3   : > { %v2447_v47 = vrot.slane %v2443_v34, 1  ;;  %v2448_v49 = vrot.slane %v2444_v35, 1  ;;  %v2460_v50 = vrot.slane %v2456_v37, 2  ;;  %v2461_v51 = vrot.slane %v2457_v62, 2 }
0x12d4   : > { %v2474_v52 = vrot.slane %v2470_v38, 3  ;;  %v2482_v55 = vmul.f32 %v2481_v28, %v2430_v39  ;;  %v2473_v57 = vrot.slane %v2469_v42, 3  ;;  %v2495_v58 = vmul.f32 %v2494_v33, %v2430_v39  ;;  %v5658_v42 = vld [vmem:[%s8535_s6 + $0x20] sm:$0xff] }
0x12d5   : > { %v2449_v56 = vsel %vm993_vm0, %v2447_v47, %v2448_v49  ;;  %v2496_v60 = vmul.f32 %v2494_v33, %v2431_v31  ;;  %v2487_v63 = vrot.slane %v2483_v40, 4  ;;  %v2462_v3 = vsel %vm991_vm2, %v2460_v50, %v2461_v51  ;;  %v5661_v49 = vld [vmem:[%s8535_s6 + $0x38] sm:$0xff] }
0x12d6   : > { %v2451_v61 = vadd.f32 %v2449_v56, %v2437_v54  ;;  %v2486_v4 = vrot.slane %v2482_v55, 4  ;;  %v2508_v6 = vmul.f32 %v2507_v43, %v2430_v39  ;;  %v2509_v7 = vmul.f32 %v2507_v43, %v2431_v31  ;;  %v5655_v39 = vld [vmem:[%s8532_s3 + $0x6] ss:$0 sm:$0xff]  ;;  %v5660_v43 = vld [vmem:[%s8535_s6 + $0x30] sm:$0xff] }
0x12d7   : > { %v2475_v0 = vsel %vm989_vm3, %v2473_v57, %v2474_v52  ;;  %v2499_v2 = vrot.slane %v2495_v58, 5  ;;  %v2500_v9 = vrot.slane %v2496_v60, 5  ;;  %v6611_v50 = vpack.c.bf16 %v5661_v49, %v5660_v43  ;;  %v5656_v56 = vld [vmem:[%s8531_s2 + $0x6] ss:$0 sm:$0xff]  ;;  %v5657_v58 = vld [vmem:[%s8531_s2 + $0x7] ss:$0 sm:$0xff] }
0x12d8   : > { %v2464_v8 = vadd.f32 %v2462_v3, %v2451_v61  ;;  %v2488_v11 = vsel %vm987_vm15, %v2486_v4, %v2487_v63  ;;  %v2512_v53 = vrot.slane %v2508_v6, 6  ;;  %v2513_v12 = vrot.slane %v2509_v7, 6  ;;  %v5665_v63 = vld [vmem:[%s8624_s7 + $0x80] sm:$0xff]  ;;  %v5666_v3 = vld [vmem:[%s8624_s7 + $0x88] sm:$0xff]  ;;  %v5667_v6 = vld [vmem:[%s8624_s7 + $0x90] sm:$0xff] }
0x12d9   : > { %v2501_v41 = vsel %vm985_vm12, %v2499_v2, %v2500_v9  ;;  %v6614_v4 = vpack.c.bf16 %v5666_v3, %v5665_v63  ;;  %v5668_v7 = vld [vmem:[%s8624_s7 + $0x98] sm:$0xff]  ;;  %v5670_v2 = vld [vmem:[%s8624_s7 + $0xa8] sm:$0xff] }
0x12da   : > { %v2477_v46 = vadd.f32 %v2475_v0, %v2464_v8  ;;  %v2514_v16 = vsel %vm983_vm11, %v2512_v53, %v2513_v12  ;;  %v6617_v8 = vpack.c.bf16 %v5668_v7, %v5667_v6  ;;  %v5669_v0 = vld [vmem:[%s8624_s7 + $0xa0] sm:$0xff] }
0x12db   : > { %v6620_v9 = vpack.c.bf16 %v5670_v2, %v5669_v0  ;;  %v5673_v12 = vld [vmem:[%s8624_s7 + $0xc0] sm:$0xff] }
0x12dc   : > { %v2490_v14 = vadd.f32 %v2488_v11, %v2477_v46  ;;  %v5671_v46 = vld [vmem:[%s8624_s7 + $0xb0] sm:$0xff]  ;;  %v5672_v11 = vld [vmem:[%s8624_s7 + $0xb8] sm:$0xff]  ;;  %v5686_v2 = vld [vmem:[%s8535_s6 + $0x40] sm:$0xff] }
0x12dd   : > { %v6623_v53 = vpack.c.bf16 %v5672_v11, %v5671_v46  ;;  %v5688_v46 = vld [vmem:[%s8535_s6 + $0x50] sm:$0xff] }
0x12de   : > { %v2503_v15 = vadd.f32 %v2501_v41, %v2490_v14  ;;  %v5674_v14 = vld [vmem:[%s8624_s7 + $0xc8] sm:$0xff] }
0x12df   : > { %v6626_v41 = vpack.c.bf16 %v5674_v14, %v5673_v12 }
0x12e0   : > { %v2516_v18 = vadd.f32 %v2514_v16, %v2503_v15  ;;  %v5675_v15 = vld [vmem:[%s8624_s7 + $0xd0] sm:$0xff]  ;;  %v5676_v16 = vld [vmem:[%s8624_s7 + $0xd8] sm:$0xff] }
0x12e2   : > { %v2522_v20 = vmul.f32 %v5647_v17, %v2516_v18  ;;  %v6629_v17 = vpack.c.bf16 %v5676_v16, %v5675_v15  ;;  %v5677_v18 = vld [vmem:[%s8624_s7 + $0xe0] sm:$0xff] }
0x12e4   : > { %v2528_v22 = vadd.f32 %v5648_v19, %v2522_v20  ;;  %v5678_v19 = vld [vmem:[%s8624_s7 + $0xe8] sm:$0xff] }
0x12e5   : > { %v6632_v20 = vpack.c.bf16 %v5678_v19, %v5677_v18  ;;  %v5685_v19 = vld [vmem:[%s8531_s2 + $0xb] ss:$0 sm:$0xff] }
0x12e6   : > { %v5649_v23 = vmul.f32 -1.442695, %v2528_v22 }
0x12e8   : > { %6837 = vpow2.f32 %v5649_v23  ;;  %v5680_v23 = vld [vmem:[%s8624_s7 + $0xf8] sm:$0xff] }
0x12f2   : > { %v6838_v25 = vpop.eup %6837 }
0x12f3   : > { %v2532_v26 = vadd.f32 1.0, %v6838_v25 }
0x12f5   : > { %6839 = vrcp.f32 %v2532_v26  ;;  %v5662_v26 = vld [vmem:[%s8533_s4 + $0x2] ss:$0 sm:$0xff] }
0x12ff   : > { %v6840_v27 = vpop.eup %6839 }
0x1300   : > { %v2535_v48 = vmul.f32 %v6840_v27, %v2528_v22  ;;  %v5679_v22 = vld [vmem:[%s8624_s7 + $0xf0] sm:$0xff] }
0x1301   : > { %v6635_v25 = vpack.c.bf16 %v5680_v23, %v5679_v22  ;;  %v5693_v23 = vld [vmem:[%s8624_s7 + $0x100] sm:$0xff] }
0x1302   : > { %6220 = vmatmul.mubr.msk.f32.vlgmr.msra.gmra.mrb[18].mxu1 %vm8642_vm14, %v2535_v48  ;;  %vm8643_vm14 = vmmov %vm8639_vm10 }
0x1303   : > { %6265 = vmatprep.mubr.msk.f32.mxu1 %vm8610_vm1, %v6901_v13  ;;  %6615 = vmatpush3.bf16.msra.mxu1 %v6614_v4 }
0x1304   : > { %6616 = vmatprep.subr.bf16.mxu1 %v6899_v10 }
0x1307   : > { %6618 = vmatpush3.bf16.msra.mxu1 %v6617_v8 }
0x1308   : > { %6619 = vmatprep.subr.bf16.mxu1 %v6899_v10 }
0x130b   : > { %6621 = vmatpush3.bf16.msra.mxu1 %v6620_v9  ;;  %v5687_v9 = vld [vmem:[%s8535_s6 + $0x48] sm:$0xff] }
0x130c   : > { %6622 = vmatprep.subr.bf16.mxu1 %v6899_v10  ;;  %v6638_v11 = vpack.c.bf16 %v5687_v9, %v5686_v2 }
0x130f   : > { %6624 = vmatpush3.bf16.msra.mxu1 %v6623_v53  ;;  %v5689_v53 = vld [vmem:[%s8535_s6 + $0x58] sm:$0xff] }
0x1310   : > { %6625 = vmatprep.subr.bf16.mxu1 %v6899_v10  ;;  %v6641_v12 = vpack.c.bf16 %v5689_v53, %v5688_v46 }
0x1313   : > { %6627 = vmatpush3.bf16.msra.mxu1 %v6626_v41 }
0x1314   : > { %6628 = vmatprep.subr.bf16.mxu1 %v6899_v10 }
0x1317   : > { %6630 = vmatpush3.bf16.msra.mxu1 %v6629_v17  ;;  %v5684_v17 = vld [vmem:[%s8531_s2 + $0xa] ss:$0 sm:$0xff] }
0x1318   : > { %6631 = vmatprep.subr.bf16.mxu1 %v6899_v10 }
0x131b   : > { %6633 = vmatpush3.bf16.msra.mxu1 %v6632_v20 }
0x131c   : > { %6634 = vmatprep.subr.bf16.mxu1 %v6899_v10 }
0x131f   : > { %6636 = vmatpush3.bf16.msra.mxu1 %v6635_v25  ;;  %v5694_v25 = vld [vmem:[%s8624_s7 + $0x108] sm:$0xff] }
0x1320   : > { %6667 = vmatprep.subr.bf16.mxu1 %v6899_v10 }
0x13d5   : > { %v2610_v28 = vpop.f32.mrb[18].mxu1 }
0x13d6   : > { %v2614_v31 = vadd.f32 %v2610_v28, %v7559_v30  ;;  %v6221_v32 = vpop.f32.mrb[19].mxu1  ;;  %v5659_v30 = vld [vmem:[%s8535_s6 + $0x28] sm:$0xff] }
0x13d7   : > { %v6608_v47 = vpack.c.bf16 %v5659_v30, %v5658_v42 }
0x13d8   : > { %v7662_v33 = vadd.f32 %v5655_v39, %v2614_v31 }
0x13d9   : > { %6609 = vmatpush3.bf16.msra.mxu0 %v6608_v47 }
0x13da   : > { %v2623_v34 = vsel %vm8639_vm10, %v7662_v33, 0.0  ;;  %6610 = vmatprep.subr.bf16.mxu0 %v6899_v10 }
0x13db   : > { %2624 = vadd.xlane.f32.xlu0 %v2623_v34 }
0x13dd   : > { %6612 = vmatpush3.bf16.msra.mxu0 %v6611_v50 }
0x13de   : > { %6637 = vmatprep.subr.bf16.mxu0 %v6899_v10 }
0x1468   : > { %v2625_v35 = vpop.xlane.xlu0 %2624 }
0x1469   : > { %v2626_v37 = vmul.f32 0.03125, %v2625_v35 }
0x146b   : > { %v2627_v62 = vsub.f32 %v7662_v33, %v2626_v37  ;;  %v5681_v37 = vld [vmem:[%s8532_s3 + $0x7] ss:$0 sm:$0xff] }
0x146d   : > { %v2628_v38 = vmul.f32 %v2627_v62, %v2627_v62 }
0x146f   : > { %v2629_v40 = vsel %vm8643_vm14, %v2628_v38, 0.0  ;;  %vm8644_vm14 = vmmov %vm8639_vm10 }
0x1470   : > { %2630 = vadd.xlane.f32.xlu0 %v2629_v40 }
0x14fd   : > { %v2631_v51 = vpop.xlane.xlu0 %2630 }
0x14fe   : > { %v2632_v52 = vmul.f32 0.03125, %v2631_v51 }
0x1500   : > { %v2633_v54 = vadd.f32 1e-05, %v2632_v52 }
0x1502   : > { %6841 = vrsqrt.f32 %v2633_v54 }
0x150c   : > { %v6842_v55 = vpop.eup %6841 }
0x150d   : > { %v2635_v57 = vmul.f32 %v6842_v55, %v2627_v62 }
0x150f   : > { %v2640_v60 = vmul.f32 %v5656_v56, %v2635_v57 }
0x1511   : > { %v2645_v61 = vadd.f32 %v5657_v58, %v2640_v60  ;;  %v5682_v58 = vld [vmem:[%s8531_s2 + $0x8] ss:$0 sm:$0xff]  ;;  %v5683_v60 = vld [vmem:[%s8531_s2 + $0x9] ss:$0 sm:$0xff] }
0x1513   : > { %6231 = vmatmul.mubr.msk.f32.vlgmr.msra.gmra.mrb[18].mxu0 %vm8639_vm10, %v2645_v61 }
0x1514   : > { %6276 = vmatprep.mubr.msk.f32.mxu0 %vm8610_vm1, %v6901_v13  ;;  %6639 = vmatpush3.bf16.msra.mxu0 %v6638_v11 }
0x1515   : > { %6640 = vmatprep.subr.bf16.mxu0 %v6899_v10 }
0x1518   : > { %6642 = vmatpush3.bf16.msra.mxu0 %v6641_v12 }
0x1519   : > { %6643 = vmatprep.subr.bf16.mxu0 %v6899_v10 }
0x15e6   : > { %v2725_v27 = vpop.f32.mrb[18].mxu0 }
0x15e7   : > { %v2726_v48 = vadd.f32 %v5662_v26, %v2725_v27  ;;  %v6232_v28 = vpop.f32.mrb[19].mxu0  ;;  %v6644_v26 = vpack.c.bf16 %v5694_v25, %v5693_v23  ;;  %v5695_v27 = vld [vmem:[%s8624_s7 + $0x110] sm:$0xff] }
0x15e8   : > { %v5718_v25 = vld [vmem:[%s8537_s8 + $0x90] sm:$0xff] }
0x15e9   : > { %v5664_v39 = vmul.f32 -1.442695, %v2726_v48 }
0x15eb   : > { %6843 = vpow2.f32 %v5664_v39  ;;  %v5697_v39 = vld [vmem:[%s8624_s7 + $0x120] sm:$0xff] }
0x15f5   : > { %v6844_v31 = vpop.eup %6843 }
0x15f6   : > { %v2732_v32 = vadd.f32 1.0, %v6844_v31  ;;  %v5698_v31 = vld [vmem:[%s8624_s7 + $0x128] sm:$0xff] }
0x15f8   : > { %6845 = vrcp.f32 %v2732_v32  ;;  %v6650_v32 = vpack.c.bf16 %v5698_v31, %v5697_v39  ;;  %v5722_v31 = vld [vmem:[%s8537_s8 + $0xb0] sm:$0xff] }
0x1602   : > { %v6846_v34 = vpop.eup %6845 }
0x1603   : > { %v2735_v35 = vmul.f32 %v6846_v34, %v2726_v48  ;;  %v5696_v48 = vld [vmem:[%s8624_s7 + $0x118] sm:$0xff]  ;;  %v5699_v34 = vld [vmem:[%s8624_s7 + $0x130] sm:$0xff] }
0x1604   : > { %v6647_v28 = vpack.c.bf16 %v5696_v48, %v5695_v27  ;;  %v5720_v27 = vld [vmem:[%s8537_s8 + $0xa0] sm:$0xff] }
0x1605   : > { %6266 = vmatmul.mubr.f32.vlgmr.msra.gmra.mrb[20].mxu1 %v2735_v35  ;;  %v5700_v35 = vld [vmem:[%s8624_s7 + $0x138] sm:$0xff] }
0x1606   : > { %6338 = vmatprep.mubr.msk.f32.mxu1 %vm8610_vm1, %v6901_v13 }
0x16d8   : > { %v2824_v62 = vpop.f32.mrb[20].mxu1 }
0x16d9   : > { %v2825_v38 = vadd.f32 %v5681_v37, %v2824_v62  ;;  %v6267_v40 = vpop.f32.mrb[21].mxu1  ;;  %v6653_v37 = vpack.c.bf16 %v5700_v35, %v5699_v34  ;;  %v5701_v62 = vld [vmem:[%s8624_s7 + $0x140] sm:$0xff] }
0x16db   : > { %v2828_v42 = vmul.f32 0.5, %v2825_v38  ;;  %v5702_v38 = vld [vmem:[%s8624_s7 + $0x148] sm:$0xff] }
0x16dc   : > { %v6656_v40 = vpack.c.bf16 %v5702_v38, %v5701_v62 }
0x16dd   : > { %v2829_v30 = vadd.f32 %v2828_v42, %v7662_v33  ;;  %v5703_v42 = vld [vmem:[%s8624_s7 + $0x150] sm:$0xff] }
0x16df   : > { %v2832_v43 = vsel %vm8644_vm14, %v2829_v30, 0.0  ;;  %vm8645_vm14 = vmmov %vm8639_vm10 }
0x16e0   : > { %2833 = vadd.xlane.f32.xlu1 %v2832_v43 }
0x176d   : > { %v2834_v47 = vpop.xlane.xlu1 %2833 }
0x176e   : > { %v2835_v49 = vmul.f32 0.03125, %v2834_v47  ;;  %v5705_v47 = vld [vmem:[%s8624_s7 + $0x160] sm:$0xff] }
0x1770   : > { %v2836_v50 = vsub.f32 %v2829_v30, %v2835_v49  ;;  %v5704_v30 = vld [vmem:[%s8624_s7 + $0x158] sm:$0xff]  ;;  %v5706_v49 = vld [vmem:[%s8624_s7 + $0x168] sm:$0xff] }
0x1771   : > { %v6659_v43 = vpack.c.bf16 %v5704_v30, %v5703_v42  ;;  %v5711_v30 = vld [vmem:[%s8531_s2 + $0xd] ss:$0 sm:$0xff] }
0x1772   : > { %v2837_v51 = vmul.f32 %v2836_v50, %v2836_v50 }
0x1774   : > { %v2838_v52 = vsel %vm8639_vm10, %v2837_v51, 0.0  ;;  %v5707_v51 = vld [vmem:[%s8624_s7 + $0x170] sm:$0xff] }
0x1775   : > { %2839 = vadd.xlane.f32.xlu0 %v2838_v52  ;;  %v5708_v52 = vld [vmem:[%s8624_s7 + $0x178] sm:$0xff]  ;;  %s8688_s7 = smov 104  }
0x1802   : > { %v2840_v54 = vpop.xlane.xlu0 %2839 }
0x1803   : > { %v2841_v55 = vmul.f32 0.03125, %v2840_v54  ;;  %v6665_v54 = vpack.c.bf16 %v5708_v52, %v5707_v51  ;;  %v5724_v52 = vld [vmem:[%s8533_s4 + $0x4] ss:$0 sm:$0xff] }
0x1805   : > { %v2842_v56 = vadd.f32 1e-05, %v2841_v55  ;;  %v5690_v55 = vld [vmem:[%s8533_s4 + $0x3] ss:$0 sm:$0xff] }
0x1807   : > { %6847 = vrsqrt.f32 %v2842_v56 }
0x1811   : > { %v6848_v57 = vpop.eup %6847 }
0x1812   : > { %v2844_v33 = vmul.f32 %v6848_v57, %v2836_v50  ;;  %v6662_v50 = vpack.c.bf16 %v5706_v49, %v5705_v47 }
0x1814   : > { %v2849_v61 = vmul.f32 %v5682_v58, %v2844_v33 }
0x1816   : > { %v7764_v63 = vadd.f32 %v5683_v60, %v2849_v61 }
0x1818   : > { %v2857_v3 = vsel %vm8645_vm14, %v7764_v63, 0.0  ;;  %vm8646_vm14 = vmmov %vm8639_vm10 }
0x1819   : > { %2858 = vadd.xlane.f32.xlu1 %v2857_v3 }
0x18a6   : > { %v2859_v4 = vpop.xlane.xlu1 %2858 }
0x18a7   : > { %v2860_v6 = vmul.f32 0.03125, %v2859_v4 }
0x18a9   : > { %v2861_v7 = vsub.f32 %v7764_v63, %v2860_v6  ;;  %v5709_v6 = vld [vmem:[%s8532_s3 + $0x8] ss:$0 sm:$0xff] }
0x18ab   : > { %v2862_v8 = vmul.f32 %v2861_v7, %v2861_v7 }
0x18ad   : > { %v2863_v0 = vsel %vm8639_vm10, %v2862_v8, 0.0 }
0x18ae   : > { %2864 = vadd.xlane.f32.xlu0 %v2863_v0 }
0x193b   : > { %v2865_v14 = vpop.xlane.xlu0 %2864 }
0x193c   : > { %v2866_v41 = vmul.f32 0.03125, %v2865_v14 }
0x193e   : > { %v2867_v15 = vadd.f32 1e-05, %v2866_v41 }
0x1940   : > { %6849 = vrsqrt.f32 %v2867_v15  ;;  %v5712_v15 = vld [vmem:[%s8537_s8 + $0x60] sm:$0xff] }
0x194a   : > { %v6850_v16 = vpop.eup %6849 }
0x194b   : > { %v2869_v18 = vmul.f32 %v6850_v16, %v2861_v7  ;;  %v5713_v16 = vld [vmem:[%s8537_s8 + $0x68] sm:$0xff] }
0x194d   : > { %v2874_v20 = vmul.f32 %v5684_v17, %v2869_v18  ;;  %v6668_v17 = vpack.c.bf16 %v5713_v16, %v5712_v15  ;;  %v5715_v18 = vld [vmem:[%s8537_s8 + $0x78] sm:$0xff] }
0x194f   : > { %v2879_v22 = vadd.f32 %v5685_v19, %v2874_v20  ;;  %6669 = vmatpush3.bf16.msra.mxu1 %v6668_v17  ;;  %v5716_v20 = vld [vmem:[%s8537_s8 + $0x80] sm:$0xff] }
0x1950   : > { %6670 = vmatprep.subr.bf16.mxu1 %v6899_v10 }
0x1951   : > { %6277 = vmatmul.mubr.msk.f32.vlgmr.msra.gmra.mrb[20].mxu0 %vm8646_vm14, %v2879_v22  ;;  %vm8648_vm14 = vmmov %vm8639_vm10  ;;  %v5717_v22 = vld [vmem:[%s8537_s8 + $0x88] sm:$0xff] }
0x1952   : > { %6311 = vmatprep.mubr.msk.f32.mxu0 %vm8610_vm1, %v6901_v13  ;;  %6645 = vmatpush3.bf16.msra.mxu0 %v6644_v26  ;;  %v6674_v23 = vpack.c.bf16 %v5717_v22, %v5716_v20  ;;  %v5719_v26 = vld [vmem:[%s8537_s8 + $0x98] sm:$0xff] }
0x1953   : > { %6646 = vmatprep.subr.bf16.mxu0 %v6899_v10  ;;  %v6677_v48 = vpack.c.bf16 %v5719_v26, %v5718_v25 }
0x1956   : > { %6648 = vmatpush3.bf16.msra.mxu0 %v6647_v28  ;;  %v5721_v28 = vld [vmem:[%s8537_s8 + $0xa8] sm:$0xff] }
0x1957   : > { %6649 = vmatprep.subr.bf16.mxu0 %v6899_v10  ;;  %v6680_v39 = vpack.c.bf16 %v5721_v28, %v5720_v27 }
0x195a   : > { %6651 = vmatpush3.bf16.msra.mxu0 %v6650_v32  ;;  %v5723_v32 = vld [vmem:[%s8537_s8 + $0xb8] sm:$0xff] }
0x195b   : > { %6652 = vmatprep.subr.bf16.mxu0 %v6899_v10  ;;  %v6683_v34 = vpack.c.bf16 %v5723_v32, %v5722_v31 }
0x195e   : > { %6654 = vmatpush3.bf16.msra.mxu0 %v6653_v37 }
0x195f   : > { %6655 = vmatprep.subr.bf16.mxu0 %v6899_v10 }
0x1962   : > { %6657 = vmatpush3.bf16.msra.mxu0 %v6656_v40  ;;  %v5710_v40 = vld [vmem:[%s8531_s2 + $0xc] ss:$0 sm:$0xff] }
0x1963   : > { %6658 = vmatprep.subr.bf16.mxu0 %v6899_v10 }
0x1966   : > { %6660 = vmatpush3.bf16.msra.mxu0 %v6659_v43 }
0x1967   : > { %6661 = vmatprep.subr.bf16.mxu0 %v6899_v10 }
0x196a   : > { %6663 = vmatpush3.bf16.msra.mxu0 %v6662_v50 }
0x196b   : > { %6664 = vmatprep.subr.bf16.mxu0 %v6899_v10 }
0x196e   : > { %6666 = vmatpush3.bf16.msra.mxu0 %v6665_v54 }
0x196f   : > { %6341 = vmatprep.subr.mxu0 %v6901_v13 }
0x1a24   : > { %v2959_v56 = vpop.f32.mrb[20].mxu0 }
0x1a25   : > { %v2960_v57 = vadd.f32 %v5690_v55, %v2959_v56  ;;  %v6278_v58 = vpop.f32.mrb[21].mxu0 }
0x1a26   : > { %v7939_v58 = vld [vmem:[%s8538_s9 + $0x8] sm:$0xf] }
0x1a27   : > { %v5692_v33 = vmul.f32 -1.442695, %v2960_v57 }
0x1a29   : > { %6851 = vpow2.f32 %v5692_v33 }
0x1a33   : > { %v6852_v60 = vpop.eup %6851 }
0x1a34   : > { %v2966_v61 = vadd.f32 1.0, %v6852_v60 }
0x1a36   : > { %6853 = vrcp.f32 %v2966_v61  ;;  %v3193_v61 = vrot.slane %v7939_v58, %v7206_v45 }
0x1a40   : > { %v6854_v3 = vpop.eup %6853 }
0x1a41   : > { %v2969_v4 = vmul.f32 %v6854_v3, %v2960_v57 }
0x1a43   : > { %6312 = vmatmul.mubr.f32.vlgmr.msra.gmra.mrb[22].mxu0 %v2969_v4 }
0x1a44   : > { %6343 = vmatprep.mubr.msk.f32.mxu0 %vm8610_vm1, %v6901_v13 }
0x1b16   : > { %v3058_v7 = vpop.f32.mrb[22].mxu0 }
0x1b17   : > { %v3059_v8 = vadd.f32 %v5709_v6, %v3058_v7  ;;  %v6313_v0 = vpop.f32.mrb[23].mxu0 }
0x1b19   : > { %v3062_v2 = vmul.f32 0.5, %v3059_v8 }
0x1b1b   : > { %v7858_v9 = vadd.f32 %v3062_v2, %v7764_v63 }
0x1b1d   : > { %v3066_v46 = vsel %vm8639_vm10, %v7858_v9, 0.0 }
0x1b1e   : > { %3067 = vadd.xlane.f32.xlu1 %v3066_v46 }
0x1b2f   : > { %3090 = vrot.lane.b32.xlu1 %v7764_v63, %s8647_s12  ;;  %v5714_v63 = vld [vmem:[%s8537_s8 + $0x70] sm:$0xff] }
0x1b30   : > { %v6671_v19 = vpack.c.bf16 %v5715_v18, %v5714_v63 }
0x1b32   : > { %6672 = vmatpush3.bf16.msra.mxu1 %v6671_v19 }
0x1b33   : > { %6673 = vmatprep.subr.bf16.mxu1 %v6899_v10 }
0x1b36   : > { %6675 = vmatpush3.bf16.msra.mxu1 %v6674_v23 }
0x1b37   : > { %6676 = vmatprep.subr.bf16.mxu1 %v6899_v10 }
0x1b3a   : > { %6678 = vmatpush3.bf16.msra.mxu1 %v6677_v48 }
0x1b3b   : > { %6679 = vmatprep.subr.bf16.mxu1 %v6899_v10 }
0x1b3e   : > { %6681 = vmatpush3.bf16.msra.mxu1 %v6680_v39 }
0x1b3f   : > { %6682 = vmatprep.subr.bf16.mxu1 %v6899_v10 }
0x1b42   : > { %6684 = vmatpush3.bf16.msra.mxu1 %v6683_v34 }
0x1b43   : > { %6356 = vmatprep.subr.mxu1 %v6901_v13 }
0x1bab   : > { %v3068_v11 = vpop.xlane.xlu1 %3067 }
0x1bac   : > { %v3069_v53 = vmul.f32 0.03125, %v3068_v11 }
0x1bae   : > { %v3070_v12 = vsub.f32 %v7858_v9, %v3069_v53 }
0x1baf   : > { %v3091_v49 = vpop.permute.xlu1 %3090 }
0x1bb0   : > { %v3071_v14 = vmul.f32 %v3070_v12, %v3070_v12 }
0x1bb2   : > { %v3072_v41 = vsel %vm8648_vm14, %v3071_v14, 0.0  ;;  %vm8649_vm14 = vcmask 523264  }
0x1bb3   : > { %3073 = vadd.xlane.f32.xlu0 %v3072_v41 }
0x1c40   : > { %v3074_v35 = vpop.xlane.xlu0 %3073 }
0x1c41   : > { %v3075_v37 = vmul.f32 0.03125, %v3074_v35 }
0x1c43   : > { %v3076_v62 = vadd.f32 1e-05, %v3075_v37 }
0x1c45   : > { %6855 = vrsqrt.f32 %v3076_v62 }
0x1c4f   : > { %v6856_v38 = vpop.eup %6855 }
0x1c50   : > { %v3078_v42 = vmul.f32 %v6856_v38, %v3070_v12 }
0x1c52   : > { %v3083_v43 = vmul.f32 %v5710_v40, %v3078_v42 }
0x1c54   : > { %v3088_v47 = vadd.f32 %v5711_v30, %v3083_v43 }
0x1c56   : > { %v3093_v50 = vsel %vm8639_vm10, %v3088_v47, %v3091_v49 }
0x1c57   : > { %v3094_v51 = vsel %vm8649_vm14, %v3093_v50, %v7186_v36  ;;  %v7932_v36 = vld [vmem:[%s8538_s9 + $0xc] sm:$0xf]  ;;  %vm8657_vm14 = vcmask 48128  }
0x1c58   : > { %6339 = vmatmul.mubr.msk.f32.vlgmr.msra.gmra.mrb[22].mxu1 %vm8650_vm13, %v3094_v51  ;;  %v3198_v57 = vrot.slane %v7932_v36, %v7206_v45  ;;  %v3515_v46 = vrot.slane %v7932_v36, %v7255_v59  ;;  %vm8655_vm13 = vcmask 39936  }
0x1c59   : > { %6358 = vmatprep.mubr.msk.f32.mxu1 %vm8610_vm1, %v6901_v13  ;;  %vm8656_vm10 = vmmov %vm8655_vm13 }
0x1d2b   : > { %v3182_v54 = vpop.f32.mrb[22].mxu1 }
0x1d2c   : > { %v7923_v55 = vadd.f32 %v5724_v52, %v3182_v54  ;;  %v6340_v56 = vpop.f32.mrb[23].mxu1 }
0x1d2d   : > { %v3506_v56 = vrot.slane %v7939_v58, %v7255_v59 }
0x1d2e   : > { %3339 = vrot.lane.b32.xlu1 %v7923_v55, %s8651_s14  ;;  %3201 = vrot.lane.b32.xlu0 %v7923_v55, %s8647_s12  ;;  %v3199_v60 = vadd.f32 %v3198_v57, %v7923_v55  ;;  %v3194_v4 = vadd.f32 %v3193_v61, %v7923_v55  ;;  %s8652_s12 = smov 121   ;;  %s8664_s14 = smov 16  }
0x1da0   : > { %v3202_v33 = vpop.permute.xlu0 %3201  ;;  %v3340_v3 = vpop.permute.xlu1 %3339 }
0x1da1   : > { %6342 = vmatpush3.xpose.msk.msra.mxu0 %vm8612_vm4, %v3202_v33 }
0x1da2   : > { %6346 = vmatprep.subr.mxu0 %v6901_v13 }
0x1da4   : > { %6344 = vmatmul.mubr.msk.f32.vlgmr.msra.gmra.mrb[24].mxu0 %vm8612_vm4, %v3199_v60 }
0x1da5   : > { %6347 = vmatpush3.xpose.msk.msra.mxu0 %vm8612_vm4, %v3340_v3  ;;  %6348 = vmatprep.mubr.msk.f32.mxu0 %vm8610_vm1, %v6901_v13 }
0x1da6   : > { %6351 = vmatprep.subr.mxu0 %v6901_v13 }
0x1da8   : > { %6349 = vmatmul.mubr.msk.f32.vlgmr.msra.gmra.mrb[26].mxu0 %vm8612_vm4, %v3194_v4 }
0x1da9   : > { %6353 = vmatprep.mubr.msk.f32.mxu0 %vm8610_vm1, %v6901_v13 }
0x1e77   : > { %v3274_v6 = vpop.f32.mrb[24].mxu0 }
0x1e78   : > { %3296 = vrot.lane.b32.xlu0 %v3274_v6, %s8635_s28  ;;  %3279 = vrot.lane.b32.xlu1 %v3274_v6, %s8652_s12  ;;  %v6345_v7 = vpop.f32.mrb[25].mxu0  ;;  %v3282_v2 = vrot.slane %v3274_v6, 1 }
0x1e7b   : > { %v3412_v8 = vpop.f32.mrb[26].mxu0 }
0x1e7c   : > { %3304 = vrot.lane.b32.xlu0 %v3274_v6, %s8627_s16  ;;  %3288 = vrot.lane.b32.xlu1 %v3274_v6, %s8653_s11  ;;  %v6350_v0 = vpop.f32.mrb[27].mxu0 }
0x1e80   : > { %3312 = vrot.lane.b32.xlu0 %v3274_v6, %s8628_s29  ;;  %3291 = vrot.lane.b32.xlu1 %v3282_v2, %s8654_s21 }
0x1e84   : > { %3299 = vrot.lane.b32.xlu1 %v3282_v2, %s8633_s24  ;;  %3283 = vrot.lane.b32.xlu0 %v3282_v2, %s8634_s26 }
0x1e88   : > { %3307 = vrot.lane.b32.xlu1 %v3282_v2, %s8629_s27  ;;  %3320 = vrot.lane.b32.xlu0 %v3274_v6, %s8636_s25 }
0x1e8c   : > { %3315 = vrot.lane.b32.xlu1 %v3282_v2, %s8626_s23  ;;  %3328 = vrot.lane.b32.xlu0 %v3274_v6, %s8637_s17 }
0x1e90   : > { %3323 = vrot.lane.b32.xlu1 %v3282_v2, %s8630_s30 }
0x1e94   : > { %3517 = vrot.lane.b32.xlu1 %v3515_v46, %s8632_s22 }
0x1e98   : > { %3524 = vrot.lane.b32.xlu1 %v7923_v55, %s8631_s20 }
0x1eea   : > { %v3297_v11 = vpop.permute.xlu0 %3296  ;;  %v3280_v53 = vpop.permute.xlu1 %3279 }
0x1eeb   : > { %v3286_v63 = vsel %vm928_vm6, %v3280_v53, 0.0  ;;  %v3302_v23 = vsel %vm939_vm7, %v3297_v11, 0.0 }
0x1eee   : > { %v3305_v12 = vpop.permute.xlu0 %3304  ;;  %v3289_v14 = vpop.permute.xlu1 %3288 }
0x1eef   : > { %v3294_v22 = vsel %vm8607_vm5, %v3289_v14, 0.0  ;;  %v3310_v26 = vsel %vm8608_vm8, %v3305_v12, 0.0 }
0x1ef2   : > { %v3313_v41 = vpop.permute.xlu0 %3312  ;;  %v3292_v15 = vpop.permute.xlu1 %3291 }
0x1ef3   : > { %v3295_v25 = vsel %vm939_vm7, %v3294_v22, %v3292_v15  ;;  %v3318_v39 = vsel %vm8655_vm13, %v3313_v41, 0.0  ;;  %vm8668_vm13 = vcmask 31744  }
0x1ef6   : > { %v3300_v16 = vpop.permute.xlu1 %3299  ;;  %v3284_v17 = vpop.permute.xlu0 %3283 }
0x1ef7   : > { %v3287_v19 = vsel %vm8607_vm5, %v3286_v63, %v3284_v17  ;;  %v3303_v27 = vsel %vm8608_vm8, %v3302_v23, %v3300_v16  ;;  %vm8658_vm5 = vmmov %vm8657_vm14  ;;  %vm8659_vm8 = vcmask 56320   ;;  %v3839_v16 = vrot.slane %v7932_v36, %v7331_v1 }
0x1ef8   : > { %v3332_v48 = vsel %vm8609_vm9, %v3287_v19, %v3295_v25  ;;  %vm8660_vm9 = vmmov %vm8659_vm8 }
0x1ef9   : > { %v3333_v34 = vsel %vm983_vm11, %v3332_v48, %v3303_v27 }
0x1efa   : > { %v3308_v18 = vpop.permute.xlu1 %3307  ;;  %v3321_v20 = vpop.permute.xlu0 %3320 }
0x1efb   : > { %v3311_v31 = vsel %vm8656_vm10, %v3310_v26, %v3308_v18  ;;  %v3326_v62 = vsel %vm8658_vm5, %v3321_v20, 0.0  ;;  %vm8665_vm5 = vcmask 15360   ;;  %vm8669_vm10 = vmmov %vm8668_vm13 }
0x1efc   : > { %v3334_v37 = vsel %vm985_vm12, %v3333_v34, %v3311_v31 }
0x1efe   : > { %v3316_v28 = vpop.permute.xlu1 %3315  ;;  %v3329_v35 = vpop.permute.xlu0 %3328 }
0x1eff   : > { %v3319_v32 = vsel %vm8657_vm14, %v3318_v39, %v3316_v28  ;;  %v3331_v30 = vsel %vm8660_vm9, %v3329_v35, 0.0  ;;  %vm8667_vm9 = vcmask 1040384   ;;  %vm8670_vm14 = vcmask 39936  }
0x1f00   : > { %v3335_v40 = vsel %vm987_vm15, %v3334_v37, %v3319_v32 }
0x1f02   : > { %v3324_v38 = vpop.permute.xlu1 %3323 }
0x1f03   : > { %v3327_v42 = vsel %vm8659_vm8, %v3326_v62, %v3324_v38  ;;  %vm8666_vm8 = vmmov %vm8665_vm5 }
0x1f04   : > { %v3336_v43 = vsel %vm989_vm3, %v3335_v40, %v3327_v42 }
0x1f05   : > { %v3337_v47 = vsel %vm991_vm2, %v3336_v43, %v3331_v30 }
0x1f06   : > { %v3518_v49 = vpop.permute.xlu1 %3517  ;;  %v3338_v50 = vsel %vm993_vm0, %v3337_v47, %v3274_v6 }
0x1f07   : > { %v3520_v51 = vadd.f32 %v3518_v49, %v7923_v55  ;;  %v3413_v52 = vadd.f32 %v3412_v8, %v3338_v50 }
0x1f09   : > { %3522 = vrot.lane.b32.xlu1 %v3520_v51, %s8661_s0  ;;  %v3416_v54 = vsel %vm8612_vm4, %v3413_v52, -inf }
0x1f0a   : > { %v3525_v57 = vpop.permute.xlu1 %3524  ;;  %3417 = vmax.xlane.f32.xlu0 %v3416_v54  ;;  %v3830_v54 = vrot.slane %v7939_v58, %v7331_v1 }
0x1f0b   : > { %6357 = vmatpush3.xpose.msk.msra.mxu1 %vm8612_vm4, %v3525_v57 }
0x1f0c   : > { %6366 = vmatprep.subr.mxu1 %v6901_v13 }
0x1f0d   : > { %3508 = vrot.lane.b32.xlu1 %v3506_v56, %s8632_s22 }
0x1f20   : > { %3427 = vrot.lane.b32.xlu0 %v7923_v55, %s8662_s1  ;;  %s8692_s1 = smov 72  }
0x1f7b   : > { %v3523_v33 = vpop.permute.xlu1 %3522 }
0x1f7c   : > { %6359 = vmatmul.mubr.msk.f32.vlgmr.msra.gmra.mrb[24].mxu1 %vm8612_vm4, %v3523_v33 }
0x1f7d   : > { %6368 = vmatprep.mubr.msk.f32.mxu1 %vm8610_vm1, %v6901_v13 }
0x1f7f   : > { %v3509_v60 = vpop.permute.xlu1 %3508 }
0x1f80   : > { %v3511_v61 = vadd.f32 %v3509_v60, %v7923_v55 }
0x1f82   : > { %3662 = vrot.lane.b32.xlu0 %v3511_v61, %s8661_s0  ;;  %s8691_s0 = smov 48  }
0x1f97   : > { %v3418_v3 = vpop.xlane.xlu0 %3417 }
0x1f98   : > { %v3419_v4 = vsub.f32 %v3413_v52, %v3418_v3 }
0x1f9a   : > { %v3420_v6 = vmul.f32 1.442695, %v3419_v4 }
0x1f9b   : > { %v3428_v7 = vpop.permute.xlu0 %3427 }
0x1f9c   : > { %6857 = vpow2.f32 %v3420_v6  ;;  %6352 = vmatpush3.msra.mxu0 %v3428_v7 }
0x1f9d   : > { %6361 = vmatprep.subr.mxu0 %v6901_v13 }
0x1fa6   : > { %v6858_v8 = vpop.eup %6857 }
0x1fa7   : > { %v3422_v0 = vsel %vm8612_vm4, %v6858_v8, 0.0 }
0x1fa8   : > { %3423 = vadd.xlane.f32.xlu1 %v3422_v0 }
0x1fb9   : > { %3664 = vrot.lane.b32.xlu1 %v7923_v55, %s8663_s13 }
0x1ff4   : > { %v3663_v12 = vpop.permute.xlu0 %3662 }
0x2035   : > { %v3424_v2 = vpop.xlane.xlu1 %3423 }
0x2036   : > { %6859 = vrcp.f32 %v3424_v2 }
0x2039   : > { %v3665_v53 = vpop.permute.xlu1 %3664 }
0x2040   : > { %v6860_v46 = vpop.eup %6859 }
0x2041   : > { %v3426_v11 = vmul.f32 %v6860_v46, %v6858_v8 }
0x2043   : > { %6354 = vmatmul.mubr.msk.f32.vlgmr.msra.gmra.mrb[28].mxu0 %vm8612_vm4, %v3426_v11 }
0x2044   : > { %6362 = vmatpush3.xpose.msk.msra.mxu0 %vm8612_vm4, %v3665_v53  ;;  %6363 = vmatprep.mubr.msk.f32.mxu0 %vm8610_vm1, %v6901_v13 }
0x2045   : > { %6371 = vmatprep.subr.mxu0 %v6901_v13 }
0x2047   : > { %6364 = vmatmul.mubr.msk.f32.vlgmr.msra.gmra.mrb[30].mxu0 %vm8612_vm4, %v3663_v12 }
0x2048   : > { %6373 = vmatprep.mubr.msk.f32.mxu0 %vm8610_vm1, %v6901_v13 }
0x204f   : > { %v3596_v14 = vpop.f32.mrb[24].mxu1 }
0x2050   : > { %v6360_v41 = vpop.f32.mrb[25].mxu1  ;;  %3601 = vrot.lane.b32.xlu0 %v3596_v14, %s8652_s12  ;;  %v3604_v15 = vrot.slane %v3596_v14, 1 }
0x2052   : > { %3613 = vrot.lane.b32.xlu1 %v3604_v15, %s8654_s21 }
0x2054   : > { %3610 = vrot.lane.b32.xlu0 %v3596_v14, %s8653_s11 }
0x2056   : > { %3621 = vrot.lane.b32.xlu1 %v3604_v15, %s8633_s24 }
0x2058   : > { %3605 = vrot.lane.b32.xlu0 %v3604_v15, %s8634_s26 }
0x205a   : > { %3629 = vrot.lane.b32.xlu1 %v3604_v15, %s8629_s27 }
0x205c   : > { %3618 = vrot.lane.b32.xlu0 %v3596_v14, %s8635_s28 }
0x205e   : > { %3637 = vrot.lane.b32.xlu1 %v3604_v15, %s8626_s23 }
0x2060   : > { %3626 = vrot.lane.b32.xlu0 %v3596_v14, %s8627_s16 }
0x2062   : > { %3645 = vrot.lane.b32.xlu1 %v3604_v15, %s8630_s30 }
0x2064   : > { %3634 = vrot.lane.b32.xlu0 %v3596_v14, %s8628_s29 }
0x2066   : > { %3841 = vrot.lane.b32.xlu1 %v3839_v16, %s8664_s14 }
0x2068   : > { %3642 = vrot.lane.b32.xlu0 %v3596_v14, %s8636_s25 }
0x206a   : > { %3848 = vrot.lane.b32.xlu1 %v7923_v55, %s8664_s14 }
0x206c   : > { %3650 = vrot.lane.b32.xlu0 %v3596_v14, %s8637_s17 }
0x20c2   : > { %v3602_v17 = vpop.permute.xlu0 %3601 }
0x20c3   : > { %v3608_v22 = vsel %vm928_vm6, %v3602_v17, 0.0 }
0x20c4   : > { %v3614_v63 = vpop.permute.xlu1 %3613 }
0x20c6   : > { %v3611_v18 = vpop.permute.xlu0 %3610 }
0x20c7   : > { %v3616_v23 = vsel %vm8665_vm5, %v3611_v18, 0.0  ;;  %vm8671_vm5 = vmmov %vm8670_vm14 }
0x20c8   : > { %v3622_v19 = vpop.permute.xlu1 %3621  ;;  %v3617_v48 = vsel %vm939_vm7, %v3616_v23, %v3614_v63 }
0x20ca   : > { %v3606_v20 = vpop.permute.xlu0 %3605 }
0x20cb   : > { %v3609_v26 = vsel %vm8666_vm8, %v3608_v22, %v3606_v20  ;;  %vm8672_vm8 = vcmask 48128   ;;  %v4163_v22 = vrot.slane %v7932_v36, %v7404_v5 }
0x20cc   : > { %v3630_v25 = vpop.permute.xlu1 %3629  ;;  %v3654_v39 = vsel %vm8667_vm9, %v3609_v26, %v3617_v48  ;;  %vm8673_vm9 = vmmov %vm8672_vm8 }
0x20ce   : > { %v3619_v27 = vpop.permute.xlu0 %3618 }
0x20cf   : > { %v3624_v28 = vsel %vm939_vm7, %v3619_v27, 0.0 }
0x20d0   : > { %v3625_v31 = vsel %vm8668_vm13, %v3624_v28, %v3622_v19  ;;  %v3638_v32 = vpop.permute.xlu1 %3637  ;;  %vm8675_vm13 = vcmask 56320  }
0x20d1   : > { %v3655_v34 = vsel %vm983_vm11, %v3654_v39, %v3625_v31 }
0x20d2   : > { %v3627_v35 = vpop.permute.xlu0 %3626 }
0x20d3   : > { %v3632_v37 = vsel %vm8669_vm10, %v3627_v35, 0.0  ;;  %vm8676_vm10 = vmmov %vm8675_vm13 }
0x20d4   : > { %v3633_v62 = vsel %vm8670_vm14, %v3632_v37, %v3630_v25  ;;  %v3646_v38 = vpop.permute.xlu1 %3645  ;;  %vm8679_vm14 = vcmask 15360  }
0x20d5   : > { %v3656_v40 = vsel %vm985_vm12, %v3655_v34, %v3633_v62 }
0x20d6   : > { %v3635_v42 = vpop.permute.xlu0 %3634 }
0x20d7   : > { %v3640_v30 = vsel %vm8671_vm5, %v3635_v42, 0.0  ;;  %vm8680_vm5 = vmmov %vm8679_vm14 }
0x20d8   : > { %v3641_v43 = vsel %vm8672_vm8, %v3640_v30, %v3638_v32  ;;  %v3842_v47 = vpop.permute.xlu1 %3841  ;;  %vm8681_vm8 = vcmask 1040384  }
0x20d9   : > { %v3657_v49 = vsel %vm987_vm15, %v3656_v40, %v3641_v43  ;;  %v3844_v50 = vadd.f32 %v3842_v47, %v7923_v55 }
0x20da   : > { %v3643_v51 = vpop.permute.xlu0 %3642 }
0x20db   : > { %v3648_v52 = vsel %vm8673_vm9, %v3643_v51, 0.0  ;;  %3846 = vrot.lane.b32.xlu1 %v3844_v50, %s8674_s15  ;;  %vm8682_vm9 = vcmask 31744  }
0x20dc   : > { %v3649_v56 = vsel %vm8675_vm13, %v3648_v52, %v3646_v38  ;;  %v3849_v57 = vpop.permute.xlu1 %3848  ;;  %vm8683_vm13 = vmmov %vm8682_vm9 }
0x20dd   : > { %6372 = vmatpush3.xpose.msk.msra.mxu0 %vm8612_vm4, %v3849_v57  ;;  %v3658_v33 = vsel %vm989_vm3, %v3657_v49, %v3649_v56 }
0x20de   : > { %v3651_v60 = vpop.permute.xlu0 %3650  ;;  %6381 = vmatprep.subr.mxu0 %v6901_v13 }
0x20df   : > { %v3653_v61 = vsel %vm8676_vm10, %v3651_v60, 0.0  ;;  %3832 = vrot.lane.b32.xlu1 %v3830_v54, %s8664_s14  ;;  %vm8684_vm10 = vcmask 39936  }
0x20e0   : > { %v3659_v3 = vsel %vm991_vm2, %v3658_v33, %v3653_v61 }
0x20e1   : > { %v3660_v4 = vsel %vm993_vm0, %v3659_v3, %v3596_v14 }
0x2116   : > { %v8065_v6 = vpop.f32.mrb[28].mxu0 }
0x2117   : > { %v6355_v7 = vpop.f32.mrb[29].mxu0 }
0x211a   : > { %v3736_v8 = vpop.f32.mrb[30].mxu0 }
0x211b   : > { %v3737_v0 = vadd.f32 %v3736_v8, %v3660_v4  ;;  %v6365_v2 = vpop.f32.mrb[31].mxu0 }
0x211d   : > { %v3740_v46 = vsel %vm8612_vm4, %v3737_v0, -inf }
0x211e   : > { %3741 = vmax.xlane.f32.xlu0 %v3740_v46 }
0x2134   : > { %3751 = vrot.lane.b32.xlu0 %v7923_v55, %s8677_s18 }
0x214d   : > { %v3847_v11 = vpop.permute.xlu1 %3846 }
0x214e   : > { %6374 = vmatmul.mubr.msk.f32.vlgmr.msra.gmra.mrb[32].mxu0 %vm8612_vm4, %v3847_v11 }
0x214f   : > { %6383 = vmatprep.mubr.msk.f32.mxu0 %vm8610_vm1, %v6901_v13 }
0x2151   : > { %v3833_v53 = vpop.permute.xlu1 %3832 }
0x2152   : > { %v3835_v12 = vadd.f32 %v3833_v53, %v7923_v55 }
0x2154   : > { %3986 = vrot.lane.b32.xlu0 %v3835_v12, %s8674_s15  ;;  %s8729_s15 = sld [smem:[#allocation9_spill]] }
0x21ab   : > { %v3742_v14 = vpop.xlane.xlu0 %3741 }
0x21ac   : > { %v3743_v41 = vsub.f32 %v3737_v0, %v3742_v14  ;;  %v4154_v0 = vrot.slane %v7939_v58, %v7404_v5 }
0x21ae   : > { %v3744_v15 = vmul.f32 1.442695, %v3743_v41 }
0x21af   : > { %v3752_v16 = vpop.permute.xlu0 %3751 }
0x21b0   : > { %6861 = vpow2.f32 %v3744_v15  ;;  %6367 = vmatpush3.msra.mxu1 %v3752_v16 }
0x21b1   : > { %6376 = vmatprep.subr.mxu1 %v6901_v13 }
0x21ba   : > { %v6862_v17 = vpop.eup %6861 }
0x21bb   : > { %v3746_v63 = vsel %vm8612_vm4, %v6862_v17, 0.0 }
0x21bc   : > { %3747 = vadd.xlane.f32.xlu1 %v3746_v63 }
0x21c6   : > { %v3987_v36 = vpop.permute.xlu0 %3986 }
0x21cd   : > { %3988 = vrot.lane.b32.xlu1 %v7923_v55, %s8678_s19  ;;  %s8721_s19 = sld [smem:[#allocation6_spill]] }
0x2221   : > { %v8079_v18 = vpop.f32.mrb[32].mxu0 }
0x2222   : > { %3925 = vrot.lane.b32.xlu0 %v8079_v18, %s8652_s12  ;;  %v6375_v19 = vpop.f32.mrb[33].mxu0  ;;  %v3928_v20 = vrot.slane %v8079_v18, 1 }
0x2224   : > { %3937 = vrot.lane.b32.xlu1 %v3928_v20, %s8654_s21 }
0x2226   : > { %3934 = vrot.lane.b32.xlu0 %v8079_v18, %s8653_s11 }
0x2228   : > { %3945 = vrot.lane.b32.xlu1 %v3928_v20, %s8633_s24 }
0x222a   : > { %3929 = vrot.lane.b32.xlu0 %v3928_v20, %s8634_s26 }
0x222c   : > { %3953 = vrot.lane.b32.xlu1 %v3928_v20, %s8629_s27 }
0x222e   : > { %3942 = vrot.lane.b32.xlu0 %v8079_v18, %s8635_s28 }
0x2230   : > { %3961 = vrot.lane.b32.xlu1 %v3928_v20, %s8626_s23 }
0x2232   : > { %3950 = vrot.lane.b32.xlu0 %v8079_v18, %s8627_s16 }
0x2234   : > { %3969 = vrot.lane.b32.xlu1 %v3928_v20, %s8630_s30 }
0x2236   : > { %3958 = vrot.lane.b32.xlu0 %v8079_v18, %s8628_s29 }
0x2238   : > { %4165 = vrot.lane.b32.xlu1 %v4163_v22, %s8631_s20 }
0x223a   : > { %3966 = vrot.lane.b32.xlu0 %v8079_v18, %s8636_s25 }
0x223c   : > { %4172 = vrot.lane.b32.xlu1 %v7923_v55, %s8632_s22 }
0x223e   : > { %3974 = vrot.lane.b32.xlu0 %v8079_v18, %s8637_s17 }
0x2249   : > { %v3748_v23 = vpop.xlane.xlu1 %3747 }
0x224a   : > { %6863 = vrcp.f32 %v3748_v23 }
0x224d   : > { %v3989_v27 = vpop.permute.xlu1 %3988 }
0x2254   : > { %v6864_v25 = vpop.eup %6863 }
0x2255   : > { %v3750_v26 = vmul.f32 %v6864_v25, %v6862_v17 }
0x2257   : > { %6369 = vmatmul.mubr.msk.f32.vlgmr.msra.gmra.mrb[26].mxu1 %vm8612_vm4, %v3750_v26 }
0x2258   : > { %6377 = vmatpush3.xpose.msk.msra.mxu1 %vm8612_vm4, %v3989_v27  ;;  %6378 = vmatprep.mubr.msk.f32.mxu1 %vm8610_vm1, %v6901_v13 }
0x2259   : > { %6386 = vmatprep.subr.mxu1 %v6901_v13 }
0x225b   : > { %6379 = vmatmul.mubr.msk.f32.vlgmr.msra.gmra.mrb[28].mxu1 %vm8612_vm4, %v3987_v36 }
0x225c   : > { %6388 = vmatprep.mubr.msk.f32.mxu1 %vm8610_vm1, %v6901_v13 }
0x2294   : > { %v3926_v48 = vpop.permute.xlu0 %3925 }
0x2295   : > { %v3932_v34 = vsel %vm928_vm6, %v3926_v48, 0.0 }
0x2296   : > { %v3938_v28 = vpop.permute.xlu1 %3937 }
0x2298   : > { %v3935_v39 = vpop.permute.xlu0 %3934 }
0x2299   : > { %v3940_v35 = vsel %vm8679_vm14, %v3935_v39, 0.0  ;;  %vm8685_vm14 = vmmov %vm8684_vm10 }
0x229a   : > { %v3946_v31 = vpop.permute.xlu1 %3945  ;;  %v3941_v40 = vsel %vm939_vm7, %v3940_v35, %v3938_v28 }
0x229c   : > { %v3930_v32 = vpop.permute.xlu0 %3929 }
0x229d   : > { %v3933_v62 = vsel %vm8680_vm5, %v3932_v34, %v3930_v32  ;;  %vm8686_vm5 = vcmask 48128  }
0x229e   : > { %v3954_v37 = vpop.permute.xlu1 %3953  ;;  %v3978_v30 = vsel %vm8681_vm8, %v3933_v62, %v3941_v40  ;;  %vm8687_vm8 = vmmov %vm8686_vm5 }
0x22a0   : > { %v3943_v38 = vpop.permute.xlu0 %3942 }
0x22a1   : > { %v3948_v42 = vsel %vm939_vm7, %v3943_v38, 0.0 }
0x22a2   : > { %v3949_v43 = vsel %vm8682_vm9, %v3948_v42, %v3946_v31  ;;  %v3962_v47 = vpop.permute.xlu1 %3961  ;;  %vm8689_vm9 = vcmask 56320  }
0x22a3   : > { %v3979_v49 = vsel %vm983_vm11, %v3978_v30, %v3949_v43 }
0x22a4   : > { %v3951_v50 = vpop.permute.xlu0 %3950 }
0x22a5   : > { %v3956_v51 = vsel %vm8683_vm13, %v3951_v50, 0.0  ;;  %vm8690_vm13 = vmmov %vm8689_vm9 }
0x22a6   : > { %v3957_v52 = vsel %vm8684_vm10, %v3956_v51, %v3954_v37  ;;  %v3970_v54 = vpop.permute.xlu1 %3969  ;;  %vm8693_vm10 = vcmask 15360  }
0x22a7   : > { %v3980_v56 = vsel %vm985_vm12, %v3979_v49, %v3957_v52 }
0x22a8   : > { %v3959_v57 = vpop.permute.xlu0 %3958 }
0x22a9   : > { %v3964_v33 = vsel %vm8685_vm14, %v3959_v57, 0.0  ;;  %vm8694_vm14 = vcmask 31744  }
0x22aa   : > { %v3965_v60 = vsel %vm8686_vm5, %v3964_v33, %v3962_v47  ;;  %v4166_v61 = vpop.permute.xlu1 %4165  ;;  %vm8695_vm5 = vmmov %vm8693_vm10 }
0x22ab   : > { %v3981_v3 = vsel %vm987_vm15, %v3980_v56, %v3965_v60  ;;  %v4168_v4 = vadd.f32 %v4166_v61, %v7923_v55 }
0x22ac   : > { %v3967_v7 = vpop.permute.xlu0 %3966 }
0x22ad   : > { %v3972_v8 = vsel %vm8687_vm8, %v3967_v7, 0.0  ;;  %4170 = vrot.lane.b32.xlu1 %v4168_v4, %s8688_s7  ;;  %vm8696_vm8 = vcmask 39936  }
0x22ae   : > { %v3973_v2 = vsel %vm8689_vm9, %v3972_v8, %v3970_v54  ;;  %v4173_v46 = vpop.permute.xlu1 %4172  ;;  %vm8697_vm9 = vmmov %vm8694_vm14 }
0x22af   : > { %6387 = vmatpush3.xpose.msk.msra.mxu1 %vm8612_vm4, %v4173_v46  ;;  %v3982_v11 = vsel %vm989_vm3, %v3981_v3, %v3973_v2 }
0x22b0   : > { %v3975_v53 = vpop.permute.xlu0 %3974  ;;  %6396 = vmatprep.subr.mxu1 %v6901_v13 }
0x22b1   : > { %v3977_v12 = vsel %vm8690_vm13, %v3975_v53, 0.0  ;;  %4156 = vrot.lane.b32.xlu1 %v4154_v0, %s8631_s20  ;;  %vm8698_vm13 = vcmask 48128  }
0x22b2   : > { %v3983_v14 = vsel %vm991_vm2, %v3982_v11, %v3977_v12 }
0x22b3   : > { %v3984_v41 = vsel %vm993_vm0, %v3983_v14, %v8079_v18 }
0x231f   : > { %v4171_v58 = vpop.permute.xlu1 %4170 }
0x2320   : > { %6389 = vmatmul.mubr.msk.f32.vlgmr.msra.gmra.mrb[30].mxu1 %vm8612_vm4, %v4171_v58 }
0x2321   : > { %6398 = vmatprep.mubr.msk.f32.mxu1 %vm8610_vm1, %v6901_v13 }
0x2323   : > { %v4157_v22 = vpop.permute.xlu1 %4156 }
0x2324   : > { %v4159_v18 = vadd.f32 %v4157_v22, %v7923_v55 }
0x232a   : > { %v8146_v15 = vpop.f32.mrb[26].mxu1 }
0x232b   : > { %v6370_v16 = vpop.f32.mrb[27].mxu1 }
0x232e   : > { %v4060_v17 = vpop.f32.mrb[28].mxu1 }
0x232f   : > { %v4061_v63 = vadd.f32 %v4060_v17, %v3984_v41  ;;  %v6380_v19 = vpop.f32.mrb[29].mxu1 }
0x2331   : > { %v4064_v20 = vsel %vm8612_vm4, %v4061_v63, -inf }
0x2332   : > { %4065 = vmax.xlane.f32.xlu0 %v4064_v20 }
0x2348   : > { %4075 = vrot.lane.b32.xlu0 %v7923_v55, %s8691_s0  ;;  %s8731_s0 = sld [smem:[#allocation3_spill]] }
0x234c   : > { %4310 = vrot.lane.b32.xlu0 %v4159_v18, %s8688_s7 }
0x23bf   : > { %v4066_v23 = vpop.xlane.xlu0 %4065 }
0x23c0   : > { %v4067_v25 = vsub.f32 %v4061_v63, %v4066_v23 }
0x23c2   : > { %v4068_v26 = vmul.f32 1.442695, %v4067_v25 }
0x23c3   : > { %v4076_v27 = vpop.permute.xlu0 %4075 }
0x23c4   : > { %6865 = vpow2.f32 %v4068_v26  ;;  %6382 = vmatpush3.msra.mxu0 %v4076_v27 }
0x23c5   : > { %6391 = vmatprep.subr.mxu0 %v6901_v13 }
0x23c7   : > { %v4311_v62 = vpop.permute.xlu0 %4310 }
0x23ce   : > { %v6866_v36 = vpop.eup %6865 }
0x23cf   : > { %v4070_v48 = vsel %vm8612_vm4, %v6866_v36, 0.0 }
0x23d0   : > { %4071 = vadd.xlane.f32.xlu1 %v4070_v48 }
0x23e1   : > { %4312 = vrot.lane.b32.xlu1 %v7923_v55, %s8692_s1 }
0x23f3   : > { %v8157_v28 = vpop.f32.mrb[30].mxu1 }
0x23f4   : > { %v6390_v39 = vpop.f32.mrb[31].mxu1  ;;  %4249 = vrot.lane.b32.xlu0 %v8157_v28, %s8652_s12  ;;  %v4252_v31 = vrot.slane %v8157_v28, 1  ;;  %s8736_s12 = sld [smem:[#allocation11_spill]] }
0x23f6   : > { %4261 = vrot.lane.b32.xlu1 %v4252_v31, %s8654_s21 }
0x23f8   : > { %4258 = vrot.lane.b32.xlu0 %v8157_v28, %s8653_s11 }
0x23fa   : > { %4269 = vrot.lane.b32.xlu1 %v4252_v31, %s8633_s24  ;;  %s8706_s24 = smov 40  }
0x23fc   : > { %4253 = vrot.lane.b32.xlu0 %v4252_v31, %s8634_s26 }
0x23fe   : > { %4277 = vrot.lane.b32.xlu1 %v4252_v31, %s8629_s27 }
0x2400   : > { %4266 = vrot.lane.b32.xlu0 %v8157_v28, %s8635_s28  ;;  %s8734_s28 = sld [smem:[#allocation10_spill]] }
0x2402   : > { %4285 = vrot.lane.b32.xlu1 %v4252_v31, %s8626_s23 }
0x2404   : > { %4274 = vrot.lane.b32.xlu0 %v8157_v28, %s8627_s16  ;;  %s8724_s16 = sld [smem:[#allocation7_spill]] }
0x2406   : > { %4293 = vrot.lane.b32.xlu1 %v4252_v31, %s8630_s30 }
0x2408   : > { %4282 = vrot.lane.b32.xlu0 %v8157_v28, %s8628_s29  ;;  %s8735_s29 = sshll.u32 %s8731_s0, 3 }
0x2409   : > { %s489_s11 = scalar_lea.vmem %s8736_s12, %s8735_s29 }
0x240c   : > { %4290 = vrot.lane.b32.xlu0 %v8157_v28, %s8636_s25  ;;  %s8732_s25 = sld [smem:[#allocation8_spill]] }
0x2410   : > { %4298 = vrot.lane.b32.xlu0 %v8157_v28, %s8637_s17 }
0x245d   : > { %v4072_v32 = vpop.xlane.xlu1 %4071 }
0x245e   : > { %6867 = vrcp.f32 %v4072_v32 }
0x2461   : > { %v4313_v37 = vpop.permute.xlu1 %4312 }
0x2466   : > { %v4250_v38 = vpop.permute.xlu0 %4249 }
0x2467   : > { %v4256_v57 = vsel %vm928_vm6, %v4250_v38, 0.0  ;;  %vm8701_vm6 = vmmov %vm8698_vm13  ;;  %v5751_v38 = vld [vmem:[%s8534_s5 + $0x98] sm:$0xff] }
0x2468   : > { %v6868_v34 = vpop.eup %6867  ;;  %v4262_v43 = vpop.permute.xlu1 %4261 }
0x2469   : > { %v4074_v35 = vmul.f32 %v6868_v34, %v6866_v36 }
0x246a   : > { %v4259_v40 = vpop.permute.xlu0 %4258 }
0x246b   : > { %6384 = vmatmul.mubr.msk.f32.vlgmr.msra.gmra.mrb[34].mxu0 %vm8612_vm4, %v4074_v35  ;;  %v4264_v33 = vsel %vm8693_vm10, %v4259_v40, 0.0  ;;  %vm8702_vm10 = vcmask 56320   ;;  %v5748_v35 = vld [vmem:[%s8534_s5 + $0x80] sm:$0xff] }
0x246c   : > { %6392 = vmatpush3.xpose.msk.msra.mxu0 %vm8612_vm4, %v4313_v37  ;;  %6393 = vmatprep.mubr.msk.f32.mxu0 %vm8610_vm1, %v6901_v13  ;;  %v4270_v49 = vpop.permute.xlu1 %4269  ;;  %v4265_v8 = vsel %vm939_vm7, %v4264_v33, %v4262_v43  ;;  %v5750_v37 = vld [vmem:[%s8534_s5 + $0x90] sm:$0xff] }
0x246d   : > { %6685 = vmatprep.subr.bf16.mxu0 %v6899_v10  ;;  %v6689_v40 = vpack.c.bf16 %v5751_v38, %v5750_v37 }
0x246e   : > { %v4254_v42 = vpop.permute.xlu0 %4253 }
0x246f   : > { %6394 = vmatmul.mubr.msk.f32.vlgmr.msra.gmra.mrb[36].mxu0 %vm8612_vm4, %v4311_v62  ;;  %v4257_v61 = vsel %vm8695_vm5, %v4256_v57, %v4254_v42  ;;  %vm8700_vm4 = vcmask 1040384   ;;  %vm8708_vm5 = vmmov 0  }
0x2470   : > { %6409 = vmatprep.mubr.msk.f32.mxu0 %vm8610_vm1, %v6901_v13  ;;  %v4278_v51 = vpop.permute.xlu1 %4277  ;;  %vm8699_vm1 = vmmov %vm8696_vm8  ;;  %v4302_v46 = vsel %vm8700_vm4, %v4257_v61, %v4265_v8 }
0x2472   : > { %v4267_v30 = vpop.permute.xlu0 %4266 }
0x2473   : > { %v4272_v56 = vsel %vm939_vm7, %v4267_v30, 0.0 }
0x2474   : > { %v4286_v54 = vpop.permute.xlu1 %4285  ;;  %v4273_v4 = vsel %vm8697_vm9, %v4272_v56, %v4270_v49  ;;  %vm8710_vm9 = vcmask 130048   ;;  %v5753_v56 = vld [vmem:[%s8532_s3 + $0x9] ss:$0 sm:$0xff] }
0x2475   : > { %v4303_v12 = vsel %vm983_vm11, %v4302_v46, %v4273_v4 }
0x2476   : > { %v4275_v47 = vpop.permute.xlu0 %4274 }
0x2477   : > { %v4280_v60 = vsel %vm8694_vm14, %v4275_v47, 0.0  ;;  %vm8703_vm14 = vmmov %vm8702_vm10 }
0x2478   : > { %v4281_v0 = vsel %vm8699_vm1, %v4280_v60, %v4278_v51  ;;  %v4294_v11 = vpop.permute.xlu1 %4293  ;;  %vm8704_vm1 = vcmask 64512  }
0x2479   : > { %v4304_v41 = vsel %vm985_vm12, %v4303_v12, %v4281_v0  ;;  %vm8705_vm4 = vmmov %vm8704_vm1  ;;  %v5756_v0 = vld [vmem:[%s8534_s5 + $0xa0] sm:$0xff]  ;;  %v5759_v12 = vld [vmem:[%s8534_s5 + $0xb8] sm:$0xff] }
0x247a   : > { %v4283_v50 = vpop.permute.xlu0 %4282  ;;  %vm8707_vm7 = vmmov %vm8704_vm1 }
0x247b   : > { %v4288_v3 = vsel %vm8696_vm8, %v4283_v50, 0.0  ;;  %vm8709_vm8 = vmmov %vm8704_vm1 }
0x247c   : > { %v4289_v53 = vsel %vm8701_vm6, %v4288_v3, %v4286_v54  ;;  %vm8712_vm6 = vcmask 261120  }
0x247d   : > { %v4305_v16 = vsel %vm987_vm15, %v4304_v41, %v4289_v53  ;;  %v5758_v53 = vld [vmem:[%s8534_s5 + $0xb0] sm:$0xff] }
0x247e   : > { %v4291_v52 = vpop.permute.xlu0 %4290  ;;  %v5764_v41 = vld [vmem:[%s8534_s5 + $0xd0] sm:$0xff] }
0x247f   : > { %v4296_v7 = vsel %vm8698_vm13, %v4291_v52, 0.0  ;;  %vm8711_vm13 = vcmask 195584  }
0x2480   : > { %v4297_v14 = vsel %vm8702_vm10, %v4296_v7, %v4294_v11  ;;  %vm8713_vm10 = vmmov %vm8712_vm6  ;;  %v5763_v11 = vld [vmem:[%s8534_s5 + $0xc8] sm:$0xff] }
0x2481   : > { %v4306_v17 = vsel %vm989_vm3, %v4305_v16, %v4297_v14  ;;  %v6695_v16 = vpack.c.bf16 %v5759_v12, %v5758_v53 }
0x2482   : > { %v4299_v2 = vpop.permute.xlu0 %4298 }
0x2483   : > { %v4301_v58 = vsel %vm8703_vm14, %v4299_v2, 0.0  ;;  %vm8714_vm14 = vmmov %vm8712_vm6  ;;  %v5762_v2 = vld [vmem:[%s8534_s5 + $0xc0] sm:$0xff] }
0x2484   : > { %v4307_v19 = vsel %vm991_vm2, %v4306_v17, %v4301_v58  ;;  %v6698_v14 = vpack.c.bf16 %v5763_v11, %v5762_v2  ;;  %v5765_v58 = vld [vmem:[%s8534_s5 + $0xd8] sm:$0xff] }
0x2485   : > { %v4308_v22 = vsel %vm993_vm0, %v4307_v19, %v8157_v28  ;;  %v6701_v17 = vpack.c.bf16 %v5765_v58, %v5764_v41 }
0x253e   : > { %v4147_v63 = vpop.f32.mrb[34].mxu0 }
0x253f   : > { %v6385_v20 = vpop.f32.mrb[35].mxu0 }
0x2542   : > { %v4384_v18 = vpop.f32.mrb[36].mxu0 }
0x2543   : > { %v4385_v23 = vadd.f32 %v4384_v18, %v4308_v22  ;;  %v6395_v25 = vpop.f32.mrb[37].mxu0  ;;  %v5754_v18 = vld [vmem:[%s8531_s2 + $0xe] ss:$0 sm:$0xff] }
0x2544   : > { %v5755_v25 = vld [vmem:[%s8531_s2 + $0xf] ss:$0 sm:$0xff] }
0x2545   : > { %v4388_v26 = vsel %vm8704_vm1, %v4385_v23, -inf  ;;  %vm8715_vm1 = vmmov %vm8712_vm6 }
0x2546   : > { %4389 = vmax.xlane.f32.xlu1 %v4388_v26 }
0x2557   : > { %4476 = vrot.lane.b32.xlu1 %v8146_v15, %s8632_s22 }
0x255b   : > { %4480 = vrot.lane.b32.xlu1 %v4147_v63, %s8664_s14 }
0x25d3   : > { %v4390_v27 = vpop.xlane.xlu1 %4389 }
0x25d4   : > { %v4391_v36 = vsub.f32 %v4385_v23, %v4390_v27 }
0x25d6   : > { %v4392_v48 = vmul.f32 1.442695, %v4391_v36  ;;  %v5773_v36 = vld [vmem:[%s8534_s5 + $0xe0] sm:$0xff] }
0x25d7   : > { %v4477_v43 = vpop.permute.xlu1 %4476 }
0x25d8   : > { %6869 = vpow2.f32 %v4392_v48  ;;  %v4487_v49 = vsel %vm8709_vm8, %v8065_v6, %v4477_v43  ;;  %v5774_v48 = vld [vmem:[%s8534_s5 + $0xe8] sm:$0xff]  ;;  %vm8723_vm8 = vmmov %vm8715_vm1 }
0x25db   : > { %v4481_v47 = vpop.permute.xlu1 %4480 }
0x25dc   : > { %v4488_v50 = vsel %vm8710_vm9, %v4487_v49, %v4481_v47  ;;  %v5769_v47 = vld [vmem:[%s8539_s10 + $0x8] sm:$0x7f]  ;;  %vm8725_vm9 = vcmask 1040384  }
0x25e2   : > { %v6870_v39 = vpop.eup %6869 }
0x25e3   : > { %v4394_v31 = vsel %vm8705_vm4, %v6870_v39, 0.0  ;;  %vm8716_vm4 = vmmov %vm8715_vm1 }
0x25e4   : > { %4395 = vadd.xlane.f32.xlu0 %v4394_v31  ;;  %v6704_v31 = vpack.c.bf16 %v5774_v48, %v5773_v36 }
0x25fa   : > { %4399 = vrot.lane.b32.xlu0 %v7923_v55, %s8706_s24  ;;  %v5749_v55 = vld [vmem:[%s8534_s5 + $0x88] sm:$0xff] }
0x25fb   : > { %v6686_v62 = vpack.c.bf16 %v5749_v55, %v5748_v35 }
0x25fd   : > { %6687 = vmatpush3.bf16.msra.mxu0 %v6686_v62 }
0x25fe   : > { %6688 = vmatprep.subr.bf16.mxu0 %v6899_v10 }
0x2601   : > { %6690 = vmatpush3.bf16.msra.mxu0 %v6689_v40 }
0x2602   : > { %6697 = vmatprep.subr.bf16.mxu0 %v6899_v10 }
0x2671   : > { %v4396_v28 = vpop.xlane.xlu0 %4395 }
0x2672   : > { %6871 = vrcp.f32 %v4396_v28  ;;  %v5776_v28 = vld [vmem:[%s8534_s5 + $0xf8] sm:$0xff] }
0x2675   : > { %v4400_v32 = vpop.permute.xlu0 %4399 }
0x2676   : > { %6397 = vmatpush3.msra.mxu1 %v4400_v32 }
0x2677   : > { %6691 = vmatprep.subr.bf16.mxu1 %v6899_v10 }
0x267c   : > { %v6872_v15 = vpop.eup %6871 }
0x267d   : > { %v4398_v34 = vmul.f32 %v6872_v15, %v6870_v39  ;;  %v5775_v39 = vld [vmem:[%s8534_s5 + $0xf0] sm:$0xff]  ;;  %v5766_v15 = vld [vmem:[%s8532_s3 + $0xb] ss:$0 sm:$0xff] }
0x267e   : > { %v6707_v32 = vpack.c.bf16 %v5776_v28, %v5775_v39 }
0x267f   : > { %6399 = vmatmul.mubr.msk.f32.vlgmr.msra.gmra.mrb[32].mxu1 %vm8707_vm7, %v4398_v34  ;;  %vm8722_vm7 = vmmov %vm8715_vm1 }
0x2680   : > { %6420 = vmatprep.mubr.msk.f32.mxu1 %vm8708_vm5, %v6901_v13 }
0x2752   : > { %v4471_v42 = vpop.f32.mrb[32].mxu1 }
0x2753   : > { %4484 = vrot.lane.b32.xlu0 %v4471_v42, %s8631_s20  ;;  %v6400_v30 = vpop.f32.mrb[33].mxu1 }
0x2754   : > { %v5760_v30 = vld [vmem:[%s8532_s3 + $0xa] ss:$0 sm:$0xff] }
0x27c5   : > { %v4485_v51 = vpop.permute.xlu0 %4484 }
0x27c6   : > { %v4489_v52 = vsel %vm8711_vm13, %v4488_v50, %v4485_v51  ;;  %v4786_v51 = vrot.slane %v5769_v47, %v7255_v59  ;;  %vm8726_vm13 = vmmov %vm8725_vm9 }
0x27c7   : > { %6410 = vmatmul.mubr.msk.f32.vlgmr.msra.gmra.mrb[38].mxu0 %vm8712_vm6, %v4489_v52  ;;  %v4799_v52 = vrot.slane %v5769_v47, %v7331_v1  ;;  %vm8727_vm6 = vmmov %vm8715_vm1 }
0x27c8   : > { %6431 = vmatprep.mubr.msk.f32.mxu0 %vm8708_vm5, %v6901_v13  ;;  %6699 = vmatpush3.bf16.msra.mxu0 %v6698_v14 }
0x27c9   : > { %6700 = vmatprep.subr.bf16.mxu0 %v6899_v10 }
0x27cc   : > { %6702 = vmatpush3.bf16.msra.mxu0 %v6701_v17 }
0x27cd   : > { %6709 = vmatprep.subr.bf16.mxu0 %v6899_v10 }
0x289a   : > { %v4564_v54 = vpop.f32.mrb[38].mxu0 }
0x289b   : > { %v4568_v57 = vadd.f32 %v4564_v54, %v7858_v9  ;;  %v6411_v33 = vpop.f32.mrb[39].mxu0  ;;  %v5757_v9 = vld [vmem:[%s8534_s5 + $0xa8] sm:$0xff] }
0x289c   : > { %v6692_v46 = vpack.c.bf16 %v5757_v9, %v5756_v0 }
0x289d   : > { %v8246_v60 = vadd.f32 %v5753_v56, %v4568_v57  ;;  %v4812_v56 = vrot.slane %v5769_v47, %v7404_v5  ;;  %v4825_v57 = vrot.slane %v5769_v47, %v2480_v21  ;;  %v4851_v5 = vrot.slane %v5769_v47, %v2506_v29 }
0x289e   : > { %6693 = vmatpush3.bf16.msra.mxu1 %v6692_v46 }
0x289f   : > { %v4577_v6 = vsel %vm8713_vm10, %v8246_v60, 0.0  ;;  %6694 = vmatprep.subr.bf16.mxu1 %v6899_v10  ;;  %vm8728_vm10 = vmmov %vm8715_vm1 }
0x28a0   : > { %4578 = vadd.xlane.f32.xlu1 %v4577_v6 }
0x28a2   : > { %6696 = vmatpush3.bf16.msra.mxu1 %v6695_v16 }
0x28a3   : > { %6703 = vmatprep.subr.bf16.mxu1 %v6899_v10 }
0x292d   : > { %v4579_v61 = vpop.xlane.xlu1 %4578 }
0x292e   : > { %v4580_v3 = vmul.f32 0.03125, %v4579_v61  ;;  %v4780_v61 = vrot.slane %v5769_v47, %v7206_v45 }
0x2930   : > { %v4581_v4 = vsub.f32 %v8246_v60, %v4580_v3  ;;  %v4838_v3 = vrot.slane %v5769_v47, %v2493_v24 }
0x2932   : > { %v4582_v7 = vmul.f32 %v4581_v4, %v4581_v4 }
0x2934   : > { %v4583_v8 = vsel %vm8714_vm14, %v4582_v7, 0.0 }
0x2935   : > { %4584 = vadd.xlane.f32.xlu0 %v4583_v8 }
0x29c2   : > { %v4585_v63 = vpop.xlane.xlu0 %4584 }
0x29c3   : > { %v4586_v19 = vmul.f32 0.03125, %v4585_v63 }
0x29c5   : > { %v4587_v20 = vadd.f32 1e-05, %v4586_v19 }
0x29c7   : > { %6873 = vrsqrt.f32 %v4587_v20 }
0x29d1   : > { %v6874_v22 = vpop.eup %6873 }
0x29d2   : > { %v4589_v23 = vmul.f32 %v6874_v22, %v4581_v4 }
0x29d4   : > { %v4594_v26 = vmul.f32 %v5754_v18, %v4589_v23 }
0x29d6   : > { %v4599_v27 = vadd.f32 %v5755_v25, %v4594_v26 }
0x29d8   : > { %6421 = vmatmul.mubr.msk.f32.vlgmr.msra.gmra.mrb[34].mxu1 %vm8715_vm1, %v4599_v27  ;;  %6432 = vmatmul.mubr.msk.f32.vlgmr.msra.gmra.mrb[40].mxu0 %vm8716_vm4, %v4599_v27 }
0x29d9   : > { %6442 = vmatprep.mubr.msk.f32.mxu1 %vm8708_vm5, %v6901_v13  ;;  %6453 = vmatprep.mubr.msk.f32.mxu0 %vm8708_vm5, %v6901_v13 }
0x29da   : > { %6705 = vmatpush3.bf16.msra.mxu1 %v6704_v31 }
0x29db   : > { %6706 = vmatprep.subr.bf16.mxu1 %v6899_v10 }
0x29de   : > { %6708 = vmatpush3.bf16.msra.mxu1 %v6707_v32  ;;  %v5770_v32 = vld [vmem:[%s8532_s3 + $0xc] ss:$0 sm:$0xff] }
0x29df   : > { %6715 = vmatprep.subr.bf16.mxu1 %v6899_v10 }
0x2aab   : > { %v4679_v34 = vpop.f32.mrb[34].mxu1  ;;  %v4759_v35 = vpop.f32.mrb[40].mxu0 }
0x2aac   : > { %v4760_v55 = vadd.f32 %v5766_v15, %v4759_v35  ;;  %v6422_v37 = vpop.f32.mrb[35].mxu1  ;;  %v6433_v62 = vpop.f32.mrb[41].mxu0  ;;  %v4680_v43 = vadd.f32 %v5760_v30, %v4679_v34  ;;  %v5771_v34 = vld [vmem:[%s8532_s3 + $0xd] ss:$0 sm:$0xff] }
0x2aae   : > { %v5768_v38 = vmul.f32 -1.442695, %v4760_v55 }
0x2ab0   : > { %6875 = vpow2.f32 %v5768_v38 }
0x2aba   : > { %v6876_v40 = vpop.eup %6875 }
0x2abb   : > { %v4766_v42 = vadd.f32 1.0, %v6876_v40 }
0x2abd   : > { %6877 = vrcp.f32 %v4766_v42 }
0x2ac7   : > { %v6878_v49 = vpop.eup %6877 }
0x2ac8   : > { %v4769_v50 = vmul.f32 %v6878_v49, %v4680_v43  ;;  %v5778_v43 = vld [vmem:[%s8532_s3 + $0xe] ss:$0 sm:$0xff] }
0x2aca   : > { %v4771_v54 = vrot.slane %v4769_v50, 5 }
0x2acc   : > { %v4773_v33 = vsel %vm985_vm12, 0.0, %v4771_v54  ;;  %v4774_v6 = vsel %vm985_vm12, %v4771_v54, 0.0 }
0x2acd   : > { %v4787_v4 = vmul.f32 %v4786_v51, %v4773_v33  ;;  %v4788_v7 = vmul.f32 %v4786_v51, %v4774_v6  ;;  %v4800_v59 = vmul.f32 %v4799_v52, %v4773_v33  ;;  %v4801_v8 = vmul.f32 %v4799_v52, %v4774_v6 }
0x2ace   : > { %v4814_v1 = vmul.f32 %v4812_v56, %v4774_v6  ;;  %v4827_v0 = vmul.f32 %v4825_v57, %v4774_v6  ;;  %v4813_v9 = vmul.f32 %v4812_v56, %v4773_v33  ;;  %v4781_v12 = vmul.f32 %v4780_v61, %v4773_v33  ;;  %v5783_v61 = vld [vmem:[%s8535_s6 + $0x70] sm:$0xff] }
0x2acf   : > { %v4791_v21 = vrot.slane %v4787_v4, 1  ;;  %v4792_v2 = vrot.slane %v4788_v7, 1  ;;  %v4804_v46 = vrot.slane %v4800_v59, 2  ;;  %v4805_v11 = vrot.slane %v4801_v8, 2  ;;  %v5784_v4 = vld [vmem:[%s8535_s6 + $0x78] sm:$0xff] }
0x2ad0   : > { %v4818_v53 = vrot.slane %v4814_v1, 3  ;;  %v4826_v45 = vmul.f32 %v4825_v57, %v4773_v33  ;;  %v4817_v24 = vrot.slane %v4813_v9, 3  ;;  %v4839_v41 = vmul.f32 %v4838_v3, %v4773_v33  ;;  %v5779_v9 = vld [vmem:[%s8531_s2 + $0x10] ss:$0 sm:$0xff] }
0x2ad1   : > { %v4793_v14 = vsel %vm993_vm0, %v4791_v21, %v4792_v2  ;;  %v4840_v58 = vmul.f32 %v4838_v3, %v4774_v6  ;;  %v4831_v17 = vrot.slane %v4827_v0, 4  ;;  %v4806_v63 = vsel %vm991_vm2, %v4804_v46, %v4805_v11  ;;  %v5780_v21 = vld [vmem:[%s8531_s2 + $0x11] ss:$0 sm:$0xff]  ;;  %v5788_v11 = vld [vmem:[%s8721_s19 + $0x180] sm:$0xff] }
0x2ad2   : > { %v4795_v16 = vadd.f32 %v4793_v14, %v4781_v12  ;;  %v4830_v19 = vrot.slane %v4826_v45, 4  ;;  %v4852_v20 = vmul.f32 %v4851_v5, %v4773_v33  ;;  %v4853_v44 = vmul.f32 %v4851_v5, %v4774_v6  ;;  %v5781_v6 = vld [vmem:[%s8535_s6 + $0x60] sm:$0xff]  ;;  %v5790_v45 = vld [vmem:[%s8721_s19 + $0x190] sm:$0xff]  ;;  %v5791_v14 = vld [vmem:[%s8721_s19 + $0x198] sm:$0xff] }
0x2ad3   : > { %v4819_v22 = vsel %vm989_vm3, %v4817_v24, %v4818_v53  ;;  %v4843_v18 = vrot.slane %v4839_v41, 5  ;;  %v4844_v23 = vrot.slane %v4840_v58, 5  ;;  %vm8717_vm3 = vmmov %vm8715_vm1  ;;  %v6713_v7 = vpack.c.bf16 %v5784_v4, %v5783_v61  ;;  %v5789_v53 = vld [vmem:[%s8721_s19 + $0x188] sm:$0xff]  ;;  %v5792_v41 = vld [vmem:[%s8721_s19 + $0x1a0] sm:$0xff] }
0x2ad4   : > { %v4808_v29 = vadd.f32 %v4806_v63, %v4795_v16  ;;  %v4832_v26 = vsel %vm987_vm15, %v4830_v19, %v4831_v17  ;;  %v4856_v27 = vrot.slane %v4852_v20, 6  ;;  %v4857_v36 = vrot.slane %v4853_v44, 6  ;;  %vm8720_vm15 = vmmov %vm8715_vm1  ;;  %v5793_v58 = vld [vmem:[%s8721_s19 + $0x1a8] sm:$0xff]  ;;  %v5794_v17 = vld [vmem:[%s8721_s19 + $0x1b0] sm:$0xff] }
0x2ad5   : > { %v4845_v39 = vsel %vm985_vm12, %v4843_v18, %v4844_v23  ;;  %vm8719_vm12 = vmmov %vm8715_vm1  ;;  %v6716_v12 = vpack.c.bf16 %v5789_v53, %v5788_v11  ;;  %v6719_v24 = vpack.c.bf16 %v5791_v14, %v5790_v45  ;;  %v6722_v16 = vpack.c.bf16 %v5793_v58, %v5792_v41  ;;  %v5795_v63 = vld [vmem:[%s8721_s19 + $0x1b8] sm:$0xff]  ;;  %v5796_v20 = vld [vmem:[%s8721_s19 + $0x1c0] sm:$0xff] }
0x2ad6   : > { %v4821_v25 = vadd.f32 %v4819_v22, %v4808_v29  ;;  %v4858_v28 = vsel %vm983_vm11, %v4856_v27, %v4857_v36  ;;  %vm8718_vm11 = vmmov %vm8715_vm1  ;;  %v6725_v19 = vpack.c.bf16 %v5795_v63, %v5794_v17  ;;  %v5797_v44 = vld [vmem:[%s8721_s19 + $0x1c8] sm:$0xff]  ;;  %v5798_v22 = vld [vmem:[%s8721_s19 + $0x1d0] sm:$0xff] }
0x2ad7   : > { %v6728_v29 = vpack.c.bf16 %v5797_v44, %v5796_v20  ;;  %v5799_v18 = vld [vmem:[%s8721_s19 + $0x1d8] sm:$0xff]  ;;  %v5802_v36 = vld [vmem:[%s8721_s19 + $0x1f0] sm:$0xff]  ;;  %v5814_v58 = vld [vmem:[%s8724_s16 + $0x40] sm:$0xff] }
0x2ad8   : > { %v4834_v48 = vadd.f32 %v4832_v26, %v4821_v25  ;;  %v6731_v23 = vpack.c.bf16 %v5799_v18, %v5798_v22  ;;  %v5800_v25 = vld [vmem:[%s8721_s19 + $0x1e0] sm:$0xff]  ;;  %v5801_v26 = vld [vmem:[%s8721_s19 + $0x1e8] sm:$0xff]  ;;  %v5215_v61 = vld [vmem:[%s8724_s16 + $0x18] sm:$0xff] }
0x2ad9   : > { %v6734_v27 = vpack.c.bf16 %v5801_v26, %v5800_v25  ;;  %v5812_v45 = vld [vmem:[%s8724_s16 + $0x38] sm:$0xff]  ;;  %v5816_v20 = vld [vmem:[%s8724_s16 + $0x50] sm:$0xff]  ;;  %v5454_v18 = vld [vmem:[%s8729_s15] sm:$0xff] }
0x2ada   : > { %v4847_v31 = vadd.f32 %v4845_v39, %v4834_v48  ;;  %v5803_v48 = vld [vmem:[%s8721_s19 + $0x1f8] sm:$0xff] }
0x2adb   : > { %v6737_v39 = vpack.c.bf16 %v5803_v48, %v5802_v36  ;;  %v5817_v44 = vld [vmem:[%s8724_s16 + $0x58] sm:$0xff]  ;;  %v5456_v48 = vld [vmem:[%s8729_s15 + $0x10] sm:$0xff] }
0x2adc   : > { %v4860_v15 = vadd.f32 %v4858_v28, %v4847_v31  ;;  %v5785_v31 = vld [vmem:[%s8533_s4 + $0x5] ss:$0 sm:$0xff]  ;;  %v6755_v22 = vpack.c.bf16 %v5817_v44, %v5816_v20 }
0x2ade   : > { %v4866_v35 = vmul.f32 %v5770_v32, %v4860_v15 }
0x2ae0   : > { %v4872_v55 = vadd.f32 %v5771_v34, %v4866_v35 }
0x2ae2   : > { %v5772_v37 = vmul.f32 -1.442695, %v4872_v55 }
0x2ae4   : > { %6879 = vpow2.f32 %v5772_v37 }
0x2aee   : > { %v6880_v62 = vpop.eup %6879 }
0x2aef   : > { %v4876_v38 = vadd.f32 1.0, %v6880_v62 }
0x2af1   : > { %6881 = vrcp.f32 %v4876_v38  ;;  %v5804_v38 = vld [vmem:[%s8532_s3 + $0xf] ss:$0 sm:$0xff] }
0x2afb   : > { %v6882_v40 = vpop.eup %6881 }
0x2afc   : > { %v4879_v42 = vmul.f32 %v6882_v40, %v4872_v55 }
0x2afe   : > { %6443 = vmatmul.mubr.msk.f32.vlgmr.msra.gmra.mrb[36].mxu1 %vm8717_vm3, %v4879_v42 }
0x2aff   : > { %6488 = vmatprep.mubr.msk.f32.mxu1 %vm8708_vm5, %v6901_v13  ;;  %6717 = vmatpush3.bf16.msra.mxu1 %v6716_v12  ;;  %v5811_v12 = vld [vmem:[%s8724_s16 + $0x30] sm:$0xff] }
0x2b00   : > { %6718 = vmatprep.subr.bf16.mxu1 %v6899_v10  ;;  %v6749_v41 = vpack.c.bf16 %v5812_v45, %v5811_v12 }
0x2b03   : > { %6720 = vmatpush3.bf16.msra.mxu1 %v6719_v24 }
0x2b04   : > { %6721 = vmatprep.subr.bf16.mxu1 %v6899_v10 }
0x2b07   : > { %6723 = vmatpush3.bf16.msra.mxu1 %v6722_v16  ;;  %v5815_v16 = vld [vmem:[%s8724_s16 + $0x48] sm:$0xff] }
0x2b08   : > { %6724 = vmatprep.subr.bf16.mxu1 %v6899_v10 }
0x2b0b   : > { %6726 = vmatpush3.bf16.msra.mxu1 %v6725_v19  ;;  %v6752_v19 = vpack.c.bf16 %v5815_v16, %v5814_v58 }
0x2b0c   : > { %6727 = vmatprep.subr.bf16.mxu1 %v6899_v10 }
0x2b0f   : > { %6729 = vmatpush3.bf16.msra.mxu1 %v6728_v29 }
0x2b10   : > { %6730 = vmatprep.subr.bf16.mxu1 %v6899_v10 }
0x2b13   : > { %6732 = vmatpush3.bf16.msra.mxu1 %v6731_v23  ;;  %v5455_v23 = vld [vmem:[%s8729_s15 + $0x8] sm:$0xff] }
0x2b14   : > { %6733 = vmatprep.subr.bf16.mxu1 %v6899_v10 }
0x2b17   : > { %6735 = vmatpush3.bf16.msra.mxu1 %v6734_v27  ;;  %v6758_v27 = vpack.c.bf16 %v5455_v23, %v5454_v18 }
0x2b18   : > { %6736 = vmatprep.subr.bf16.mxu1 %v6899_v10 }
0x2b1b   : > { %6738 = vmatpush3.bf16.msra.mxu1 %v6737_v39  ;;  %v5457_v39 = vld [vmem:[%s8729_s15 + $0x18] sm:$0xff] }
0x2bd1   : > { %v4954_v30 = vpop.f32.mrb[36].mxu1 }
0x2bd2   : > { %v4958_v47 = vadd.f32 %v4954_v30, %v8246_v60  ;;  %v6444_v49 = vpop.f32.mrb[37].mxu1  ;;  %v5782_v60 = vld [vmem:[%s8535_s6 + $0x68] sm:$0xff] }
0x2bd3   : > { %v6710_v3 = vpack.c.bf16 %v5782_v60, %v5781_v6  ;;  %v5213_v6 = vld [vmem:[%s8724_s16 + $0x8] sm:$0xff] }
0x2bd4   : > { %v8346_v50 = vadd.f32 %v5778_v43, %v4958_v47 }
0x2bd5   : > { %6711 = vmatpush3.bf16.msra.mxu0 %v6710_v3 }
0x2bd6   : > { %v4967_v51 = vsel %vm8718_vm11, %v8346_v50, 0.0  ;;  %6712 = vmatprep.subr.bf16.mxu0 %v6899_v10 }
0x2bd7   : > { %4968 = vadd.xlane.f32.xlu0 %v4967_v51 }
0x2bd9   : > { %6714 = vmatpush3.bf16.msra.mxu0 %v6713_v7 }
0x2bda   : > { %6739 = vmatprep.subr.bf16.mxu0 %v6899_v10 }
0x2c64   : > { %v4969_v52 = vpop.xlane.xlu0 %4968 }
0x2c65   : > { %v4970_v54 = vmul.f32 0.03125, %v4969_v52 }
0x2c67   : > { %v4971_v56 = vsub.f32 %v8346_v50, %v4970_v54 }
0x2c69   : > { %v4972_v57 = vmul.f32 %v4971_v56, %v4971_v56 }
0x2c6b   : > { %v4973_v33 = vsel %vm8719_vm12, %v4972_v57, 0.0 }
0x2c6c   : > { %4974 = vadd.xlane.f32.xlu0 %v4973_v33  ;;  %v5212_v33 = vld [vmem:[%s8724_s16] sm:$0xff] }
0x2c6d   : > { %v6740_v60 = vpack.c.bf16 %v5213_v6, %v5212_v33 }
0x2cf9   : > { %v4975_v59 = vpop.xlane.xlu0 %4974 }
0x2cfa   : > { %v4976_v8 = vmul.f32 0.03125, %v4975_v59 }
0x2cfc   : > { %v4977_v1 = vadd.f32 1e-05, %v4976_v8 }
0x2cfe   : > { %6883 = vrsqrt.f32 %v4977_v1  ;;  %v5805_v1 = vld [vmem:[%s8531_s2 + $0x12] ss:$0 sm:$0xff] }
0x2d08   : > { %v6884_v0 = vpop.eup %6883 }
0x2d09   : > { %v4979_v5 = vmul.f32 %v6884_v0, %v4971_v56 }
0x2d0b   : > { %v4984_v2 = vmul.f32 %v5779_v9, %v4979_v5  ;;  %v5806_v9 = vld [vmem:[%s8531_s2 + $0x13] ss:$0 sm:$0xff] }
0x2d0d   : > { %v4989_v46 = vadd.f32 %v5780_v21, %v4984_v2  ;;  %v5809_v21 = vld [vmem:[%s8724_s16 + $0x20] sm:$0xff]  ;;  %v5810_v2 = vld [vmem:[%s8724_s16 + $0x28] sm:$0xff] }
0x2d0e   : > { %v6746_v53 = vpack.c.bf16 %v5810_v2, %v5809_v21 }
0x2d0f   : > { %6454 = vmatmul.mubr.msk.f32.vlgmr.msra.gmra.mrb[42].mxu0 %vm8720_vm15, %v4989_v46 }
0x2d10   : > { %6499 = vmatprep.mubr.msk.f32.mxu0 %vm8708_vm5, %v6901_v13  ;;  %6741 = vmatpush3.bf16.msra.mxu0 %v6740_v60 }
0x2d11   : > { %6742 = vmatprep.subr.bf16.mxu0 %v6899_v10 }
0x2de2   : > { %v5069_v28 = vpop.f32.mrb[42].mxu0 }
0x2de3   : > { %v5070_v32 = vadd.f32 %v5785_v31, %v5069_v28  ;;  %v6455_v15 = vpop.f32.mrb[43].mxu0  ;;  %v6761_v31 = vpack.c.bf16 %v5457_v39, %v5456_v48  ;;  %v5807_v28 = vld [vmem:[%s8732_s25] ss:$0 sm:$0xff] }
0x2de5   : > { %v5787_v34 = vmul.f32 -1.442695, %v5070_v32 }
0x2de7   : > { %6885 = vpow2.f32 %v5787_v34 }
0x2df1   : > { %v6886_v35 = vpop.eup %6885 }
0x2df2   : > { %v5076_v55 = vadd.f32 1.0, %v6886_v35 }
0x2df4   : > { %6887 = vrcp.f32 %v5076_v55 }
0x2dfe   : > { %v6888_v37 = vpop.eup %6887 }
0x2dff   : > { %v5079_v62 = vmul.f32 %v6888_v37, %v5070_v32 }
0x2e01   : > { %6489 = vmatmul.mubr.f32.vlgmr.msra.gmra.mrb[38].mxu1 %v5079_v62 }
0x2ed4   : > { %v5168_v40 = vpop.f32.mrb[38].mxu1 }
0x2ed5   : > { %v5169_v42 = vadd.f32 %v5804_v38, %v5168_v40  ;;  %v6490_v30 = vpop.f32.mrb[39].mxu1 }
0x2ed7   : > { %v5172_v43 = vmul.f32 0.5, %v5169_v42 }
0x2ed9   : > { %v5173_v47 = vadd.f32 %v5172_v43, %v8346_v50  ;;  %v5214_v50 = vld [vmem:[%s8724_s16 + $0x10] sm:$0xff] }
0x2eda   : > { %v6743_v3 = vpack.c.bf16 %v5215_v61, %v5214_v50 }
0x2edb   : > { %v5176_v49 = vsel %vm8722_vm7, %v5173_v47, 0.0 }
0x2edc   : > { %5177 = vadd.xlane.f32.xlu1 %v5176_v49  ;;  %6744 = vmatpush3.bf16.msra.mxu0 %v6743_v3 }
0x2edd   : > { %6745 = vmatprep.subr.bf16.mxu0 %v6899_v10 }
0x2f69   : > { %v5178_v51 = vpop.xlane.xlu1 %5177 }
0x2f6a   : > { %v5179_v52 = vmul.f32 0.03125, %v5178_v51 }
0x2f6c   : > { %v5180_v54 = vsub.f32 %v5173_v47, %v5179_v52 }
0x2f6e   : > { %v5181_v56 = vmul.f32 %v5180_v54, %v5180_v54 }
0x2f70   : > { %v5182_v57 = vsel %vm8723_vm8, %v5181_v56, 0.0 }
0x2f71   : > { %5183 = vadd.xlane.f32.xlu0 %v5182_v57 }
0x2ffe   : > { %v5184_v4 = vpop.xlane.xlu0 %5183 }
0x2fff   : > { %v5185_v7 = vmul.f32 0.03125, %v5184_v4 }
0x3001   : > { %v5186_v59 = vadd.f32 1e-05, %v5185_v7 }
0x3003   : > { %6889 = vrsqrt.f32 %v5186_v59 }
0x300d   : > { %v6890_v8 = vpop.eup %6889 }
0x300e   : > { %v5188_v0 = vmul.f32 %v6890_v8, %v5180_v54 }
0x3010   : > { %v5193_v5 = vmul.f32 %v5805_v1, %v5188_v0 }
0x3012   : > { %v5198_v46 = vadd.f32 %v5806_v9, %v5193_v5 }
0x3014   : > { %v5200_v11 = vrot.slane %v5198_v46, 7 }
0x3016   : > { %v5202_v14 = vsel %vm8725_vm9, 0.0, %v5200_v11  ;;  %v5203_v24 = vsel %vm8726_vm13, %v5200_v11, 0.0 }
0x3017   : > { %6500 = vmatmul.mubr.msk.f32.vlgmr.msra.gmra.mrb[44].mxu0 %vm8727_vm6, %v5202_v14  ;;  %v5296_v17 = vrot.slane %v5202_v14, 1  ;;  %v5297_v63 = vrot.slane %v5203_v24, 1  ;;  %v5377_v25 = vrot.slane %v5202_v14, 2  ;;  %v5378_v26 = vrot.slane %v5203_v24, 2 }
0x3018   : > { %6747 = vmatpush3.bf16.msra.mxu0 %v6746_v53  ;;  %6510 = vmatprep.mubr.msk.f32.mxu0 %vm8708_vm5, %v6901_v13 }
0x3019   : > { %6748 = vmatprep.subr.bf16.mxu0 %v6899_v10  ;;  %v5298_v29 = vsel %vm993_vm0, %v5296_v17, %v5297_v63  ;;  %v5379_v36 = vsel %vm991_vm2, %v5377_v25, %v5378_v26  ;;  %vm8730_vm0 = vmmov %vm8715_vm1 }
0x301a   : > { %vm8733_vm2 = vmmov %vm8730_vm0 }
0x301c   : > { %6750 = vmatpush3.bf16.msra.mxu0 %v6749_v41 }
0x301d   : > { %6751 = vmatprep.subr.bf16.mxu0 %v6899_v10 }
0x301f   : > { %6511 = vmatmul.mubr.msk.f32.vlgmr.msra.gmra.mrb[44].mxu0 %vm8728_vm10, %v5298_v29 }
0x3020   : > { %6753 = vmatpush3.bf16.msra.mxu0 %v6752_v19  ;;  %6521 = vmatprep.mubr.msk.f32.mxu0 %vm8708_vm5, %v6901_v13 }
0x3021   : > { %6754 = vmatprep.subr.bf16.mxu0 %v6899_v10 }
0x3024   : > { %6756 = vmatpush3.bf16.msra.mxu0 %v6755_v22 }
0x3025   : > { %6757 = vmatprep.subr.bf16.mxu0 %v6899_v10 }
0x3027   : > { %6522 = vmatmul.mubr.msk.f32.vlgmr.msra.gmra.mrb[44].mxu0 %vm8730_vm0, %v5379_v36 }
0x3028   : > { %6759 = vmatpush3.bf16.msra.mxu0 %v6758_v27  ;;  %6532 = vmatprep.mubr.msk.f32.mxu0 %vm8708_vm5, %v6901_v13  ;;  %vm8737_vm5 = vcmask 39936  }
0x3029   : > { %6760 = vmatprep.subr.bf16.mxu0 %v6899_v10  ;;  %v5819_v10 = vld [vmem:[%s8734_s28] ss:$0 sm:$0xff] }
0x302c   : > { %6762 = vmatpush3.bf16.msra.mxu0 %v6761_v31 }
0x30fa   : > { %v5448_v32 = vpop.f32.mrb[44].mxu0 }
0x30fb   : > { %v6763_v15 = vadd.f32 %v5807_v28, %v5448_v32  ;;  %v6523_v34 = vpop.f32.mrb[45].mxu0 }
0x30fd   : > { %v5453_v13 = vmax.f32 %v6763_v15, 0.0 }
0x30ff   : > { %6533 = vmatmul.mubr.msk.f32.vlgmr.msra.gmra.mrb[46].mxu0 %vm8733_vm2, %v5453_v13 }
0x31d2   : > { %v5534_v35 = vpop.f32.mrb[46].mxu0 }
0x31d3   : > { %v5535_v55 = vadd.f32 %v5819_v10, %v5534_v35  ;;  %v6534_v37 = vpop.f32.mrb[47].mxu0 }
0x31d5   : > { %5538 = vst.msk [vmem:[%s489_s11] sm:$0xff] %vm8737_vm5, %v5535_v55 }
0x31d6 PF: > { %s8738_s21 = sld [smem:[#allocation2_spill]] }
0x31dc   : > { %s25_s18 = sadd.s32 1, %s8738_s21  }
0x31dd   : > { %p22_p4 = scmp.ge.s32.totalorder %s25_s18, 4  }
0x31df   :  { %24 = sbr.rel (!%p22_p4) target bundleno = 9 (0x9), region = 130 }

</bundles_post_ra>
